<compile_context>
chip_gen: v7x
topology: tpu7x:2x2x1
jax: 0.10.0
libtpu: 0.0.40
codegen_flags: <defaults>
</compile_context>

<pallas_src>
import numpy as np
import jax
import jax.numpy as jnp
from jax import lax
from jax.experimental import pallas as pl
from jax.experimental.pallas import tpu as pltpu

F32 = jnp.float32


# ----------------------------------------------------------------------------
# Geometry + deterministic parameter init (mirrors the PyTorch module).
# ----------------------------------------------------------------------------
def cnn_to_fc(h_in, w_in, seq):
    h_out, w_out = h_in, w_in
    for (p, d, k, s) in seq:
        h_out = int((h_out + 2.0 * p - d * (k - 1) - 1) / s + 1)
        w_out = int((w_out + 2.0 * p - d * (k - 1) - 1) / s + 1)
    return h_out, w_out


def ortho_weights(shape, scale=1.0, rng=None):
    """Numpy port of ortho_init (2-D case, as used for the pi / v heads)."""
    shape = tuple(shape)
    if len(shape) == 2:
        flat_shape = (shape[1], shape[0])
    elif len(shape) == 4:
        flat_shape = (int(np.prod(shape[1:])), shape[0])
    else:
        raise NotImplementedError
    a = rng.normal(0.0, 1.0, flat_shape)
    u, _, v = np.linalg.svd(a, full_matrices=False)
    q = u if u.shape == flat_shape else v
    q = q.transpose().copy().reshape(shape)
    return (scale * q).astype(np.float32)


def init_params(h_size, w_size, out_size, seed=0):
    rng = np.random.RandomState(seed)
    h1, w1 = cnn_to_fc(h_size, w_size, [(0, 1, 4, 2)])
    h2, w2 = cnn_to_fc(h1, w1, [(0, 1, 3, 1)])
    flat = 64 * h2 * w2

    def uni(shape, fan_in):
        bound = 1.0 / np.sqrt(fan_in)
        return rng.uniform(-bound, bound, size=shape).astype(np.float32)

    params = {
        "conv1_w": uni((64, 1, 4, 4), 1 * 4 * 4),     # Conv2d(1, 64, 4, stride=2)
        "conv1_b": uni((64,), 1 * 4 * 4),
        "conv2_w": uni((64, 64, 3, 3), 64 * 3 * 3),   # Conv2d(64, 64, 3, stride=1)
        "conv2_b": uni((64,), 64 * 3 * 3),
        "fc_w":    uni((32, flat), flat),             # Linear(64*h2*w2, 32)
        "fc_b":    uni((32,), flat),
        "pi_w":    ortho_weights((out_size, 32), scale=0.01, rng=rng),
        "pi_b":    uni((out_size,), 32),
        "v_w":     ortho_weights((1, 32), scale=1.0, rng=rng),
        "v_b":     uni((1,), 32),
    }
    return {k: jnp.asarray(v) for k, v in params.items()}, (h2, w2)


# ----------------------------------------------------------------------------
# Fused Pallas forward.
# ----------------------------------------------------------------------------
def make_policy_forward(params, h_size, w_size, out_size, *,
                        batch_tile=None, max_batch_tile=128,
                        compute_dtype=jnp.bfloat16):
    """Build a jitted `states (N,1,H,W) -> (pi (N,out), v (N,1))` function running the
    whole PolicyCNNNet forward inside a single fused Pallas TPU kernel."""

    # -------- static geometry --------
    kh1, kw1, st1 = 4, 4, 2
    kh2, kw2 = 3, 3
    c1 = c2 = 64
    n_hidden = 32
    h1, w1 = cnn_to_fc(h_size, w_size, [(0, 1, kh1, st1)])
    h2, w2 = cnn_to_fc(h1, w1, [(0, 1, kh2, 1)])
    p1_pos = h1 * w1                          # conv1 output positions / sample
    patch1 = 1 * kh1 * kw1                    # conv1 im2col patch length (16)
    n_taps = kh2 * kw2                        # 9
    k_conv2 = n_taps * c1                     # 576 (K-packed conv2 reduction depth)
    k_fc = h2 * w2 * c2                       # 1600 (K-packed fc reduction depth)
    n_head = out_size + 1                     # pi logits + value
    head_pad = ((n_head + 127) // 128) * 128  # lane-dense fused head width
    max_shift = (kh2 - 1) * w1 + (kw2 - 1)    # largest conv2 row shift (in positions)

    if batch_tile is not None:
        assert batch_tile > 0 and batch_tile % 16 == 0, \
            "batch_tile must be a positive multiple of 16 (bf16 sublane packing)"

    # -------- one-time weight prep: transpose / K-pack / pad / cast --------
    # conv1: OIHW (64,1,4,4) -> (patch1, 64); patch order (kh, kw) since c_in == 1.
    w1m = jnp.asarray(params["conv1_w"]).reshape(c1, patch1).T.astype(compute_dtype)
    b1v = jnp.asarray(params["conv1_b"]).reshape(1, c1).astype(F32)
    # conv2: OIHW (64,64,3,3) -> rows ordered (kh, kw, c_in), cols c_out -> (576, 64).
    w2p = jnp.transpose(jnp.asarray(params["conv2_w"]), (2, 3, 1, 0)) \
             .reshape(k_conv2, c2).astype(compute_dtype)
    b2v = jnp.asarray(params["conv2_b"]).reshape(1, c2).astype(F32)
    # fc: (32, 64*h2*w2) NCHW-flatten -> rows ordered (position i,j then channel) -> (1600, 32).
    wfcp = jnp.transpose(jnp.asarray(params["fc_w"]).reshape(n_hidden, c2, h2, w2),
                         (2, 3, 1, 0)).reshape(k_fc, n_hidden).astype(compute_dtype)
    bfcv = jnp.asarray(params["fc_b"]).reshape(1, n_hidden).astype(F32)
    # pi / v heads fused into one lane-dense (32, head_pad) matrix.
    wh = jnp.concatenate([params["pi_w"], params["v_w"]], axis=0).T          # (32, out+1)
    whm = jnp.zeros((n_hidden, head_pad), F32).at[:, :n_head].set(wh).astype(compute_dtype)
    bhv = jnp.zeros((1, head_pad), F32).at[0, :n_head].set(
        jnp.concatenate([params["pi_b"], params["v_b"]]))

    weight_bytes = int(sum(int(np.prod(a.shape)) * a.dtype.itemsize
                           for a in (w1m, b1v, w2p, b2v, wfcp, bfcv, whm, bhv)))

    def _pick_tile(n):
        if batch_tile is not None:
            return batch_tile
        # Aim for >= 2 grid blocks once there is enough work so v7x's two TensorCores
        # both get a share of the "parallel" axis; keep each block a multiple of 16 rows.
        target = (n + 1) // 2 if n >= 64 else n
        tile = ((max(target, 1) + 15) // 16) * 16
        return max(16, min(max_batch_tile, tile))

    def _build_call(n):
        B = _pick_tile(n)
        n_blocks = (n + B - 1) // B
        n_padded = n_blocks * B
        mb = p1_pos * B                      # GEMM rows per grid step (position-major)
        pad_rows = max_shift * B             # shift-overrun tail rows in y1 scratch

        # -------- the fused kernel (one batch tile per grid step) --------
        def kernel(p1_ref, w1_ref, b1_ref, w2_ref, b2_ref, wfc_ref, bfc_ref,
                   wh_ref, bh_ref, out_ref, y1_scr, pk2_scr, y2_scr, pkfc_scr):
            # Hygiene-only zero of the shift-overrun tail (scratch persists across
            # grid steps, so do it once).  Correctness never depends on these rows:
            # they only feed conv2 output rows >= ((h2-1)*w1 + w2)*B, which the fc
            # gather below never reads.
            @pl.when(pl.program_id(0) == 0)
            def _():
                y1_scr[mb:mb + pad_rows, :] = jnp.zeros((pad_rows, c1), y1_scr.dtype)

            # conv1 + bias + ReLU: bf16 MXU operands, f32 accumulate + elementwise,
            # single bf16 store.  Row layout is position-major: row = pos*B + b.
            z1 = jnp.dot(p1_ref[...], w1_ref[...], preferred_element_type=F32)
            y1_scr[0:mb, :] = jnp.maximum(z1 + b1_ref[...], 0.0).astype(y1_scr.dtype)

            # conv2: lane-pack the 9 taps (K = 9*64 = 576) with 16-row-aligned shifted
            # copies of the VMEM-resident conv1 activations, then ONE K-deep MXU GEMM.
            # Accumulation over taps happens inside the MXU -> no f32 partial-sum
            # round trips through VMEM, and ~3x fewer passes on 256-deep MXUs.
            for t in range(n_taps):
                di, dj = divmod(t, kw2)
                s = (di * w1 + dj) * B
                pk2_scr[:, t * c1:(t + 1) * c1] = y1_scr[s:s + mb, :]
            z2 = jnp.dot(pk2_scr[...], w2_ref[...], preferred_element_type=F32)
            y2_scr[...] = jnp.maximum(z2 + b2_ref[...], 0.0).astype(y2_scr.dtype)

            # fc + ReLU: gather the h2*w2 valid conv2 positions into a sample-major
            # (B, 1600) bf16 buffer (NCHW flatten order is baked into wfc) -> ONE GEMM.
            for i in range(h2):
                for j in range(w2):
                    p = i * w2 + j
                    r0 = (i * w1 + j) * B
                    pkfc_scr[:, p * c2:(p + 1) * c2] = y2_scr[r0:r0 + B, :]
            h = jnp.dot(pkfc_scr[...], wfc_ref[...], preferred_element_type=F32)
            h = jnp.maximum(h + bfc_ref[...], 0.0).astype(compute_dtype)

            # Fused pi/v heads: single matmul + single lane-dense (B, 128) bf16 store.
            out = jnp.dot(h, wh_ref[...], preferred_element_type=F32) + bh_ref[...]
            out_ref[...] = out.astype(out_ref.dtype)

        flops = n_blocks * (2 * mb * patch1 * c1
                            + 2 * mb * k_conv2 * c2
                            + 2 * B * k_fc * n_hidden
                            + 2 * B * n_hidden * head_pad)
        cost = pl.CostEstimate(
            flops=flops, transcendentals=0,
            bytes_accessed=int(n_blocks * mb * patch1 * 2 + weight_bytes
                               + n_padded * head_pad * 2))

        # Explicit VMEM budget (double-buffered ins/outs + scratch + f32 GEMM temps)
        # so large batch tiles stay inside v7x's 64 MiB without silent regressions.
        vmem_est = (2 * mb * patch1 * 2 + 2 * B * head_pad * 2 + 2 * weight_bytes
                    + (mb + pad_rows) * c1 * 2 + mb * k_conv2 * 2 + mb * c2 * 2
                    + B * k_fc * 2 + 2 * mb * c2 * 4)
        vmem_limit = int(min(64 << 20, max(32 << 20, 2 * vmem_est)))

        call = pl.pallas_call(
            kernel,
            out_shape=jax.ShapeDtypeStruct((n_padded, head_pad), compute_dtype),
            grid_spec=pltpu.PrefetchScalarGridSpec(
                num_scalar_prefetch=0,
                grid=(n_blocks,),
                in_specs=[
                    pl.BlockSpec((mb, patch1), lambda g: (g, 0)),         # conv1 patches (bf16)
                    pl.BlockSpec((patch1, c1), lambda g: (0, 0)),         # w1
                    pl.BlockSpec((1, c1), lambda g: (0, 0)),              # b1
                    pl.BlockSpec((k_conv2, c2), lambda g: (0, 0)),        # w2 (K-packed)
                    pl.BlockSpec((1, c2), lambda g: (0, 0)),              # b2
                    pl.BlockSpec((k_fc, n_hidden), lambda g: (0, 0)),     # fc (K-packed)
                    pl.BlockSpec((1, n_hidden), lambda g: (0, 0)),        # bfc
                    pl.BlockSpec((n_hidden, head_pad), lambda g: (0, 0)), # fused heads
                    pl.BlockSpec((1, head_pad), lambda g: (0, 0)),        # head bias
                ],
                out_specs=pl.BlockSpec((B, head_pad), lambda g: (g, 0)),
                scratch_shapes=[
                    pltpu.VMEM((mb + pad_rows, c1), compute_dtype),  # conv1 acts (+ tail)
                    pltpu.VMEM((mb, k_conv2), compute_dtype),        # conv2 K-packed lhs
                    pltpu.VMEM((mb, c2), compute_dtype),             # conv2 acts
                    pltpu.VMEM((B, k_fc), compute_dtype),            # fc K-packed lhs
                ],
            ),
            compiler_params=pltpu.CompilerParams(
                dimension_semantics=("parallel",),
                vmem_limit_bytes=vmem_limit),
            cost_estimate=cost,
        )
        return call, B, n_blocks, n_padded, mb

    # -------- wrapper: conv1 im2col (bf16) + pallas_call + head slicing --------
    def forward(states):
        n = states.shape[0]
        call, B, n_blocks, n_padded, mb = _build_call(n)

        # conv1 im2col (VALID, stride 2) in bf16 so the dominant HBM stream into the
        # kernel is half-width; c_in == 1 so this expansion is cheap and XLA fuses it.
        # TODO(synk): move the conv1 im2col into the kernel (DMA the raw (B,H,W) block)
        # to avoid materializing the expanded patch tensor in HBM at all.
        x = states.reshape(n, h_size, w_size).astype(compute_dtype)
        cols = []
        for di in range(kh1):
            for dj in range(kw1):
                cols.append(x[:, di:di + st1 * h1:st1, dj:dj + st1 * w1:st1])
        p1 = jnp.stack(cols, axis=-1).reshape(n, p1_pos, patch1)
        if n_padded != n:
            p1 = jnp.pad(p1, ((0, n_padded - n), (0, 0), (0, 0)))
        # Position-major row layout inside each batch tile: row = pos*B + b.
        p1 = p1.reshape(n_blocks, B, p1_pos, patch1)
        p1 = jnp.transpose(p1, (0, 2, 1, 3)).reshape(n_blocks * mb, patch1)

        out = call(p1, w1m, b1v, w2p, b2v, wfcp, bfcv, whm, bhv)
        out = out[:n].astype(F32)
        return out[:, :out_size], out[:, out_size:out_size + 1]

    return jax.jit(forward)


# ----------------------------------------------------------------------------
# Pure-JAX reference with the SAME mixed precision as the kernel
# (bf16 matmul/conv operands, f32 accumulation and elementwise math).
# ----------------------------------------------------------------------------
def reference_forward(params, states, compute_dtype=jnp.bfloat16):
    dn = ("NCHW", "OIHW", "NCHW")
    cast = lambda a: a.astype(compute_dtype)
    z1 = lax.conv_general_dilated(cast(states), cast(params["conv1_w"]), (2, 2), "VALID",
                                  dimension_numbers=dn, preferred_element_type=F32)
    y1 = jnp.maximum(z1 + params["conv1_b"][None, :, None, None], 0.0)
    z2 = lax.conv_general_dilated(cast(y1), cast(params["conv2_w"]), (1, 1), "VALID",
                                  dimension_numbers=dn, preferred_element_type=F32)
    y2 = jnp.maximum(z2 + params["conv2_b"][None, :, None, None], 0.0)
    flat = y2.reshape(states.shape[0], -1)                       # NCHW flatten order
    h = jnp.maximum(
        jnp.dot(cast(flat), cast(params["fc_w"].T), preferred_element_type=F32)
        + params["fc_b"], 0.0)
    pi = jnp.dot(cast(h), cast(params["pi_w"].T), preferred_element_type=F32) + params["pi_b"]
    v = jnp.dot(cast(h), cast(params["v_w"].T), preferred_element_type=F32) + params["v_b"]
    return pi, v


if __name__ == "__main__":
    # Small shapes consistent with the module: states (N, 1, H, W).
    N, H, W, OUT = 2, 16, 16, 6
    params, (h_out, w_out) = init_params(H, W, OUT, seed=0)

    key = jax.random.PRNGKey(0)
    states = jax.random.normal(key, (N, 1, H, W), dtype=jnp.float32)

    forward = make_policy_forward(params, H, W, OUT)
    pi_out, v_out = jax.block_until_ready(forward(states))
    pi_ref, v_ref = jax.block_until_ready(reference_forward(params, states))

    assert pi_out.shape == (N, OUT) and v_out.shape == (N, 1)
    assert np.allclose(np.asarray(pi_out), np.asarray(pi_ref), atol=2e-3, rtol=1e-2)
    assert np.allclose(np.asarray(v_out), np.asarray(v_ref), atol=2e-3, rtol=1e-2)

    # Also exercise the multi-block path (>= 2 "parallel" grid blocks + batch padding)
    # that the v7x TensorCore split relies on.
    states_big = jax.random.normal(jax.random.PRNGKey(1), (100, 1, H, W), dtype=jnp.float32)
    pi_b, v_b = jax.block_until_ready(forward(states_big))
    pi_rb, v_rb = jax.block_until_ready(reference_forward(params, states_big))
    assert np.allclose(np.asarray(pi_b), np.asarray(pi_rb), atol=2e-3, rtol=1e-2)
    assert np.allclose(np.asarray(v_b), np.asarray(v_rb), atol=2e-3, rtol=1e-2)

    print("KERNEL_OK")
</pallas_src>

<mosaic_0001>
module attributes {stable_mosaic.version = 11 : i64} {
  func.func @kernel(%arg0: i32, %arg1: memref<784x16xbf16, #tpu.memory_space<vmem>>, %arg2: memref<16x64xbf16, #tpu.memory_space<vmem>>, %arg3: memref<1x64xf32, #tpu.memory_space<vmem>>, %arg4: memref<576x64xbf16, #tpu.memory_space<vmem>>, %arg5: memref<1x64xf32, #tpu.memory_space<vmem>>, %arg6: memref<1600x32xbf16, #tpu.memory_space<vmem>>, %arg7: memref<1x32xf32, #tpu.memory_space<vmem>>, %arg8: memref<32x128xbf16, #tpu.memory_space<vmem>>, %arg9: memref<1x128xf32, #tpu.memory_space<vmem>>, %arg10: memref<16x128xbf16, #tpu.memory_space<vmem>>, %arg11: memref<1040x64xbf16, #tpu.memory_space<vmem>>, %arg12: memref<784x576xbf16, #tpu.memory_space<vmem>>, %arg13: memref<784x64xbf16, #tpu.memory_space<vmem>>, %arg14: memref<16x1600xbf16, #tpu.memory_space<vmem>>) attributes {dimension_semantics = [#tpu.dimension_semantics<parallel>], iteration_bounds = array<i64: 1>, scalar_prefetch = 0 : i64, scratch_operands = 4 : i64, tpu.core_type = #tpu.core_type<tc>, window_params = [{transform_indices = @transform_0, window_bounds = array<i64: 784, 16>}, {pipeline_mode = #tpu.pipeline_mode<synchronous>, transform_indices = @transform_1, window_bounds = array<i64: 16, 64>}, {pipeline_mode = #tpu.pipeline_mode<synchronous>, transform_indices = @transform_2, window_bounds = array<i64: 1, 64>}, {pipeline_mode = #tpu.pipeline_mode<synchronous>, transform_indices = @transform_3, window_bounds = array<i64: 576, 64>}, {pipeline_mode = #tpu.pipeline_mode<synchronous>, transform_indices = @transform_4, window_bounds = array<i64: 1, 64>}, {pipeline_mode = #tpu.pipeline_mode<synchronous>, transform_indices = @transform_5, window_bounds = array<i64: 1600, 32>}, {pipeline_mode = #tpu.pipeline_mode<synchronous>, transform_indices = @transform_6, window_bounds = array<i64: 1, 32>}, {pipeline_mode = #tpu.pipeline_mode<synchronous>, transform_indices = @transform_7, window_bounds = array<i64: 32, 128>}, {pipeline_mode = #tpu.pipeline_mode<synchronous>, transform_indices = @transform_8, window_bounds = array<i64: 1, 128>}, {transform_indices = @transform_9, window_bounds = array<i64: 16, 128>}]} {
    %c0_i32 = arith.constant 0 : i32
    %0 = arith.cmpi eq, %arg0, %c0_i32 : i32
    %1 = arith.extui %0 : i1 to i32
    %c0_i32_0 = arith.constant 0 : i32
    %2 = arith.cmpi ne, %1, %c0_i32_0 : i32
    scf.if %2 {
      %cst_128 = arith.constant 0.000000e+00 : bf16
      %107 = vector.broadcast %cst_128 : bf16 to vector<256x64xbf16>
      %c784 = arith.constant 784 : index
      %c0_129 = arith.constant 0 : index
      %108 = vector.load %arg11[%c784, %c0_129] : memref<1040x64xbf16, #tpu.memory_space<vmem>>, vector<256x64xbf16>
      tpu.vector_store %arg11[%c784, %c0_129], %107 {strides = array<i32>} : memref<1040x64xbf16, #tpu.memory_space<vmem>>, vector<256x64xbf16>,
    } else {
    }
    %c0 = arith.constant 0 : index
    %c0_1 = arith.constant 0 : index
    %3 = vector.load %arg1[%c0, %c0_1] : memref<784x16xbf16, #tpu.memory_space<vmem>>, vector<784x16xbf16>
    %c0_2 = arith.constant 0 : index
    %c0_3 = arith.constant 0 : index
    %4 = vector.load %arg2[%c0_2, %c0_3] : memref<16x64xbf16, #tpu.memory_space<vmem>>, vector<16x64xbf16>
    %cst = arith.constant dense<0.000000e+00> : vector<784x64xf32>
    %5 = tpu.matmul %3, %4, %cst {dimension_numbers = #tpu.dot_dimension_numbers<[1], [0], [0], [1], [0, 0, 1, 1], [], []>} : vector<784x16xbf16>, vector<16x64xbf16>, vector<784x64xf32> -> vector<784x64xf32>
    %c0_4 = arith.constant 0 : index
    %c0_5 = arith.constant 0 : index
    %6 = vector.load %arg3[%c0_4, %c0_5] : memref<1x64xf32, #tpu.memory_space<vmem>>, vector<1x64xf32>
    %7 = vector.broadcast %6 : vector<1x64xf32> to vector<784x64xf32>
    %8 = arith.addf %5, %7 : vector<784x64xf32>
    %cst_6 = arith.constant 0.000000e+00 : f32
    %9 = vector.broadcast %cst_6 : f32 to vector<784x64xf32>
    %10 = arith.maximumf %8, %9 : vector<784x64xf32>
    %11 = arith.truncf %10 : vector<784x64xf32> to vector<784x64xbf16>
    %c0_7 = arith.constant 0 : index
    %c0_8 = arith.constant 0 : index
    %12 = vector.load %arg11[%c0_7, %c0_8] : memref<1040x64xbf16, #tpu.memory_space<vmem>>, vector<784x64xbf16>
    tpu.vector_store %arg11[%c0_7, %c0_8], %11 {strides = array<i32>} : memref<1040x64xbf16, #tpu.memory_space<vmem>>, vector<784x64xbf16>,
    %c0_9 = arith.constant 0 : index
    %c0_10 = arith.constant 0 : index
    %13 = vector.load %arg11[%c0_9, %c0_10] : memref<1040x64xbf16, #tpu.memory_space<vmem>>, vector<784x64xbf16>
    %c0_11 = arith.constant 0 : index
    %c0_12 = arith.constant 0 : index
    %14 = vector.load %arg12[%c0_11, %c0_12] : memref<784x576xbf16, #tpu.memory_space<vmem>>, vector<784x64xbf16>
    tpu.vector_store %arg12[%c0_11, %c0_12], %13 {strides = array<i32>} : memref<784x576xbf16, #tpu.memory_space<vmem>>, vector<784x64xbf16>,
    %c16 = arith.constant 16 : index
    %c0_13 = arith.constant 0 : index
    %15 = vector.load %arg11[%c16, %c0_13] : memref<1040x64xbf16, #tpu.memory_space<vmem>>, vector<784x64xbf16>
    %c0_14 = arith.constant 0 : index
    %c64 = arith.constant 64 : index
    %16 = vector.load %arg12[%c0_14, %c64] : memref<784x576xbf16, #tpu.memory_space<vmem>>, vector<784x64xbf16>
    tpu.vector_store %arg12[%c0_14, %c64], %15 {strides = array<i32>} : memref<784x576xbf16, #tpu.memory_space<vmem>>, vector<784x64xbf16>,
    %c32 = arith.constant 32 : index
    %c0_15 = arith.constant 0 : index
    %17 = vector.load %arg11[%c32, %c0_15] : memref<1040x64xbf16, #tpu.memory_space<vmem>>, vector<784x64xbf16>
    %c0_16 = arith.constant 0 : index
    %c128 = arith.constant 128 : index
    %18 = vector.load %arg12[%c0_16, %c128] : memref<784x576xbf16, #tpu.memory_space<vmem>>, vector<784x64xbf16>
    tpu.vector_store %arg12[%c0_16, %c128], %17 {strides = array<i32>} : memref<784x576xbf16, #tpu.memory_space<vmem>>, vector<784x64xbf16>,
    %c112 = arith.constant 112 : index
    %c0_17 = arith.constant 0 : index
    %19 = vector.load %arg11[%c112, %c0_17] : memref<1040x64xbf16, #tpu.memory_space<vmem>>, vector<784x64xbf16>
    %c0_18 = arith.constant 0 : index
    %c192 = arith.constant 192 : index
    %20 = vector.load %arg12[%c0_18, %c192] : memref<784x576xbf16, #tpu.memory_space<vmem>>, vector<784x64xbf16>
    tpu.vector_store %arg12[%c0_18, %c192], %19 {strides = array<i32>} : memref<784x576xbf16, #tpu.memory_space<vmem>>, vector<784x64xbf16>,
    %c128_19 = arith.constant 128 : index
    %c0_20 = arith.constant 0 : index
    %21 = vector.load %arg11[%c128_19, %c0_20] : memref<1040x64xbf16, #tpu.memory_space<vmem>>, vector<784x64xbf16>
    %c0_21 = arith.constant 0 : index
    %c256 = arith.constant 256 : index
    %22 = vector.load %arg12[%c0_21, %c256] : memref<784x576xbf16, #tpu.memory_space<vmem>>, vector<784x64xbf16>
    tpu.vector_store %arg12[%c0_21, %c256], %21 {strides = array<i32>} : memref<784x576xbf16, #tpu.memory_space<vmem>>, vector<784x64xbf16>,
    %c144 = arith.constant 144 : index
    %c0_22 = arith.constant 0 : index
    %23 = vector.load %arg11[%c144, %c0_22] : memref<1040x64xbf16, #tpu.memory_space<vmem>>, vector<784x64xbf16>
    %c0_23 = arith.constant 0 : index
    %c320 = arith.constant 320 : index
    %24 = vector.load %arg12[%c0_23, %c320] : memref<784x576xbf16, #tpu.memory_space<vmem>>, vector<784x64xbf16>
    tpu.vector_store %arg12[%c0_23, %c320], %23 {strides = array<i32>} : memref<784x576xbf16, #tpu.memory_space<vmem>>, vector<784x64xbf16>,
    %c224 = arith.constant 224 : index
    %c0_24 = arith.constant 0 : index
    %25 = vector.load %arg11[%c224, %c0_24] : memref<1040x64xbf16, #tpu.memory_space<vmem>>, vector<784x64xbf16>
    %c0_25 = arith.constant 0 : index
    %c384 = arith.constant 384 : index
    %26 = vector.load %arg12[%c0_25, %c384] : memref<784x576xbf16, #tpu.memory_space<vmem>>, vector<784x64xbf16>
    tpu.vector_store %arg12[%c0_25, %c384], %25 {strides = array<i32>} : memref<784x576xbf16, #tpu.memory_space<vmem>>, vector<784x64xbf16>,
    %c240 = arith.constant 240 : index
    %c0_26 = arith.constant 0 : index
    %27 = vector.load %arg11[%c240, %c0_26] : memref<1040x64xbf16, #tpu.memory_space<vmem>>, vector<784x64xbf16>
    %c0_27 = arith.constant 0 : index
    %c448 = arith.constant 448 : index
    %28 = vector.load %arg12[%c0_27, %c448] : memref<784x576xbf16, #tpu.memory_space<vmem>>, vector<784x64xbf16>
    tpu.vector_store %arg12[%c0_27, %c448], %27 {strides = array<i32>} : memref<784x576xbf16, #tpu.memory_space<vmem>>, vector<784x64xbf16>,
    %c256_28 = arith.constant 256 : index
    %c0_29 = arith.constant 0 : index
    %29 = vector.load %arg11[%c256_28, %c0_29] : memref<1040x64xbf16, #tpu.memory_space<vmem>>, vector<784x64xbf16>
    %c0_30 = arith.constant 0 : index
    %c512 = arith.constant 512 : index
    %30 = vector.load %arg12[%c0_30, %c512] : memref<784x576xbf16, #tpu.memory_space<vmem>>, vector<784x64xbf16>
    tpu.vector_store %arg12[%c0_30, %c512], %29 {strides = array<i32>} : memref<784x576xbf16, #tpu.memory_space<vmem>>, vector<784x64xbf16>,
    %c0_31 = arith.constant 0 : index
    %c0_32 = arith.constant 0 : index
    %31 = vector.load %arg12[%c0_31, %c0_32] : memref<784x576xbf16, #tpu.memory_space<vmem>>, vector<784x576xbf16>
    %c0_33 = arith.constant 0 : index
    %c0_34 = arith.constant 0 : index
    %32 = vector.load %arg4[%c0_33, %c0_34] : memref<576x64xbf16, #tpu.memory_space<vmem>>, vector<576x64xbf16>
    %cst_35 = arith.constant dense<0.000000e+00> : vector<784x64xf32>
    %33 = tpu.matmul %31, %32, %cst_35 {dimension_numbers = #tpu.dot_dimension_numbers<[1], [0], [0], [1], [0, 0, 1, 1], [], []>} : vector<784x576xbf16>, vector<576x64xbf16>, vector<784x64xf32> -> vector<784x64xf32>
    %c0_36 = arith.constant 0 : index
    %c0_37 = arith.constant 0 : index
    %34 = vector.load %arg5[%c0_36, %c0_37] : memref<1x64xf32, #tpu.memory_space<vmem>>, vector<1x64xf32>
    %35 = vector.broadcast %34 : vector<1x64xf32> to vector<784x64xf32>
    %36 = arith.addf %33, %35 : vector<784x64xf32>
    %cst_38 = arith.constant 0.000000e+00 : f32
    %37 = vector.broadcast %cst_38 : f32 to vector<784x64xf32>
    %38 = arith.maximumf %36, %37 : vector<784x64xf32>
    %39 = arith.truncf %38 : vector<784x64xf32> to vector<784x64xbf16>
    %c0_39 = arith.constant 0 : index
    %c0_40 = arith.constant 0 : index
    %40 = vector.load %arg13[%c0_39, %c0_40] : memref<784x64xbf16, #tpu.memory_space<vmem>>, vector<784x64xbf16>
    tpu.vector_store %arg13[%c0_39, %c0_40], %39 {strides = array<i32>} : memref<784x64xbf16, #tpu.memory_space<vmem>>, vector<784x64xbf16>,
    %c0_41 = arith.constant 0 : index
    %c0_42 = arith.constant 0 : index
    %41 = vector.load %arg13[%c0_41, %c0_42] : memref<784x64xbf16, #tpu.memory_space<vmem>>, vector<16x64xbf16>
    %c0_43 = arith.constant 0 : index
    %c0_44 = arith.constant 0 : index
    %42 = vector.load %arg14[%c0_43, %c0_44] : memref<16x1600xbf16, #tpu.memory_space<vmem>>, vector<16x64xbf16>
    tpu.vector_store %arg14[%c0_43, %c0_44], %41 {strides = array<i32>} : memref<16x1600xbf16, #tpu.memory_space<vmem>>, vector<16x64xbf16>,
    %c16_45 = arith.constant 16 : index
    %c0_46 = arith.constant 0 : index
    %43 = vector.load %arg13[%c16_45, %c0_46] : memref<784x64xbf16, #tpu.memory_space<vmem>>, vector<16x64xbf16>
    %c0_47 = arith.constant 0 : index
    %c64_48 = arith.constant 64 : index
    %44 = vector.load %arg14[%c0_47, %c64_48] : memref<16x1600xbf16, #tpu.memory_space<vmem>>, vector<16x64xbf16>
    tpu.vector_store %arg14[%c0_47, %c64_48], %43 {strides = array<i32>} : memref<16x1600xbf16, #tpu.memory_space<vmem>>, vector<16x64xbf16>,
    %c32_49 = arith.constant 32 : index
    %c0_50 = arith.constant 0 : index
    %45 = vector.load %arg13[%c32_49, %c0_50] : memref<784x64xbf16, #tpu.memory_space<vmem>>, vector<16x64xbf16>
    %c0_51 = arith.constant 0 : index
    %c128_52 = arith.constant 128 : index
    %46 = vector.load %arg14[%c0_51, %c128_52] : memref<16x1600xbf16, #tpu.memory_space<vmem>>, vector<16x64xbf16>
    tpu.vector_store %arg14[%c0_51, %c128_52], %45 {strides = array<i32>} : memref<16x1600xbf16, #tpu.memory_space<vmem>>, vector<16x64xbf16>,
    %c48 = arith.constant 48 : index
    %c0_53 = arith.constant 0 : index
    %47 = vector.load %arg13[%c48, %c0_53] : memref<784x64xbf16, #tpu.memory_space<vmem>>, vector<16x64xbf16>
    %c0_54 = arith.constant 0 : index
    %c192_55 = arith.constant 192 : index
    %48 = vector.load %arg14[%c0_54, %c192_55] : memref<16x1600xbf16, #tpu.memory_space<vmem>>, vector<16x64xbf16>
    tpu.vector_store %arg14[%c0_54, %c192_55], %47 {strides = array<i32>} : memref<16x1600xbf16, #tpu.memory_space<vmem>>, vector<16x64xbf16>,
    %c64_56 = arith.constant 64 : index
    %c0_57 = arith.constant 0 : index
    %49 = vector.load %arg13[%c64_56, %c0_57] : memref<784x64xbf16, #tpu.memory_space<vmem>>, vector<16x64xbf16>
    %c0_58 = arith.constant 0 : index
    %c256_59 = arith.constant 256 : index
    %50 = vector.load %arg14[%c0_58, %c256_59] : memref<16x1600xbf16, #tpu.memory_space<vmem>>, vector<16x64xbf16>
    tpu.vector_store %arg14[%c0_58, %c256_59], %49 {strides = array<i32>} : memref<16x1600xbf16, #tpu.memory_space<vmem>>, vector<16x64xbf16>,
    %c112_60 = arith.constant 112 : index
    %c0_61 = arith.constant 0 : index
    %51 = vector.load %arg13[%c112_60, %c0_61] : memref<784x64xbf16, #tpu.memory_space<vmem>>, vector<16x64xbf16>
    %c0_62 = arith.constant 0 : index
    %c320_63 = arith.constant 320 : index
    %52 = vector.load %arg14[%c0_62, %c320_63] : memref<16x1600xbf16, #tpu.memory_space<vmem>>, vector<16x64xbf16>
    tpu.vector_store %arg14[%c0_62, %c320_63], %51 {strides = array<i32>} : memref<16x1600xbf16, #tpu.memory_space<vmem>>, vector<16x64xbf16>,
    %c128_64 = arith.constant 128 : index
    %c0_65 = arith.constant 0 : index
    %53 = vector.load %arg13[%c128_64, %c0_65] : memref<784x64xbf16, #tpu.memory_space<vmem>>, vector<16x64xbf16>
    %c0_66 = arith.constant 0 : index
    %c384_67 = arith.constant 384 : index
    %54 = vector.load %arg14[%c0_66, %c384_67] : memref<16x1600xbf16, #tpu.memory_space<vmem>>, vector<16x64xbf16>
    tpu.vector_store %arg14[%c0_66, %c384_67], %53 {strides = array<i32>} : memref<16x1600xbf16, #tpu.memory_space<vmem>>, vector<16x64xbf16>,
    %c144_68 = arith.constant 144 : index
    %c0_69 = arith.constant 0 : index
    %55 = vector.load %arg13[%c144_68, %c0_69] : memref<784x64xbf16, #tpu.memory_space<vmem>>, vector<16x64xbf16>
    %c0_70 = arith.constant 0 : index
    %c448_71 = arith.constant 448 : index
    %56 = vector.load %arg14[%c0_70, %c448_71] : memref<16x1600xbf16, #tpu.memory_space<vmem>>, vector<16x64xbf16>
    tpu.vector_store %arg14[%c0_70, %c448_71], %55 {strides = array<i32>} : memref<16x1600xbf16, #tpu.memory_space<vmem>>, vector<16x64xbf16>,
    %c160 = arith.constant 160 : index
    %c0_72 = arith.constant 0 : index
    %57 = vector.load %arg13[%c160, %c0_72] : memref<784x64xbf16, #tpu.memory_space<vmem>>, vector<16x64xbf16>
    %c0_73 = arith.constant 0 : index
    %c512_74 = arith.constant 512 : index
    %58 = vector.load %arg14[%c0_73, %c512_74] : memref<16x1600xbf16, #tpu.memory_space<vmem>>, vector<16x64xbf16>
    tpu.vector_store %arg14[%c0_73, %c512_74], %57 {strides = array<i32>} : memref<16x1600xbf16, #tpu.memory_space<vmem>>, vector<16x64xbf16>,
    %c176 = arith.constant 176 : index
    %c0_75 = arith.constant 0 : index
    %59 = vector.load %arg13[%c176, %c0_75] : memref<784x64xbf16, #tpu.memory_space<vmem>>, vector<16x64xbf16>
    %c0_76 = arith.constant 0 : index
    %c576 = arith.constant 576 : index
    %60 = vector.load %arg14[%c0_76, %c576] : memref<16x1600xbf16, #tpu.memory_space<vmem>>, vector<16x64xbf16>
    tpu.vector_store %arg14[%c0_76, %c576], %59 {strides = array<i32>} : memref<16x1600xbf16, #tpu.memory_space<vmem>>, vector<16x64xbf16>,
    %c224_77 = arith.constant 224 : index
    %c0_78 = arith.constant 0 : index
    %61 = vector.load %arg13[%c224_77, %c0_78] : memref<784x64xbf16, #tpu.memory_space<vmem>>, vector<16x64xbf16>
    %c0_79 = arith.constant 0 : index
    %c640 = arith.constant 640 : index
    %62 = vector.load %arg14[%c0_79, %c640] : memref<16x1600xbf16, #tpu.memory_space<vmem>>, vector<16x64xbf16>
    tpu.vector_store %arg14[%c0_79, %c640], %61 {strides = array<i32>} : memref<16x1600xbf16, #tpu.memory_space<vmem>>, vector<16x64xbf16>,
    %c240_80 = arith.constant 240 : index
    %c0_81 = arith.constant 0 : index
    %63 = vector.load %arg13[%c240_80, %c0_81] : memref<784x64xbf16, #tpu.memory_space<vmem>>, vector<16x64xbf16>
    %c0_82 = arith.constant 0 : index
    %c704 = arith.constant 704 : index
    %64 = vector.load %arg14[%c0_82, %c704] : memref<16x1600xbf16, #tpu.memory_space<vmem>>, vector<16x64xbf16>
    tpu.vector_store %arg14[%c0_82, %c704], %63 {strides = array<i32>} : memref<16x1600xbf16, #tpu.memory_space<vmem>>, vector<16x64xbf16>,
    %c256_83 = arith.constant 256 : index
    %c0_84 = arith.constant 0 : index
    %65 = vector.load %arg13[%c256_83, %c0_84] : memref<784x64xbf16, #tpu.memory_space<vmem>>, vector<16x64xbf16>
    %c0_85 = arith.constant 0 : index
    %c768 = arith.constant 768 : index
    %66 = vector.load %arg14[%c0_85, %c768] : memref<16x1600xbf16, #tpu.memory_space<vmem>>, vector<16x64xbf16>
    tpu.vector_store %arg14[%c0_85, %c768], %65 {strides = array<i32>} : memref<16x1600xbf16, #tpu.memory_space<vmem>>, vector<16x64xbf16>,
    %c272 = arith.constant 272 : index
    %c0_86 = arith.constant 0 : index
    %67 = vector.load %arg13[%c272, %c0_86] : memref<784x64xbf16, #tpu.memory_space<vmem>>, vector<16x64xbf16>
    %c0_87 = arith.constant 0 : index
    %c832 = arith.constant 832 : index
    %68 = vector.load %arg14[%c0_87, %c832] : memref<16x1600xbf16, #tpu.memory_space<vmem>>, vector<16x64xbf16>
    tpu.vector_store %arg14[%c0_87, %c832], %67 {strides = array<i32>} : memref<16x1600xbf16, #tpu.memory_space<vmem>>, vector<16x64xbf16>,
    %c288 = arith.constant 288 : index
    %c0_88 = arith.constant 0 : index
    %69 = vector.load %arg13[%c288, %c0_88] : memref<784x64xbf16, #tpu.memory_space<vmem>>, vector<16x64xbf16>
    %c0_89 = arith.constant 0 : index
    %c896 = arith.constant 896 : index
    %70 = vector.load %arg14[%c0_89, %c896] : memref<16x1600xbf16, #tpu.memory_space<vmem>>, vector<16x64xbf16>
    tpu.vector_store %arg14[%c0_89, %c896], %69 {strides = array<i32>} : memref<16x1600xbf16, #tpu.memory_space<vmem>>, vector<16x64xbf16>,
    %c336 = arith.constant 336 : index
    %c0_90 = arith.constant 0 : index
    %71 = vector.load %arg13[%c336, %c0_90] : memref<784x64xbf16, #tpu.memory_space<vmem>>, vector<16x64xbf16>
    %c0_91 = arith.constant 0 : index
    %c960 = arith.constant 960 : index
    %72 = vector.load %arg14[%c0_91, %c960] : memref<16x1600xbf16, #tpu.memory_space<vmem>>, vector<16x64xbf16>
    tpu.vector_store %arg14[%c0_91, %c960], %71 {strides = array<i32>} : memref<16x1600xbf16, #tpu.memory_space<vmem>>, vector<16x64xbf16>,
    %c352 = arith.constant 352 : index
    %c0_92 = arith.constant 0 : index
    %73 = vector.load %arg13[%c352, %c0_92] : memref<784x64xbf16, #tpu.memory_space<vmem>>, vector<16x64xbf16>
    %c0_93 = arith.constant 0 : index
    %c1024 = arith.constant 1024 : index
    %74 = vector.load %arg14[%c0_93, %c1024] : memref<16x1600xbf16, #tpu.memory_space<vmem>>, vector<16x64xbf16>
    tpu.vector_store %arg14[%c0_93, %c1024], %73 {strides = array<i32>} : memref<16x1600xbf16, #tpu.memory_space<vmem>>, vector<16x64xbf16>,
    %c368 = arith.constant 368 : index
    %c0_94 = arith.constant 0 : index
    %75 = vector.load %arg13[%c368, %c0_94] : memref<784x64xbf16, #tpu.memory_space<vmem>>, vector<16x64xbf16>
    %c0_95 = arith.constant 0 : index
    %c1088 = arith.constant 1088 : index
    %76 = vector.load %arg14[%c0_95, %c1088] : memref<16x1600xbf16, #tpu.memory_space<vmem>>, vector<16x64xbf16>
    tpu.vector_store %arg14[%c0_95, %c1088], %75 {strides = array<i32>} : memref<16x1600xbf16, #tpu.memory_space<vmem>>, vector<16x64xbf16>,
    %c384_96 = arith.constant 384 : index
    %c0_97 = arith.constant 0 : index
    %77 = vector.load %arg13[%c384_96, %c0_97] : memref<784x64xbf16, #tpu.memory_space<vmem>>, vector<16x64xbf16>
    %c0_98 = arith.constant 0 : index
    %c1152 = arith.constant 1152 : index
    %78 = vector.load %arg14[%c0_98, %c1152] : memref<16x1600xbf16, #tpu.memory_space<vmem>>, vector<16x64xbf16>
    tpu.vector_store %arg14[%c0_98, %c1152], %77 {strides = array<i32>} : memref<16x1600xbf16, #tpu.memory_space<vmem>>, vector<16x64xbf16>,
    %c400 = arith.constant 400 : index
    %c0_99 = arith.constant 0 : index
    %79 = vector.load %arg13[%c400, %c0_99] : memref<784x64xbf16, #tpu.memory_space<vmem>>, vector<16x64xbf16>
    %c0_100 = arith.constant 0 : index
    %c1216 = arith.constant 1216 : index
    %80 = vector.load %arg14[%c0_100, %c1216] : memref<16x1600xbf16, #tpu.memory_space<vmem>>, vector<16x64xbf16>
    tpu.vector_store %arg14[%c0_100, %c1216], %79 {strides = array<i32>} : memref<16x1600xbf16, #tpu.memory_space<vmem>>, vector<16x64xbf16>,
    %c448_101 = arith.constant 448 : index
    %c0_102 = arith.constant 0 : index
    %81 = vector.load %arg13[%c448_101, %c0_102] : memref<784x64xbf16, #tpu.memory_space<vmem>>, vector<16x64xbf16>
    %c0_103 = arith.constant 0 : index
    %c1280 = arith.constant 1280 : index
    %82 = vector.load %arg14[%c0_103, %c1280] : memref<16x1600xbf16, #tpu.memory_space<vmem>>, vector<16x64xbf16>
    tpu.vector_store %arg14[%c0_103, %c1280], %81 {strides = array<i32>} : memref<16x1600xbf16, #tpu.memory_space<vmem>>, vector<16x64xbf16>,
    %c464 = arith.constant 464 : index
    %c0_104 = arith.constant 0 : index
    %83 = vector.load %arg13[%c464, %c0_104] : memref<784x64xbf16, #tpu.memory_space<vmem>>, vector<16x64xbf16>
    %c0_105 = arith.constant 0 : index
    %c1344 = arith.constant 1344 : index
    %84 = vector.load %arg14[%c0_105, %c1344] : memref<16x1600xbf16, #tpu.memory_space<vmem>>, vector<16x64xbf16>
    tpu.vector_store %arg14[%c0_105, %c1344], %83 {strides = array<i32>} : memref<16x1600xbf16, #tpu.memory_space<vmem>>, vector<16x64xbf16>,
    %c480 = arith.constant 480 : index
    %c0_106 = arith.constant 0 : index
    %85 = vector.load %arg13[%c480, %c0_106] : memref<784x64xbf16, #tpu.memory_space<vmem>>, vector<16x64xbf16>
    %c0_107 = arith.constant 0 : index
    %c1408 = arith.constant 1408 : index
    %86 = vector.load %arg14[%c0_107, %c1408] : memref<16x1600xbf16, #tpu.memory_space<vmem>>, vector<16x64xbf16>
    tpu.vector_store %arg14[%c0_107, %c1408], %85 {strides = array<i32>} : memref<16x1600xbf16, #tpu.memory_space<vmem>>, vector<16x64xbf16>,
    %c496 = arith.constant 496 : index
    %c0_108 = arith.constant 0 : index
    %87 = vector.load %arg13[%c496, %c0_108] : memref<784x64xbf16, #tpu.memory_space<vmem>>, vector<16x64xbf16>
    %c0_109 = arith.constant 0 : index
    %c1472 = arith.constant 1472 : index
    %88 = vector.load %arg14[%c0_109, %c1472] : memref<16x1600xbf16, #tpu.memory_space<vmem>>, vector<16x64xbf16>
    tpu.vector_store %arg14[%c0_109, %c1472], %87 {strides = array<i32>} : memref<16x1600xbf16, #tpu.memory_space<vmem>>, vector<16x64xbf16>,
    %c512_110 = arith.constant 512 : index
    %c0_111 = arith.constant 0 : index
    %89 = vector.load %arg13[%c512_110, %c0_111] : memref<784x64xbf16, #tpu.memory_space<vmem>>, vector<16x64xbf16>
    %c0_112 = arith.constant 0 : index
    %c1536 = arith.constant 1536 : index
    %90 = vector.load %arg14[%c0_112, %c1536] : memref<16x1600xbf16, #tpu.memory_space<vmem>>, vector<16x64xbf16>
    tpu.vector_store %arg14[%c0_112, %c1536], %89 {strides = array<i32>} : memref<16x1600xbf16, #tpu.memory_space<vmem>>, vector<16x64xbf16>,
    %c0_113 = arith.constant 0 : index
    %c0_114 = arith.constant 0 : index
    %91 = vector.load %arg14[%c0_113, %c0_114] : memref<16x1600xbf16, #tpu.memory_space<vmem>>, vector<16x1600xbf16>
    %c0_115 = arith.constant 0 : index
    %c0_116 = arith.constant 0 : index
    %92 = vector.load %arg6[%c0_115, %c0_116] : memref<1600x32xbf16, #tpu.memory_space<vmem>>, vector<1600x32xbf16>
    %cst_117 = arith.constant dense<0.000000e+00> : vector<16x32xf32>
    %93 = tpu.matmul %91, %92, %cst_117 {dimension_numbers = #tpu.dot_dimension_numbers<[1], [0], [0], [1], [0, 0, 1, 1], [], []>} : vector<16x1600xbf16>, vector<1600x32xbf16>, vector<16x32xf32> -> vector<16x32xf32>
    %c0_118 = arith.constant 0 : index
    %c0_119 = arith.constant 0 : index
    %94 = vector.load %arg7[%c0_118, %c0_119] : memref<1x32xf32, #tpu.memory_space<vmem>>, vector<1x32xf32>
    %95 = vector.broadcast %94 : vector<1x32xf32> to vector<16x32xf32>
    %96 = arith.addf %93, %95 : vector<16x32xf32>
    %cst_120 = arith.constant 0.000000e+00 : f32
    %97 = vector.broadcast %cst_120 : f32 to vector<16x32xf32>
    %98 = arith.maximumf %96, %97 : vector<16x32xf32>
    %99 = arith.truncf %98 : vector<16x32xf32> to vector<16x32xbf16>
    %c0_121 = arith.constant 0 : index
    %c0_122 = arith.constant 0 : index
    %100 = vector.load %arg8[%c0_121, %c0_122] : memref<32x128xbf16, #tpu.memory_space<vmem>>, vector<32x128xbf16>
    %cst_123 = arith.constant dense<0.000000e+00> : vector<16x128xf32>
    %101 = tpu.matmul %99, %100, %cst_123 {dimension_numbers = #tpu.dot_dimension_numbers<[1], [0], [0], [1], [0, 0, 1, 1], [], []>} : vector<16x32xbf16>, vector<32x128xbf16>, vector<16x128xf32> -> vector<16x128xf32>
    %c0_124 = arith.constant 0 : index
    %c0_125 = arith.constant 0 : index
    %102 = vector.load %arg9[%c0_124, %c0_125] : memref<1x128xf32, #tpu.memory_space<vmem>>, vector<1x128xf32>
    %103 = vector.broadcast %102 : vector<1x128xf32> to vector<16x128xf32>
    %104 = arith.addf %101, %103 : vector<16x128xf32>
    %105 = arith.truncf %104 : vector<16x128xf32> to vector<16x128xbf16>
    %c0_126 = arith.constant 0 : index
    %c0_127 = arith.constant 0 : index
    %106 = vector.load %arg10[%c0_126, %c0_127] : memref<16x128xbf16, #tpu.memory_space<vmem>>, vector<16x128xbf16>
    tpu.vector_store %arg10[%c0_126, %c0_127], %105 {strides = array<i32>} : memref<16x128xbf16, #tpu.memory_space<vmem>>, vector<16x128xbf16>,
    return
  }
  func.func @transform_0(%arg0: i32) -> (i32, i32) {
    %c0_i32 = arith.constant 0 : i32
    %c0_i32_0 = arith.constant 0 : i32
    return %arg0, %c0_i32 : i32, i32
  }
  func.func @transform_1(%arg0: i32) -> (i32, i32) {
    %c0_i32 = arith.constant 0 : i32
    %c0_i32_0 = arith.constant 0 : i32
    %c0_i32_1 = arith.constant 0 : i32
    return %c0_i32, %c0_i32_0 : i32, i32
  }
  func.func @transform_2(%arg0: i32) -> (i32, i32) {
    %c0_i32 = arith.constant 0 : i32
    %c0_i32_0 = arith.constant 0 : i32
    %c0_i32_1 = arith.constant 0 : i32
    return %c0_i32, %c0_i32_0 : i32, i32
  }
  func.func @transform_3(%arg0: i32) -> (i32, i32) {
    %c0_i32 = arith.constant 0 : i32
    %c0_i32_0 = arith.constant 0 : i32
    %c0_i32_1 = arith.constant 0 : i32
    return %c0_i32, %c0_i32_0 : i32, i32
  }
  func.func @transform_4(%arg0: i32) -> (i32, i32) {
    %c0_i32 = arith.constant 0 : i32
    %c0_i32_0 = arith.constant 0 : i32
    %c0_i32_1 = arith.constant 0 : i32
    return %c0_i32, %c0_i32_0 : i32, i32
  }
  func.func @transform_5(%arg0: i32) -> (i32, i32) {
    %c0_i32 = arith.constant 0 : i32
    %c0_i32_0 = arith.constant 0 : i32
    %c0_i32_1 = arith.constant 0 : i32
    return %c0_i32, %c0_i32_0 : i32, i32
  }
  func.func @transform_6(%arg0: i32) -> (i32, i32) {
    %c0_i32 = arith.constant 0 : i32
    %c0_i32_0 = arith.constant 0 : i32
    %c0_i32_1 = arith.constant 0 : i32
    return %c0_i32, %c0_i32_0 : i32, i32
  }
  func.func @transform_7(%arg0: i32) -> (i32, i32) {
    %c0_i32 = arith.constant 0 : i32
    %c0_i32_0 = arith.constant 0 : i32
    %c0_i32_1 = arith.constant 0 : i32
    return %c0_i32, %c0_i32_0 : i32, i32
  }
  func.func @transform_8(%arg0: i32) -> (i32, i32) {
    %c0_i32 = arith.constant 0 : i32
    %c0_i32_0 = arith.constant 0 : i32
    %c0_i32_1 = arith.constant 0 : i32
    return %c0_i32, %c0_i32_0 : i32, i32
  }
  func.func @transform_9(%arg0: i32) -> (i32, i32) {
    %c0_i32 = arith.constant 0 : i32
    %c0_i32_0 = arith.constant 0 : i32
    return %arg0, %c0_i32 : i32, i32
  }
}

</mosaic_0001>

<bundles_post_ra>
// kernel: forward.1
= control target key start
LH: loop header
LB: loop body
LE: loop exit
PB: predicated region body
PF: predicated region fallthrough
CT: control target
= control target key end

     0   :  { %v10568_v0 = vmov 0.0   ;;  %vm7902_vm0 = vmmov 0   ;;  %vm412_vm1 = vcmask 130048   ;;  %vm37_vm2 = vcmask 523264   ;;  %s7904_s23 = smov 64   ;;  %s10558_s1 = inlined_call_operand.vmem [shape: bf16[16,64], index: 1, kind: input, shape index: {}]   ;;  %s10559_s0 = inlined_call_operand.vmem [shape: bf16[784,16], index: 0, kind: input, shape index: {}]   ;;  %s10560_s2 = inlined_call_operand.vmem [shape: f32[1,64], index: 2, kind: input, shape index: {}]   ;;  %s10561_s3 = inlined_call_operand.vmem [shape: bf16[576,64], index: 3, kind: input, shape index: {}]   ;;  %s10562_s5 = inlined_call_operand.vmem [shape: bf16[1600,32], index: 5, kind: input, shape index: {}]   ;;  %s10563_s4 = inlined_call_operand.vmem [shape: f32[1,64], index: 4, kind: input, shape index: {}]   ;;  %s10564_s6 = inlined_call_operand.vmem [shape: f32[1,32], index: 6, kind: input, shape index: {}]   ;;  %s10565_s7 = inlined_call_operand.vmem [shape: bf16[32,128], index: 7, kind: input, shape index: {}]   ;;  %s10566_s8 = inlined_call_operand.vmem [shape: f32[1,128], index: 8, kind: input, shape index: {}]   ;;  %s10567_s9 = inlined_call_operand.vmem [shape: bf16[16,128], index: 9, kind: output, shape index: {}]  }
   0x1   :  { %6844 = vmatprep.subr.bf16.mxu0 %v10568_v0  ;;  %v7710_v1 = vld [vmem:[%s10558_s1] sm:$0xff]   ;;  %6846 = vmatprep.mubr.msk.bf16.mxu0 %vm7902_vm0, %v10568_v0  ;;  %v7712_v3 = vld [vmem:[%s10559_s0 + $0x8] sm:$0xff]   ;;  %v7713_v4 = vld [vmem:[%s10559_s0 + $0x10] sm:$0xff]   ;;  %vm1525_vm3 = vcmask 1048064   ;;  %vm6241_vm4 = vcmask 261120  }
   0x2   :  { %v7711_v2 = vld [vmem:[%s10559_s0] sm:$0xff]   ;;  %6845 = vmatpush3.bf16.msra.mxu0 %v7710_v1  ;;  %v7714_v5 = vld [vmem:[%s10559_s0 + $0x18] sm:$0xff]   ;;  %v7716_v7 = vld [vmem:[%s10559_s0 + $0x28] sm:$0xff]  }
   0x3   :  { %v7715_v6 = vld [vmem:[%s10559_s0 + $0x20] sm:$0xff]   ;;  %v7717_v8 = vld [vmem:[%s10559_s0 + $0x30] sm:$0xff]   ;;  %v7718_v9 = vld [vmem:[%s10559_s0 + $0x38] sm:$0xff]  }
   0x4   :  { %v7719_v10 = vld [vmem:[%s10559_s0 + $0x40] sm:$0xff]   ;;  %v7720_v11 = vld [vmem:[%s10559_s0 + $0x48] sm:$0xff]   ;;  %v7721_v12 = vld [vmem:[%s10559_s0 + $0x50] sm:$0xff]  }
   0x5   :  { %6847 = vmatmul.mubr.msk.bf16.vlgmr.msra.gmra.mrb[0].mxu0 %vm412_vm1, %v7711_v2  ;;  %v7722_v13 = vld [vmem:[%s10559_s0 + $0x58] sm:$0xff]   ;;  %v7723_v14 = vld [vmem:[%s10559_s0 + $0x60] sm:$0xff]   ;;  %v7724_v15 = vld [vmem:[%s10559_s0 + $0x68] sm:$0xff]  }
   0x6   :  { %6850 = vmatprep.mubr.msk.bf16.mxu0 %vm7902_vm0, %v10568_v0  ;;  %v7725_v16 = vld [vmem:[%s10559_s0 + $0x70] sm:$0xff]   ;;  %v7726_v17 = vld [vmem:[%s10559_s0 + $0x78] sm:$0xff]   ;;  %v7727_v18 = vld [vmem:[%s10559_s0 + $0x80] sm:$0xff]  }
   0x7   :  { %v7728_v19 = vld [vmem:[%s10559_s0 + $0x88] sm:$0xff]   ;;  %v7729_v20 = vld [vmem:[%s10559_s0 + $0x90] sm:$0xff]   ;;  %v7730_v21 = vld [vmem:[%s10559_s0 + $0x98] sm:$0xff]  }
   0x8   :  { %v7731_v22 = vld [vmem:[%s10559_s0 + $0xa0] sm:$0xff]   ;;  %v7732_v23 = vld [vmem:[%s10559_s0 + $0xa8] sm:$0xff]   ;;  %v7733_v24 = vld [vmem:[%s10559_s0 + $0xb0] sm:$0xff]  }
   0x9   :  { %v7734_v25 = vld [vmem:[%s10559_s0 + $0xb8] sm:$0xff]   ;;  %v7735_v26 = vld [vmem:[%s10559_s0 + $0xc0] sm:$0xff]   ;;  %v7736_v27 = vld [vmem:[%s10559_s0 + $0xc8] sm:$0xff]  }
   0xa   :  { %v7737_v28 = vld [vmem:[%s10559_s0 + $0xd0] sm:$0xff]   ;;  %v8124_v29 = vld [vmem:[%s10560_s2] ss:$0 sm:$0xff]  ;;  %v7738_v33 = vld [vmem:[%s10559_s0 + $0xd8] sm:$0xff]  }
   0xb   :  { %v7739_v43 = vld [vmem:[%s10559_s0 + $0xe0] sm:$0xff]   ;;  %v7740_v54 = vld [vmem:[%s10559_s0 + $0xe8] sm:$0xff]   ;;  %v7741_v2 = vld [vmem:[%s10559_s0 + $0xf0] sm:$0xff]  }
   0xd   :  { %6851 = vmatmul.mubr.msk.bf16.gmra.mrb[4].mxu0 %vm412_vm1, %v7712_v3 }
   0xe   :  { %6854 = vmatprep.mubr.msk.bf16.mxu0 %vm7902_vm0, %v10568_v0 }
  0x15   :  { %6855 = vmatmul.mubr.msk.bf16.gmra.mrb[8].mxu0 %vm412_vm1, %v7713_v4 }
  0x16   :  { %6858 = vmatprep.mubr.msk.bf16.mxu0 %vm7902_vm0, %v10568_v0 }
  0x1d   :  { %6859 = vmatmul.mubr.msk.bf16.gmra.mrb[12].mxu0 %vm412_vm1, %v7714_v5 }
  0x1e   :  { %6862 = vmatprep.mubr.msk.bf16.mxu0 %vm7902_vm0, %v10568_v0 }
  0x25   :  { %6863 = vmatmul.mubr.msk.bf16.gmra.mrb[16].mxu0 %vm412_vm1, %v7715_v6 }
  0x26   :  { %6866 = vmatprep.mubr.msk.bf16.mxu0 %vm7902_vm0, %v10568_v0 }
  0x2d   :  { %6867 = vmatmul.mubr.msk.bf16.gmra.mrb[20].mxu0 %vm412_vm1, %v7716_v7 }
  0x2e   :  { %6870 = vmatprep.mubr.msk.bf16.mxu0 %vm7902_vm0, %v10568_v0 }
  0x35   :  { %6871 = vmatmul.mubr.msk.bf16.gmra.mrb[24].mxu0 %vm412_vm1, %v7717_v8 }
  0x36   :  { %6874 = vmatprep.mubr.msk.bf16.mxu0 %vm7902_vm0, %v10568_v0 }
  0x3d   :  { %6875 = vmatmul.mubr.msk.bf16.gmra.mrb[28].mxu0 %vm412_vm1, %v7718_v9 }
  0x3e   :  { %6878 = vmatprep.mubr.msk.bf16.mxu0 %vm7902_vm0, %v10568_v0 }
  0x45   :  { %6879 = vmatmul.mubr.msk.bf16.gmra.mrb[32].mxu0 %vm412_vm1, %v7719_v10 }
  0x46   :  { %6882 = vmatprep.mubr.msk.bf16.mxu0 %vm7902_vm0, %v10568_v0 }
  0x4d   :  { %6883 = vmatmul.mubr.msk.bf16.gmra.mrb[36].mxu0 %vm412_vm1, %v7720_v11 }
  0x4e   :  { %6886 = vmatprep.mubr.msk.bf16.mxu0 %vm7902_vm0, %v10568_v0 }
  0x55   :  { %6887 = vmatmul.mubr.msk.bf16.gmra.mrb[40].mxu0 %vm412_vm1, %v7721_v12 }
  0x56   :  { %6890 = vmatprep.mubr.msk.bf16.mxu0 %vm7902_vm0, %v10568_v0 }
  0x5d   :  { %6891 = vmatmul.mubr.msk.bf16.gmra.mrb[44].mxu0 %vm412_vm1, %v7722_v13  ;;  %v7742_v13 = vld [vmem:[%s10559_s0 + $0xf8] sm:$0xff]  }
  0x5e   :  { %6894 = vmatprep.mubr.msk.bf16.mxu0 %vm7902_vm0, %v10568_v0 }
  0x65   :  { %6895 = vmatmul.mubr.msk.bf16.gmra.mrb[48].mxu0 %vm412_vm1, %v7723_v14 }
  0x66   :  { %6898 = vmatprep.mubr.msk.bf16.mxu0 %vm7902_vm0, %v10568_v0 }
  0x6d   :  { %6899 = vmatmul.mubr.msk.bf16.gmra.mrb[52].mxu0 %vm412_vm1, %v7724_v15 }
  0x6e   :  { %6902 = vmatprep.mubr.msk.bf16.mxu0 %vm7902_vm0, %v10568_v0 }
  0x75   :  { %6903 = vmatmul.mubr.msk.bf16.gmra.mrb[56].mxu0 %vm412_vm1, %v7725_v16 }
  0x76   :  { %6906 = vmatprep.mubr.msk.bf16.mxu0 %vm7902_vm0, %v10568_v0 }
  0x7d   :  { %6907 = vmatmul.mubr.msk.bf16.gmra.mrb[60].mxu0 %vm412_vm1, %v7726_v17 }
  0x7e   :  { %6910 = vmatprep.mubr.msk.bf16.mxu0 %vm7902_vm0, %v10568_v0 }
  0x85   :  { %6911 = vmatmul.mubr.msk.bf16.gmra.mrb[64].mxu0 %vm412_vm1, %v7727_v18 }
  0x86   :  { %6914 = vmatprep.mubr.msk.bf16.mxu0 %vm7902_vm0, %v10568_v0 }
  0x8d   :  { %6915 = vmatmul.mubr.msk.bf16.gmra.mrb[68].mxu0 %vm412_vm1, %v7728_v19 }
  0x8e   :  { %6918 = vmatprep.mubr.msk.bf16.mxu0 %vm7902_vm0, %v10568_v0 }
  0x95   :  { %6919 = vmatmul.mubr.msk.bf16.gmra.mrb[72].mxu0 %vm412_vm1, %v7729_v20 }
  0x96   :  { %6922 = vmatprep.mubr.msk.bf16.mxu0 %vm7902_vm0, %v10568_v0 }
  0x9d   :  { %6923 = vmatmul.mubr.msk.bf16.gmra.mrb[76].mxu0 %vm412_vm1, %v7730_v21 }
  0x9e   :  { %6926 = vmatprep.mubr.msk.bf16.mxu0 %vm7902_vm0, %v10568_v0 }
  0xa5   :  { %6927 = vmatmul.mubr.msk.bf16.gmra.mrb[80].mxu0 %vm412_vm1, %v7731_v22 }
  0xa6   :  { %6930 = vmatprep.mubr.msk.bf16.mxu0 %vm7902_vm0, %v10568_v0 }
  0xad   :  { %6931 = vmatmul.mubr.msk.bf16.gmra.mrb[84].mxu0 %vm412_vm1, %v7732_v23 }
  0xae   :  { %6934 = vmatprep.mubr.msk.bf16.mxu0 %vm7902_vm0, %v10568_v0 }
  0xb5   :  { %6935 = vmatmul.mubr.msk.bf16.gmra.mrb[88].mxu0 %vm412_vm1, %v7733_v24  ;;  %v7743_v24 = vld [vmem:[%s10559_s0 + $0x100] sm:$0xff]  }
  0xb6   :  { %6938 = vmatprep.mubr.msk.bf16.mxu0 %vm7902_vm0, %v10568_v0 }
  0xbd   :  { %6939 = vmatmul.mubr.msk.bf16.gmra.mrb[92].mxu0 %vm412_vm1, %v7734_v25 }
  0xbe   :  { %6942 = vmatprep.mubr.msk.bf16.mxu0 %vm7902_vm0, %v10568_v0 }
  0xc5   :  { %6943 = vmatmul.mubr.msk.bf16.gmra.mrb[96].mxu0 %vm412_vm1, %v7735_v26 }
  0xc6   :  { %6946 = vmatprep.mubr.msk.bf16.mxu0 %vm7902_vm0, %v10568_v0 }
  0xcd   :  { %6947 = vmatmul.mubr.msk.bf16.gmra.mrb[100].mxu0 %vm412_vm1, %v7736_v27 }
  0xce   :  { %6950 = vmatprep.mubr.msk.bf16.mxu0 %vm7902_vm0, %v10568_v0 }
  0xd5   :  { %6951 = vmatmul.mubr.msk.bf16.gmra.mrb[104].mxu0 %vm412_vm1, %v7737_v28 }
  0xd6   :  { %6954 = vmatprep.mubr.msk.bf16.mxu0 %vm7902_vm0, %v10568_v0 }
  0xd8   :  { %v594_v30 = vpop.f32.mrb[0].mxu0 }
  0xd9   :  { %v595_v31 = vadd.f32 %v8124_v29, %v594_v30  ;;  %v6848_v32 = vpop.f32.mrb[1].mxu0 }
  0xda   :  { %v597_v34 = vpop.f32.mrb[2].mxu0 }
  0xdb   :  { %v598_v35 = vadd.f32 %v8124_v29, %v597_v34  ;;  %v6849_v36 = vpop.f32.mrb[3].mxu0  ;;  %v985_v37 = vmax.f32 %v595_v31, 0.0 }
  0xdc   :  { %v7744_v36 = vld [vmem:[%s10559_s0 + $0x108] sm:$0xff]  }
  0xdd   :  { %v986_v38 = vmax.f32 %v598_v35, 0.0  ;;  %6955 = vmatmul.mubr.msk.bf16.gmra.mrb[108].mxu0 %vm412_vm1, %v7738_v33 }
  0xde   :  { %6958 = vmatprep.mubr.msk.bf16.mxu0 %vm7902_vm0, %v10568_v0 }
  0xdf   :  { %v1083_v39 = vpack.c.bf16 %v986_v38, %v985_v37 }
  0xe0   :  { %v602_v40 = vpop.f32.mrb[4].mxu0 }
  0xe1   :  { %1133 = vst.msk [vmem:[#allocation2] sm:$0xff] %vm37_vm2, %v1083_v39  ;;  %v603_v41 = vadd.f32 %v8124_v29, %v602_v40  ;;  %v6852_v42 = vpop.f32.mrb[5].mxu0 }
  0xe2   :  { %v605_v44 = vpop.f32.mrb[6].mxu0 }
  0xe3   :  { %v606_v45 = vadd.f32 %v8124_v29, %v605_v44  ;;  %v6853_v46 = vpop.f32.mrb[7].mxu0  ;;  %v987_v47 = vmax.f32 %v603_v41, 0.0 }
  0xe5   :  { %v988_v48 = vmax.f32 %v606_v45, 0.0  ;;  %6959 = vmatmul.mubr.msk.bf16.gmra.mrb[112].mxu0 %vm412_vm1, %v7739_v43 }
  0xe6   :  { %6962 = vmatprep.mubr.msk.bf16.mxu0 %vm7902_vm0, %v10568_v0 }
  0xe7   :  { %v1084_v49 = vpack.c.bf16 %v988_v48, %v987_v47  ;;  %v7745_v47 = vld [vmem:[%s10559_s0 + $0x110] sm:$0xff]  }
  0xe8   :  { %v610_v50 = vpop.f32.mrb[8].mxu0  ;;  %v1182_v51 = vld [vmem:[#allocation2] sm:$0xff] }
  0xe9   :  { %1134 = vst.msk [vmem:[#allocation2 + $0x8] sm:$0xff] %vm37_vm2, %v1084_v49  ;;  %v611_v52 = vadd.f32 %v8124_v29, %v610_v50  ;;  %v6856_v53 = vpop.f32.mrb[9].mxu0  ;;  %1231 = vst.msk [vmem:[#allocation3] sm:$0xff] %vm37_vm2, %v1182_v51 }
  0xea   :  { %v613_v55 = vpop.f32.mrb[10].mxu0 }
  0xeb   :  { %v614_v56 = vadd.f32 %v8124_v29, %v613_v55  ;;  %v6857_v57 = vpop.f32.mrb[11].mxu0  ;;  %v989_v58 = vmax.f32 %v611_v52, 0.0 }
  0xed   :  { %v990_v59 = vmax.f32 %v614_v56, 0.0  ;;  %6963 = vmatmul.mubr.msk.bf16.gmra.mrb[116].mxu0 %vm412_vm1, %v7740_v54 }
  0xee   :  { %6966 = vmatprep.mubr.msk.bf16.mxu0 %vm7902_vm0, %v10568_v0 }
  0xef   :  { %v1085_v60 = vpack.c.bf16 %v990_v59, %v989_v58  ;;  %v7746_v58 = vld [vmem:[%s10559_s0 + $0x118] sm:$0xff]  }
  0xf0   :  { %v618_v61 = vpop.f32.mrb[12].mxu0  ;;  %v8155_v62 = vld [vmem:[#allocation2 + $0x8] sm:$0xff] }
  0xf1   :  { %1135 = vst.msk [vmem:[#allocation2 + $0x10] sm:$0xff] %vm37_vm2, %v1085_v60  ;;  %v619_v63 = vadd.f32 %v8124_v29, %v618_v61  ;;  %v6860_v1 = vpop.f32.mrb[13].mxu0  ;;  %1232 = vst.msk [vmem:[#allocation3 + $0x28] sm:$0xff] %vm37_vm2, %v8155_v62 }
  0xf2   :  { %v621_v3 = vpop.f32.mrb[14].mxu0 }
  0xf3   :  { %v622_v4 = vadd.f32 %v8124_v29, %v621_v3  ;;  %v6861_v5 = vpop.f32.mrb[15].mxu0  ;;  %v991_v6 = vmax.f32 %v619_v63, 0.0 }
  0xf5   :  { %v992_v7 = vmax.f32 %v622_v4, 0.0  ;;  %6967 = vmatmul.mubr.msk.bf16.gmra.mrb[120].mxu0 %vm412_vm1, %v7741_v2 }
  0xf6   :  { %6970 = vmatprep.mubr.msk.bf16.mxu0 %vm7902_vm0, %v10568_v0 }
  0xf7   :  { %v1086_v8 = vpack.c.bf16 %v992_v7, %v991_v6  ;;  %v7747_v7 = vld [vmem:[%s10559_s0 + $0x120] sm:$0xff]  }
  0xf8   :  { %v626_v9 = vpop.f32.mrb[16].mxu0  ;;  %v8168_v10 = vld [vmem:[#allocation2 + $0x10] sm:$0xff] }
  0xf9   :  { %1136 = vst.msk [vmem:[#allocation2 + $0x18] sm:$0xff] %vm37_vm2, %v1086_v8  ;;  %v627_v11 = vadd.f32 %v8124_v29, %v626_v9  ;;  %v6864_v12 = vpop.f32.mrb[17].mxu0  ;;  %1233 = vst.msk [vmem:[#allocation3 + $0x50] sm:$0xff] %vm37_vm2, %v8168_v10 }
  0xfa   :  { %1624 = vst.msk [vmem:[#allocation3 + $0x8] sm:$0xff] %vm37_vm2, %v8168_v10  ;;  %v629_v14 = vpop.f32.mrb[18].mxu0 }
  0xfb   :  { %v630_v15 = vadd.f32 %v8124_v29, %v629_v14  ;;  %v6865_v16 = vpop.f32.mrb[19].mxu0  ;;  %v993_v17 = vmax.f32 %v627_v11, 0.0 }
  0xfd   :  { %v994_v18 = vmax.f32 %v630_v15, 0.0  ;;  %6971 = vmatmul.mubr.msk.bf16.gmra.mrb[124].mxu0 %vm412_vm1, %v7742_v13 }
  0xfe   :  { %6974 = vmatprep.mubr.msk.bf16.mxu0 %vm7902_vm0, %v10568_v0 }
  0xff   :  { %v1087_v19 = vpack.c.bf16 %v994_v18, %v993_v17 }
 0x100   :  { %v634_v20 = vpop.f32.mrb[20].mxu0  ;;  %v8183_v21 = vld [vmem:[#allocation2 + $0x18] sm:$0xff] }
 0x101   :  { %1137 = vst.msk [vmem:[#allocation2 + $0x20] sm:$0xff] %vm37_vm2, %v1087_v19  ;;  %v635_v22 = vadd.f32 %v8124_v29, %v634_v20  ;;  %v6868_v23 = vpop.f32.mrb[21].mxu0  ;;  %1234 = vst.msk [vmem:[#allocation3 + $0x78] sm:$0xff] %vm37_vm2, %v8183_v21  ;;  %v7748_v20 = vld [vmem:[%s10559_s0 + $0x128] sm:$0xff]  }
 0x102   :  { %1625 = vst.msk [vmem:[#allocation3 + $0x30] sm:$0xff] %vm37_vm2, %v8183_v21  ;;  %v637_v25 = vpop.f32.mrb[22].mxu0 }
 0x103   :  { %v638_v26 = vadd.f32 %v8124_v29, %v637_v25  ;;  %v6869_v27 = vpop.f32.mrb[23].mxu0  ;;  %v995_v28 = vmax.f32 %v635_v22, 0.0 }
 0x105   :  { %v996_v30 = vmax.f32 %v638_v26, 0.0  ;;  %6975 = vmatmul.mubr.msk.bf16.gmra.mrb[128].mxu0 %vm412_vm1, %v7743_v24 }
 0x106   :  { %6978 = vmatprep.mubr.msk.bf16.mxu0 %vm7902_vm0, %v10568_v0 }
 0x107   :  { %v1088_v31 = vpack.c.bf16 %v996_v30, %v995_v28 }
 0x108   :  { %v642_v32 = vpop.f32.mrb[24].mxu0  ;;  %v8198_v33 = vld [vmem:[#allocation2 + $0x20] sm:$0xff] }
 0x109   :  { %1138 = vst.msk [vmem:[#allocation2 + $0x28] sm:$0xff] %vm37_vm2, %v1088_v31  ;;  %v643_v34 = vadd.f32 %v8124_v29, %v642_v32  ;;  %v6872_v35 = vpop.f32.mrb[25].mxu0  ;;  %1235 = vst.msk [vmem:[#allocation3 + $0xa0] sm:$0xff] %vm37_vm2, %v8198_v33 }
 0x10a   :  { %1626 = vst.msk [vmem:[#allocation3 + $0x58] sm:$0xff] %vm37_vm2, %v8198_v33  ;;  %v645_v37 = vpop.f32.mrb[26].mxu0 }
 0x10b   :  { %v646_v38 = vadd.f32 %v8124_v29, %v645_v37  ;;  %v6873_v39 = vpop.f32.mrb[27].mxu0  ;;  %v997_v40 = vmax.f32 %v643_v34, 0.0 }
 0x10d   :  { %v998_v41 = vmax.f32 %v646_v38, 0.0  ;;  %6979 = vmatmul.mubr.msk.bf16.gmra.mrb[132].mxu0 %vm412_vm1, %v7744_v36  ;;  %v7749_v36 = vld [vmem:[%s10559_s0 + $0x130] sm:$0xff]  }
 0x10e   :  { %6982 = vmatprep.mubr.msk.bf16.mxu0 %vm7902_vm0, %v10568_v0 }
 0x10f   :  { %v1089_v42 = vpack.c.bf16 %v998_v41, %v997_v40 }
 0x110   :  { %v650_v43 = vpop.f32.mrb[28].mxu0  ;;  %v8213_v44 = vld [vmem:[#allocation2 + $0x28] sm:$0xff] }
 0x111   :  { %1139 = vst.msk [vmem:[#allocation2 + $0x30] sm:$0xff] %vm37_vm2, %v1089_v42  ;;  %v651_v45 = vadd.f32 %v8124_v29, %v650_v43  ;;  %v6876_v46 = vpop.f32.mrb[29].mxu0  ;;  %1236 = vst.msk [vmem:[#allocation3 + $0xc8] sm:$0xff] %vm37_vm2, %v8213_v44 }
 0x112   :  { %1627 = vst.msk [vmem:[#allocation3 + $0x80] sm:$0xff] %vm37_vm2, %v8213_v44  ;;  %v653_v48 = vpop.f32.mrb[30].mxu0 }
 0x113   :  { %v654_v49 = vadd.f32 %v8124_v29, %v653_v48  ;;  %v6877_v50 = vpop.f32.mrb[31].mxu0  ;;  %v999_v51 = vmax.f32 %v651_v45, 0.0 }
 0x115   :  { %v1000_v52 = vmax.f32 %v654_v49, 0.0  ;;  %6983 = vmatmul.mubr.msk.bf16.gmra.mrb[136].mxu0 %vm412_vm1, %v7745_v47  ;;  %v7750_v49 = vld [vmem:[%s10559_s0 + $0x138] sm:$0xff]  }
 0x116   :  { %6986 = vmatprep.mubr.msk.bf16.mxu0 %vm7902_vm0, %v10568_v0 }
 0x117   :  { %v1090_v53 = vpack.c.bf16 %v1000_v52, %v999_v51 }
 0x118   :  { %v658_v54 = vpop.f32.mrb[32].mxu0  ;;  %v8228_v55 = vld [vmem:[#allocation2 + $0x30] sm:$0xff] }
 0x119   :  { %1140 = vst.msk [vmem:[#allocation2 + $0x38] sm:$0xff] %vm37_vm2, %v1090_v53  ;;  %v659_v56 = vadd.f32 %v8124_v29, %v658_v54  ;;  %v6880_v57 = vpop.f32.mrb[33].mxu0  ;;  %1237 = vst.msk [vmem:[#allocation3 + $0xf0] sm:$0xff] %vm37_vm2, %v8228_v55 }
 0x11a   :  { %1628 = vst.msk [vmem:[#allocation3 + $0xa8] sm:$0xff] %vm37_vm2, %v8228_v55  ;;  %v661_v59 = vpop.f32.mrb[34].mxu0 }
 0x11b   :  { %v662_v60 = vadd.f32 %v8124_v29, %v661_v59  ;;  %v6881_v61 = vpop.f32.mrb[35].mxu0  ;;  %v1001_v63 = vmax.f32 %v659_v56, 0.0 }
 0x11d   :  { %v1002_v1 = vmax.f32 %v662_v60, 0.0  ;;  %6987 = vmatmul.mubr.msk.bf16.gmra.mrb[140].mxu0 %vm412_vm1, %v7746_v58 }
 0x11e   :  { %6990 = vmatprep.mubr.msk.bf16.mxu0 %vm7902_vm0, %v10568_v0 }
 0x11f   :  { %v1091_v2 = vpack.c.bf16 %v1002_v1, %v1001_v63  ;;  %v7751_v63 = vld [vmem:[%s10559_s0 + $0x140] sm:$0xff]  }
 0x120   :  { %v666_v3 = vpop.f32.mrb[36].mxu0  ;;  %v8243_v4 = vld [vmem:[#allocation2 + $0x38] sm:$0xff] }
 0x121   :  { %1141 = vst.msk [vmem:[#allocation2 + $0x40] sm:$0xff] %vm37_vm2, %v1091_v2  ;;  %v667_v5 = vadd.f32 %v8124_v29, %v666_v3  ;;  %v6884_v6 = vpop.f32.mrb[37].mxu0  ;;  %1238 = vst.msk [vmem:[#allocation3 + $0x118] sm:$0xff] %vm37_vm2, %v8243_v4 }
 0x122   :  { %1629 = vst.msk [vmem:[#allocation3 + $0xd0] sm:$0xff] %vm37_vm2, %v8243_v4  ;;  %v669_v8 = vpop.f32.mrb[38].mxu0 }
 0x123   :  { %v670_v9 = vadd.f32 %v8124_v29, %v669_v8  ;;  %v6885_v11 = vpop.f32.mrb[39].mxu0  ;;  %v1003_v12 = vmax.f32 %v667_v5, 0.0 }
 0x125   :  { %v1004_v13 = vmax.f32 %v670_v9, 0.0  ;;  %6991 = vmatmul.mubr.msk.bf16.gmra.mrb[144].mxu0 %vm412_vm1, %v7747_v7 }
 0x126   :  { %6994 = vmatprep.mubr.msk.bf16.mxu0 %vm7902_vm0, %v10568_v0 }
 0x127   :  { %v1092_v14 = vpack.c.bf16 %v1004_v13, %v1003_v12 }
 0x128   :  { %v674_v15 = vpop.f32.mrb[40].mxu0  ;;  %v8258_v16 = vld [vmem:[#allocation2 + $0x40] sm:$0xff] }
 0x129   :  { %v1190_v17 = vld [vmem:[#allocation2 + $0x40] sm:$0xff]  ;;  %1142 = vst.msk [vmem:[#allocation2 + $0x48] sm:$0xff] %vm37_vm2, %v1092_v14  ;;  %v675_v18 = vadd.f32 %v8124_v29, %v674_v15  ;;  %v6888_v19 = vpop.f32.mrb[41].mxu0  ;;  %2016 = vst.msk [vmem:[#allocation3 + $0x10] sm:$0xff] %vm37_vm2, %v8258_v16  ;;  %v7752_v14 = vld [vmem:[%s10559_s0 + $0x148] sm:$0xff]  }
 0x12a   :  { %1239 = vst.msk [vmem:[#allocation3 + $0x140] sm:$0xff] %vm37_vm2, %v1190_v17  ;;  %1630 = vst.msk [vmem:[#allocation3 + $0xf8] sm:$0xff] %vm37_vm2, %v1190_v17  ;;  %v677_v22 = vpop.f32.mrb[42].mxu0 }
 0x12b   :  { %v678_v23 = vadd.f32 %v8124_v29, %v677_v22  ;;  %v6889_v24 = vpop.f32.mrb[43].mxu0  ;;  %v1005_v25 = vmax.f32 %v675_v18, 0.0 }
 0x12d   :  { %v1006_v26 = vmax.f32 %v678_v23, 0.0  ;;  %6995 = vmatmul.mubr.msk.bf16.gmra.mrb[148].mxu0 %vm412_vm1, %v7748_v20 }
 0x12e   :  { %6998 = vmatprep.mubr.msk.bf16.mxu0 %vm7902_vm0, %v10568_v0 }
 0x12f   :  { %v1093_v27 = vpack.c.bf16 %v1006_v26, %v1005_v25 }
 0x130   :  { %v682_v28 = vpop.f32.mrb[44].mxu0  ;;  %v8273_v30 = vld [vmem:[#allocation2 + $0x48] sm:$0xff] }
 0x131   :  { %v8275_v31 = vld [vmem:[#allocation2 + $0x48] sm:$0xff]  ;;  %1143 = vst.msk [vmem:[#allocation2 + $0x50] sm:$0xff] %vm37_vm2, %v1093_v27  ;;  %v683_v34 = vadd.f32 %v8124_v29, %v682_v28  ;;  %v6892_v35 = vpop.f32.mrb[45].mxu0  ;;  %2017 = vst.msk [vmem:[#allocation3 + $0x38] sm:$0xff] %vm37_vm2, %v8273_v30  ;;  %v7753_v28 = vld [vmem:[%s10559_s0 + $0x150] sm:$0xff]  }
 0x132   :  { %v1582_v32 = vld [vmem:[#allocation2 + $0x48] sm:$0xff]  ;;  %1240 = vst.msk [vmem:[#allocation3 + $0x168] sm:$0xff] %vm37_vm2, %v8275_v31  ;;  %v685_v37 = vpop.f32.mrb[46].mxu0 }
 0x133   :  { %1631 = vst.msk [vmem:[#allocation3 + $0x120] sm:$0xff] %vm37_vm2, %v1582_v32  ;;  %v686_v38 = vadd.f32 %v8124_v29, %v685_v37  ;;  %v6893_v39 = vpop.f32.mrb[47].mxu0  ;;  %v1007_v40 = vmax.f32 %v683_v34, 0.0 }
 0x135   :  { %v1008_v41 = vmax.f32 %v686_v38, 0.0  ;;  %6999 = vmatmul.mubr.msk.bf16.gmra.mrb[152].mxu0 %vm412_vm1, %v7749_v36 }
 0x136   :  { %7002 = vmatprep.mubr.msk.bf16.mxu0 %vm7902_vm0, %v10568_v0 }
 0x137   :  { %v1094_v42 = vpack.c.bf16 %v1008_v41, %v1007_v40 }
 0x138   :  { %v690_v43 = vpop.f32.mrb[48].mxu0  ;;  %v8291_v45 = vld [vmem:[#allocation2 + $0x50] sm:$0xff] }
 0x139   :  { %v8293_v46 = vld [vmem:[#allocation2 + $0x50] sm:$0xff]  ;;  %1144 = vst.msk [vmem:[#allocation2 + $0x58] sm:$0xff] %vm37_vm2, %v1094_v42  ;;  %v691_v47 = vadd.f32 %v8124_v29, %v690_v43  ;;  %v6896_v48 = vpop.f32.mrb[49].mxu0  ;;  %2018 = vst.msk [vmem:[#allocation3 + $0x60] sm:$0xff] %vm37_vm2, %v8291_v45 }
 0x13a   :  { %1241 = vst.msk [vmem:[#allocation3 + $0x190] sm:$0xff] %vm37_vm2, %v8293_v46  ;;  %1632 = vst.msk [vmem:[#allocation3 + $0x148] sm:$0xff] %vm37_vm2, %v8293_v46  ;;  %v693_v50 = vpop.f32.mrb[50].mxu0 }
 0x13b   :  { %v694_v51 = vadd.f32 %v8124_v29, %v693_v50  ;;  %v6897_v52 = vpop.f32.mrb[51].mxu0  ;;  %v1009_v53 = vmax.f32 %v691_v47, 0.0  ;;  %v7754_v47 = vld [vmem:[%s10559_s0 + $0x158] sm:$0xff]  }
 0x13d   :  { %v1010_v54 = vmax.f32 %v694_v51, 0.0  ;;  %7003 = vmatmul.mubr.msk.bf16.gmra.mrb[156].mxu0 %vm412_vm1, %v7750_v49 }
 0x13e   :  { %7006 = vmatprep.mubr.msk.bf16.mxu0 %vm7902_vm0, %v10568_v0 }
 0x13f   :  { %v1095_v56 = vpack.c.bf16 %v1010_v54, %v1009_v53 }
 0x140   :  { %v698_v57 = vpop.f32.mrb[52].mxu0  ;;  %v8310_v58 = vld [vmem:[#allocation2 + $0x58] sm:$0xff] }
 0x141   :  { %v8312_v59 = vld [vmem:[#allocation2 + $0x58] sm:$0xff]  ;;  %1145 = vst.msk [vmem:[#allocation2 + $0x60] sm:$0xff] %vm37_vm2, %v1095_v56  ;;  %v699_v60 = vadd.f32 %v8124_v29, %v698_v57  ;;  %v6900_v61 = vpop.f32.mrb[53].mxu0  ;;  %2019 = vst.msk [vmem:[#allocation3 + $0x88] sm:$0xff] %vm37_vm2, %v8310_v58 }
 0x142   :  { %1242 = vst.msk [vmem:[#allocation3 + $0x1b8] sm:$0xff] %vm37_vm2, %v8312_v59  ;;  %1633 = vst.msk [vmem:[#allocation3 + $0x170] sm:$0xff] %vm37_vm2, %v8312_v59  ;;  %v701_v1 = vpop.f32.mrb[54].mxu0 }
 0x143   :  { %v702_v2 = vadd.f32 %v8124_v29, %v701_v1  ;;  %v6901_v3 = vpop.f32.mrb[55].mxu0  ;;  %v1011_v5 = vmax.f32 %v699_v60, 0.0  ;;  %v7755_v1 = vld [vmem:[%s10559_s0 + $0x160] sm:$0xff]  }
 0x145   :  { %v1012_v6 = vmax.f32 %v702_v2, 0.0  ;;  %7007 = vmatmul.mubr.msk.bf16.gmra.mrb[160].mxu0 %vm412_vm1, %v7751_v63 }
 0x146   :  { %7010 = vmatprep.mubr.msk.bf16.mxu0 %vm7902_vm0, %v10568_v0 }
 0x147   :  { %v1096_v7 = vpack.c.bf16 %v1012_v6, %v1011_v5 }
 0x148   :  { %v706_v8 = vpop.f32.mrb[56].mxu0  ;;  %v8329_v9 = vld [vmem:[#allocation2 + $0x60] sm:$0xff] }
 0x149   :  { %v8331_v11 = vld [vmem:[#allocation2 + $0x60] sm:$0xff]  ;;  %1146 = vst.msk [vmem:[#allocation2 + $0x68] sm:$0xff] %vm37_vm2, %v1096_v7  ;;  %v707_v12 = vadd.f32 %v8124_v29, %v706_v8  ;;  %v6904_v13 = vpop.f32.mrb[57].mxu0  ;;  %2020 = vst.msk [vmem:[#allocation3 + $0xb0] sm:$0xff] %vm37_vm2, %v8329_v9 }
 0x14a   :  { %1243 = vst.msk [vmem:[#allocation3 + $0x1e0] sm:$0xff] %vm37_vm2, %v8331_v11  ;;  %1634 = vst.msk [vmem:[#allocation3 + $0x198] sm:$0xff] %vm37_vm2, %v8331_v11  ;;  %v709_v15 = vpop.f32.mrb[58].mxu0 }
 0x14b   :  { %v710_v17 = vadd.f32 %v8124_v29, %v709_v15  ;;  %v6905_v18 = vpop.f32.mrb[59].mxu0  ;;  %v1013_v19 = vmax.f32 %v707_v12, 0.0 }
 0x14d   :  { %v1014_v20 = vmax.f32 %v710_v17, 0.0  ;;  %7011 = vmatmul.mubr.msk.bf16.gmra.mrb[164].mxu0 %vm412_vm1, %v7752_v14 }
 0x14e   :  { %7014 = vmatprep.mubr.msk.bf16.mxu0 %vm7902_vm0, %v10568_v0 }
 0x14f   :  { %v1097_v22 = vpack.c.bf16 %v1014_v20, %v1013_v19  ;;  %v7756_v19 = vld [vmem:[%s10559_s0 + $0x168] sm:$0xff]  }
 0x150   :  { %v714_v23 = vpop.f32.mrb[60].mxu0  ;;  %v8348_v24 = vld [vmem:[#allocation2 + $0x68] sm:$0xff] }
 0x151   :  { %v8350_v25 = vld [vmem:[#allocation2 + $0x68] sm:$0xff]  ;;  %1147 = vst.msk [vmem:[#allocation2 + $0x70] sm:$0xff] %vm37_vm2, %v1097_v22  ;;  %v715_v26 = vadd.f32 %v8124_v29, %v714_v23  ;;  %v6908_v27 = vpop.f32.mrb[61].mxu0  ;;  %2021 = vst.msk [vmem:[#allocation3 + $0xd8] sm:$0xff] %vm37_vm2, %v8348_v24 }
 0x152   :  { %10634 = vst [vmem:[#allocation6_spill] sm:$0xff] %v8350_v25  ;;  %1244 = vst.msk [vmem:[#allocation3 + $0x208] sm:$0xff] %vm37_vm2, %v8350_v25  ;;  %v717_v32 = vpop.f32.mrb[62].mxu0 }
 0x153   :  { %1635 = vst.msk [vmem:[#allocation3 + $0x1c0] sm:$0xff] %vm37_vm2, %v8350_v25  ;;  %v718_v34 = vadd.f32 %v8124_v29, %v717_v32  ;;  %v6909_v35 = vpop.f32.mrb[63].mxu0  ;;  %v1015_v36 = vmax.f32 %v715_v26, 0.0 }
 0x155   :  { %v1016_v37 = vmax.f32 %v718_v34, 0.0  ;;  %7015 = vmatmul.mubr.msk.bf16.gmra.mrb[168].mxu0 %vm412_vm1, %v7753_v28 }
 0x156   :  { %7018 = vmatprep.mubr.msk.bf16.mxu0 %vm7902_vm0, %v10568_v0 }
 0x157   :  { %v1098_v38 = vpack.c.bf16 %v1016_v37, %v1015_v36 }
 0x158   :  { %v722_v39 = vpop.f32.mrb[64].mxu0  ;;  %v8367_v40 = vld [vmem:[#allocation2 + $0x70] sm:$0xff] }
 0x159   :  { %v8369_v41 = vld [vmem:[#allocation2 + $0x70] sm:$0xff]  ;;  %1148 = vst.msk [vmem:[#allocation2 + $0x78] sm:$0xff] %vm37_vm2, %v1098_v38  ;;  %v723_v42 = vadd.f32 %v8124_v29, %v722_v39  ;;  %v6912_v43 = vpop.f32.mrb[65].mxu0  ;;  %2408 = vst.msk [vmem:[#allocation3 + $0x18] sm:$0xff] %vm37_vm2, %v8367_v40 }
 0x15a   :  { %10635 = vst [vmem:[#allocation7_spill] sm:$0xff] %v8369_v41  ;;  %2022 = vst.msk [vmem:[#allocation3 + $0x100] sm:$0xff] %vm37_vm2, %v8367_v40  ;;  %v725_v48 = vpop.f32.mrb[66].mxu0  ;;  %v7757_v38 = vld [vmem:[%s10559_s0 + $0x170] sm:$0xff]  }
 0x15b   :  { %1245 = vst.msk [vmem:[#allocation3 + $0x230] sm:$0xff] %vm37_vm2, %v8369_v41  ;;  %1636 = vst.msk [vmem:[#allocation3 + $0x1e8] sm:$0xff] %vm37_vm2, %v8369_v41  ;;  %v726_v49 = vadd.f32 %v8124_v29, %v725_v48  ;;  %v6913_v50 = vpop.f32.mrb[67].mxu0  ;;  %v1017_v51 = vmax.f32 %v723_v42, 0.0 }
 0x15d   :  { %v1018_v52 = vmax.f32 %v726_v49, 0.0  ;;  %7019 = vmatmul.mubr.msk.bf16.gmra.mrb[172].mxu0 %vm412_vm1, %v7754_v47 }
 0x15e   :  { %7022 = vmatprep.mubr.msk.bf16.mxu0 %vm7902_vm0, %v10568_v0 }
 0x15f   :  { %v1099_v53 = vpack.c.bf16 %v1018_v52, %v1017_v51 }
 0x160   :  { %v730_v54 = vpop.f32.mrb[68].mxu0  ;;  %v8388_v56 = vld [vmem:[#allocation2 + $0x78] sm:$0xff] }
 0x161   :  { %v8390_v57 = vld [vmem:[#allocation2 + $0x78] sm:$0xff]  ;;  %1149 = vst.msk [vmem:[#allocation2 + $0x80] sm:$0xff] %vm37_vm2, %v1099_v53  ;;  %v731_v61 = vadd.f32 %v8124_v29, %v730_v54  ;;  %v6916_v63 = vpop.f32.mrb[69].mxu0  ;;  %2409 = vst.msk [vmem:[#allocation3 + $0x40] sm:$0xff] %vm37_vm2, %v8388_v56 }
 0x162   :  { %10636 = vst [vmem:[#allocation8_spill] sm:$0xff] %v8390_v57  ;;  %v1588_v60 = vld [vmem:[#allocation2 + $0x78] sm:$0xff]  ;;  %2023 = vst.msk [vmem:[#allocation3 + $0x128] sm:$0xff] %vm37_vm2, %v8388_v56  ;;  %v733_v2 = vpop.f32.mrb[70].mxu0 }
 0x163   :  { %1246 = vst.msk [vmem:[#allocation3 + $0x258] sm:$0xff] %vm37_vm2, %v8390_v57  ;;  %1637 = vst.msk [vmem:[#allocation3 + $0x210] sm:$0xff] %vm37_vm2, %v1588_v60  ;;  %v734_v3 = vadd.f32 %v8124_v29, %v733_v2  ;;  %v6917_v5 = vpop.f32.mrb[71].mxu0  ;;  %v1019_v6 = vmax.f32 %v731_v61, 0.0  ;;  %v7758_v63 = vld [vmem:[%s10559_s0 + $0x178] sm:$0xff]  }
 0x165   :  { %v1020_v7 = vmax.f32 %v734_v3, 0.0  ;;  %7023 = vmatmul.mubr.msk.bf16.gmra.mrb[176].mxu0 %vm412_vm1, %v7755_v1 }
 0x166   :  { %7026 = vmatprep.mubr.msk.bf16.mxu0 %vm7902_vm0, %v10568_v0 }
 0x167   :  { %v1100_v8 = vpack.c.bf16 %v1020_v7, %v1019_v6 }
 0x168   :  { %v8408_v12 = vld [vmem:[#allocation2 + $0x80] sm:$0xff]  ;;  %v738_v13 = vpop.f32.mrb[72].mxu0 }
 0x169   :  { %v8410_v14 = vld [vmem:[#allocation2 + $0x80] sm:$0xff]  ;;  %2800 = vst.msk [vmem:[#allocation3 + $0x20] sm:$0xff] %vm37_vm2, %v8408_v12  ;;  %1150 = vst.msk [vmem:[#allocation2 + $0x88] sm:$0xff] %vm37_vm2, %v1100_v8  ;;  %v739_v17 = vadd.f32 %v8124_v29, %v738_v13  ;;  %v6920_v18 = vpop.f32.mrb[73].mxu0 }
 0x16a   :  { %10637 = vst [vmem:[#allocation9_spill] sm:$0xff] %v8410_v14  ;;  %v1198_v15 = vld [vmem:[#allocation2 + $0x80] sm:$0xff]  ;;  %2410 = vst.msk [vmem:[#allocation3 + $0x68] sm:$0xff] %vm37_vm2, %v8410_v14  ;;  %v741_v20 = vpop.f32.mrb[74].mxu0 }
 0x16b   :  { %2024 = vst.msk [vmem:[#allocation3 + $0x150] sm:$0xff] %vm37_vm2, %v8410_v14  ;;  %1247 = vst.msk [vmem:[#allocation3 + $0x280] sm:$0xff] %vm37_vm2, %v1198_v15  ;;  %v742_v22 = vadd.f32 %v8124_v29, %v741_v20  ;;  %v6921_v23 = vpop.f32.mrb[75].mxu0  ;;  %v1021_v26 = vmax.f32 %v739_v17, 0.0  ;;  %v7768_v14 = vld [vmem:[%s10561_s3 + $0x40] sm:$0xff]  }
 0x16c   :  { %1638 = vst.msk [vmem:[#allocation3 + $0x238] sm:$0xff] %vm37_vm2, %v1198_v15 }
 0x16d   :  { %v1022_v27 = vmax.f32 %v742_v22, 0.0  ;;  %7027 = vmatmul.mubr.msk.bf16.gmra.mrb[180].mxu0 %vm412_vm1, %v7756_v19  ;;  %v7759_v19 = vld [vmem:[%s10559_s0 + $0x180] sm:$0xff]  }
 0x16e   :  { %7030 = vmatprep.mubr.msk.bf16.mxu0 %vm7902_vm0, %v10568_v0 }
 0x16f   :  { %v1101_v28 = vpack.c.bf16 %v1022_v27, %v1021_v26 }
 0x170   :  { %v746_v32 = vpop.f32.mrb[76].mxu0  ;;  %v8429_v34 = vld [vmem:[#allocation2 + $0x88] sm:$0xff] }
 0x171   :  { %v8431_v35 = vld [vmem:[#allocation2 + $0x88] sm:$0xff]  ;;  %1151 = vst.msk [vmem:[#allocation2 + $0x90] sm:$0xff] %vm37_vm2, %v1101_v28  ;;  %v747_v36 = vadd.f32 %v8124_v29, %v746_v32  ;;  %v6924_v37 = vpop.f32.mrb[77].mxu0  ;;  %2411 = vst.msk [vmem:[#allocation3 + $0x90] sm:$0xff] %vm37_vm2, %v8429_v34 }
 0x172   :  { %10638 = vst [vmem:[#allocation10_spill] sm:$0xff] %v8431_v35  ;;  %2025 = vst.msk [vmem:[#allocation3 + $0x178] sm:$0xff] %vm37_vm2, %v8429_v34  ;;  %v2752_v39 = vld [vmem:[#allocation2 + $0x88] sm:$0xff]  ;;  %v749_v42 = vpop.f32.mrb[78].mxu0 }
 0x173   :  { %1248 = vst.msk [vmem:[#allocation3 + $0x2a8] sm:$0xff] %vm37_vm2, %v8431_v35  ;;  %1639 = vst.msk [vmem:[#allocation3 + $0x260] sm:$0xff] %vm37_vm2, %v8431_v35  ;;  %v750_v43 = vadd.f32 %v8124_v29, %v749_v42  ;;  %v6925_v47 = vpop.f32.mrb[79].mxu0  ;;  %v1023_v48 = vmax.f32 %v747_v36, 0.0 }
 0x174   :  { %2801 = vst.msk [vmem:[#allocation3 + $0x48] sm:$0xff] %vm37_vm2, %v2752_v39 }
 0x175   :  { %v1024_v49 = vmax.f32 %v750_v43, 0.0  ;;  %7031 = vmatmul.mubr.msk.bf16.gmra.mrb[184].mxu0 %vm412_vm1, %v7757_v38 }
 0x176   :  { %7034 = vmatprep.mubr.msk.bf16.mxu0 %vm7902_vm0, %v10568_v0 }
 0x177   :  { %v1102_v50 = vpack.c.bf16 %v1024_v49, %v1023_v48 }
 0x178   :  { %v754_v51 = vpop.f32.mrb[80].mxu0  ;;  %v8451_v52 = vld [vmem:[#allocation2 + $0x90] sm:$0xff] }
 0x179   :  { %v8453_v53 = vld [vmem:[#allocation2 + $0x90] sm:$0xff]  ;;  %1152 = vst.msk [vmem:[#allocation2 + $0x98] sm:$0xff] %vm37_vm2, %v1102_v50  ;;  %v755_v60 = vadd.f32 %v8124_v29, %v754_v51  ;;  %v6928_v61 = vpop.f32.mrb[81].mxu0  ;;  %2412 = vst.msk [vmem:[#allocation3 + $0xb8] sm:$0xff] %vm37_vm2, %v8451_v52 }
 0x17a   :  { %10639 = vst [vmem:[#allocation11_spill] sm:$0xff] %v8453_v53  ;;  %v2753_v54 = vld [vmem:[#allocation2 + $0x90] sm:$0xff]  ;;  %2026 = vst.msk [vmem:[#allocation3 + $0x1a0] sm:$0xff] %vm37_vm2, %v8451_v52  ;;  %v757_v1 = vpop.f32.mrb[82].mxu0 }
 0x17b   :  { %1249 = vst.msk [vmem:[#allocation3 + $0x2d0] sm:$0xff] %vm37_vm2, %v8453_v53  ;;  %1640 = vst.msk [vmem:[#allocation3 + $0x288] sm:$0xff] %vm37_vm2, %v8453_v53  ;;  %v758_v2 = vadd.f32 %v8124_v29, %v757_v1  ;;  %v6929_v3 = vpop.f32.mrb[83].mxu0  ;;  %v1025_v5 = vmax.f32 %v755_v60, 0.0 }
 0x17c   :  { %2802 = vst.msk [vmem:[#allocation3 + $0x70] sm:$0xff] %vm37_vm2, %v2753_v54 }
 0x17d   :  { %v1026_v6 = vmax.f32 %v758_v2, 0.0  ;;  %7035 = vmatmul.mubr.msk.bf16.gmra.mrb[188].mxu0 %vm412_vm1, %v7758_v63 }
 0x17e   :  { %7038 = vmatprep.mubr.msk.bf16.mxu0 %vm7902_vm0, %v10568_v0 }
 0x17f   :  { %v1103_v7 = vpack.c.bf16 %v1026_v6, %v1025_v5 }
 0x180   :  { %v762_v8 = vpop.f32.mrb[84].mxu0  ;;  %v8473_v13 = vld [vmem:[#allocation2 + $0x98] sm:$0xff] }
 0x181   :  { %v8475_v15 = vld [vmem:[#allocation2 + $0x98] sm:$0xff]  ;;  %1153 = vst.msk [vmem:[#allocation2 + $0xa0] sm:$0xff] %vm37_vm2, %v1103_v7  ;;  %v763_v17 = vadd.f32 %v8124_v29, %v762_v8  ;;  %v6932_v18 = vpop.f32.mrb[85].mxu0  ;;  %2413 = vst.msk [vmem:[#allocation3 + $0xe0] sm:$0xff] %vm37_vm2, %v8473_v13 }
 0x182   :  { %10640 = vst [vmem:[#allocation12_spill] sm:$0xff] %v8475_v15  ;;  %2027 = vst.msk [vmem:[#allocation3 + $0x1c8] sm:$0xff] %vm37_vm2, %v8473_v13  ;;  %v2754_v20 = vld [vmem:[#allocation2 + $0x98] sm:$0xff]  ;;  %v765_v22 = vpop.f32.mrb[86].mxu0 }
 0x183   :  { %1250 = vst.msk [vmem:[#allocation3 + $0x2f8] sm:$0xff] %vm37_vm2, %v8475_v15  ;;  %1641 = vst.msk [vmem:[#allocation3 + $0x2b0] sm:$0xff] %vm37_vm2, %v8475_v15  ;;  %v766_v23 = vadd.f32 %v8124_v29, %v765_v22  ;;  %v6933_v26 = vpop.f32.mrb[87].mxu0  ;;  %v1027_v27 = vmax.f32 %v763_v17, 0.0 }
 0x184   :  { %2803 = vst.msk [vmem:[#allocation3 + $0x98] sm:$0xff] %vm37_vm2, %v2754_v20 }
 0x185   :  { %v1028_v28 = vmax.f32 %v766_v23, 0.0  ;;  %7039 = vmatmul.mubr.msk.bf16.gmra.mrb[192].mxu0 %vm412_vm1, %v7759_v19 }
 0x187   :  { %v1104_v32 = vpack.c.bf16 %v1028_v28, %v1027_v27 }
 0x188   :  { %v770_v36 = vpop.f32.mrb[88].mxu0  ;;  %v8493_v37 = vld [vmem:[#allocation2 + $0xa0] sm:$0xff] }
 0x189   :  { %v8495_v38 = vld [vmem:[#allocation2 + $0xa0] sm:$0xff]  ;;  %1154 = vst.msk [vmem:[#allocation2 + $0xa8] sm:$0xff] %vm37_vm2, %v1104_v32  ;;  %v771_v42 = vadd.f32 %v8124_v29, %v770_v36  ;;  %v6936_v43 = vpop.f32.mrb[89].mxu0  ;;  %2414 = vst.msk [vmem:[#allocation3 + $0x108] sm:$0xff] %vm37_vm2, %v8493_v37 }
 0x18a   :  { %10641 = vst [vmem:[#allocation13_spill] sm:$0xff] %v8495_v38  ;;  %v2755_v39 = vld [vmem:[#allocation2 + $0xa0] sm:$0xff]  ;;  %2028 = vst.msk [vmem:[#allocation3 + $0x1f0] sm:$0xff] %vm37_vm2, %v8493_v37  ;;  %v773_v47 = vpop.f32.mrb[90].mxu0 }
 0x18b   :  { %1251 = vst.msk [vmem:[#allocation3 + $0x320] sm:$0xff] %vm37_vm2, %v8495_v38  ;;  %1642 = vst.msk [vmem:[#allocation3 + $0x2d8] sm:$0xff] %vm37_vm2, %v8495_v38  ;;  %v774_v48 = vadd.f32 %v8124_v29, %v773_v47  ;;  %v6937_v49 = vpop.f32.mrb[91].mxu0  ;;  %v1029_v50 = vmax.f32 %v771_v42, 0.0 }
 0x18c   :  { %2804 = vst.msk [vmem:[#allocation3 + $0xc0] sm:$0xff] %vm37_vm2, %v2755_v39 }
 0x18d   :  { %v1030_v51 = vmax.f32 %v774_v48, 0.0 }
 0x18f   :  { %v1105_v54 = vpack.c.bf16 %v1030_v51, %v1029_v50 }
 0x190   :  { %v778_v60 = vpop.f32.mrb[92].mxu0  ;;  %v8509_v61 = vld [vmem:[#allocation2 + $0xa8] sm:$0xff] }
 0x191   :  { %v8511_v63 = vld [vmem:[#allocation2 + $0xa8] sm:$0xff]  ;;  %1155 = vst.msk [vmem:[#allocation2 + $0xb0] sm:$0xff] %vm37_vm2, %v1105_v54  ;;  %v779_v1 = vadd.f32 %v8124_v29, %v778_v60  ;;  %v6940_v2 = vpop.f32.mrb[93].mxu0  ;;  %2415 = vst.msk [vmem:[#allocation3 + $0x130] sm:$0xff] %vm37_vm2, %v8509_v61 }
 0x192   :  { %10642 = vst [vmem:[#allocation14_spill] sm:$0xff] %v8511_v63  ;;  %2029 = vst.msk [vmem:[#allocation3 + $0x218] sm:$0xff] %vm37_vm2, %v8509_v61  ;;  %v2756_v3 = vld [vmem:[#allocation2 + $0xa8] sm:$0xff]  ;;  %v781_v5 = vpop.f32.mrb[94].mxu0 }
 0x193   :  { %1252 = vst.msk [vmem:[#allocation3 + $0x348] sm:$0xff] %vm37_vm2, %v8511_v63  ;;  %1643 = vst.msk [vmem:[#allocation3 + $0x300] sm:$0xff] %vm37_vm2, %v8511_v63  ;;  %v782_v6 = vadd.f32 %v8124_v29, %v781_v5  ;;  %v6941_v7 = vpop.f32.mrb[95].mxu0  ;;  %v1031_v8 = vmax.f32 %v779_v1, 0.0 }
 0x194   :  { %2805 = vst.msk [vmem:[#allocation3 + $0xe8] sm:$0xff] %vm37_vm2, %v2756_v3 }
 0x195   :  { %v1032_v17 = vmax.f32 %v782_v6, 0.0 }
 0x197   :  { %v1106_v18 = vpack.c.bf16 %v1032_v17, %v1031_v8 }
 0x198   :  { %v786_v19 = vpop.f32.mrb[96].mxu0  ;;  %v8525_v20 = vld [vmem:[#allocation2 + $0xb0] sm:$0xff] }
 0x199   :  { %v8527_v22 = vld [vmem:[#allocation2 + $0xb0] sm:$0xff]  ;;  %1156 = vst.msk [vmem:[#allocation2 + $0xb8] sm:$0xff] %vm37_vm2, %v1106_v18  ;;  %v787_v26 = vadd.f32 %v8124_v29, %v786_v19  ;;  %v6944_v27 = vpop.f32.mrb[97].mxu0  ;;  %2416 = vst.msk [vmem:[#allocation3 + $0x158] sm:$0xff] %vm37_vm2, %v8525_v20 }
 0x19a   :  { %10643 = vst [vmem:[#allocation15_spill] sm:$0xff] %v8527_v22  ;;  %v2757_v23 = vld [vmem:[#allocation2 + $0xb0] sm:$0xff]  ;;  %2030 = vst.msk [vmem:[#allocation3 + $0x240] sm:$0xff] %vm37_vm2, %v8525_v20  ;;  %v789_v28 = vpop.f32.mrb[98].mxu0 }
 0x19b   :  { %1253 = vst.msk [vmem:[#allocation3 + $0x370] sm:$0xff] %vm37_vm2, %v8527_v22  ;;  %1644 = vst.msk [vmem:[#allocation3 + $0x328] sm:$0xff] %vm37_vm2, %v8527_v22  ;;  %v790_v32 = vadd.f32 %v8124_v29, %v789_v28  ;;  %v6945_v36 = vpop.f32.mrb[99].mxu0  ;;  %v1033_v39 = vmax.f32 %v787_v26, 0.0 }
 0x19c   :  { %2806 = vst.msk [vmem:[#allocation3 + $0x110] sm:$0xff] %vm37_vm2, %v2757_v23 }
 0x19d   :  { %v1034_v42 = vmax.f32 %v790_v32, 0.0 }
 0x19f   :  { %v1107_v43 = vpack.c.bf16 %v1034_v42, %v1033_v39 }
 0x1a0   :  { %v794_v47 = vpop.f32.mrb[100].mxu0  ;;  %v8541_v48 = vld [vmem:[#allocation2 + $0xb8] sm:$0xff] }
 0x1a1   :  { %v8543_v49 = vld [vmem:[#allocation2 + $0xb8] sm:$0xff]  ;;  %1157 = vst.msk [vmem:[#allocation2 + $0xc0] sm:$0xff] %vm37_vm2, %v1107_v43  ;;  %v795_v50 = vadd.f32 %v8124_v29, %v794_v47  ;;  %v6948_v51 = vpop.f32.mrb[101].mxu0  ;;  %2417 = vst.msk [vmem:[#allocation3 + $0x180] sm:$0xff] %vm37_vm2, %v8541_v48 }
 0x1a2   :  { %10644 = vst [vmem:[#allocation16_spill] sm:$0xff] %v8543_v49  ;;  %2031 = vst.msk [vmem:[#allocation3 + $0x268] sm:$0xff] %vm37_vm2, %v8541_v48  ;;  %v2758_v54 = vld [vmem:[#allocation2 + $0xb8] sm:$0xff]  ;;  %v797_v60 = vpop.f32.mrb[102].mxu0 }
 0x1a3   :  { %1254 = vst.msk [vmem:[#allocation3 + $0x398] sm:$0xff] %vm37_vm2, %v8543_v49  ;;  %1645 = vst.msk [vmem:[#allocation3 + $0x350] sm:$0xff] %vm37_vm2, %v8543_v49  ;;  %v798_v1 = vadd.f32 %v8124_v29, %v797_v60  ;;  %v6949_v2 = vpop.f32.mrb[103].mxu0  ;;  %v1035_v3 = vmax.f32 %v795_v50, 0.0 }
 0x1a4   :  { %2807 = vst.msk [vmem:[#allocation3 + $0x138] sm:$0xff] %vm37_vm2, %v2758_v54 }
 0x1a5   :  { %v1036_v5 = vmax.f32 %v798_v1, 0.0 }
 0x1a7   :  { %v1108_v6 = vpack.c.bf16 %v1036_v5, %v1035_v3 }
 0x1a8   :  { %v802_v7 = vpop.f32.mrb[104].mxu0  ;;  %v8557_v8 = vld [vmem:[#allocation2 + $0xc0] sm:$0xff] }
 0x1a9   :  { %v8559_v17 = vld [vmem:[#allocation2 + $0xc0] sm:$0xff]  ;;  %1158 = vst.msk [vmem:[#allocation2 + $0xc8] sm:$0xff] %vm37_vm2, %v1108_v6  ;;  %v803_v19 = vadd.f32 %v8124_v29, %v802_v7  ;;  %v6952_v23 = vpop.f32.mrb[105].mxu0  ;;  %2418 = vst.msk [vmem:[#allocation3 + $0x1a8] sm:$0xff] %vm37_vm2, %v8557_v8  ;;  %v10570_v6 = vmov 0  }
 0x1aa   :  { %10645 = vst [vmem:[#allocation17_spill] sm:$0xff] %v8559_v17  ;;  %v2759_v18 = vld [vmem:[#allocation2 + $0xc0] sm:$0xff]  ;;  %2032 = vst.msk [vmem:[#allocation3 + $0x290] sm:$0xff] %vm37_vm2, %v8557_v8  ;;  %v805_v26 = vpop.f32.mrb[106].mxu0  ;;  %7266 = vmatprep.subr.bf16.mxu1 %v10570_v6  ;;  %3536 = vmatprep.subr.bf16.mxu0 %v10570_v6 }
 0x1ab   :  { %1255 = vst.msk [vmem:[#allocation3 + $0x3c0] sm:$0xff] %vm37_vm2, %v8559_v17  ;;  %1646 = vst.msk [vmem:[#allocation3 + $0x378] sm:$0xff] %vm37_vm2, %v8559_v17  ;;  %v806_v27 = vadd.f32 %v8124_v29, %v805_v26  ;;  %v6953_v28 = vpop.f32.mrb[107].mxu0  ;;  %v1037_v32 = vmax.f32 %v803_v19, 0.0  ;;  %v8631_v26 = vld [vmem:[%s10560_s2] ss:$0 sm:$0xff] }
 0x1ac   :  { %2808 = vst.msk [vmem:[#allocation3 + $0x160] sm:$0xff] %vm37_vm2, %v2759_v18  ;;  %38 = vst.msk [vmem:[#allocation2 + $0x188] sm:$0xff] %vm37_vm2, %v10570_v6 }
 0x1ad   :  { %v1038_v36 = vmax.f32 %v806_v27, 0.0  ;;  %39 = vst.msk [vmem:[#allocation2 + $0x190] sm:$0xff] %vm37_vm2, %v10570_v6  ;;  %40 = vst.msk [vmem:[#allocation2 + $0x198] sm:$0xff] %vm37_vm2, %v10570_v6 }
 0x1ae   :  { %41 = vst.msk [vmem:[#allocation2 + $0x1a0] sm:$0xff] %vm37_vm2, %v10570_v6  ;;  %42 = vst.msk [vmem:[#allocation2 + $0x1a8] sm:$0xff] %vm37_vm2, %v10570_v6 }
 0x1af   :  { %v1109_v39 = vpack.c.bf16 %v1038_v36, %v1037_v32  ;;  %43 = vst.msk [vmem:[#allocation2 + $0x1b0] sm:$0xff] %vm37_vm2, %v10570_v6  ;;  %44 = vst.msk [vmem:[#allocation2 + $0x1b8] sm:$0xff] %vm37_vm2, %v10570_v6 }
 0x1b0   :  { %v810_v42 = vpop.f32.mrb[108].mxu0  ;;  %v8573_v43 = vld [vmem:[#allocation2 + $0xc8] sm:$0xff]  ;;  %45 = vst.msk [vmem:[#allocation2 + $0x1c0] sm:$0xff] %vm37_vm2, %v10570_v6  ;;  %46 = vst.msk [vmem:[#allocation2 + $0x1c8] sm:$0xff] %vm37_vm2, %v10570_v6 }
 0x1b1   :  { %v8575_v47 = vld [vmem:[#allocation2 + $0xc8] sm:$0xff]  ;;  %1159 = vst.msk [vmem:[#allocation2 + $0xd0] sm:$0xff] %vm37_vm2, %v1109_v39  ;;  %v811_v50 = vadd.f32 %v8124_v29, %v810_v42  ;;  %v6956_v51 = vpop.f32.mrb[109].mxu0  ;;  %2419 = vst.msk [vmem:[#allocation3 + $0x1d0] sm:$0xff] %vm37_vm2, %v8573_v43 }
 0x1b2   :  { %10646 = vst [vmem:[#allocation18_spill] sm:$0xff] %v8575_v47  ;;  %2033 = vst.msk [vmem:[#allocation3 + $0x2b8] sm:$0xff] %vm37_vm2, %v8573_v43  ;;  %v2760_v54 = vld [vmem:[#allocation2 + $0xc8] sm:$0xff]  ;;  %v813_v60 = vpop.f32.mrb[110].mxu0 }
 0x1b3   :  { %1256 = vst.msk [vmem:[#allocation3 + $0x3e8] sm:$0xff] %vm37_vm2, %v8575_v47  ;;  %1647 = vst.msk [vmem:[#allocation3 + $0x3a0] sm:$0xff] %vm37_vm2, %v8575_v47  ;;  %v814_v1 = vadd.f32 %v8124_v29, %v813_v60  ;;  %v6957_v2 = vpop.f32.mrb[111].mxu0  ;;  %v1039_v3 = vmax.f32 %v811_v50, 0.0  ;;  %v8644_v42 = vld [vmem:[#allocation2 + $0x188] sm:$0xff] }
 0x1b4   :  { %2809 = vst.msk [vmem:[#allocation3 + $0x188] sm:$0xff] %vm37_vm2, %v2760_v54  ;;  %47 = vst.msk [vmem:[#allocation2 + $0x1d0] sm:$0xff] %vm37_vm2, %v10570_v6  ;;  %1855 = vrot.lane.b32.xlu1 %v8644_v42, %s7904_s23 }
 0x1b5   :  { %v1040_v5 = vmax.f32 %v814_v1, 0.0  ;;  %48 = vst.msk [vmem:[#allocation2 + $0x1d8] sm:$0xff] %vm37_vm2, %v10570_v6  ;;  %49 = vst.msk [vmem:[#allocation2 + $0x1e0] sm:$0xff] %vm37_vm2, %v10570_v6 }
 0x1b6   :  { %50 = vst.msk [vmem:[#allocation2 + $0x1e8] sm:$0xff] %vm37_vm2, %v10570_v6  ;;  %51 = vst.msk [vmem:[#allocation2 + $0x1f0] sm:$0xff] %vm37_vm2, %v10570_v6 }
 0x1b7   :  { %52 = vst.msk [vmem:[#allocation2 + $0x1f8] sm:$0xff] %vm37_vm2, %v10570_v6  ;;  %53 = vst.msk [vmem:[#allocation2 + $0x200] sm:$0xff] %vm37_vm2, %v10570_v6  ;;  %v1110_v29 = vpack.c.bf16 %v1040_v5, %v1039_v3 }
 0x1b8   :  { %v818_v7 = vpop.f32.mrb[112].mxu0  ;;  %v8623_v18 = vld [vmem:[#allocation2 + $0xd0] sm:$0xff]  ;;  %1671 = vst.msk [vmem:[#allocation3 + $0x760] sm:$0xff] %vm37_vm2, %v8644_v42 }
 0x1b9   :  { %v8625_v19 = vld [vmem:[#allocation2 + $0xd0] sm:$0xff]  ;;  %1160 = vst.msk [vmem:[#allocation2 + $0xd8] sm:$0xff] %vm37_vm2, %v1110_v29  ;;  %v819_v27 = vadd.f32 %v8631_v26, %v818_v7  ;;  %v6960_v28 = vpop.f32.mrb[113].mxu0  ;;  %2420 = vst.msk [vmem:[#allocation3 + $0x1f8] sm:$0xff] %vm37_vm2, %v8623_v18 }
 0x1ba   :  { %10647 = vst [vmem:[#allocation19_spill] sm:$0xff] %v8625_v19  ;;  %v2761_v23 = vld [vmem:[#allocation2 + $0xd0] sm:$0xff]  ;;  %2034 = vst.msk [vmem:[#allocation3 + $0x2e0] sm:$0xff] %vm37_vm2, %v8623_v18  ;;  %v821_v32 = vpop.f32.mrb[114].mxu0 }
 0x1bb   :  { %1257 = vst.msk [vmem:[#allocation3 + $0x410] sm:$0xff] %vm37_vm2, %v8625_v19  ;;  %1648 = vst.msk [vmem:[#allocation3 + $0x3c8] sm:$0xff] %vm37_vm2, %v8625_v19  ;;  %v822_v36 = vadd.f32 %v8631_v26, %v821_v32  ;;  %v6961_v39 = vpop.f32.mrb[115].mxu0  ;;  %v1041_v50 = vmax.f32 %v819_v27, 0.0 }
 0x1bc   :  { %2810 = vst.msk [vmem:[#allocation3 + $0x1b0] sm:$0xff] %vm37_vm2, %v2761_v23 }
 0x1bd   :  { %v1042_v51 = vmax.f32 %v822_v36, 0.0 }
 0x1bf   :  { %v1111_v54 = vpack.c.bf16 %v1042_v51, %v1041_v50 }
 0x1c0   :  { %v826_v60 = vpop.f32.mrb[116].mxu0  ;;  %v8650_v1 = vld [vmem:[#allocation2 + $0xd8] sm:$0xff] }
 0x1c1   :  { %v8652_v2 = vld [vmem:[#allocation2 + $0xd8] sm:$0xff]  ;;  %1161 = vst.msk [vmem:[#allocation2 + $0xe0] sm:$0xff] %vm37_vm2, %v1111_v54  ;;  %v827_v3 = vadd.f32 %v8631_v26, %v826_v60  ;;  %v6964_v5 = vpop.f32.mrb[117].mxu0  ;;  %2421 = vst.msk [vmem:[#allocation3 + $0x220] sm:$0xff] %vm37_vm2, %v8650_v1 }
 0x1c2   :  { %10648 = vst [vmem:[#allocation20_spill] sm:$0xff] %v8652_v2  ;;  %2035 = vst.msk [vmem:[#allocation3 + $0x308] sm:$0xff] %vm37_vm2, %v8650_v1  ;;  %v2762_v29 = vld [vmem:[#allocation2 + $0xd8] sm:$0xff]  ;;  %v829_v7 = vpop.f32.mrb[118].mxu0 }
 0x1c3   :  { %1258 = vst.msk [vmem:[#allocation3 + $0x438] sm:$0xff] %vm37_vm2, %v8652_v2  ;;  %1649 = vst.msk [vmem:[#allocation3 + $0x3f0] sm:$0xff] %vm37_vm2, %v8652_v2  ;;  %v830_v23 = vadd.f32 %v8631_v26, %v829_v7  ;;  %v6965_v27 = vpop.f32.mrb[119].mxu0  ;;  %v1043_v28 = vmax.f32 %v827_v3, 0.0 }
 0x1c4   :  { %2811 = vst.msk [vmem:[#allocation3 + $0x1d8] sm:$0xff] %vm37_vm2, %v2762_v29 }
 0x1c5   :  { %v1044_v32 = vmax.f32 %v830_v23, 0.0 }
 0x1c7   :  { %v1112_v36 = vpack.c.bf16 %v1044_v32, %v1043_v28 }
 0x1c8   :  { %v834_v39 = vpop.f32.mrb[120].mxu0  ;;  %v8666_v50 = vld [vmem:[#allocation2 + $0xe0] sm:$0xff] }
 0x1c9   :  { %v8668_v51 = vld [vmem:[#allocation2 + $0xe0] sm:$0xff]  ;;  %1162 = vst.msk [vmem:[#allocation2 + $0xe8] sm:$0xff] %vm37_vm2, %v1112_v36  ;;  %v835_v60 = vadd.f32 %v8631_v26, %v834_v39  ;;  %v6968_v5 = vpop.f32.mrb[121].mxu0  ;;  %2422 = vst.msk [vmem:[#allocation3 + $0x248] sm:$0xff] %vm37_vm2, %v8666_v50 }
 0x1ca   :  { %10649 = vst [vmem:[#allocation21_spill] sm:$0xff] %v8668_v51  ;;  %v2763_v54 = vld [vmem:[#allocation2 + $0xe0] sm:$0xff]  ;;  %2036 = vst.msk [vmem:[#allocation3 + $0x330] sm:$0xff] %vm37_vm2, %v8666_v50  ;;  %v837_v3 = vpop.f32.mrb[122].mxu0 }
 0x1cb   :  { %1259 = vst.msk [vmem:[#allocation3 + $0x460] sm:$0xff] %vm37_vm2, %v8668_v51  ;;  %1650 = vst.msk [vmem:[#allocation3 + $0x418] sm:$0xff] %vm37_vm2, %v8668_v51  ;;  %v838_v29 = vadd.f32 %v8631_v26, %v837_v3  ;;  %v6969_v7 = vpop.f32.mrb[123].mxu0  ;;  %v1045_v23 = vmax.f32 %v835_v60, 0.0 }
 0x1cc   :  { %2812 = vst.msk [vmem:[#allocation3 + $0x200] sm:$0xff] %vm37_vm2, %v2763_v54 }
 0x1cd   :  { %v1046_v27 = vmax.f32 %v838_v29, 0.0 }
 0x1cf   :  { %v1113_v28 = vpack.c.bf16 %v1046_v27, %v1045_v23 }
 0x1d0   :  { %v842_v32 = vpop.f32.mrb[124].mxu0  ;;  %v8682_v36 = vld [vmem:[#allocation2 + $0xe8] sm:$0xff] }
 0x1d1   :  { %v8684_v39 = vld [vmem:[#allocation2 + $0xe8] sm:$0xff]  ;;  %1163 = vst.msk [vmem:[#allocation2 + $0xf0] sm:$0xff] %vm37_vm2, %v1113_v28  ;;  %v843_v5 = vadd.f32 %v8631_v26, %v842_v32  ;;  %v6972_v0 = vpop.f32.mrb[125].mxu0  ;;  %2423 = vst.msk [vmem:[#allocation3 + $0x270] sm:$0xff] %vm37_vm2, %v8682_v36 }
 0x1d2   :  { %10650 = vst [vmem:[#allocation22_spill] sm:$0xff] %v8684_v39  ;;  %2037 = vst.msk [vmem:[#allocation3 + $0x358] sm:$0xff] %vm37_vm2, %v8682_v36  ;;  %v2764_v54 = vld [vmem:[#allocation2 + $0xe8] sm:$0xff]  ;;  %v845_v60 = vpop.f32.mrb[126].mxu0 }
 0x1d3   :  { %1260 = vst.msk [vmem:[#allocation3 + $0x488] sm:$0xff] %vm37_vm2, %v8684_v39  ;;  %1651 = vst.msk [vmem:[#allocation3 + $0x440] sm:$0xff] %vm37_vm2, %v8684_v39  ;;  %v846_v3 = vadd.f32 %v8631_v26, %v845_v60  ;;  %v6973_v29 = vpop.f32.mrb[127].mxu0  ;;  %v1047_v0 = vmax.f32 %v843_v5, 0.0 }
 0x1d4   :  { %2813 = vst.msk [vmem:[#allocation3 + $0x228] sm:$0xff] %vm37_vm2, %v2764_v54 }
 0x1d5   :  { %v1048_v7 = vmax.f32 %v846_v3, 0.0 }
 0x1d7   :  { %v1114_v23 = vpack.c.bf16 %v1048_v7, %v1047_v0 }
 0x1d8   :  { %v850_v27 = vpop.f32.mrb[128].mxu0  ;;  %v8698_v28 = vld [vmem:[#allocation2 + $0xf0] sm:$0xff] }
 0x1d9   :  { %v8700_v32 = vld [vmem:[#allocation2 + $0xf0] sm:$0xff]  ;;  %1164 = vst.msk [vmem:[#allocation2 + $0xf8] sm:$0xff] %vm37_vm2, %v1114_v23  ;;  %v851_v39 = vadd.f32 %v8631_v26, %v850_v27  ;;  %v6976_v51 = vpop.f32.mrb[129].mxu0  ;;  %2424 = vst.msk [vmem:[#allocation3 + $0x298] sm:$0xff] %vm37_vm2, %v8698_v28 }
 0x1da   :  { %10651 = vst [vmem:[#allocation23_spill] sm:$0xff] %v8700_v32  ;;  %v2765_v6 = vld [vmem:[#allocation2 + $0xf0] sm:$0xff]  ;;  %2038 = vst.msk [vmem:[#allocation3 + $0x380] sm:$0xff] %vm37_vm2, %v8698_v28  ;;  %v853_v5 = vpop.f32.mrb[130].mxu0 }
 0x1db   :  { %1261 = vst.msk [vmem:[#allocation3 + $0x4b0] sm:$0xff] %vm37_vm2, %v8700_v32  ;;  %1652 = vst.msk [vmem:[#allocation3 + $0x468] sm:$0xff] %vm37_vm2, %v8700_v32  ;;  %v854_v54 = vadd.f32 %v8631_v26, %v853_v5  ;;  %v6977_v60 = vpop.f32.mrb[131].mxu0  ;;  %v1049_v3 = vmax.f32 %v851_v39, 0.0 }
 0x1dc   :  { %2814 = vst.msk [vmem:[#allocation3 + $0x250] sm:$0xff] %vm37_vm2, %v2765_v6 }
 0x1dd   :  { %v1050_v51 = vmax.f32 %v854_v54, 0.0 }
 0x1df   :  { %v1115_v29 = vpack.c.bf16 %v1050_v51, %v1049_v3 }
 0x1e0   :  { %v858_v0 = vpop.f32.mrb[132].mxu0  ;;  %v8714_v7 = vld [vmem:[#allocation2 + $0xf8] sm:$0xff] }
 0x1e1   :  { %v8716_v23 = vld [vmem:[#allocation2 + $0xf8] sm:$0xff]  ;;  %1165 = vst.msk [vmem:[#allocation2 + $0x100] sm:$0xff] %vm37_vm2, %v1115_v29  ;;  %v859_v27 = vadd.f32 %v8631_v26, %v858_v0  ;;  %v6980_v2 = vpop.f32.mrb[133].mxu0  ;;  %2425 = vst.msk [vmem:[#allocation3 + $0x2c0] sm:$0xff] %vm37_vm2, %v8714_v7 }
 0x1e2   :  { %10652 = vst [vmem:[#allocation24_spill] sm:$0xff] %v8716_v23  ;;  %2039 = vst.msk [vmem:[#allocation3 + $0x3a8] sm:$0xff] %vm37_vm2, %v8714_v7  ;;  %v2766_v6 = vld [vmem:[#allocation2 + $0xf8] sm:$0xff]  ;;  %v861_v39 = vpop.f32.mrb[134].mxu0 }
 0x1e3   :  { %1262 = vst.msk [vmem:[#allocation3 + $0x4d8] sm:$0xff] %vm37_vm2, %v8716_v23  ;;  %1653 = vst.msk [vmem:[#allocation3 + $0x490] sm:$0xff] %vm37_vm2, %v8716_v23  ;;  %v862_v5 = vadd.f32 %v8631_v26, %v861_v39  ;;  %v6981_v54 = vpop.f32.mrb[135].mxu0  ;;  %v1051_v2 = vmax.f32 %v859_v27, 0.0 }
 0x1e4   :  { %2815 = vst.msk [vmem:[#allocation3 + $0x278] sm:$0xff] %vm37_vm2, %v2766_v6  ;;  %v8746_v54 = vld [vmem:[#allocation2 + $0x190] sm:$0xff] }
 0x1e5   :  { %v1052_v60 = vmax.f32 %v862_v5, 0.0  ;;  %1672 = vst.msk [vmem:[#allocation3 + $0x788] sm:$0xff] %vm37_vm2, %v8746_v54 }
 0x1e7   :  { %v1116_v3 = vpack.c.bf16 %v1052_v60, %v1051_v2 }
 0x1e8   :  { %v866_v51 = vpop.f32.mrb[136].mxu0  ;;  %v8730_v29 = vld [vmem:[#allocation2 + $0x100] sm:$0xff] }
 0x1e9   :  { %v8732_v0 = vld [vmem:[#allocation2 + $0x100] sm:$0xff]  ;;  %1166 = vst.msk [vmem:[#allocation2 + $0x108] sm:$0xff] %vm37_vm2, %v1116_v3  ;;  %v867_v23 = vadd.f32 %v8631_v26, %v866_v51  ;;  %v6984_v19 = vpop.f32.mrb[137].mxu0  ;;  %2426 = vst.msk [vmem:[#allocation3 + $0x2e8] sm:$0xff] %vm37_vm2, %v8730_v29 }
 0x1ea   :  { %10653 = vst [vmem:[#allocation25_spill] sm:$0xff] %v8732_v0  ;;  %v2767_v32 = vld [vmem:[#allocation2 + $0x100] sm:$0xff]  ;;  %2040 = vst.msk [vmem:[#allocation3 + $0x3d0] sm:$0xff] %vm37_vm2, %v8730_v29  ;;  %v869_v27 = vpop.f32.mrb[138].mxu0 }
 0x1eb   :  { %1263 = vst.msk [vmem:[#allocation3 + $0x500] sm:$0xff] %vm37_vm2, %v8732_v0  ;;  %1654 = vst.msk [vmem:[#allocation3 + $0x4b8] sm:$0xff] %vm37_vm2, %v8732_v0  ;;  %v870_v6 = vadd.f32 %v8631_v26, %v869_v27  ;;  %v6985_v39 = vpop.f32.mrb[139].mxu0  ;;  %v1053_v5 = vmax.f32 %v867_v23, 0.0 }
 0x1ec   :  { %2816 = vst.msk [vmem:[#allocation3 + $0x2a0] sm:$0xff] %vm37_vm2, %v2767_v32 }
 0x1ed   :  { %v1054_v19 = vmax.f32 %v870_v6, 0.0 }
 0x1ef   :  { %v1117_v2 = vpack.c.bf16 %v1054_v19, %v1053_v5 }
 0x1f0   :  { %v874_v60 = vpop.f32.mrb[140].mxu0  ;;  %v8750_v3 = vld [vmem:[#allocation2 + $0x108] sm:$0xff] }
 0x1f1   :  { %v8752_v51 = vld [vmem:[#allocation2 + $0x108] sm:$0xff]  ;;  %1167 = vst.msk [vmem:[#allocation2 + $0x110] sm:$0xff] %vm37_vm2, %v1117_v2  ;;  %v875_v32 = vadd.f32 %v8631_v26, %v874_v60  ;;  %v6988_v0 = vpop.f32.mrb[141].mxu0  ;;  %2427 = vst.msk [vmem:[#allocation3 + $0x310] sm:$0xff] %vm37_vm2, %v8750_v3 }
 0x1f2   :  { %10654 = vst [vmem:[#allocation26_spill] sm:$0xff] %v8752_v51  ;;  %2041 = vst.msk [vmem:[#allocation3 + $0x3f8] sm:$0xff] %vm37_vm2, %v8750_v3  ;;  %v2768_v23 = vld [vmem:[#allocation2 + $0x108] sm:$0xff]  ;;  %v877_v27 = vpop.f32.mrb[142].mxu0 }
 0x1f3   :  { %1264 = vst.msk [vmem:[#allocation3 + $0x528] sm:$0xff] %vm37_vm2, %v8752_v51  ;;  %1655 = vst.msk [vmem:[#allocation3 + $0x4e0] sm:$0xff] %vm37_vm2, %v8752_v51  ;;  %v878_v6 = vadd.f32 %v8631_v26, %v877_v27  ;;  %v6989_v39 = vpop.f32.mrb[143].mxu0  ;;  %v1055_v0 = vmax.f32 %v875_v32, 0.0 }
 0x1f4   :  { %2817 = vst.msk [vmem:[#allocation3 + $0x2c8] sm:$0xff] %vm37_vm2, %v2768_v23 }
 0x1f5   :  { %v1056_v5 = vmax.f32 %v878_v6, 0.0 }
 0x1f7   :  { %v1118_v19 = vpack.c.bf16 %v1056_v5, %v1055_v0 }
 0x1f8   :  { %v882_v2 = vpop.f32.mrb[144].mxu0  ;;  %v8766_v60 = vld [vmem:[#allocation2 + $0x110] sm:$0xff] }
 0x1f9   :  { %v8768_v47 = vld [vmem:[#allocation2 + $0x110] sm:$0xff]  ;;  %1168 = vst.msk [vmem:[#allocation2 + $0x118] sm:$0xff] %vm37_vm2, %v1118_v19  ;;  %v883_v51 = vadd.f32 %v8631_v26, %v882_v2  ;;  %v6992_v49 = vpop.f32.mrb[145].mxu0  ;;  %2428 = vst.msk [vmem:[#allocation3 + $0x338] sm:$0xff] %vm37_vm2, %v8766_v60 }
 0x1fa   :  { %10655 = vst [vmem:[#allocation27_spill] sm:$0xff] %v8768_v47  ;;  %v2769_v17 = vld [vmem:[#allocation2 + $0x110] sm:$0xff]  ;;  %2042 = vst.msk [vmem:[#allocation3 + $0x420] sm:$0xff] %vm37_vm2, %v8766_v60  ;;  %v885_v32 = vpop.f32.mrb[146].mxu0 }
 0x1fb   :  { %1265 = vst.msk [vmem:[#allocation3 + $0x550] sm:$0xff] %vm37_vm2, %v8768_v47  ;;  %1656 = vst.msk [vmem:[#allocation3 + $0x508] sm:$0xff] %vm37_vm2, %v8768_v47  ;;  %v886_v23 = vadd.f32 %v8631_v26, %v885_v32  ;;  %v6993_v27 = vpop.f32.mrb[147].mxu0  ;;  %v1057_v6 = vmax.f32 %v883_v51, 0.0 }
 0x1fc   :  { %2818 = vst.msk [vmem:[#allocation3 + $0x2f0] sm:$0xff] %vm37_vm2, %v2769_v17 }
 0x1fd   :  { %v1058_v49 = vmax.f32 %v886_v23, 0.0 }
 0x1ff   :  { %v1119_v39 = vpack.c.bf16 %v1058_v49, %v1057_v6 }
 0x200   :  { %v890_v0 = vpop.f32.mrb[148].mxu0  ;;  %v8782_v5 = vld [vmem:[#allocation2 + $0x118] sm:$0xff] }
 0x201   :  { %v8784_v19 = vld [vmem:[#allocation2 + $0x118] sm:$0xff]  ;;  %1169 = vst.msk [vmem:[#allocation2 + $0x120] sm:$0xff] %vm37_vm2, %v1119_v39  ;;  %v891_v22 = vadd.f32 %v8631_v26, %v890_v0  ;;  %v6996_v47 = vpop.f32.mrb[149].mxu0  ;;  %2429 = vst.msk [vmem:[#allocation3 + $0x360] sm:$0xff] %vm37_vm2, %v8782_v5 }
 0x202   :  { %10656 = vst [vmem:[#allocation28_spill] sm:$0xff] %v8784_v19  ;;  %v1217_v2 = vld [vmem:[#allocation2 + $0x118] sm:$0xff]  ;;  %2043 = vst.msk [vmem:[#allocation3 + $0x448] sm:$0xff] %vm37_vm2, %v8784_v19  ;;  %v893_v17 = vpop.f32.mrb[150].mxu0 }
 0x203   :  { %1266 = vst.msk [vmem:[#allocation3 + $0x578] sm:$0xff] %vm37_vm2, %v1217_v2  ;;  %1657 = vst.msk [vmem:[#allocation3 + $0x530] sm:$0xff] %vm37_vm2, %v1217_v2  ;;  %v894_v51 = vadd.f32 %v8631_v26, %v893_v17  ;;  %v6997_v32 = vpop.f32.mrb[151].mxu0  ;;  %v1059_v23 = vmax.f32 %v891_v22, 0.0 }
 0x204   :  { %2819 = vst.msk [vmem:[#allocation3 + $0x318] sm:$0xff] %vm37_vm2, %v1217_v2 }
 0x205   :  { %v1060_v27 = vmax.f32 %v894_v51, 0.0 }
 0x207   :  { %v1120_v6 = vpack.c.bf16 %v1060_v27, %v1059_v23 }
 0x208   :  { %v898_v47 = vpop.f32.mrb[152].mxu0  ;;  %v8796_v49 = vld [vmem:[#allocation2 + $0x120] sm:$0xff] }
 0x209   :  { %v8798_v39 = vld [vmem:[#allocation2 + $0x120] sm:$0xff]  ;;  %1170 = vst.msk [vmem:[#allocation2 + $0x128] sm:$0xff] %vm37_vm2, %v1120_v6  ;;  %v899_v19 = vadd.f32 %v8631_v26, %v898_v47  ;;  %v7000_v63 = vpop.f32.mrb[153].mxu0  ;;  %2430 = vst.msk [vmem:[#allocation3 + $0x388] sm:$0xff] %vm37_vm2, %v8796_v49 }
 0x20a   :  { %10657 = vst [vmem:[#allocation29_spill] sm:$0xff] %v8798_v39  ;;  %v1218_v0 = vld [vmem:[#allocation2 + $0x120] sm:$0xff]  ;;  %2044 = vst.msk [vmem:[#allocation3 + $0x470] sm:$0xff] %vm37_vm2, %v8798_v39  ;;  %v901_v22 = vpop.f32.mrb[154].mxu0 }
 0x20b   :  { %1267 = vst.msk [vmem:[#allocation3 + $0x5a0] sm:$0xff] %vm37_vm2, %v1218_v0  ;;  %1658 = vst.msk [vmem:[#allocation3 + $0x558] sm:$0xff] %vm37_vm2, %v1218_v0  ;;  %v902_v2 = vadd.f32 %v8631_v26, %v901_v22  ;;  %v7001_v17 = vpop.f32.mrb[155].mxu0  ;;  %v1061_v51 = vmax.f32 %v899_v19, 0.0 }
 0x20c   :  { %2820 = vst.msk [vmem:[#allocation3 + $0x340] sm:$0xff] %vm37_vm2, %v1218_v0 }
 0x20d   :  { %v1062_v32 = vmax.f32 %v902_v2, 0.0 }
 0x20f   :  { %v1121_v23 = vpack.c.bf16 %v1062_v32, %v1061_v51 }
 0x210   :  { %v906_v63 = vpop.f32.mrb[156].mxu0  ;;  %v8810_v27 = vld [vmem:[#allocation2 + $0x128] sm:$0xff] }
 0x211   :  { %v8812_v6 = vld [vmem:[#allocation2 + $0x128] sm:$0xff]  ;;  %1171 = vst.msk [vmem:[#allocation2 + $0x130] sm:$0xff] %vm37_vm2, %v1121_v23  ;;  %v907_v47 = vadd.f32 %v8631_v26, %v906_v63  ;;  %v7004_v39 = vpop.f32.mrb[157].mxu0  ;;  %2431 = vst.msk [vmem:[#allocation3 + $0x3b0] sm:$0xff] %vm37_vm2, %v8810_v27 }
 0x212   :  { %10658 = vst [vmem:[#allocation30_spill] sm:$0xff] %v8812_v6  ;;  %2045 = vst.msk [vmem:[#allocation3 + $0x498] sm:$0xff] %vm37_vm2, %v8810_v27  ;;  %v2772_v19 = vld [vmem:[#allocation2 + $0x128] sm:$0xff]  ;;  %v909_v0 = vpop.f32.mrb[158].mxu0 }
 0x213   :  { %1268 = vst.msk [vmem:[#allocation3 + $0x5c8] sm:$0xff] %vm37_vm2, %v8812_v6  ;;  %1659 = vst.msk [vmem:[#allocation3 + $0x580] sm:$0xff] %vm37_vm2, %v8812_v6  ;;  %v910_v22 = vadd.f32 %v8631_v26, %v909_v0  ;;  %v7005_v2 = vpop.f32.mrb[159].mxu0  ;;  %v1063_v39 = vmax.f32 %v907_v47, 0.0 }
 0x214   :  { %2821 = vst.msk [vmem:[#allocation3 + $0x368] sm:$0xff] %vm37_vm2, %v2772_v19 }
 0x215   :  { %v1064_v17 = vmax.f32 %v910_v22, 0.0 }
 0x217   :  { %v1122_v51 = vpack.c.bf16 %v1064_v17, %v1063_v39 }
 0x218   :  { %v914_v32 = vpop.f32.mrb[160].mxu0  ;;  %v8826_v23 = vld [vmem:[#allocation2 + $0x130] sm:$0xff] }
 0x219   :  { %v8828_v63 = vld [vmem:[#allocation2 + $0x130] sm:$0xff]  ;;  %1172 = vst.msk [vmem:[#allocation2 + $0x138] sm:$0xff] %vm37_vm2, %v1122_v51  ;;  %v915_v6 = vadd.f32 %v8631_v26, %v914_v32  ;;  %v7008_v15 = vpop.f32.mrb[161].mxu0  ;;  %2432 = vst.msk [vmem:[#allocation3 + $0x3d8] sm:$0xff] %vm37_vm2, %v8826_v23 }
 0x21a   :  { %10659 = vst [vmem:[#allocation31_spill] sm:$0xff] %v8828_v63  ;;  %v2773_v38 = vld [vmem:[#allocation2 + $0x130] sm:$0xff]  ;;  %2046 = vst.msk [vmem:[#allocation3 + $0x4c0] sm:$0xff] %vm37_vm2, %v8826_v23  ;;  %v917_v47 = vpop.f32.mrb[162].mxu0 }
 0x21b   :  { %1269 = vst.msk [vmem:[#allocation3 + $0x5f0] sm:$0xff] %vm37_vm2, %v8828_v63  ;;  %1660 = vst.msk [vmem:[#allocation3 + $0x5a8] sm:$0xff] %vm37_vm2, %v8828_v63  ;;  %v918_v19 = vadd.f32 %v8631_v26, %v917_v47  ;;  %v7009_v0 = vpop.f32.mrb[163].mxu0  ;;  %v1065_v22 = vmax.f32 %v915_v6, 0.0  ;;  %v10661_v63 = vmov 0  }
 0x21c   :  { %2822 = vst.msk [vmem:[#allocation3 + $0x390] sm:$0xff] %vm37_vm2, %v2773_v38 }
 0x21d   :  { %v1066_v15 = vmax.f32 %v918_v19, 0.0 }
 0x21f   :  { %v1123_v2 = vpack.c.bf16 %v1066_v15, %v1065_v22  ;;  %v7760_v22 = vld [vmem:[%s10561_s3] sm:$0xff]  }
 0x220   :  { %v922_v39 = vpop.f32.mrb[164].mxu0  ;;  %v8842_v17 = vld [vmem:[#allocation2 + $0x138] sm:$0xff]  ;;  %7282 = vmatpush1.bf16.msra.mxu1 %v7760_v22  ;;  %3537 = vmatpush1.bf16.msra.mxu0 %v7760_v22 }
 0x221   :  { %v8844_v51 = vld [vmem:[#allocation2 + $0x138] sm:$0xff]  ;;  %1173 = vst.msk [vmem:[#allocation2 + $0x140] sm:$0xff] %vm37_vm2, %v1123_v2  ;;  %v923_v32 = vadd.f32 %v8631_v26, %v922_v39  ;;  %v7012_v53 = vpop.f32.mrb[165].mxu0  ;;  %2433 = vst.msk [vmem:[#allocation3 + $0x400] sm:$0xff] %vm37_vm2, %v8842_v17  ;;  %7267 = vmatprep.subr.bf16.mxu1 %v10661_v63  ;;  %3538 = vmatprep.subr.bf16.mxu0 %v10661_v63 }
 0x222   :  { %10660 = vst [vmem:[#allocation32_spill] sm:$0xff] %v8844_v51  ;;  %2047 = vst.msk [vmem:[#allocation3 + $0x4e8] sm:$0xff] %vm37_vm2, %v8842_v17  ;;  %v2774_v38 = vld [vmem:[#allocation2 + $0x138] sm:$0xff]  ;;  %v925_v6 = vpop.f32.mrb[166].mxu0 }
 0x223   :  { %1270 = vst.msk [vmem:[#allocation3 + $0x618] sm:$0xff] %vm37_vm2, %v8844_v51  ;;  %1661 = vst.msk [vmem:[#allocation3 + $0x5d0] sm:$0xff] %vm37_vm2, %v8844_v51  ;;  %v926_v47 = vadd.f32 %v8631_v26, %v925_v6  ;;  %v7013_v19 = vpop.f32.mrb[167].mxu0  ;;  %v1067_v53 = vmax.f32 %v923_v32, 0.0  ;;  %v7761_v32 = vld [vmem:[%s10561_s3 + $0x8] sm:$0xff]  }
 0x224   :  { %2823 = vst.msk [vmem:[#allocation3 + $0x3b8] sm:$0xff] %vm37_vm2, %v2774_v38  ;;  %7283 = vmatpush1.bf16.msra.mxu1 %v7761_v32  ;;  %3539 = vmatpush1.bf16.msra.mxu0 %v7761_v32 }
 0x225   :  { %v1068_v0 = vmax.f32 %v926_v47, 0.0  ;;  %7268 = vmatprep.subr.bf16.mxu1 %v10661_v63  ;;  %3540 = vmatprep.subr.bf16.mxu0 %v10661_v63 }
 0x227   :  { %v1124_v15 = vpack.c.bf16 %v1068_v0, %v1067_v53 }
 0x228   :  { %v930_v2 = vpop.f32.mrb[168].mxu0  ;;  %v8861_v39 = vld [vmem:[#allocation2 + $0x140] sm:$0xff] }
 0x229   :  { %1174 = vst.msk [vmem:[#allocation2 + $0x148] sm:$0xff] %vm37_vm2, %v1124_v15  ;;  %v931_v51 = vadd.f32 %v8631_v26, %v930_v2  ;;  %v7016_v38 = vpop.f32.mrb[169].mxu0  ;;  %2434 = vst.msk [vmem:[#allocation3 + $0x428] sm:$0xff] %vm37_vm2, %v8861_v39  ;;  %v8874_v47 = vld [vmem:[#allocation2 + $0x140] sm:$0xff]  ;;  %v7762_v15 = vld [vmem:[%s10561_s3 + $0x10] sm:$0xff]  }
 0x22a   :  { %2048 = vst.msk [vmem:[#allocation3 + $0x510] sm:$0xff] %vm37_vm2, %v8861_v39  ;;  %v933_v6 = vpop.f32.mrb[170].mxu0  ;;  %10662 = vst [vmem:[#allocation33_spill] sm:$0xff] %v8874_v47  ;;  %7284 = vmatpush1.bf16.msra.mxu1 %v7762_v15  ;;  %3541 = vmatpush1.bf16.msra.mxu0 %v7762_v15 }
 0x22b   :  { %v934_v19 = vadd.f32 %v8631_v26, %v933_v6  ;;  %v7017_v53 = vpop.f32.mrb[171].mxu0  ;;  %1271 = vst.msk [vmem:[#allocation3 + $0x640] sm:$0xff] %vm37_vm2, %v8874_v47  ;;  %1662 = vst.msk [vmem:[#allocation3 + $0x5f8] sm:$0xff] %vm37_vm2, %v8874_v47  ;;  %v1069_v0 = vmax.f32 %v931_v51, 0.0  ;;  %7269 = vmatprep.subr.bf16.mxu1 %v10661_v63  ;;  %3542 = vmatprep.subr.bf16.mxu0 %v10661_v63 }
 0x22d   :  { %v1070_v22 = vmax.f32 %v934_v19, 0.0 }
 0x22f   :  { %v1125_v2 = vpack.c.bf16 %v1070_v22, %v1069_v0 }
 0x230   :  { %v938_v38 = vpop.f32.mrb[172].mxu0  ;;  %v8886_v6 = vld [vmem:[#allocation2 + $0x148] sm:$0xff] }
 0x231   :  { %1175 = vst.msk [vmem:[#allocation2 + $0x150] sm:$0xff] %vm37_vm2, %v1125_v2  ;;  %v939_v32 = vadd.f32 %v8631_v26, %v938_v38  ;;  %v7020_v51 = vpop.f32.mrb[173].mxu0  ;;  %1272 = vst.msk [vmem:[#allocation3 + $0x668] sm:$0xff] %vm37_vm2, %v8886_v6  ;;  %v8893_v19 = vld [vmem:[#allocation2 + $0x148] sm:$0xff]  ;;  %v7763_v38 = vld [vmem:[%s10561_s3 + $0x18] sm:$0xff]  }
 0x232   :  { %10663 = vst [vmem:[#allocation34_spill] sm:$0xff] %v8893_v19  ;;  %v941_v53 = vpop.f32.mrb[174].mxu0  ;;  %2435 = vst.msk [vmem:[#allocation3 + $0x450] sm:$0xff] %vm37_vm2, %v8893_v19  ;;  %v1614_v0 = vld [vmem:[#allocation2 + $0x148] sm:$0xff]  ;;  %v2775_v51 = vld [vmem:[#allocation2 + $0x140] sm:$0xff]  ;;  %7285 = vmatpush1.bf16.msra.mxu1 %v7763_v38  ;;  %3543 = vmatpush1.bf16.msra.mxu0 %v7763_v38 }
 0x233   :  { %2049 = vst.msk [vmem:[#allocation3 + $0x538] sm:$0xff] %vm37_vm2, %v8893_v19  ;;  %v1071_v22 = vmax.f32 %v939_v32, 0.0  ;;  %v942_v15 = vadd.f32 %v8631_v26, %v941_v53  ;;  %v7021_v2 = vpop.f32.mrb[175].mxu0  ;;  %1663 = vst.msk [vmem:[#allocation3 + $0x620] sm:$0xff] %vm37_vm2, %v1614_v0  ;;  %v7764_v32 = vld [vmem:[%s10561_s3 + $0x20] sm:$0xff]   ;;  %7270 = vmatprep.subr.bf16.mxu1 %v10661_v63  ;;  %3544 = vmatprep.subr.bf16.mxu0 %v10661_v63 }
 0x234   :  { %2825 = vst.msk [vmem:[#allocation3 + $0x408] sm:$0xff] %vm37_vm2, %v1614_v0  ;;  %2824 = vst.msk [vmem:[#allocation3 + $0x3e0] sm:$0xff] %vm37_vm2, %v2775_v51 }
 0x235   :  { %v1072_v47 = vmax.f32 %v942_v15, 0.0 }
 0x236   :  { %7286 = vmatpush1.bf16.msra.mxu1 %v7764_v32  ;;  %3545 = vmatpush1.bf16.msra.mxu0 %v7764_v32  ;;  %v7765_v32 = vld [vmem:[%s10561_s3 + $0x28] sm:$0xff]  }
 0x237   :  { %v1126_v53 = vpack.c.bf16 %v1072_v47, %v1071_v22  ;;  %7271 = vmatprep.subr.bf16.mxu1 %v10661_v63  ;;  %3546 = vmatprep.subr.bf16.mxu0 %v10661_v63 }
 0x238   :  { %v946_v2 = vpop.f32.mrb[176].mxu0  ;;  %v8912_v19 = vld [vmem:[#allocation2 + $0x150] sm:$0xff] }
 0x239   :  { %1176 = vst.msk [vmem:[#allocation2 + $0x158] sm:$0xff] %vm37_vm2, %v1126_v53  ;;  %v947_v0 = vadd.f32 %v8631_v26, %v946_v2  ;;  %v7024_v51 = vpop.f32.mrb[177].mxu0  ;;  %1273 = vst.msk [vmem:[#allocation3 + $0x690] sm:$0xff] %vm37_vm2, %v8912_v19  ;;  %v8918_v15 = vld [vmem:[#allocation2 + $0x150] sm:$0xff] }
 0x23a   :  { %10664 = vst [vmem:[#allocation35_spill] sm:$0xff] %v8918_v15  ;;  %v949_v38 = vpop.f32.mrb[178].mxu0  ;;  %2436 = vst.msk [vmem:[#allocation3 + $0x478] sm:$0xff] %vm37_vm2, %v8918_v15  ;;  %v1615_v47 = vld [vmem:[#allocation2 + $0x150] sm:$0xff]  ;;  %7287 = vmatpush1.bf16.msra.mxu1 %v7765_v32  ;;  %3547 = vmatpush1.bf16.msra.mxu0 %v7765_v32 }
 0x23b   :  { %2050 = vst.msk [vmem:[#allocation3 + $0x560] sm:$0xff] %vm37_vm2, %v8918_v15  ;;  %v1073_v22 = vmax.f32 %v947_v0, 0.0  ;;  %v950_v53 = vadd.f32 %v8631_v26, %v949_v38  ;;  %v7025_v2 = vpop.f32.mrb[179].mxu0  ;;  %1664 = vst.msk [vmem:[#allocation3 + $0x648] sm:$0xff] %vm37_vm2, %v1615_v47  ;;  %v7766_v15 = vld [vmem:[%s10561_s3 + $0x30] sm:$0xff]   ;;  %7272 = vmatprep.subr.bf16.mxu1 %v10661_v63  ;;  %3548 = vmatprep.subr.bf16.mxu0 %v10661_v63 }
 0x23c   :  { %2826 = vst.msk [vmem:[#allocation3 + $0x430] sm:$0xff] %vm37_vm2, %v1615_v47 }
 0x23d   :  { %v1074_v51 = vmax.f32 %v950_v53, 0.0 }
 0x23e   :  { %7288 = vmatpush1.bf16.msra.mxu1 %v7766_v15  ;;  %3549 = vmatpush1.bf16.msra.mxu0 %v7766_v15 }
 0x23f   :  { %v1127_v0 = vpack.c.bf16 %v1074_v51, %v1073_v22  ;;  %7273 = vmatprep.subr.bf16.mxu1 %v10661_v63  ;;  %3550 = vmatprep.subr.bf16.mxu0 %v10661_v63 }
 0x240   :  { %v954_v38 = vpop.f32.mrb[180].mxu0  ;;  %v8937_v2 = vld [vmem:[#allocation2 + $0x158] sm:$0xff] }
 0x241   :  { %1177 = vst.msk [vmem:[#allocation2 + $0x160] sm:$0xff] %vm37_vm2, %v1127_v0  ;;  %v955_v35 = vadd.f32 %v8631_v26, %v954_v38  ;;  %1462 = vrot.lane.b32.xlu1 %v8937_v2, %s7904_s23  ;;  %v7028_v47 = vpop.f32.mrb[181].mxu0  ;;  %1274 = vst.msk [vmem:[#allocation3 + $0x6b8] sm:$0xff] %vm37_vm2, %v8937_v2  ;;  %v8947_v53 = vld [vmem:[#allocation2 + $0x158] sm:$0xff] }
 0x242   :  { %1665 = vst.msk [vmem:[#allocation3 + $0x670] sm:$0xff] %vm37_vm2, %v8937_v2  ;;  %10665 = vst [vmem:[#allocation36_spill] sm:$0xff] %v8947_v53  ;;  %v957_v22 = vpop.f32.mrb[182].mxu0  ;;  %v7767_v38 = vld [vmem:[%s10561_s3 + $0x38] sm:$0xff]  }
 0x243   :  { %2437 = vst.msk [vmem:[#allocation3 + $0x4a0] sm:$0xff] %vm37_vm2, %v8947_v53  ;;  %2051 = vst.msk [vmem:[#allocation3 + $0x588] sm:$0xff] %vm37_vm2, %v8947_v53  ;;  %v1075_v32 = vmax.f32 %v955_v35, 0.0  ;;  %v958_v51 = vadd.f32 %v8631_v26, %v957_v22  ;;  %v7029_v0 = vpop.f32.mrb[183].mxu0  ;;  %7289 = vmatpush1.bf16.msra.mxu1 %v7767_v38  ;;  %3551 = vmatpush1.bf16.msra.mxu0 %v7767_v38  ;;  %v2778_v15 = vld [vmem:[#allocation2 + $0x158] sm:$0xff] }
 0x244   :  { %7274 = vmatprep.subr.bf16.mxu1 %v10661_v63  ;;  %3552 = vmatprep.subr.bf16.mxu0 %v10661_v63  ;;  %2827 = vst.msk [vmem:[#allocation3 + $0x458] sm:$0xff] %vm37_vm2, %v2778_v15 }
 0x245   :  { %v1076_v47 = vmax.f32 %v958_v51, 0.0 }
 0x247   :  { %v1128_v35 = vpack.c.bf16 %v1076_v47, %v1075_v32  ;;  %v1856_v32 = vpop.permute.xlu1 %1855  ;;  %7290 = vmatpush1.bf16.msra.mxu1 %v7768_v14  ;;  %3553 = vmatpush1.bf16.msra.mxu0 %v7768_v14 }
 0x248   :  { %v962_v22 = vpop.f32.mrb[184].mxu0  ;;  %v8965_v0 = vld [vmem:[#allocation2 + $0x160] sm:$0xff]  ;;  %7275 = vmatprep.subr.bf16.mxu1 %v10661_v63  ;;  %3554 = vmatprep.subr.bf16.mxu0 %v10661_v63 }
 0x249   :  { %v8967_v53 = vld [vmem:[#allocation2 + $0x160] sm:$0xff]  ;;  %1178 = vst.msk [vmem:[#allocation2 + $0x168] sm:$0xff] %vm37_vm2, %v1128_v35  ;;  %v963_v57 = vadd.f32 %v8631_v26, %v962_v22  ;;  %1464 = vrot.lane.b32.xlu1 %v8965_v0, %s7904_s23  ;;  %v7032_v38 = vpop.f32.mrb[185].mxu0  ;;  %1666 = vst.msk [vmem:[#allocation3 + $0x698] sm:$0xff] %vm37_vm2, %v8965_v0  ;;  %v7769_v22 = vld [vmem:[%s10561_s3 + $0x48] sm:$0xff]  }
 0x24a   :  { %10666 = vst [vmem:[#allocation37_spill] sm:$0xff] %v8967_v53  ;;  %v2779_v51 = vld [vmem:[#allocation2 + $0x160] sm:$0xff]  ;;  %1275 = vst.msk [vmem:[#allocation3 + $0x6e0] sm:$0xff] %vm37_vm2, %v8965_v0  ;;  %v965_v47 = vpop.f32.mrb[186].mxu0 }
 0x24b   :  { %2438 = vst.msk [vmem:[#allocation3 + $0x4c8] sm:$0xff] %vm37_vm2, %v8967_v53  ;;  %2052 = vst.msk [vmem:[#allocation3 + $0x5b0] sm:$0xff] %vm37_vm2, %v8967_v53  ;;  %v966_v15 = vadd.f32 %v8631_v26, %v965_v47  ;;  %v7033_v35 = vpop.f32.mrb[187].mxu0  ;;  %v1077_v38 = vmax.f32 %v963_v57, 0.0  ;;  %7291 = vmatpush1.bf16.msra.mxu1 %v7769_v22  ;;  %3555 = vmatpush1.bf16.msra.mxu0 %v7769_v22 }
 0x24c   :  { %2828 = vst.msk [vmem:[#allocation3 + $0x480] sm:$0xff] %vm37_vm2, %v2779_v51  ;;  %v7770_v51 = vld [vmem:[%s10561_s3 + $0x50] sm:$0xff]   ;;  %7276 = vmatprep.subr.bf16.mxu1 %v10661_v63  ;;  %3556 = vmatprep.subr.bf16.mxu0 %v10661_v63 }
 0x24d   :  { %1960 = vst.msk [vmem:[#allocation3 + $0x698] sm:$0xff] %vm1525_vm3, %v1856_v32  ;;  %v1078_v41 = vmax.f32 %v966_v15, 0.0 }
 0x24f   :  { %v1129_v14 = vpack.c.bf16 %v1078_v41, %v1077_v38  ;;  %7292 = vmatpush1.bf16.msra.mxu1 %v7770_v51  ;;  %3557 = vmatpush1.bf16.msra.mxu0 %v7770_v51 }
 0x250   :  { %v970_v32 = vpop.f32.mrb[188].mxu0  ;;  %v8994_v47 = vld [vmem:[#allocation2 + $0x168] sm:$0xff]  ;;  %7277 = vmatprep.subr.bf16.mxu1 %v10661_v63  ;;  %3558 = vmatprep.subr.bf16.mxu0 %v10661_v63 }
 0x251   :  { %v8996_v35 = vld [vmem:[#allocation2 + $0x168] sm:$0xff]  ;;  %1179 = vst.msk [vmem:[#allocation2 + $0x170] sm:$0xff] %vm37_vm2, %v1129_v14  ;;  %v971_v57 = vadd.f32 %v8631_v26, %v970_v32  ;;  %1466 = vrot.lane.b32.xlu1 %v8994_v47, %s7904_s23  ;;  %v7036_v15 = vpop.f32.mrb[189].mxu0  ;;  %1276 = vst.msk [vmem:[#allocation3 + $0x708] sm:$0xff] %vm37_vm2, %v8994_v47  ;;  %v7771_v32 = vld [vmem:[%s10561_s3 + $0x58] sm:$0xff]  }
 0x252   :  { %10667 = vst [vmem:[#allocation38_spill] sm:$0xff] %v8996_v35  ;;  %1667 = vst.msk [vmem:[#allocation3 + $0x6c0] sm:$0xff] %vm37_vm2, %v8994_v47  ;;  %v2780_v41 = vld [vmem:[#allocation2 + $0x168] sm:$0xff]  ;;  %v973_v22 = vpop.f32.mrb[190].mxu0 }
 0x253   :  { %2439 = vst.msk [vmem:[#allocation3 + $0x4f0] sm:$0xff] %vm37_vm2, %v8996_v35  ;;  %2053 = vst.msk [vmem:[#allocation3 + $0x5d8] sm:$0xff] %vm37_vm2, %v8996_v35  ;;  %v974_v38 = vadd.f32 %v8631_v26, %v973_v22  ;;  %v7037_v14 = vpop.f32.mrb[191].mxu0  ;;  %v1079_v15 = vmax.f32 %v971_v57, 0.0  ;;  %7293 = vmatpush1.bf16.msra.mxu1 %v7771_v32  ;;  %v7772_v35 = vld [vmem:[%s10561_s3 + $0x60] sm:$0xff]   ;;  %3559 = vmatpush1.bf16.msra.mxu0 %v7771_v32 }
 0x254   :  { %2829 = vst.msk [vmem:[#allocation3 + $0x4a8] sm:$0xff] %vm37_vm2, %v2780_v41  ;;  %7278 = vmatprep.subr.bf16.mxu1 %v10661_v63  ;;  %3560 = vmatprep.subr.bf16.mxu0 %v10661_v63 }
 0x255   :  { %v1080_v53 = vmax.f32 %v974_v38, 0.0 }
 0x257   :  { %v1130_v51 = vpack.c.bf16 %v1080_v53, %v1079_v15  ;;  %7294 = vmatpush1.bf16.msra.mxu1 %v7772_v35  ;;  %3561 = vmatpush1.bf16.msra.mxu0 %v7772_v35  ;;  %v7899_v53 = vld [vmem:[%s10560_s2] ss:$0 sm:$0xff]  ;;  %v7774_v35 = vld [vmem:[%s10561_s3 + $0x70] sm:$0xff]  }
 0x258   :  { %v978_v41 = vpop.f32.mrb[192].mxu0  ;;  %v9022_v22 = vld [vmem:[#allocation2 + $0x170] sm:$0xff]  ;;  %7279 = vmatprep.subr.bf16.mxu1 %v10661_v63  ;;  %3562 = vmatprep.subr.bf16.mxu0 %v10661_v63 }
 0x259   :  { %v9024_v14 = vld [vmem:[#allocation2 + $0x170] sm:$0xff]  ;;  %1180 = vst.msk [vmem:[#allocation2 + $0x178] sm:$0xff] %vm37_vm2, %v1130_v51  ;;  %v979_v57 = vadd.f32 %v8631_v26, %v978_v41  ;;  %1468 = vrot.lane.b32.xlu1 %v9022_v22, %s7904_s23  ;;  %v7040_v38 = vpop.f32.mrb[193].mxu0  ;;  %1277 = vst.msk [vmem:[#allocation3 + $0x730] sm:$0xff] %vm37_vm2, %v9022_v22  ;;  %v7773_v51 = vld [vmem:[%s10561_s3 + $0x68] sm:$0xff]  }
 0x25a   :  { %v2781_v25 = vld [vmem:[#allocation2 + $0x170] sm:$0xff]  ;;  %1668 = vst.msk [vmem:[#allocation3 + $0x6e8] sm:$0xff] %vm37_vm2, %v9022_v22  ;;  %2440 = vst.msk [vmem:[#allocation3 + $0x518] sm:$0xff] %vm37_vm2, %v9024_v14  ;;  %v981_v26 = vpop.f32.mrb[194].mxu0 }
 0x25b   :  { %2054 = vst.msk [vmem:[#allocation3 + $0x600] sm:$0xff] %vm37_vm2, %v9024_v14  ;;  %2830 = vst.msk [vmem:[#allocation3 + $0x4d0] sm:$0xff] %vm37_vm2, %v2781_v25  ;;  %v982_v32 = vadd.f32 %v7899_v53, %v981_v26  ;;  %v7041_v15 = vpop.f32.mrb[195].mxu0  ;;  %v1081_v41 = vmax.f32 %v979_v57, 0.0  ;;  %7295 = vmatpush1.bf16.msra.mxu1 %v7773_v51  ;;  %3563 = vmatpush1.bf16.msra.mxu0 %v7773_v51 }
 0x25c   :  { %7280 = vmatprep.subr.bf16.mxu1 %v10661_v63  ;;  %3564 = vmatprep.subr.bf16.mxu0 %v10661_v63 }
 0x25d   :  { %v1082_v38 = vmax.f32 %v982_v32, 0.0  ;;  %v7775_v32 = vld [vmem:[%s10561_s3 + $0x78] sm:$0xff]  }
 0x25f   :  { %v1131_v25 = vpack.c.bf16 %v1082_v38, %v1081_v41  ;;  %7296 = vmatpush1.bf16.msra.mxu1 %v7774_v35  ;;  %3565 = vmatpush1.bf16.msra.mxu0 %v7774_v35  ;;  %v9095_v38 = vld [vmem:[#allocation2 + $0x198] sm:$0xff]  ;;  %v3060_v35 = vld [vmem:[#allocation3 + $0x698] sm:$0xff] }
 0x260   :  { %v9052_v26 = vld [vmem:[#allocation2 + $0x178] sm:$0xff]  ;;  %7281 = vmatprep.subr.bf16.mxu1 %v10661_v63  ;;  %3566 = vmatprep.subr.bf16.mxu0 %v10661_v63 }
 0x261   :  { %v9054_v53 = vld [vmem:[#allocation2 + $0x178] sm:$0xff]  ;;  %1181 = vst.msk [vmem:[#allocation2 + $0x180] sm:$0xff] %vm37_vm2, %v1131_v25  ;;  %1470 = vrot.lane.b32.xlu1 %v9052_v26, %s7904_s23  ;;  %1278 = vst.msk [vmem:[#allocation3 + $0x758] sm:$0xff] %vm37_vm2, %v9052_v26  ;;  %v9101_v25 = vld [vmem:[#allocation2 + $0x1a0] sm:$0xff] }
 0x262   :  { %1669 = vst.msk [vmem:[#allocation3 + $0x710] sm:$0xff] %vm37_vm2, %v9052_v26  ;;  %2441 = vst.msk [vmem:[#allocation3 + $0x540] sm:$0xff] %vm37_vm2, %v9054_v53  ;;  %v2782_v57 = vld [vmem:[#allocation2 + $0x178] sm:$0xff] }
 0x263   :  { %2055 = vst.msk [vmem:[#allocation3 + $0x628] sm:$0xff] %vm37_vm2, %v9054_v53  ;;  %2831 = vst.msk [vmem:[#allocation3 + $0x4f8] sm:$0xff] %vm37_vm2, %v2782_v57  ;;  %7297 = vmatpush1.bf16.msra.mxu1 %v7775_v32  ;;  %3567 = vmatpush1.bf16.msra.mxu0 %v7775_v32 }
 0x264   :  { %3961 = vmatprep.subr.bf16.mxu1 %v10661_v63 }
 0x268   :  { %v9074_v15 = vld [vmem:[#allocation2 + $0x180] sm:$0xff] }
 0x269   :  { %v2393_v51 = vld [vmem:[#allocation2 + $0x180] sm:$0xff]  ;;  %1853 = vrot.lane.b32.xlu0 %v9074_v15, %s7904_s23  ;;  %1472 = vrot.lane.b32.xlu1 %v9074_v15, %s7904_s23  ;;  %1279 = vst.msk [vmem:[#allocation3 + $0x780] sm:$0xff] %vm37_vm2, %v9074_v15  ;;  %1670 = vst.msk [vmem:[#allocation3 + $0x738] sm:$0xff] %vm37_vm2, %v9074_v15 }
 0x26a   :  { %v2783_v41 = vld [vmem:[#allocation2 + $0x180] sm:$0xff]  ;;  %2442 = vst.msk [vmem:[#allocation3 + $0x568] sm:$0xff] %vm37_vm2, %v2393_v51  ;;  %2056 = vst.msk [vmem:[#allocation3 + $0x650] sm:$0xff] %vm37_vm2, %v2393_v51  ;;  %v7778_v51 = vld [vmem:[%s10561_s3 + $0x90] sm:$0xff]  }
 0x26b   :  { %2832 = vst.msk [vmem:[#allocation3 + $0x520] sm:$0xff] %vm37_vm2, %v2783_v41 }
 0x26d   :  { %1460 = vrot.lane.b32.xlu0 %v8912_v19, %s7904_s23  ;;  %1474 = vrot.lane.b32.xlu1 %v8644_v42, %s7904_s23  ;;  %v1719_v42 = vld [vmem:[#allocation2 + $0x1a8] sm:$0xff] }
 0x271   :  { %1857 = vrot.lane.b32.xlu0 %v8746_v54, %s7904_s23  ;;  %2163 = vrot.lane.b32.xlu1 %v8273_v30, %s7904_s23  ;;  %v1720_v30 = vld [vmem:[#allocation2 + $0x1b0] sm:$0xff] }
 0x275   :  { %1859 = vrot.lane.b32.xlu0 %v9095_v38, %s7904_s23  ;;  %2165 = vrot.lane.b32.xlu1 %v8291_v45, %s7904_s23  ;;  %v1721_v45 = vld [vmem:[#allocation2 + $0x1b8] sm:$0xff] }
 0x279   :  { %1861 = vrot.lane.b32.xlu0 %v9101_v25, %s7904_s23  ;;  %2167 = vrot.lane.b32.xlu1 %v8310_v58, %s7904_s23  ;;  %v9128_v58 = vld [vmem:[#allocation2 + $0x188] sm:$0xff] }
 0x27a   :  { %2443 = vst.msk [vmem:[#allocation3 + $0x590] sm:$0xff] %vm37_vm2, %v9128_v58  ;;  %2057 = vst.msk [vmem:[#allocation3 + $0x678] sm:$0xff] %vm37_vm2, %v9128_v58 }
 0x27d   :  { %1863 = vrot.lane.b32.xlu0 %v1719_v42, %s7904_s23  ;;  %2169 = vrot.lane.b32.xlu1 %v8329_v9, %s7904_s23  ;;  %v9150_v9 = vld [vmem:[#allocation2 + $0x1a8] sm:$0xff] }
 0x27e   :  { %2447 = vst.msk [vmem:[#allocation3 + $0x630] sm:$0xff] %vm37_vm2, %v9150_v9  ;;  %2061 = vst.msk [vmem:[#allocation3 + $0x718] sm:$0xff] %vm37_vm2, %v9150_v9 }
 0x281   :  { %1865 = vrot.lane.b32.xlu0 %v1720_v30, %s7904_s23  ;;  %2171 = vrot.lane.b32.xlu1 %v8348_v24, %s7904_s23  ;;  %v9160_v24 = vld [vmem:[#allocation2 + $0x1b0] sm:$0xff] }
 0x282   :  { %2448 = vst.msk [vmem:[#allocation3 + $0x658] sm:$0xff] %vm37_vm2, %v9160_v24  ;;  %2062 = vst.msk [vmem:[#allocation3 + $0x740] sm:$0xff] %vm37_vm2, %v9160_v24 }
 0x285   :  { %1867 = vrot.lane.b32.xlu0 %v1721_v45, %s7904_s23  ;;  %2173 = vrot.lane.b32.xlu1 %v8367_v40, %s7904_s23  ;;  %v9170_v40 = vld [vmem:[#allocation2 + $0x1b8] sm:$0xff] }
 0x286   :  { %2449 = vst.msk [vmem:[#allocation3 + $0x680] sm:$0xff] %vm37_vm2, %v9170_v40  ;;  %2063 = vst.msk [vmem:[#allocation3 + $0x768] sm:$0xff] %vm37_vm2, %v9170_v40  ;;  %v7779_v45 = vld [vmem:[%s10561_s3 + $0x98] sm:$0xff]  }
 0x289   :  { %2555 = vrot.lane.b32.xlu0 %v8388_v56, %s7904_s23  ;;  %2175 = vrot.lane.b32.xlu1 %v8388_v56, %s7904_s23  ;;  %v9176_v56 = vld [vmem:[#allocation2 + $0x1c0] sm:$0xff] }
 0x28a   :  { %2450 = vst.msk [vmem:[#allocation3 + $0x6a8] sm:$0xff] %vm37_vm2, %v9176_v56  ;;  %2064 = vst.msk [vmem:[#allocation3 + $0x790] sm:$0xff] %vm37_vm2, %v9176_v56 }
 0x28d   :  { %2557 = vrot.lane.b32.xlu0 %v8408_v12, %s7904_s23  ;;  %2177 = vrot.lane.b32.xlu1 %v8408_v12, %s7904_s23  ;;  %v9186_v12 = vld [vmem:[#allocation2 + $0x1c8] sm:$0xff] }
 0x28e   :  { %2451 = vst.msk [vmem:[#allocation3 + $0x6d0] sm:$0xff] %vm37_vm2, %v9186_v12 }
 0x291   :  { %2559 = vrot.lane.b32.xlu0 %v8429_v34, %s7904_s23  ;;  %2179 = vrot.lane.b32.xlu1 %v8429_v34, %s7904_s23 }
 0x295   :  { %2561 = vrot.lane.b32.xlu0 %v8451_v52, %s7904_s23  ;;  %2181 = vrot.lane.b32.xlu1 %v8451_v52, %s7904_s23  ;;  %v9195_v52 = vld [vmem:[#allocation2 + $0x1d0] sm:$0xff] }
 0x296   :  { %2452 = vst.msk [vmem:[#allocation3 + $0x6f8] sm:$0xff] %vm37_vm2, %v9195_v52 }
 0x299   :  { %2563 = vrot.lane.b32.xlu0 %v8473_v13, %s7904_s23  ;;  %2183 = vrot.lane.b32.xlu1 %v8473_v13, %s7904_s23  ;;  %v9203_v13 = vld [vmem:[#allocation2 + $0x1d8] sm:$0xff] }
 0x29a   :  { %2453 = vst.msk [vmem:[#allocation3 + $0x720] sm:$0xff] %vm37_vm2, %v9203_v13 }
 0x29d   :  { %2565 = vrot.lane.b32.xlu0 %v8493_v37, %s7904_s23  ;;  %2185 = vrot.lane.b32.xlu1 %v8493_v37, %s7904_s23 }
 0x2a1   :  { %2567 = vrot.lane.b32.xlu0 %v8509_v61, %s7904_s23  ;;  %2187 = vrot.lane.b32.xlu1 %v8509_v61, %s7904_s23  ;;  %v9212_v61 = vld [vmem:[#allocation2 + $0x1e0] sm:$0xff] }
 0x2a2   :  { %2454 = vst.msk [vmem:[#allocation3 + $0x748] sm:$0xff] %vm37_vm2, %v9212_v61 }
 0x2a5   :  { %2569 = vrot.lane.b32.xlu0 %v8525_v20, %s7904_s23  ;;  %2189 = vrot.lane.b32.xlu1 %v8525_v20, %s7904_s23  ;;  %v9220_v20 = vld [vmem:[#allocation2 + $0x1e8] sm:$0xff] }
 0x2a6   :  { %2455 = vst.msk [vmem:[#allocation3 + $0x770] sm:$0xff] %vm37_vm2, %v9220_v20 }
 0x2a9   :  { %2571 = vrot.lane.b32.xlu0 %v8541_v48, %s7904_s23  ;;  %2191 = vrot.lane.b32.xlu1 %v8541_v48, %s7904_s23 }
 0x2ad   :  { %2573 = vrot.lane.b32.xlu0 %v8557_v8, %s7904_s23  ;;  %2193 = vrot.lane.b32.xlu1 %v8557_v8, %s7904_s23  ;;  %v9229_v8 = vld [vmem:[#allocation2 + $0x1f0] sm:$0xff] }
 0x2ae   :  { %2456 = vst.msk [vmem:[#allocation3 + $0x798] sm:$0xff] %vm37_vm2, %v9229_v8 }
 0x2b1   :  { %2575 = vrot.lane.b32.xlu0 %v8573_v43, %s7904_s23  ;;  %2195 = vrot.lane.b32.xlu1 %v8573_v43, %s7904_s23 }
 0x2b3   :  { %v1463_v34 = vpop.permute.xlu1 %1462 }
 0x2b4   :  { %1568 = vst.msk [vmem:[#allocation3 + $0x690] sm:$0xff] %vm1525_vm3, %v1463_v34 }
 0x2b5   :  { %2577 = vrot.lane.b32.xlu0 %v8623_v18, %s7904_s23  ;;  %2197 = vrot.lane.b32.xlu1 %v8623_v18, %s7904_s23 }
 0x2b9   :  { %2579 = vrot.lane.b32.xlu0 %v8650_v1, %s7904_s23  ;;  %2199 = vrot.lane.b32.xlu1 %v8650_v1, %s7904_s23 }
 0x2bb   :  { %v1465_v37 = vpop.permute.xlu1 %1464  ;;  %v3059_v42 = vld [vmem:[#allocation3 + $0x690] sm:$0xff] }
 0x2bc   :  { %1569 = vst.msk [vmem:[#allocation3 + $0x6b8] sm:$0xff] %vm1525_vm3, %v1465_v37  ;;  %v7780_v37 = vld [vmem:[%s10561_s3 + $0xa0] sm:$0xff]  }
 0x2bd   :  { %2581 = vrot.lane.b32.xlu0 %v8666_v50, %s7904_s23  ;;  %2201 = vrot.lane.b32.xlu1 %v8666_v50, %s7904_s23 }
 0x2c1   :  { %2583 = vrot.lane.b32.xlu0 %v8682_v36, %s7904_s23  ;;  %2203 = vrot.lane.b32.xlu1 %v8682_v36, %s7904_s23 }
 0x2c3   :  { %v1467_v48 = vpop.permute.xlu1 %1466 }
 0x2c4   :  { %1570 = vst.msk [vmem:[#allocation3 + $0x6e0] sm:$0xff] %vm1525_vm3, %v1467_v48 }
 0x2c5   :  { %2585 = vrot.lane.b32.xlu0 %v8698_v28, %s7904_s23  ;;  %2205 = vrot.lane.b32.xlu1 %v8698_v28, %s7904_s23 }
 0x2c9   :  { %2587 = vrot.lane.b32.xlu0 %v8714_v7, %s7904_s23  ;;  %2207 = vrot.lane.b32.xlu1 %v8714_v7, %s7904_s23 }
 0x2cb   :  { %v1469_v43 = vpop.permute.xlu1 %1468 }
 0x2cc   :  { %1571 = vst.msk [vmem:[#allocation3 + $0x708] sm:$0xff] %vm1525_vm3, %v1469_v43  ;;  %v3064_v43 = vld [vmem:[#allocation3 + $0x6b8] sm:$0xff] }
 0x2cd   :  { %2589 = vrot.lane.b32.xlu0 %v8730_v29, %s7904_s23  ;;  %2209 = vrot.lane.b32.xlu1 %v8730_v29, %s7904_s23 }
 0x2d1   :  { %2591 = vrot.lane.b32.xlu0 %v8750_v3, %s7904_s23  ;;  %2211 = vrot.lane.b32.xlu1 %v8750_v3, %s7904_s23 }
 0x2d3   :  { %v1471_v18 = vpop.permute.xlu1 %1470 }
 0x2d4   :  { %1572 = vst.msk [vmem:[#allocation3 + $0x730] sm:$0xff] %vm1525_vm3, %v1471_v18 }
 0x2d5   :  { %2593 = vrot.lane.b32.xlu0 %v8766_v60, %s7904_s23  ;;  %2213 = vrot.lane.b32.xlu1 %v8766_v60, %s7904_s23  ;;  %v7776_v60 = vld [vmem:[%s10561_s3 + $0x80] sm:$0xff]  }
 0x2d9   :  { %2595 = vrot.lane.b32.xlu0 %v8782_v5, %s7904_s23  ;;  %2215 = vrot.lane.b32.xlu1 %v8782_v5, %s7904_s23 }
 0x2db   :  { %v1854_v1 = vpop.permute.xlu0 %1853  ;;  %v1473_v50 = vpop.permute.xlu1 %1472 }
 0x2dc   :  { %1959 = vst.msk [vmem:[#allocation3 + $0x670] sm:$0xff] %vm1525_vm3, %v1854_v1  ;;  %1573 = vst.msk [vmem:[#allocation3 + $0x758] sm:$0xff] %vm1525_vm3, %v1473_v50  ;;  %v7781_v1 = vld [vmem:[%s10561_s3 + $0xa8] sm:$0xff]  }
 0x2dd   :  { %2597 = vrot.lane.b32.xlu0 %v8796_v49, %s7904_s23  ;;  %2217 = vrot.lane.b32.xlu1 %v8796_v49, %s7904_s23 }
 0x2df   :  { %v1461_v36 = vpop.permute.xlu0 %1460  ;;  %v1475_v28 = vpop.permute.xlu1 %1474 }
 0x2e0   :  { %1567 = vst.msk [vmem:[#allocation3 + $0x668] sm:$0xff] %vm1525_vm3, %v1461_v36  ;;  %1574 = vst.msk [vmem:[#allocation3 + $0x780] sm:$0xff] %vm1525_vm3, %v1475_v28  ;;  %v7782_v36 = vld [vmem:[%s10561_s3 + $0xb0] sm:$0xff]  }
 0x2e1   :  { %2599 = vrot.lane.b32.xlu0 %v8810_v27, %s7904_s23  ;;  %2219 = vrot.lane.b32.xlu1 %v8810_v27, %s7904_s23 }
 0x2e3   :  { %v1858_v7 = vpop.permute.xlu0 %1857  ;;  %v2164_v29 = vpop.permute.xlu1 %2163  ;;  %v3055_v3 = vld [vmem:[#allocation3 + $0x670] sm:$0xff] }
 0x2e4   :  { %1961 = vst.msk [vmem:[#allocation3 + $0x6c0] sm:$0xff] %vm1525_vm3, %v1858_v7  ;;  %2310 = vst.msk [vmem:[#allocation3 + $0x10] sm:$0xff] %vm1525_vm3, %v2164_v29  ;;  %3896 = vmatprep.mubr.bf16.mxu1 %v3055_v3  ;;  %v3069_v7 = vld [vmem:[#allocation3 + $0x6e0] sm:$0xff]  ;;  %v7783_v3 = vld [vmem:[%s10561_s3 + $0xb8] sm:$0xff]  }
 0x2e5   :  { %2601 = vrot.lane.b32.xlu0 %v8826_v23, %s7904_s23  ;;  %2221 = vrot.lane.b32.xlu1 %v8826_v23, %s7904_s23  ;;  %v7777_v23 = vld [vmem:[%s10561_s3 + $0x88] sm:$0xff]  }
 0x2e7   :  { %v1860_v5 = vpop.permute.xlu0 %1859  ;;  %v2166_v49 = vpop.permute.xlu1 %2165  ;;  %v3054_v27 = vld [vmem:[#allocation3 + $0x668] sm:$0xff] }
 0x2e8   :  { %1962 = vst.msk [vmem:[#allocation3 + $0x6e8] sm:$0xff] %vm1525_vm3, %v1860_v5  ;;  %2311 = vst.msk [vmem:[#allocation3 + $0x38] sm:$0xff] %vm1525_vm3, %v2166_v49  ;;  %3897 = vmatmul.mubr.bf16.vlgmr.msra.gmra.mrb[0].mxu1 %v3054_v27  ;;  %v7784_v5 = vld [vmem:[%s10561_s3 + $0xc0] sm:$0xff]   ;;  %v3074_v27 = vld [vmem:[#allocation3 + $0x708] sm:$0xff] }
 0x2e9   :  { %3962 = vmatpush1.bf16.msra.mxu1 %v7776_v60  ;;  %2603 = vrot.lane.b32.xlu0 %v8842_v17, %s7904_s23 }
 0x2ea   :  { %2223 = vrot.lane.b32.xlu1 %v8842_v17, %s7904_s23  ;;  %3963 = vmatprep.subr.bf16.mxu1 %v10661_v63 }
 0x2eb   :  { %v1862_v57 = vpop.permute.xlu0 %1861  ;;  %v2168_v32 = vpop.permute.xlu1 %2167  ;;  %3904 = vmatprep.mubr.bf16.mxu1 %v3060_v35  ;;  %v3065_v30 = vld [vmem:[#allocation3 + $0x6c0] sm:$0xff] }
 0x2ec   :  { %1963 = vst.msk [vmem:[#allocation3 + $0x710] sm:$0xff] %vm1525_vm3, %v1862_v57  ;;  %2312 = vst.msk [vmem:[#allocation3 + $0x60] sm:$0xff] %vm1525_vm3, %v2168_v32 }
 0x2ed   :  { %3964 = vmatpush1.bf16.msra.mxu1 %v7777_v23  ;;  %2605 = vrot.lane.b32.xlu0 %v8861_v39, %s7904_s23  ;;  %v7785_v23 = vld [vmem:[%s10561_s3 + $0xc8] sm:$0xff]  }
 0x2ee   :  { %2225 = vrot.lane.b32.xlu1 %v8861_v39, %s7904_s23  ;;  %3965 = vmatprep.subr.bf16.mxu1 %v10661_v63 }
 0x2ef   :  { %v1864_v17 = vpop.permute.xlu0 %1863  ;;  %v2170_v41 = vpop.permute.xlu1 %2169  ;;  %v3070_v18 = vld [vmem:[#allocation3 + $0x6e8] sm:$0xff] }
 0x2f0   :  { %1964 = vst.msk [vmem:[#allocation3 + $0x738] sm:$0xff] %vm1525_vm3, %v1864_v17  ;;  %2313 = vst.msk [vmem:[#allocation3 + $0x88] sm:$0xff] %vm1525_vm3, %v2170_v41  ;;  %3905 = vmatmul.mubr.bf16.gmra.mrb[4].mxu1 %v3059_v42  ;;  %v3079_v42 = vld [vmem:[#allocation3 + $0x730] sm:$0xff] }
 0x2f1   :  { %3966 = vmatpush1.bf16.msra.mxu1 %v7778_v51  ;;  %2607 = vrot.lane.b32.xlu0 %v8886_v6, %s7904_s23  ;;  %v2396_v51 = vld [vmem:[#allocation2 + $0x198] sm:$0xff] }
 0x2f2   :  { %2227 = vrot.lane.b32.xlu1 %v8886_v6, %s7904_s23  ;;  %3967 = vmatprep.subr.bf16.mxu1 %v10661_v63  ;;  %2445 = vst.msk [vmem:[#allocation3 + $0x5e0] sm:$0xff] %vm37_vm2, %v2396_v51  ;;  %2059 = vst.msk [vmem:[#allocation3 + $0x6c8] sm:$0xff] %vm37_vm2, %v2396_v51 }
 0x2f3   :  { %v1866_v39 = vpop.permute.xlu0 %1865  ;;  %v2172_v34 = vpop.permute.xlu1 %2171  ;;  %3912 = vmatprep.mubr.bf16.mxu1 %v3065_v30  ;;  %v3075_v29 = vld [vmem:[#allocation3 + $0x710] sm:$0xff] }
 0x2f4   :  { %1965 = vst.msk [vmem:[#allocation3 + $0x760] sm:$0xff] %vm1525_vm3, %v1866_v39  ;;  %2314 = vst.msk [vmem:[#allocation3 + $0xb0] sm:$0xff] %vm1525_vm3, %v2172_v34 }
 0x2f5   :  { %3968 = vmatpush1.bf16.msra.mxu1 %v7779_v45  ;;  %2609 = vrot.lane.b32.xlu0 %v8912_v19, %s7904_s23  ;;  %v2397_v45 = vld [vmem:[#allocation2 + $0x1a0] sm:$0xff] }
 0x2f6   :  { %2229 = vrot.lane.b32.xlu1 %v8912_v19, %s7904_s23  ;;  %3969 = vmatprep.subr.bf16.mxu1 %v10661_v63  ;;  %2446 = vst.msk [vmem:[#allocation3 + $0x608] sm:$0xff] %vm37_vm2, %v2397_v45  ;;  %2060 = vst.msk [vmem:[#allocation3 + $0x6f0] sm:$0xff] %vm37_vm2, %v2397_v45 }
 0x2f7   :  { %v1868_v6 = vpop.permute.xlu0 %1867  ;;  %v2174_v48 = vpop.permute.xlu1 %2173  ;;  %v3080_v35 = vld [vmem:[#allocation3 + $0x738] sm:$0xff] }
 0x2f8   :  { %1966 = vst.msk [vmem:[#allocation3 + $0x788] sm:$0xff] %vm1525_vm3, %v1868_v6  ;;  %2315 = vst.msk [vmem:[#allocation3 + $0xd8] sm:$0xff] %vm1525_vm3, %v2174_v48  ;;  %3913 = vmatmul.mubr.bf16.gmra.mrb[8].mxu1 %v3064_v43  ;;  %v3084_v48 = vld [vmem:[#allocation3 + $0x758] sm:$0xff] }
 0x2f9   :  { %3970 = vmatpush1.bf16.msra.mxu1 %v7780_v37  ;;  %2611 = vrot.lane.b32.xlu0 %v8937_v2, %s7904_s23 }
 0x2fa   :  { %2231 = vrot.lane.b32.xlu1 %v8937_v2, %s7904_s23  ;;  %3971 = vmatprep.subr.bf16.mxu1 %v10661_v63 }
 0x2fb   :  { %v2556_v19 = vpop.permute.xlu0 %2555  ;;  %v2176_v50 = vpop.permute.xlu1 %2175  ;;  %3920 = vmatprep.mubr.bf16.mxu1 %v3070_v18  ;;  %v3085_v30 = vld [vmem:[#allocation3 + $0x760] sm:$0xff] }
 0x2fc   :  { %2702 = vst.msk [vmem:[#allocation3 + $0x18] sm:$0xff] %vm1525_vm3, %v2556_v19  ;;  %2316 = vst.msk [vmem:[#allocation3 + $0x100] sm:$0xff] %vm1525_vm3, %v2176_v50  ;;  %v7789_v18 = vld [vmem:[%s10561_s3 + $0xe8] sm:$0xff]   ;;  %v7790_v50 = vld [vmem:[%s10561_s3 + $0xf0] sm:$0xff]  }
 0x2fd   :  { %3972 = vmatpush1.bf16.msra.mxu1 %v7781_v1  ;;  %2613 = vrot.lane.b32.xlu0 %v8965_v0, %s7904_s23  ;;  %v3089_v19 = vld [vmem:[#allocation3 + $0x780] sm:$0xff] }
 0x2fe   :  { %2233 = vrot.lane.b32.xlu1 %v8965_v0, %s7904_s23  ;;  %3973 = vmatprep.subr.bf16.mxu1 %v10661_v63 }
 0x2ff   :  { %v2558_v2 = vpop.permute.xlu0 %2557  ;;  %v2178_v28 = vpop.permute.xlu1 %2177  ;;  %v3090_v43 = vld [vmem:[#allocation3 + $0x788] sm:$0xff]  ;;  %v2876_v45 = vld [vmem:[#allocation3 + $0xd8] sm:$0xff] }
 0x300   :  { %2703 = vst.msk [vmem:[#allocation3 + $0x40] sm:$0xff] %vm1525_vm3, %v2558_v2  ;;  %2317 = vst.msk [vmem:[#allocation3 + $0x128] sm:$0xff] %vm1525_vm3, %v2178_v28  ;;  %3921 = vmatmul.mubr.bf16.gmra.mrb[12].mxu1 %v3069_v7  ;;  %v7791_v28 = vld [vmem:[%s10561_s3 + $0xf8] sm:$0xff]  }
 0x301   :  { %3974 = vmatpush1.bf16.msra.mxu1 %v7782_v36  ;;  %2615 = vrot.lane.b32.xlu0 %v8994_v47, %s7904_s23 }
 0x302   :  { %2235 = vrot.lane.b32.xlu1 %v8994_v47, %s7904_s23  ;;  %3975 = vmatprep.subr.bf16.mxu1 %v10661_v63 }
 0x303   :  { %v2560_v0 = vpop.permute.xlu0 %2559  ;;  %v2180_v60 = vpop.permute.xlu1 %2179  ;;  %3928 = vmatprep.mubr.bf16.mxu1 %v3075_v29  ;;  %v2852_v2 = vld [vmem:[#allocation3 + $0x18] sm:$0xff] }
 0x304   :  { %2704 = vst.msk [vmem:[#allocation3 + $0x68] sm:$0xff] %vm1525_vm3, %v2560_v0  ;;  %2318 = vst.msk [vmem:[#allocation3 + $0x150] sm:$0xff] %vm1525_vm3, %v2180_v60  ;;  %v7792_v29 = vld [vmem:[%s10561_s3 + $0x100] sm:$0xff]   ;;  %v2851_v0 = vld [vmem:[#allocation3 + $0x10] sm:$0xff] }
 0x305   :  { %3976 = vmatpush1.bf16.msra.mxu1 %v7783_v3  ;;  %2617 = vrot.lane.b32.xlu0 %v9022_v22, %s7904_s23 }
 0x306   :  { %2237 = vrot.lane.b32.xlu1 %v9022_v22, %s7904_s23  ;;  %3977 = vmatprep.subr.bf16.mxu1 %v10661_v63  ;;  %v2395_v22 = vld [vmem:[#allocation2 + $0x190] sm:$0xff] }
 0x307   :  { %v2562_v47 = vpop.permute.xlu0 %2561  ;;  %v2182_v49 = vpop.permute.xlu1 %2181  ;;  %2444 = vst.msk [vmem:[#allocation3 + $0x5b8] sm:$0xff] %vm37_vm2, %v2395_v22  ;;  %2058 = vst.msk [vmem:[#allocation3 + $0x6a0] sm:$0xff] %vm37_vm2, %v2395_v22  ;;  %v2857_v60 = vld [vmem:[#allocation3 + $0x40] sm:$0xff] }
 0x308   :  { %2705 = vst.msk [vmem:[#allocation3 + $0x90] sm:$0xff] %vm1525_vm3, %v2562_v47  ;;  %2319 = vst.msk [vmem:[#allocation3 + $0x178] sm:$0xff] %vm1525_vm3, %v2182_v49  ;;  %3929 = vmatmul.mubr.bf16.gmra.mrb[16].mxu1 %v3074_v27  ;;  %v2856_v27 = vld [vmem:[#allocation3 + $0x38] sm:$0xff] }
 0x309   :  { %3978 = vmatpush1.bf16.msra.mxu1 %v7784_v5  ;;  %2619 = vrot.lane.b32.xlu0 %v9052_v26, %s7904_s23  ;;  %v7793_v5 = vld [vmem:[%s10561_s3 + $0x108] sm:$0xff]  }
 0x30a   :  { %2239 = vrot.lane.b32.xlu1 %v9052_v26, %s7904_s23  ;;  %3979 = vmatprep.subr.bf16.mxu1 %v10661_v63  ;;  %v7786_v26 = vld [vmem:[%s10561_s3 + $0xd0] sm:$0xff]  }
 0x30b   :  { %v2564_v57 = vpop.permute.xlu0 %2563  ;;  %v2184_v32 = vpop.permute.xlu1 %2183  ;;  %3936 = vmatprep.mubr.bf16.mxu1 %v3080_v35  ;;  %v2862_v35 = vld [vmem:[#allocation3 + $0x68] sm:$0xff] }
 0x30c   :  { %2706 = vst.msk [vmem:[#allocation3 + $0xb8] sm:$0xff] %vm1525_vm3, %v2564_v57  ;;  %2320 = vst.msk [vmem:[#allocation3 + $0x1a0] sm:$0xff] %vm1525_vm3, %v2184_v32  ;;  %v2861_v32 = vld [vmem:[#allocation3 + $0x60] sm:$0xff] }
 0x30d   :  { %3980 = vmatpush1.bf16.msra.mxu1 %v7785_v23  ;;  %2621 = vrot.lane.b32.xlu0 %v9074_v15, %s7904_s23 }
 0x30e   :  { %2241 = vrot.lane.b32.xlu1 %v9074_v15, %s7904_s23  ;;  %3981 = vmatprep.subr.bf16.mxu1 %v10661_v63  ;;  %v7787_v15 = vld [vmem:[%s10561_s3 + $0xd8] sm:$0xff]  }
 0x30f   :  { %v2566_v17 = vpop.permute.xlu0 %2565  ;;  %v2186_v41 = vpop.permute.xlu1 %2185 }
 0x310   :  { %2707 = vst.msk [vmem:[#allocation3 + $0xe0] sm:$0xff] %vm1525_vm3, %v2566_v17  ;;  %2321 = vst.msk [vmem:[#allocation3 + $0x1c8] sm:$0xff] %vm1525_vm3, %v2186_v41  ;;  %3937 = vmatmul.mubr.bf16.gmra.mrb[20].mxu1 %v3079_v42  ;;  %v2866_v17 = vld [vmem:[#allocation3 + $0x88] sm:$0xff] }
 0x311   :  { %3982 = vmatpush1.bf16.msra.mxu1 %v7786_v26  ;;  %2623 = vrot.lane.b32.xlu0 %v9128_v58, %s7904_s23 }
 0x312   :  { %2243 = vrot.lane.b32.xlu1 %v9128_v58, %s7904_s23  ;;  %3983 = vmatprep.subr.bf16.mxu1 %v10661_v63  ;;  %v7788_v58 = vld [vmem:[%s10561_s3 + $0xe0] sm:$0xff]  }
 0x313   :  { %v2568_v39 = vpop.permute.xlu0 %2567  ;;  %v2188_v34 = vpop.permute.xlu1 %2187  ;;  %3944 = vmatprep.mubr.bf16.mxu1 %v3085_v30 }
 0x314   :  { %2708 = vst.msk [vmem:[#allocation3 + $0x108] sm:$0xff] %vm1525_vm3, %v2568_v39  ;;  %2322 = vst.msk [vmem:[#allocation3 + $0x1f0] sm:$0xff] %vm1525_vm3, %v2188_v34 }
 0x315   :  { %3984 = vmatpush1.bf16.msra.mxu1 %v7787_v15  ;;  %2625 = vrot.lane.b32.xlu0 %v8746_v54, %s7904_s23 }
 0x316   :  { %2245 = vrot.lane.b32.xlu1 %v8746_v54, %s7904_s23  ;;  %3985 = vmatprep.subr.bf16.mxu1 %v10661_v63 }
 0x317   :  { %v2570_v37 = vpop.permute.xlu0 %2569  ;;  %v2190_v6 = vpop.permute.xlu1 %2189 }
 0x318   :  { %2709 = vst.msk [vmem:[#allocation3 + $0x130] sm:$0xff] %vm1525_vm3, %v2570_v37  ;;  %2323 = vst.msk [vmem:[#allocation3 + $0x218] sm:$0xff] %vm1525_vm3, %v2190_v6  ;;  %3945 = vmatmul.mubr.bf16.gmra.mrb[24].mxu1 %v3084_v48  ;;  %v2881_v37 = vld [vmem:[#allocation3 + $0x100] sm:$0xff] }
 0x319   :  { %3986 = vmatpush1.bf16.msra.mxu1 %v7788_v58  ;;  %2627 = vrot.lane.b32.xlu0 %v9095_v38, %s7904_s23 }
 0x31a   :  { %2247 = vrot.lane.b32.xlu1 %v9095_v38, %s7904_s23  ;;  %3987 = vmatprep.subr.bf16.mxu1 %v10661_v63 }
 0x31b   :  { %v2572_v54 = vpop.permute.xlu0 %2571  ;;  %v2192_v1 = vpop.permute.xlu1 %2191  ;;  %3952 = vmatprep.mubr.bf16.mxu1 %v3090_v43  ;;  %v2886_v43 = vld [vmem:[#allocation3 + $0x128] sm:$0xff] }
 0x31c   :  { %2710 = vst.msk [vmem:[#allocation3 + $0x158] sm:$0xff] %vm1525_vm3, %v2572_v54  ;;  %2324 = vst.msk [vmem:[#allocation3 + $0x240] sm:$0xff] %vm1525_vm3, %v2192_v1  ;;  %v10669_v1 = vld [vmem:[#allocation6_spill] sm:$0xff] }
 0x31d   :  { %3988 = vmatpush1.bf16.msra.mxu1 %v7789_v18  ;;  %2629 = vrot.lane.b32.xlu0 %v9101_v25, %s7904_s23 }
 0x31e   :  { %2249 = vrot.lane.b32.xlu1 %v9101_v25, %s7904_s23  ;;  %3989 = vmatprep.subr.bf16.mxu1 %v10661_v63 }
 0x31f   :  { %v2574_v38 = vpop.permute.xlu0 %2573  ;;  %v2194_v36 = vpop.permute.xlu1 %2193 }
 0x320   :  { %2711 = vst.msk [vmem:[#allocation3 + $0x180] sm:$0xff] %vm1525_vm3, %v2574_v38  ;;  %2325 = vst.msk [vmem:[#allocation3 + $0x268] sm:$0xff] %vm1525_vm3, %v2194_v36  ;;  %3953 = vmatmul.mubr.bf16.gmra.mrb[28].mxu1 %v3089_v19 }
 0x321   :  { %3990 = vmatpush1.bf16.msra.mxu1 %v7790_v50  ;;  %2631 = vrot.lane.b32.xlu0 %v9150_v9, %s7904_s23  ;;  %v2891_v50 = vld [vmem:[#allocation3 + $0x150] sm:$0xff] }
 0x322   :  { %2251 = vrot.lane.b32.xlu1 %v9150_v9, %s7904_s23  ;;  %3993 = vmatprep.mubr.bf16.mxu1 %v2852_v2  ;;  %v10668_v9 = vmov 0.0  }
 0x323   :  { %3991 = vmatprep.subr.bf16.mxu1 %v10661_v63  ;;  %v2576_v25 = vpop.permute.xlu0 %2575  ;;  %v2196_v7 = vpop.permute.xlu1 %2195  ;;  %v2892_v54 = vld [vmem:[#allocation3 + $0x158] sm:$0xff] }
 0x324   :  { %2712 = vst.msk [vmem:[#allocation3 + $0x1a8] sm:$0xff] %vm1525_vm3, %v2576_v25  ;;  %2326 = vst.msk [vmem:[#allocation3 + $0x290] sm:$0xff] %vm1525_vm3, %v2196_v7  ;;  %v10671_v25 = vld [vmem:[#allocation8_spill] sm:$0xff] }
 0x325   :  { %3992 = vmatpush1.bf16.msra.mxu1 %v7791_v28  ;;  %2633 = vrot.lane.b32.xlu0 %v9160_v24, %s7904_s23  ;;  %v7794_v7 = vld [vmem:[%s10561_s3 + $0x110] sm:$0xff]  }
 0x326   :  { %2253 = vrot.lane.b32.xlu1 %v9160_v24, %s7904_s23  ;;  %7042 = vmatprep.subr.bf16.mxu1 %v10668_v9 }
 0x327   :  { %v2578_v63 = vpop.permute.xlu0 %2577  ;;  %v2198_v3 = vpop.permute.xlu1 %2197  ;;  %v2897_v36 = vld [vmem:[#allocation3 + $0x180] sm:$0xff] }
 0x328   :  { %2713 = vst.msk [vmem:[#allocation3 + $0x1d0] sm:$0xff] %vm1525_vm3, %v2578_v63  ;;  %2327 = vst.msk [vmem:[#allocation3 + $0x2b8] sm:$0xff] %vm1525_vm3, %v2198_v3  ;;  %3994 = vmatmul.mubr.bf16.vlgmr.msra.gmra.mrb[32].mxu1 %v2851_v0  ;;  %v2896_v63 = vld [vmem:[#allocation3 + $0x178] sm:$0xff] }
 0x329   :  { %7043 = vmatpush3.bf16.msra.mxu1 %v7792_v29  ;;  %2635 = vrot.lane.b32.xlu0 %v9170_v40, %s7904_s23 }
 0x32a   :  { %2255 = vrot.lane.b32.xlu1 %v9170_v40, %s7904_s23  ;;  %4001 = vmatprep.mubr.bf16.mxu1 %v2857_v60  ;;  %v10672_v60 = vld [vmem:[#allocation9_spill] sm:$0xff] }
 0x32b   :  { %v2580_v24 = vpop.permute.xlu0 %2579  ;;  %v2200_v47 = vpop.permute.xlu1 %2199  ;;  %7044 = vmatprep.subr.bf16.mxu1 %v10668_v9  ;;  %v2902_v0 = vld [vmem:[#allocation3 + $0x1a8] sm:$0xff] }
 0x32c   :  { %2714 = vst.msk [vmem:[#allocation3 + $0x1f8] sm:$0xff] %vm1525_vm3, %v2580_v24  ;;  %2328 = vst.msk [vmem:[#allocation3 + $0x2e0] sm:$0xff] %vm1525_vm3, %v2200_v47  ;;  %v10673_v47 = vld [vmem:[#allocation10_spill] sm:$0xff] }
 0x32d   :  { %2637 = vrot.lane.b32.xlu0 %v9176_v56, %s7904_s23  ;;  %7045 = vmatpush3.bf16.msra.mxu1 %v7793_v5 }
 0x32e   :  { %2257 = vrot.lane.b32.xlu1 %v9176_v56, %s7904_s23  ;;  %7046 = vmatprep.subr.bf16.mxu1 %v10668_v9 }
 0x32f   :  { %v2582_v49 = vpop.permute.xlu0 %2581  ;;  %v2202_v40 = vpop.permute.xlu1 %2201 }
 0x330   :  { %2715 = vst.msk [vmem:[#allocation3 + $0x220] sm:$0xff] %vm1525_vm3, %v2582_v49  ;;  %2329 = vst.msk [vmem:[#allocation3 + $0x308] sm:$0xff] %vm1525_vm3, %v2202_v40  ;;  %4002 = vmatmul.mubr.bf16.gmra.mrb[36].mxu1 %v2856_v27  ;;  %v2901_v40 = vld [vmem:[#allocation3 + $0x1a0] sm:$0xff] }
 0x331   :  { %2639 = vrot.lane.b32.xlu0 %v9186_v12, %s7904_s23  ;;  %4009 = vmatprep.mubr.bf16.mxu1 %v2862_v35  ;;  %v2907_v35 = vld [vmem:[#allocation3 + $0x1d0] sm:$0xff] }
 0x332   :  { %2259 = vrot.lane.b32.xlu1 %v9186_v12, %s7904_s23  ;;  %v2867_v12 = vld [vmem:[#allocation3 + $0x90] sm:$0xff]  ;;  %7047 = vmatpush3.bf16.msra.mxu1 %v7794_v7  ;;  %v10686_v7 = vld [vmem:[#allocation23_spill] sm:$0xff] }
 0x333   :  { %v2584_v23 = vpop.permute.xlu0 %2583  ;;  %v2204_v56 = vpop.permute.xlu1 %2203  ;;  %7048 = vmatprep.subr.bf16.mxu1 %v10668_v9 }
 0x334   :  { %2716 = vst.msk [vmem:[#allocation3 + $0x248] sm:$0xff] %vm1525_vm3, %v2584_v23  ;;  %2330 = vst.msk [vmem:[#allocation3 + $0x330] sm:$0xff] %vm1525_vm3, %v2204_v56  ;;  %v10674_v23 = vld [vmem:[#allocation11_spill] sm:$0xff] }
 0x335   :  { %2641 = vrot.lane.b32.xlu0 %v9195_v52, %s7904_s23 }
 0x336   :  { %1378 = vrot.lane.b32.xlu1 %v8155_v62, %s7904_s23 }
 0x337   :  { %v2586_v22 = vpop.permute.xlu0 %2585  ;;  %v2206_v57 = vpop.permute.xlu1 %2205 }
 0x338   :  { %2717 = vst.msk [vmem:[#allocation3 + $0x270] sm:$0xff] %vm1525_vm3, %v2586_v22  ;;  %2331 = vst.msk [vmem:[#allocation3 + $0x358] sm:$0xff] %vm1525_vm3, %v2206_v57  ;;  %4010 = vmatmul.mubr.bf16.gmra.mrb[40].mxu1 %v2861_v32  ;;  %v10675_v57 = vld [vmem:[#allocation12_spill] sm:$0xff] }
 0x339   :  { %2643 = vrot.lane.b32.xlu0 %v9203_v13, %s7904_s23  ;;  %4017 = vmatprep.mubr.bf16.mxu1 %v2867_v12  ;;  %v2906_v12 = vld [vmem:[#allocation3 + $0x1c8] sm:$0xff] }
 0x33a   :  { %1380 = vrot.lane.b32.xlu1 %v8168_v10, %s7904_s23  ;;  %v2872_v10 = vld [vmem:[#allocation3 + $0xb8] sm:$0xff] }
 0x33b   :  { %v2588_v52 = vpop.permute.xlu0 %2587  ;;  %v2208_v26 = vpop.permute.xlu1 %2207 }
 0x33c   :  { %2718 = vst.msk [vmem:[#allocation3 + $0x298] sm:$0xff] %vm1525_vm3, %v2588_v52  ;;  %2332 = vst.msk [vmem:[#allocation3 + $0x380] sm:$0xff] %vm1525_vm3, %v2208_v26  ;;  %v2912_v26 = vld [vmem:[#allocation3 + $0x1f8] sm:$0xff] }
 0x33d   :  { %2645 = vrot.lane.b32.xlu0 %v9212_v61, %s7904_s23 }
 0x33e   :  { %1382 = vrot.lane.b32.xlu1 %v8183_v21, %s7904_s23  ;;  %v2505_v21 = vld [vmem:[#allocation2 + $0x1f8] sm:$0xff] }
 0x33f   :  { %v2590_v62 = vpop.permute.xlu0 %2589  ;;  %v2210_v51 = vpop.permute.xlu1 %2209 }
 0x340   :  { %2719 = vst.msk [vmem:[#allocation3 + $0x2c0] sm:$0xff] %vm1525_vm3, %v2590_v62  ;;  %2333 = vst.msk [vmem:[#allocation3 + $0x3a8] sm:$0xff] %vm1525_vm3, %v2210_v51  ;;  %4018 = vmatmul.mubr.bf16.gmra.mrb[44].mxu1 %v2866_v17  ;;  %v10676_v62 = vld [vmem:[#allocation13_spill] sm:$0xff] }
 0x341   :  { %2647 = vrot.lane.b32.xlu0 %v9220_v20, %s7904_s23  ;;  %4025 = vmatprep.mubr.bf16.mxu1 %v2872_v10  ;;  %v2871_v20 = vld [vmem:[#allocation3 + $0xb0] sm:$0xff]  ;;  %v10677_v10 = vld [vmem:[#allocation14_spill] sm:$0xff] }
 0x342   :  { %1384 = vrot.lane.b32.xlu1 %v8198_v33, %s7904_s23  ;;  %v2877_v33 = vld [vmem:[#allocation3 + $0xe0] sm:$0xff] }
 0x343   :  { %v2592_v13 = vpop.permute.xlu0 %2591  ;;  %v2212_v61 = vpop.permute.xlu1 %2211 }
 0x344   :  { %2720 = vst.msk [vmem:[#allocation3 + $0x2e8] sm:$0xff] %vm1525_vm3, %v2592_v13  ;;  %2334 = vst.msk [vmem:[#allocation3 + $0x3d0] sm:$0xff] %vm1525_vm3, %v2212_v61  ;;  %v2911_v61 = vld [vmem:[#allocation3 + $0x1f0] sm:$0xff] }
 0x345   :  { %2649 = vrot.lane.b32.xlu0 %v9229_v8, %s7904_s23 }
 0x346   :  { %1386 = vrot.lane.b32.xlu1 %v8213_v44, %s7904_s23 }
 0x347   :  { %v2594_v41 = vpop.permute.xlu0 %2593  ;;  %v2214_v42 = vpop.permute.xlu1 %2213 }
 0x348   :  { %2721 = vst.msk [vmem:[#allocation3 + $0x310] sm:$0xff] %vm1525_vm3, %v2594_v41  ;;  %2335 = vst.msk [vmem:[#allocation3 + $0x3f8] sm:$0xff] %vm1525_vm3, %v2214_v42  ;;  %4026 = vmatmul.mubr.bf16.gmra.mrb[48].mxu1 %v2871_v20  ;;  %v2917_v41 = vld [vmem:[#allocation3 + $0x220] sm:$0xff] }
 0x349   :  { %2651 = vrot.lane.b32.xlu0 %v2505_v21, %s7904_s23  ;;  %4033 = vmatprep.mubr.bf16.mxu1 %v2877_v33  ;;  %v10678_v42 = vld [vmem:[#allocation15_spill] sm:$0xff] }
 0x34a   :  { %1388 = vrot.lane.b32.xlu1 %v8228_v55, %s7904_s23  ;;  %v2882_v55 = vld [vmem:[#allocation3 + $0x108] sm:$0xff] }
 0x34b   :  { %v2596_v8 = vpop.permute.xlu0 %2595  ;;  %v2216_v30 = vpop.permute.xlu1 %2215 }
 0x34c   :  { %2722 = vst.msk [vmem:[#allocation3 + $0x338] sm:$0xff] %vm1525_vm3, %v2596_v8  ;;  %2336 = vst.msk [vmem:[#allocation3 + $0x420] sm:$0xff] %vm1525_vm3, %v2216_v30  ;;  %v10679_v8 = vld [vmem:[#allocation16_spill] sm:$0xff] }
 0x34d   :  { %1771 = vrot.lane.b32.xlu0 %v8243_v4, %s7904_s23 }
 0x34e   :  { %1390 = vrot.lane.b32.xlu1 %v8243_v4, %s7904_s23 }
 0x34f   :  { %v2598_v44 = vpop.permute.xlu0 %2597  ;;  %v2218_v15 = vpop.permute.xlu1 %2217 }
 0x350   :  { %2723 = vst.msk [vmem:[#allocation3 + $0x360] sm:$0xff] %vm1525_vm3, %v2598_v44  ;;  %2337 = vst.msk [vmem:[#allocation3 + $0x448] sm:$0xff] %vm1525_vm3, %v2218_v15  ;;  %4034 = vmatmul.mubr.bf16.gmra.mrb[52].mxu1 %v2876_v45  ;;  %v2916_v44 = vld [vmem:[#allocation3 + $0x218] sm:$0xff]  ;;  %v2922_v45 = vld [vmem:[#allocation3 + $0x248] sm:$0xff] }
 0x351   :  { %1773 = vrot.lane.b32.xlu0 %v8258_v16, %s7904_s23  ;;  %4041 = vmatprep.mubr.bf16.mxu1 %v2882_v55  ;;  %v10680_v55 = vld [vmem:[#allocation17_spill] sm:$0xff] }
 0x352   :  { %1392 = vrot.lane.b32.xlu1 %v8258_v16, %s7904_s23  ;;  %v2887_v16 = vld [vmem:[#allocation3 + $0x130] sm:$0xff] }
 0x353   :  { %v2600_v39 = vpop.permute.xlu0 %2599  ;;  %v2220_v34 = vpop.permute.xlu1 %2219 }
 0x354   :  { %2724 = vst.msk [vmem:[#allocation3 + $0x388] sm:$0xff] %vm1525_vm3, %v2600_v39  ;;  %2338 = vst.msk [vmem:[#allocation3 + $0x470] sm:$0xff] %vm1525_vm3, %v2220_v34 }
 0x355   :  { %1775 = vrot.lane.b32.xlu0 %v8275_v31, %s7904_s23 }
 0x356   :  { %1394 = vrot.lane.b32.xlu1 %v8275_v31, %s7904_s23 }
 0x357   :  { %v2602_v4 = vpop.permute.xlu0 %2601  ;;  %v2222_v58 = vpop.permute.xlu1 %2221 }
 0x358   :  { %2725 = vst.msk [vmem:[#allocation3 + $0x3b0] sm:$0xff] %vm1525_vm3, %v2602_v4  ;;  %2339 = vst.msk [vmem:[#allocation3 + $0x498] sm:$0xff] %vm1525_vm3, %v2222_v58  ;;  %4042 = vmatmul.mubr.bf16.gmra.mrb[56].mxu1 %v2881_v37  ;;  %v10681_v4 = vld [vmem:[#allocation18_spill] sm:$0xff]  ;;  %v2921_v37 = vld [vmem:[#allocation3 + $0x240] sm:$0xff] }
 0x359   :  { %1777 = vrot.lane.b32.xlu0 %v8293_v46, %s7904_s23  ;;  %4049 = vmatprep.mubr.bf16.mxu1 %v2887_v16 }
 0x35a   :  { %1396 = vrot.lane.b32.xlu1 %v8293_v46, %s7904_s23 }
 0x35b   :  { %v2604_v6 = vpop.permute.xlu0 %2603 }
 0x35c   :  { %2726 = vst.msk [vmem:[#allocation3 + $0x3d8] sm:$0xff] %vm1525_vm3, %v2604_v6  ;;  %v2224_v31 = vpop.permute.xlu1 %2223  ;;  %v2927_v6 = vld [vmem:[#allocation3 + $0x270] sm:$0xff] }
 0x35d   :  { %2340 = vst.msk [vmem:[#allocation3 + $0x4c0] sm:$0xff] %vm1525_vm3, %v2224_v31  ;;  %1779 = vrot.lane.b32.xlu0 %v8312_v59, %s7904_s23  ;;  %v10682_v31 = vld [vmem:[#allocation19_spill] sm:$0xff] }
 0x35e   :  { %1398 = vrot.lane.b32.xlu1 %v8312_v59, %s7904_s23 }
 0x35f   :  { %v2606_v48 = vpop.permute.xlu0 %2605 }
 0x360   :  { %2727 = vst.msk [vmem:[#allocation3 + $0x400] sm:$0xff] %vm1525_vm3, %v2606_v48  ;;  %v2226_v18 = vpop.permute.xlu1 %2225  ;;  %4050 = vmatmul.mubr.bf16.gmra.mrb[60].mxu1 %v2886_v43 }
 0x361   :  { %2341 = vst.msk [vmem:[#allocation3 + $0x4e8] sm:$0xff] %vm1525_vm3, %v2226_v18  ;;  %1781 = vrot.lane.b32.xlu0 %v8331_v11, %s7904_s23  ;;  %4057 = vmatprep.mubr.bf16.mxu1 %v2892_v54  ;;  %v10683_v18 = vld [vmem:[#allocation20_spill] sm:$0xff] }
 0x362   :  { %1400 = vrot.lane.b32.xlu1 %v8331_v11, %s7904_s23  ;;  %v10670_v11 = vld [vmem:[#allocation7_spill] sm:$0xff] }
 0x363   :  { %v2608_v46 = vpop.permute.xlu0 %2607 }
 0x364   :  { %2728 = vst.msk [vmem:[#allocation3 + $0x428] sm:$0xff] %vm1525_vm3, %v2608_v46  ;;  %v2228_v59 = vpop.permute.xlu1 %2227  ;;  %v2926_v46 = vld [vmem:[#allocation3 + $0x268] sm:$0xff] }
 0x365   :  { %2342 = vst.msk [vmem:[#allocation3 + $0x510] sm:$0xff] %vm1525_vm3, %v2228_v59  ;;  %1783 = vrot.lane.b32.xlu0 %v10669_v1, %s7904_s23 }
 0x366   :  { %1402 = vrot.lane.b32.xlu1 %v10669_v1, %s7904_s23  ;;  %v2932_v1 = vld [vmem:[#allocation3 + $0x298] sm:$0xff] }
 0x367   :  { %v2610_v19 = vpop.permute.xlu0 %2609 }
 0x368   :  { %2729 = vst.msk [vmem:[#allocation3 + $0x450] sm:$0xff] %vm1525_vm3, %v2610_v19  ;;  %v2230_v38 = vpop.permute.xlu1 %2229  ;;  %4058 = vmatmul.mubr.bf16.gmra.mrb[64].mxu1 %v2891_v50  ;;  %v10684_v19 = vld [vmem:[#allocation21_spill] sm:$0xff] }
 0x369   :  { %2343 = vst.msk [vmem:[#allocation3 + $0x538] sm:$0xff] %vm1525_vm3, %v2230_v38  ;;  %1785 = vrot.lane.b32.xlu0 %v10670_v11, %s7904_s23  ;;  %4065 = vmatprep.mubr.bf16.mxu1 %v2897_v36  ;;  %v10685_v36 = vld [vmem:[#allocation22_spill] sm:$0xff] }
 0x36a   :  { %1404 = vrot.lane.b32.xlu1 %v10670_v11, %s7904_s23 }
 0x36b   :  { %v2612_v2 = vpop.permute.xlu0 %2611 }
 0x36c   :  { %2730 = vst.msk [vmem:[#allocation3 + $0x478] sm:$0xff] %vm1525_vm3, %v2612_v2  ;;  %v2232_v28 = vpop.permute.xlu1 %2231  ;;  %v2931_v2 = vld [vmem:[#allocation3 + $0x290] sm:$0xff] }
 0x36d   :  { %2344 = vst.msk [vmem:[#allocation3 + $0x560] sm:$0xff] %vm1525_vm3, %v2232_v28  ;;  %1787 = vrot.lane.b32.xlu0 %v10671_v25, %s7904_s23 }
 0x36e   :  { %1406 = vrot.lane.b32.xlu1 %v10671_v25, %s7904_s23  ;;  %v2937_v25 = vld [vmem:[#allocation3 + $0x2c0] sm:$0xff] }
 0x36f   :  { %v2614_v29 = vpop.permute.xlu0 %2613 }
 0x370   :  { %2731 = vst.msk [vmem:[#allocation3 + $0x4a0] sm:$0xff] %vm1525_vm3, %v2614_v29  ;;  %v2234_v3 = vpop.permute.xlu1 %2233  ;;  %4066 = vmatmul.mubr.bf16.gmra.mrb[68].mxu1 %v2896_v63 }
 0x371   :  { %2345 = vst.msk [vmem:[#allocation3 + $0x588] sm:$0xff] %vm1525_vm3, %v2234_v3  ;;  %1789 = vrot.lane.b32.xlu0 %v10672_v60, %s7904_s23  ;;  %4073 = vmatprep.mubr.bf16.mxu1 %v2902_v0  ;;  %v10687_v3 = vld [vmem:[#allocation24_spill] sm:$0xff] }
 0x372   :  { %1408 = vrot.lane.b32.xlu1 %v10672_v60, %s7904_s23  ;;  %v2936_v60 = vld [vmem:[#allocation3 + $0x2b8] sm:$0xff] }
 0x373   :  { %v2616_v5 = vpop.permute.xlu0 %2615 }
 0x374   :  { %2732 = vst.msk [vmem:[#allocation3 + $0x4c8] sm:$0xff] %vm1525_vm3, %v2616_v5  ;;  %v2236_v24 = vpop.permute.xlu1 %2235 }
 0x375   :  { %2346 = vst.msk [vmem:[#allocation3 + $0x5b0] sm:$0xff] %vm1525_vm3, %v2236_v24  ;;  %1791 = vrot.lane.b32.xlu0 %v10673_v47, %s7904_s23  ;;  %v2942_v24 = vld [vmem:[#allocation3 + $0x2e8] sm:$0xff] }
 0x376   :  { %1410 = vrot.lane.b32.xlu1 %v10673_v47, %s7904_s23  ;;  %v10688_v47 = vld [vmem:[#allocation25_spill] sm:$0xff] }
 0x377   :  { %v2618_v49 = vpop.permute.xlu0 %2617 }
 0x378   :  { %2733 = vst.msk [vmem:[#allocation3 + $0x4f0] sm:$0xff] %vm1525_vm3, %v2618_v49  ;;  %v2238_v27 = vpop.permute.xlu1 %2237  ;;  %4074 = vmatmul.mubr.bf16.gmra.mrb[72].mxu1 %v2901_v40 }
 0x379   :  { %2347 = vst.msk [vmem:[#allocation3 + $0x5d8] sm:$0xff] %vm1525_vm3, %v2238_v27  ;;  %1793 = vrot.lane.b32.xlu0 %v10674_v23, %s7904_s23  ;;  %4081 = vmatprep.mubr.bf16.mxu1 %v2907_v35  ;;  %v10689_v27 = vld [vmem:[#allocation26_spill] sm:$0xff] }
 0x37a   :  { %1412 = vrot.lane.b32.xlu1 %v10674_v23, %s7904_s23  ;;  %v2941_v23 = vld [vmem:[#allocation3 + $0x2e0] sm:$0xff] }
 0x37b   :  { %v2620_v56 = vpop.permute.xlu0 %2619 }
 0x37c   :  { %2734 = vst.msk [vmem:[#allocation3 + $0x518] sm:$0xff] %vm1525_vm3, %v2620_v56  ;;  %v2240_v22 = vpop.permute.xlu1 %2239 }
 0x37d   :  { %2348 = vst.msk [vmem:[#allocation3 + $0x600] sm:$0xff] %vm1525_vm3, %v2240_v22  ;;  %1795 = vrot.lane.b32.xlu0 %v10675_v57, %s7904_s23  ;;  %v2947_v22 = vld [vmem:[#allocation3 + $0x310] sm:$0xff] }
 0x37e   :  { %1414 = vrot.lane.b32.xlu1 %v10675_v57, %s7904_s23  ;;  %v10690_v57 = vld [vmem:[#allocation27_spill] sm:$0xff] }
 0x37f   :  { %v2622_v32 = vpop.permute.xlu0 %2621 }
 0x380   :  { %2735 = vst.msk [vmem:[#allocation3 + $0x540] sm:$0xff] %vm1525_vm3, %v2622_v32  ;;  %v2242_v52 = vpop.permute.xlu1 %2241  ;;  %4082 = vmatmul.mubr.bf16.gmra.mrb[76].mxu1 %v2906_v12 }
 0x381   :  { %2349 = vst.msk [vmem:[#allocation3 + $0x628] sm:$0xff] %vm1525_vm3, %v2242_v52  ;;  %1797 = vrot.lane.b32.xlu0 %v10676_v62, %s7904_s23  ;;  %4089 = vmatprep.mubr.bf16.mxu1 %v2912_v26  ;;  %v10691_v52 = vld [vmem:[#allocation28_spill] sm:$0xff] }
 0x382   :  { %1416 = vrot.lane.b32.xlu1 %v10676_v62, %s7904_s23  ;;  %v2946_v62 = vld [vmem:[#allocation3 + $0x308] sm:$0xff] }
 0x383   :  { %v2624_v51 = vpop.permute.xlu0 %2623 }
 0x384   :  { %2736 = vst.msk [vmem:[#allocation3 + $0x568] sm:$0xff] %vm1525_vm3, %v2624_v51  ;;  %v2244_v17 = vpop.permute.xlu1 %2243 }
 0x385   :  { %2350 = vst.msk [vmem:[#allocation3 + $0x650] sm:$0xff] %vm1525_vm3, %v2244_v17  ;;  %1799 = vrot.lane.b32.xlu0 %v10677_v10, %s7904_s23  ;;  %v2952_v17 = vld [vmem:[#allocation3 + $0x338] sm:$0xff] }
 0x386   :  { %1418 = vrot.lane.b32.xlu1 %v10677_v10, %s7904_s23  ;;  %v10692_v10 = vld [vmem:[#allocation29_spill] sm:$0xff] }
 0x387   :  { %v2626_v13 = vpop.permute.xlu0 %2625 }
 0x388   :  { %2737 = vst.msk [vmem:[#allocation3 + $0x590] sm:$0xff] %vm1525_vm3, %v2626_v13  ;;  %v2246_v21 = vpop.permute.xlu1 %2245  ;;  %4090 = vmatmul.mubr.bf16.gmra.mrb[80].mxu1 %v2911_v61 }
 0x389   :  { %2351 = vst.msk [vmem:[#allocation3 + $0x678] sm:$0xff] %vm1525_vm3, %v2246_v21  ;;  %1801 = vrot.lane.b32.xlu0 %v10678_v42, %s7904_s23  ;;  %4097 = vmatprep.mubr.bf16.mxu1 %v2917_v41  ;;  %v10693_v21 = vld [vmem:[#allocation30_spill] sm:$0xff] }
 0x38a   :  { %1420 = vrot.lane.b32.xlu1 %v10678_v42, %s7904_s23 }
 0x38b   :  { %v2628_v20 = vpop.permute.xlu0 %2627 }
 0x38c   :  { %2738 = vst.msk [vmem:[#allocation3 + $0x5b8] sm:$0xff] %vm1525_vm3, %v2628_v20  ;;  %v2248_v33 = vpop.permute.xlu1 %2247  ;;  %v2951_v20 = vld [vmem:[#allocation3 + $0x330] sm:$0xff] }
 0x38d   :  { %2352 = vst.msk [vmem:[#allocation3 + $0x6a0] sm:$0xff] %vm1525_vm3, %v2248_v33  ;;  %1803 = vrot.lane.b32.xlu0 %v10679_v8, %s7904_s23 }
 0x38e   :  { %1422 = vrot.lane.b32.xlu1 %v10679_v8, %s7904_s23 }
 0x38f   :  { %v2630_v30 = vpop.permute.xlu0 %2629 }
 0x390   :  { %2739 = vst.msk [vmem:[#allocation3 + $0x5e0] sm:$0xff] %vm1525_vm3, %v2630_v30  ;;  %v2250_v15 = vpop.permute.xlu1 %2249  ;;  %4098 = vmatmul.mubr.bf16.gmra.mrb[84].mxu1 %v2916_v44  ;;  %v10694_v30 = vld [vmem:[#allocation31_spill] sm:$0xff] }
 0x391   :  { %2353 = vst.msk [vmem:[#allocation3 + $0x6c8] sm:$0xff] %vm1525_vm3, %v2250_v15  ;;  %1805 = vrot.lane.b32.xlu0 %v10680_v55, %s7904_s23  ;;  %4105 = vmatprep.mubr.bf16.mxu1 %v2922_v45  ;;  %v2957_v44 = vld [vmem:[#allocation3 + $0x360] sm:$0xff] }
 0x392   :  { %1424 = vrot.lane.b32.xlu1 %v10680_v55, %s7904_s23 }
 0x393   :  { %v2632_v39 = vpop.permute.xlu0 %2631 }
 0x394   :  { %2740 = vst.msk [vmem:[#allocation3 + $0x608] sm:$0xff] %vm1525_vm3, %v2632_v39  ;;  %v2252_v34 = vpop.permute.xlu1 %2251  ;;  %v7795_v39 = vld [vmem:[%s10561_s3 + $0x118] sm:$0xff]  }
 0x395   :  { %2354 = vst.msk [vmem:[#allocation3 + $0x6f0] sm:$0xff] %vm1525_vm3, %v2252_v34  ;;  %1807 = vrot.lane.b32.xlu0 %v10681_v4, %s7904_s23  ;;  %v10695_v34 = vld [vmem:[#allocation32_spill] sm:$0xff]  ;;  %7049 = vmatpush3.bf16.msra.mxu1 %v7795_v39 }
 0x396   :  { %1426 = vrot.lane.b32.xlu1 %v10681_v4, %s7904_s23 }
 0x397   :  { %v2634_v58 = vpop.permute.xlu0 %2633 }
 0x398   :  { %2741 = vst.msk [vmem:[#allocation3 + $0x630] sm:$0xff] %vm1525_vm3, %v2634_v58  ;;  %v2254_v16 = vpop.permute.xlu1 %2253  ;;  %4106 = vmatmul.mubr.bf16.gmra.mrb[88].mxu1 %v2921_v37  ;;  %v2956_v58 = vld [vmem:[#allocation3 + $0x358] sm:$0xff] }
 0x399   :  { %2355 = vst.msk [vmem:[#allocation3 + $0x718] sm:$0xff] %vm1525_vm3, %v2254_v16  ;;  %1809 = vrot.lane.b32.xlu0 %v10682_v31, %s7904_s23  ;;  %4113 = vmatprep.mubr.bf16.mxu1 %v2927_v6  ;;  %v10696_v6 = vld [vmem:[#allocation33_spill] sm:$0xff] }
 0x39a   :  { %1428 = vrot.lane.b32.xlu1 %v10682_v31, %s7904_s23  ;;  %v2962_v31 = vld [vmem:[#allocation3 + $0x388] sm:$0xff] }
 0x39b   :  { %v2636_v48 = vpop.permute.xlu0 %2635 }
 0x39c   :  { %2742 = vst.msk [vmem:[#allocation3 + $0x658] sm:$0xff] %vm1525_vm3, %v2636_v48  ;;  %v2256_v43 = vpop.permute.xlu1 %2255 }
 0x39d   :  { %2356 = vst.msk [vmem:[#allocation3 + $0x740] sm:$0xff] %vm1525_vm3, %v2256_v43  ;;  %1811 = vrot.lane.b32.xlu0 %v10683_v18, %s7904_s23 }
 0x39e   :  { %1430 = vrot.lane.b32.xlu1 %v10683_v18, %s7904_s23 }
 0x39f   :  { %v2638_v54 = vpop.permute.xlu0 %2637 }
 0x3a0   :  { %2743 = vst.msk [vmem:[#allocation3 + $0x680] sm:$0xff] %vm1525_vm3, %v2638_v54  ;;  %v2258_v59 = vpop.permute.xlu1 %2257  ;;  %4114 = vmatmul.mubr.bf16.gmra.mrb[92].mxu1 %v2926_v46  ;;  %v10697_v54 = vld [vmem:[#allocation34_spill] sm:$0xff] }
 0x3a1   :  { %2357 = vst.msk [vmem:[#allocation3 + $0x768] sm:$0xff] %vm1525_vm3, %v2258_v59  ;;  %1813 = vrot.lane.b32.xlu0 %v10684_v19, %s7904_s23  ;;  %4121 = vmatprep.mubr.bf16.mxu1 %v2932_v1  ;;  %v2961_v59 = vld [vmem:[#allocation3 + $0x380] sm:$0xff] }
 0x3a2   :  { %1432 = vrot.lane.b32.xlu1 %v10684_v19, %s7904_s23 }
 0x3a3   :  { %v2640_v50 = vpop.permute.xlu0 %2639 }
 0x3a4   :  { %2744 = vst.msk [vmem:[#allocation3 + $0x6a8] sm:$0xff] %vm1525_vm3, %v2640_v50  ;;  %v2260_v38 = vpop.permute.xlu1 %2259  ;;  %v10698_v50 = vld [vmem:[#allocation35_spill] sm:$0xff] }
 0x3a5   :  { %2358 = vst.msk [vmem:[#allocation3 + $0x790] sm:$0xff] %vm1525_vm3, %v2260_v38  ;;  %1815 = vrot.lane.b32.xlu0 %v10685_v36, %s7904_s23  ;;  %v2967_v38 = vld [vmem:[#allocation3 + $0x3b0] sm:$0xff] }
 0x3a6   :  { %1434 = vrot.lane.b32.xlu1 %v10685_v36, %s7904_s23 }
 0x3a7   :  { %v2642_v11 = vpop.permute.xlu0 %2641 }
 0x3a8   :  { %2745 = vst.msk [vmem:[#allocation3 + $0x6d0] sm:$0xff] %vm1525_vm3, %v2642_v11  ;;  %v1379_v28 = vpop.permute.xlu1 %1378  ;;  %4122 = vmatmul.mubr.bf16.gmra.mrb[96].mxu1 %v2931_v2 }
 0x3a9   :  { %1526 = vst.msk [vmem:[#allocation3] sm:$0xff] %vm1525_vm3, %v1379_v28  ;;  %1817 = vrot.lane.b32.xlu0 %v10686_v7, %s7904_s23  ;;  %4129 = vmatprep.mubr.bf16.mxu1 %v2937_v25  ;;  %v10699_v28 = vld [vmem:[#allocation36_spill] sm:$0xff] }
 0x3aa   :  { %1436 = vrot.lane.b32.xlu1 %v10686_v7, %s7904_s23  ;;  %v2966_v7 = vld [vmem:[#allocation3 + $0x3a8] sm:$0xff] }
 0x3ab   :  { %v2644_v29 = vpop.permute.xlu0 %2643 }
 0x3ac   :  { %2746 = vst.msk [vmem:[#allocation3 + $0x6f8] sm:$0xff] %vm1525_vm3, %v2644_v29  ;;  %v1381_v63 = vpop.permute.xlu1 %1380 }
 0x3ad   :  { %1527 = vst.msk [vmem:[#allocation3 + $0x28] sm:$0xff] %vm1525_vm3, %v1381_v63  ;;  %1819 = vrot.lane.b32.xlu0 %v10687_v3, %s7904_s23 }
 0x3ae   :  { %1438 = vrot.lane.b32.xlu1 %v10687_v3, %s7904_s23  ;;  %v10700_v3 = vld [vmem:[#allocation37_spill] sm:$0xff] }
 0x3af   :  { %v2646_v0 = vpop.permute.xlu0 %2645 }
 0x3b0   :  { %2747 = vst.msk [vmem:[#allocation3 + $0x720] sm:$0xff] %vm1525_vm3, %v2646_v0  ;;  %v1383_v5 = vpop.permute.xlu1 %1382  ;;  %4130 = vmatmul.mubr.bf16.gmra.mrb[100].mxu1 %v2936_v60  ;;  %v2849_v8 = vld [vmem:[#allocation3] sm:$0xff]  ;;  %v2972_v0 = vld [vmem:[#allocation3 + $0x3d8] sm:$0xff] }
 0x3b1   :  { %1528 = vst.msk [vmem:[#allocation3 + $0x50] sm:$0xff] %vm1525_vm3, %v1383_v5  ;;  %1821 = vrot.lane.b32.xlu0 %v10688_v47, %s7904_s23  ;;  %4137 = vmatprep.mubr.bf16.mxu1 %v2942_v24 }
 0x3b2   :  { %1440 = vrot.lane.b32.xlu1 %v10688_v47, %s7904_s23  ;;  %v10701_v47 = vld [vmem:[#allocation38_spill] sm:$0xff] }
 0x3b3   :  { %v2648_v49 = vpop.permute.xlu0 %2647 }
 0x3b4   :  { %2748 = vst.msk [vmem:[#allocation3 + $0x748] sm:$0xff] %vm1525_vm3, %v2648_v49  ;;  %v1385_v40 = vpop.permute.xlu1 %1384  ;;  %v2854_v16 = vld [vmem:[#allocation3 + $0x28] sm:$0xff] }
 0x3b5   :  { %1529 = vst.msk [vmem:[#allocation3 + $0x78] sm:$0xff] %vm1525_vm3, %v1385_v40  ;;  %1823 = vrot.lane.b32.xlu0 %v10689_v27, %s7904_s23  ;;  %v2971_v40 = vld [vmem:[#allocation3 + $0x3d0] sm:$0xff] }
 0x3b6   :  { %1442 = vrot.lane.b32.xlu1 %v10689_v27, %s7904_s23 }
 0x3b7   :  { %v2650_v35 = vpop.permute.xlu0 %2649 }
 0x3b8   :  { %2749 = vst.msk [vmem:[#allocation3 + $0x770] sm:$0xff] %vm1525_vm3, %v2650_v35  ;;  %v1387_v56 = vpop.permute.xlu1 %1386  ;;  %4138 = vmatmul.mubr.bf16.gmra.mrb[104].mxu1 %v2941_v23  ;;  %v2859_v19 = vld [vmem:[#allocation3 + $0x50] sm:$0xff]  ;;  %v2977_v23 = vld [vmem:[#allocation3 + $0x400] sm:$0xff] }
 0x3b9   :  { %1530 = vst.msk [vmem:[#allocation3 + $0xa0] sm:$0xff] %vm1525_vm3, %v1387_v56  ;;  %1825 = vrot.lane.b32.xlu0 %v10690_v57, %s7904_s23  ;;  %4145 = vmatprep.mubr.bf16.mxu1 %v2947_v22 }
 0x3ba   :  { %1444 = vrot.lane.b32.xlu1 %v10690_v57, %s7904_s23 }
 0x3bb   :  { %v2652_v32 = vpop.permute.xlu0 %2651 }
 0x3bc   :  { %2750 = vst.msk [vmem:[#allocation3 + $0x798] sm:$0xff] %vm1525_vm3, %v2652_v32  ;;  %v1389_v12 = vpop.permute.xlu1 %1388  ;;  %v2864_v63 = vld [vmem:[#allocation3 + $0x78] sm:$0xff] }
 0x3bd   :  { %1531 = vst.msk [vmem:[#allocation3 + $0xc8] sm:$0xff] %vm1525_vm3, %v1389_v12  ;;  %1827 = vrot.lane.b32.xlu0 %v10691_v52, %s7904_s23  ;;  %v2976_v12 = vld [vmem:[#allocation3 + $0x3f8] sm:$0xff] }
 0x3be   :  { %1446 = vrot.lane.b32.xlu1 %v10691_v52, %s7904_s23 }
 0x3bf   :  { %v1772_v26 = vpop.permute.xlu0 %1771 }
 0x3c0   :  { %1918 = vst.msk [vmem:[#allocation3 + $0x8] sm:$0xff] %vm1525_vm3, %v1772_v26  ;;  %v1391_v51 = vpop.permute.xlu1 %1390  ;;  %4146 = vmatmul.mubr.bf16.gmra.mrb[108].mxu1 %v2946_v62  ;;  %v2869_v35 = vld [vmem:[#allocation3 + $0xa0] sm:$0xff]  ;;  %v2982_v26 = vld [vmem:[#allocation3 + $0x428] sm:$0xff] }
 0x3c1   :  { %1532 = vst.msk [vmem:[#allocation3 + $0xf0] sm:$0xff] %vm1525_vm3, %v1391_v51  ;;  %1829 = vrot.lane.b32.xlu0 %v10692_v10, %s7904_s23  ;;  %4153 = vmatprep.mubr.bf16.mxu1 %v2952_v17 }
 0x3c2   :  { %1448 = vrot.lane.b32.xlu1 %v10692_v10, %s7904_s23  ;;  %v2981_v10 = vld [vmem:[#allocation3 + $0x420] sm:$0xff] }
 0x3c3   :  { %v1774_v13 = vpop.permute.xlu0 %1773 }
 0x3c4   :  { %1919 = vst.msk [vmem:[#allocation3 + $0x30] sm:$0xff] %vm1525_vm3, %v1774_v13  ;;  %v1393_v61 = vpop.permute.xlu1 %1392 }
 0x3c5   :  { %1533 = vst.msk [vmem:[#allocation3 + $0x118] sm:$0xff] %vm1525_vm3, %v1393_v61  ;;  %1831 = vrot.lane.b32.xlu0 %v10693_v21, %s7904_s23 }
 0x3c6   :  { %1450 = vrot.lane.b32.xlu1 %v10693_v21, %s7904_s23  ;;  %v2987_v21 = vld [vmem:[#allocation3 + $0x450] sm:$0xff] }
 0x3c7   :  { %v1776_v41 = vpop.permute.xlu0 %1775  ;;  %v2850_v42 = vld [vmem:[#allocation3 + $0x8] sm:$0xff] }
 0x3c8   :  { %1920 = vst.msk [vmem:[#allocation3 + $0x58] sm:$0xff] %vm1525_vm3, %v1776_v41  ;;  %v1395_v33 = vpop.permute.xlu1 %1394  ;;  %3568 = vmatprep.mubr.bf16.mxu0 %v2850_v42  ;;  %4154 = vmatmul.mubr.bf16.gmra.mrb[112].mxu1 %v2951_v20  ;;  %v2879_v61 = vld [vmem:[#allocation3 + $0xf0] sm:$0xff] }
 0x3c9   :  { %1534 = vst.msk [vmem:[#allocation3 + $0x140] sm:$0xff] %vm1525_vm3, %v1395_v33  ;;  %1833 = vrot.lane.b32.xlu0 %v10694_v30, %s7904_s23  ;;  %3569 = vmatmul.mubr.bf16.vlgmr.msra.gmra.mrb[196].mxu0 %v2849_v8  ;;  %v2986_v8 = vld [vmem:[#allocation3 + $0x448] sm:$0xff] }
 0x3ca   :  { %1452 = vrot.lane.b32.xlu1 %v10694_v30, %s7904_s23  ;;  %4161 = vmatprep.mubr.bf16.mxu1 %v2957_v44 }
 0x3cb   :  { %v1778_v15 = vpop.permute.xlu0 %1777  ;;  %v2855_v45 = vld [vmem:[#allocation3 + $0x30] sm:$0xff] }
 0x3cc   :  { %1921 = vst.msk [vmem:[#allocation3 + $0x80] sm:$0xff] %vm1525_vm3, %v1778_v15  ;;  %v1397_v55 = vpop.permute.xlu1 %1396  ;;  %3576 = vmatprep.mubr.bf16.mxu0 %v2855_v45  ;;  %v2884_v44 = vld [vmem:[#allocation3 + $0x118] sm:$0xff] }
 0x3cd   :  { %1535 = vst.msk [vmem:[#allocation3 + $0x168] sm:$0xff] %vm1525_vm3, %v1397_v55  ;;  %1835 = vrot.lane.b32.xlu0 %v10695_v34, %s7904_s23  ;;  %v2992_v15 = vld [vmem:[#allocation3 + $0x478] sm:$0xff] }
 0x3ce   :  { %1454 = vrot.lane.b32.xlu1 %v10695_v34, %s7904_s23 }
 0x3cf   :  { %v1780_v4 = vpop.permute.xlu0 %1779  ;;  %v2860_v48 = vld [vmem:[#allocation3 + $0x58] sm:$0xff] }
 0x3d0   :  { %1922 = vst.msk [vmem:[#allocation3 + $0xa8] sm:$0xff] %vm1525_vm3, %v1780_v4  ;;  %v1399_v37 = vpop.permute.xlu1 %1398  ;;  %4162 = vmatmul.mubr.bf16.gmra.mrb[116].mxu1 %v2956_v58  ;;  %v2991_v4 = vld [vmem:[#allocation3 + $0x470] sm:$0xff] }
 0x3d1   :  { %1536 = vst.msk [vmem:[#allocation3 + $0x190] sm:$0xff] %vm1525_vm3, %v1399_v37  ;;  %1837 = vrot.lane.b32.xlu0 %v10696_v6, %s7904_s23  ;;  %3577 = vmatmul.mubr.bf16.gmra.mrb[200].mxu0 %v2854_v16  ;;  %v2889_v37 = vld [vmem:[#allocation3 + $0x140] sm:$0xff] }
 0x3d2   :  { %1456 = vrot.lane.b32.xlu1 %v10696_v6, %s7904_s23  ;;  %4169 = vmatprep.mubr.bf16.mxu1 %v2962_v31  ;;  %v2997_v16 = vld [vmem:[#allocation3 + $0x4a0] sm:$0xff] }
 0x3d3   :  { %3584 = vmatprep.mubr.bf16.mxu0 %v2860_v48  ;;  %v1782_v43 = vpop.permute.xlu0 %1781  ;;  %v2865_v36 = vld [vmem:[#allocation3 + $0x80] sm:$0xff] }
 0x3d4   :  { %1923 = vst.msk [vmem:[#allocation3 + $0xd0] sm:$0xff] %vm1525_vm3, %v1782_v43  ;;  %v1401_v18 = vpop.permute.xlu1 %1400 }
 0x3d5   :  { %1537 = vst.msk [vmem:[#allocation3 + $0x1b8] sm:$0xff] %vm1525_vm3, %v1401_v18  ;;  %1839 = vrot.lane.b32.xlu0 %v10697_v54, %s7904_s23  ;;  %v2996_v18 = vld [vmem:[#allocation3 + $0x498] sm:$0xff] }
 0x3d6   :  { %1458 = vrot.lane.b32.xlu1 %v10697_v54, %s7904_s23 }
 0x3d7   :  { %v1784_v46 = vpop.permute.xlu0 %1783  ;;  %v2870_v60 = vld [vmem:[#allocation3 + $0xa8] sm:$0xff] }
 0x3d8   :  { %1924 = vst.msk [vmem:[#allocation3 + $0xf8] sm:$0xff] %vm1525_vm3, %v1784_v46  ;;  %v1403_v1 = vpop.permute.xlu1 %1402  ;;  %4170 = vmatmul.mubr.bf16.gmra.mrb[120].mxu1 %v2961_v59  ;;  %v2894_v46 = vld [vmem:[#allocation3 + $0x168] sm:$0xff] }
 0x3d9   :  { %1538 = vst.msk [vmem:[#allocation3 + $0x1e0] sm:$0xff] %vm1525_vm3, %v1403_v1  ;;  %1841 = vrot.lane.b32.xlu0 %v10698_v50, %s7904_s23  ;;  %3585 = vmatmul.mubr.bf16.gmra.mrb[204].mxu0 %v2859_v19  ;;  %v3002_v59 = vld [vmem:[#allocation3 + $0x4c8] sm:$0xff] }
 0x3da   :  { %4177 = vmatprep.mubr.bf16.mxu1 %v2967_v38  ;;  %3592 = vmatprep.mubr.bf16.mxu0 %v2865_v36  ;;  %v3001_v36 = vld [vmem:[#allocation3 + $0x4c0] sm:$0xff] }
 0x3db   :  { %v1786_v11 = vpop.permute.xlu0 %1785  ;;  %v2875_v56 = vld [vmem:[#allocation3 + $0xd0] sm:$0xff] }
 0x3dc   :  { %1925 = vst.msk [vmem:[#allocation3 + $0x120] sm:$0xff] %vm1525_vm3, %v1786_v11  ;;  %v1405_v2 = vpop.permute.xlu1 %1404 }
 0x3dd   :  { %1539 = vst.msk [vmem:[#allocation3 + $0x208] sm:$0xff] %vm1525_vm3, %v1405_v2  ;;  %1843 = vrot.lane.b32.xlu0 %v10699_v28, %s7904_s23  ;;  %v2899_v2 = vld [vmem:[#allocation3 + $0x190] sm:$0xff] }
 0x3de   :  { %v3007_v28 = vld [vmem:[#allocation3 + $0x4f0] sm:$0xff] }
 0x3df   :  { %v1788_v25 = vpop.permute.xlu0 %1787  ;;  %v2880_v62 = vld [vmem:[#allocation3 + $0xf8] sm:$0xff] }
 0x3e0   :  { %1926 = vst.msk [vmem:[#allocation3 + $0x148] sm:$0xff] %vm1525_vm3, %v1788_v25  ;;  %v1407_v29 = vpop.permute.xlu1 %1406  ;;  %4178 = vmatmul.mubr.bf16.gmra.mrb[124].mxu1 %v2966_v7 }
 0x3e1   :  { %1540 = vst.msk [vmem:[#allocation3 + $0x230] sm:$0xff] %vm1525_vm3, %v1407_v29  ;;  %1845 = vrot.lane.b32.xlu0 %v10700_v3, %s7904_s23  ;;  %3593 = vmatmul.mubr.bf16.gmra.mrb[208].mxu0 %v2864_v63  ;;  %v3006_v3 = vld [vmem:[#allocation3 + $0x4e8] sm:$0xff] }
 0x3e2   :  { %4185 = vmatprep.mubr.bf16.mxu1 %v2972_v0  ;;  %3600 = vmatprep.mubr.bf16.mxu0 %v2870_v60  ;;  %v2904_v60 = vld [vmem:[#allocation3 + $0x1b8] sm:$0xff] }
 0x3e3   :  { %v1790_v5 = vpop.permute.xlu0 %1789  ;;  %v2885_v41 = vld [vmem:[#allocation3 + $0x120] sm:$0xff] }
 0x3e4   :  { %1927 = vst.msk [vmem:[#allocation3 + $0x170] sm:$0xff] %vm1525_vm3, %v1790_v5  ;;  %v1409_v24 = vpop.permute.xlu1 %1408  ;;  %v3012_v5 = vld [vmem:[#allocation3 + $0x518] sm:$0xff] }
 0x3e5   :  { %1541 = vst.msk [vmem:[#allocation3 + $0x258] sm:$0xff] %vm1525_vm3, %v1409_v24  ;;  %1847 = vrot.lane.b32.xlu0 %v10701_v47, %s7904_s23 }
 0x3e7   :  { %v1792_v49 = vpop.permute.xlu0 %1791  ;;  %v2890_v45 = vld [vmem:[#allocation3 + $0x148] sm:$0xff] }
 0x3e8   :  { %1928 = vst.msk [vmem:[#allocation3 + $0x198] sm:$0xff] %vm1525_vm3, %v1792_v49  ;;  %v1411_v27 = vpop.permute.xlu1 %1410  ;;  %4186 = vmatmul.mubr.bf16.gmra.mrb[128].mxu1 %v2971_v40 }
 0x3e9   :  { %1542 = vst.msk [vmem:[#allocation3 + $0x280] sm:$0xff] %vm1525_vm3, %v1411_v27  ;;  %1849 = vrot.lane.b32.xlu0 %v9024_v14, %s7904_s23  ;;  %3601 = vmatmul.mubr.bf16.gmra.mrb[212].mxu0 %v2869_v35  ;;  %v2874_v14 = vld [vmem:[#allocation3 + $0xc8] sm:$0xff]  ;;  %v3011_v27 = vld [vmem:[#allocation3 + $0x510] sm:$0xff] }
 0x3ea   :  { %4193 = vmatprep.mubr.bf16.mxu1 %v2977_v23  ;;  %3608 = vmatprep.mubr.bf16.mxu0 %v2875_v56  ;;  %v2909_v23 = vld [vmem:[#allocation3 + $0x1e0] sm:$0xff] }
 0x3eb   :  { %v1794_v22 = vpop.permute.xlu0 %1793  ;;  %v2895_v6 = vld [vmem:[#allocation3 + $0x170] sm:$0xff]  ;;  %v3017_v56 = vld [vmem:[#allocation3 + $0x540] sm:$0xff] }
 0x3ec   :  { %1929 = vst.msk [vmem:[#allocation3 + $0x1c0] sm:$0xff] %vm1525_vm3, %v1794_v22  ;;  %v1413_v57 = vpop.permute.xlu1 %1412 }
 0x3ed   :  { %1543 = vst.msk [vmem:[#allocation3 + $0x2a8] sm:$0xff] %vm1525_vm3, %v1413_v57  ;;  %1851 = vrot.lane.b32.xlu0 %v9054_v53, %s7904_s23 }
 0x3ef   :  { %v1796_v32 = vpop.permute.xlu0 %1795  ;;  %v2900_v1 = vld [vmem:[#allocation3 + $0x198] sm:$0xff] }
 0x3f0   :  { %1930 = vst.msk [vmem:[#allocation3 + $0x1e8] sm:$0xff] %vm1525_vm3, %v1796_v32  ;;  %v1415_v52 = vpop.permute.xlu1 %1414  ;;  %4194 = vmatmul.mubr.bf16.gmra.mrb[132].mxu1 %v2976_v12  ;;  %v3022_v12 = vld [vmem:[#allocation3 + $0x568] sm:$0xff] }
 0x3f1   :  { %1544 = vst.msk [vmem:[#allocation3 + $0x2d0] sm:$0xff] %vm1525_vm3, %v1415_v52  ;;  %3609 = vmatmul.mubr.bf16.gmra.mrb[216].mxu0 %v2874_v14  ;;  %4201 = vmatprep.mubr.bf16.mxu1 %v2982_v26  ;;  %v3016_v14 = vld [vmem:[#allocation3 + $0x538] sm:$0xff] }
 0x3f2   :  { %3616 = vmatprep.mubr.bf16.mxu0 %v2880_v62  ;;  %v2914_v62 = vld [vmem:[#allocation3 + $0x208] sm:$0xff] }
 0x3f3   :  { %v1798_v51 = vpop.permute.xlu0 %1797  ;;  %v2905_v25 = vld [vmem:[#allocation3 + $0x1c0] sm:$0xff] }
 0x3f4   :  { %1931 = vst.msk [vmem:[#allocation3 + $0x210] sm:$0xff] %vm1525_vm3, %v1798_v51  ;;  %v1417_v17 = vpop.permute.xlu1 %1416 }
 0x3f5   :  { %1545 = vst.msk [vmem:[#allocation3 + $0x2f8] sm:$0xff] %vm1525_vm3, %v1417_v17 }
 0x3f7   :  { %v1800_v53 = vpop.permute.xlu0 %1799  ;;  %v2910_v24 = vld [vmem:[#allocation3 + $0x1e8] sm:$0xff] }
 0x3f8   :  { %1932 = vst.msk [vmem:[#allocation3 + $0x238] sm:$0xff] %vm1525_vm3, %v1800_v53  ;;  %v1419_v13 = vpop.permute.xlu1 %1418  ;;  %4202 = vmatmul.mubr.bf16.gmra.mrb[136].mxu1 %v2981_v10  ;;  %v3027_v10 = vld [vmem:[#allocation3 + $0x590] sm:$0xff] }
 0x3f9   :  { %1546 = vst.msk [vmem:[#allocation3 + $0x320] sm:$0xff] %vm1525_vm3, %v1419_v13  ;;  %3617 = vmatmul.mubr.bf16.gmra.mrb[220].mxu0 %v2879_v61  ;;  %4209 = vmatprep.mubr.bf16.mxu1 %v2987_v21  ;;  %v3021_v61 = vld [vmem:[#allocation3 + $0x560] sm:$0xff] }
 0x3fa   :  { %3624 = vmatprep.mubr.bf16.mxu0 %v2885_v41  ;;  %v2919_v41 = vld [vmem:[#allocation3 + $0x230] sm:$0xff] }
 0x3fb   :  { %v1802_v42 = vpop.permute.xlu0 %1801  ;;  %v2915_v22 = vld [vmem:[#allocation3 + $0x210] sm:$0xff] }
 0x3fc   :  { %1933 = vst.msk [vmem:[#allocation3 + $0x260] sm:$0xff] %vm1525_vm3, %v1802_v42  ;;  %v1421_v20 = vpop.permute.xlu1 %1420 }
 0x3fd   :  { %1547 = vst.msk [vmem:[#allocation3 + $0x348] sm:$0xff] %vm1525_vm3, %v1421_v20 }
 0x3ff   :  { %v1804_v33 = vpop.permute.xlu0 %1803  ;;  %v2920_v51 = vld [vmem:[#allocation3 + $0x238] sm:$0xff] }
 0x400   :  { %1934 = vst.msk [vmem:[#allocation3 + $0x288] sm:$0xff] %vm1525_vm3, %v1804_v33  ;;  %v1423_v30 = vpop.permute.xlu1 %1422  ;;  %4210 = vmatmul.mubr.bf16.gmra.mrb[140].mxu1 %v2986_v8  ;;  %v3032_v8 = vld [vmem:[#allocation3 + $0x5b8] sm:$0xff] }
 0x401   :  { %1548 = vst.msk [vmem:[#allocation3 + $0x370] sm:$0xff] %vm1525_vm3, %v1423_v30  ;;  %3625 = vmatmul.mubr.bf16.gmra.mrb[224].mxu0 %v2884_v44  ;;  %4217 = vmatprep.mubr.bf16.mxu1 %v2992_v15  ;;  %v3026_v44 = vld [vmem:[#allocation3 + $0x588] sm:$0xff] }
 0x402   :  { %3632 = vmatprep.mubr.bf16.mxu0 %v2890_v45  ;;  %v2924_v45 = vld [vmem:[#allocation3 + $0x258] sm:$0xff] }
 0x403   :  { %v1806_v55 = vpop.permute.xlu0 %1805  ;;  %v2925_v42 = vld [vmem:[#allocation3 + $0x260] sm:$0xff] }
 0x404   :  { %1935 = vst.msk [vmem:[#allocation3 + $0x2b0] sm:$0xff] %vm1525_vm3, %v1806_v55  ;;  %v1425_v39 = vpop.permute.xlu1 %1424 }
 0x405   :  { %1549 = vst.msk [vmem:[#allocation3 + $0x398] sm:$0xff] %vm1525_vm3, %v1425_v39 }
 0x407   :  { %v1808_v34 = vpop.permute.xlu0 %1807  ;;  %v2930_v55 = vld [vmem:[#allocation3 + $0x288] sm:$0xff] }
 0x408   :  { %1936 = vst.msk [vmem:[#allocation3 + $0x2d8] sm:$0xff] %vm1525_vm3, %v1808_v34  ;;  %v1427_v58 = vpop.permute.xlu1 %1426  ;;  %4218 = vmatmul.mubr.bf16.gmra.mrb[144].mxu1 %v2991_v4  ;;  %v3037_v4 = vld [vmem:[#allocation3 + $0x5e0] sm:$0xff] }
 0x409   :  { %1550 = vst.msk [vmem:[#allocation3 + $0x3c0] sm:$0xff] %vm1525_vm3, %v1427_v58  ;;  %3633 = vmatmul.mubr.bf16.gmra.mrb[228].mxu0 %v2889_v37  ;;  %4225 = vmatprep.mubr.bf16.mxu1 %v2997_v16  ;;  %v3031_v37 = vld [vmem:[#allocation3 + $0x5b0] sm:$0xff] }
 0x40a   :  { %3640 = vmatprep.mubr.bf16.mxu0 %v2895_v6  ;;  %v2929_v6 = vld [vmem:[#allocation3 + $0x280] sm:$0xff] }
 0x40b   :  { %v1810_v31 = vpop.permute.xlu0 %1809 }
 0x40c   :  { %1937 = vst.msk [vmem:[#allocation3 + $0x300] sm:$0xff] %vm1525_vm3, %v1810_v31  ;;  %v1429_v48 = vpop.permute.xlu1 %1428  ;;  %v2935_v31 = vld [vmem:[#allocation3 + $0x2b0] sm:$0xff] }
 0x40d   :  { %1551 = vst.msk [vmem:[#allocation3 + $0x3e8] sm:$0xff] %vm1525_vm3, %v1429_v48 }
 0x40f   :  { %v1812_v43 = vpop.permute.xlu0 %1811 }
 0x410   :  { %1938 = vst.msk [vmem:[#allocation3 + $0x328] sm:$0xff] %vm1525_vm3, %v1812_v43  ;;  %v1431_v54 = vpop.permute.xlu1 %1430  ;;  %4226 = vmatmul.mubr.bf16.gmra.mrb[148].mxu1 %v2996_v18  ;;  %v3042_v43 = vld [vmem:[#allocation3 + $0x608] sm:$0xff] }
 0x411   :  { %1552 = vst.msk [vmem:[#allocation3 + $0x410] sm:$0xff] %vm1525_vm3, %v1431_v54  ;;  %3641 = vmatmul.mubr.bf16.gmra.mrb[232].mxu0 %v2894_v46  ;;  %4233 = vmatprep.mubr.bf16.mxu1 %v3002_v59  ;;  %v3036_v54 = vld [vmem:[#allocation3 + $0x5d8] sm:$0xff]  ;;  %v2934_v46 = vld [vmem:[#allocation3 + $0x2a8] sm:$0xff] }
 0x412   :  { %3648 = vmatprep.mubr.bf16.mxu0 %v2900_v1  ;;  %v2940_v59 = vld [vmem:[#allocation3 + $0x2d8] sm:$0xff] }
 0x413   :  { %v1814_v19 = vpop.permute.xlu0 %1813 }
 0x414   :  { %1939 = vst.msk [vmem:[#allocation3 + $0x350] sm:$0xff] %vm1525_vm3, %v1814_v19  ;;  %v1433_v50 = vpop.permute.xlu1 %1432  ;;  %v3047_v19 = vld [vmem:[#allocation3 + $0x630] sm:$0xff] }
 0x415   :  { %1553 = vst.msk [vmem:[#allocation3 + $0x438] sm:$0xff] %vm1525_vm3, %v1433_v50 }
 0x417   :  { %v1816_v38 = vpop.permute.xlu0 %1815 }
 0x418   :  { %1940 = vst.msk [vmem:[#allocation3 + $0x378] sm:$0xff] %vm1525_vm3, %v1816_v38  ;;  %v1435_v11 = vpop.permute.xlu1 %1434  ;;  %4234 = vmatmul.mubr.bf16.gmra.mrb[152].mxu1 %v3001_v36  ;;  %v3041_v38 = vld [vmem:[#allocation3 + $0x600] sm:$0xff]  ;;  %v2939_v36 = vld [vmem:[#allocation3 + $0x2d0] sm:$0xff] }
 0x419   :  { %1554 = vst.msk [vmem:[#allocation3 + $0x460] sm:$0xff] %vm1525_vm3, %v1435_v11  ;;  %3649 = vmatmul.mubr.bf16.gmra.mrb[236].mxu0 %v2899_v2  ;;  %4241 = vmatprep.mubr.bf16.mxu1 %v3007_v28  ;;  %v2945_v11 = vld [vmem:[#allocation3 + $0x300] sm:$0xff]  ;;  %v3052_v28 = vld [vmem:[#allocation3 + $0x658] sm:$0xff] }
 0x41a   :  { %3656 = vmatprep.mubr.bf16.mxu0 %v2905_v25 }
 0x41b   :  { %v1818_v7 = vpop.permute.xlu0 %1817 }
 0x41c   :  { %1941 = vst.msk [vmem:[#allocation3 + $0x3a0] sm:$0xff] %vm1525_vm3, %v1818_v7  ;;  %v1437_v29 = vpop.permute.xlu1 %1436  ;;  %v3046_v7 = vld [vmem:[#allocation3 + $0x628] sm:$0xff] }
 0x41d   :  { %1555 = vst.msk [vmem:[#allocation3 + $0x488] sm:$0xff] %vm1525_vm3, %v1437_v29  ;;  %v2944_v29 = vld [vmem:[#allocation3 + $0x2f8] sm:$0xff] }
 0x41f   :  { %v1820_v63 = vpop.permute.xlu0 %1819 }
 0x420   :  { %1942 = vst.msk [vmem:[#allocation3 + $0x3c8] sm:$0xff] %vm1525_vm3, %v1820_v63  ;;  %v1439_v0 = vpop.permute.xlu1 %1438  ;;  %4242 = vmatmul.mubr.bf16.gmra.mrb[156].mxu1 %v3006_v3  ;;  %v2950_v63 = vld [vmem:[#allocation3 + $0x328] sm:$0xff]  ;;  %v3051_v3 = vld [vmem:[#allocation3 + $0x650] sm:$0xff] }
 0x421   :  { %1556 = vst.msk [vmem:[#allocation3 + $0x4b0] sm:$0xff] %vm1525_vm3, %v1439_v0  ;;  %3657 = vmatmul.mubr.bf16.gmra.mrb[240].mxu0 %v2904_v60  ;;  %4249 = vmatprep.mubr.bf16.mxu1 %v3012_v5  ;;  %v3057_v0 = vld [vmem:[#allocation3 + $0x680] sm:$0xff]  ;;  %v2955_v5 = vld [vmem:[#allocation3 + $0x350] sm:$0xff] }
 0x422   :  { %3664 = vmatprep.mubr.bf16.mxu0 %v2910_v24  ;;  %v2949_v60 = vld [vmem:[#allocation3 + $0x320] sm:$0xff]  ;;  %v3056_v24 = vld [vmem:[#allocation3 + $0x678] sm:$0xff] }
 0x423   :  { %v1822_v47 = vpop.permute.xlu0 %1821 }
 0x424   :  { %1943 = vst.msk [vmem:[#allocation3 + $0x3f0] sm:$0xff] %vm1525_vm3, %v1822_v47  ;;  %v1441_v49 = vpop.permute.xlu1 %1440  ;;  %v3062_v47 = vld [vmem:[#allocation3 + $0x6a8] sm:$0xff] }
 0x425   :  { %1557 = vst.msk [vmem:[#allocation3 + $0x4d8] sm:$0xff] %vm1525_vm3, %v1441_v49  ;;  %v2954_v49 = vld [vmem:[#allocation3 + $0x348] sm:$0xff] }
 0x427   :  { %v1824_v40 = vpop.permute.xlu0 %1823 }
 0x428   :  { %1944 = vst.msk [vmem:[#allocation3 + $0x418] sm:$0xff] %vm1525_vm3, %v1824_v40  ;;  %v1443_v35 = vpop.permute.xlu1 %1442  ;;  %4250 = vmatmul.mubr.bf16.gmra.mrb[160].mxu1 %v3011_v27  ;;  %v2960_v40 = vld [vmem:[#allocation3 + $0x378] sm:$0xff]  ;;  %v3061_v27 = vld [vmem:[#allocation3 + $0x6a0] sm:$0xff] }
 0x429   :  { %1558 = vst.msk [vmem:[#allocation3 + $0x500] sm:$0xff] %vm1525_vm3, %v1443_v35  ;;  %3665 = vmatmul.mubr.bf16.gmra.mrb[244].mxu0 %v2909_v23  ;;  %4257 = vmatprep.mubr.bf16.mxu1 %v3017_v56  ;;  %v3067_v35 = vld [vmem:[#allocation3 + $0x6d0] sm:$0xff]  ;;  %v2965_v56 = vld [vmem:[#allocation3 + $0x3a0] sm:$0xff] }
 0x42a   :  { %3672 = vmatprep.mubr.bf16.mxu0 %v2915_v22  ;;  %v2959_v23 = vld [vmem:[#allocation3 + $0x370] sm:$0xff]  ;;  %v3066_v22 = vld [vmem:[#allocation3 + $0x6c8] sm:$0xff] }
 0x42b   :  { %v1826_v57 = vpop.permute.xlu0 %1825 }
 0x42c   :  { %1945 = vst.msk [vmem:[#allocation3 + $0x440] sm:$0xff] %vm1525_vm3, %v1826_v57  ;;  %v1445_v32 = vpop.permute.xlu1 %1444  ;;  %v3072_v57 = vld [vmem:[#allocation3 + $0x6f8] sm:$0xff] }
 0x42d   :  { %1559 = vst.msk [vmem:[#allocation3 + $0x528] sm:$0xff] %vm1525_vm3, %v1445_v32  ;;  %v2964_v32 = vld [vmem:[#allocation3 + $0x398] sm:$0xff] }
 0x42f   :  { %v1828_v52 = vpop.permute.xlu0 %1827 }
 0x430   :  { %1946 = vst.msk [vmem:[#allocation3 + $0x468] sm:$0xff] %vm1525_vm3, %v1828_v52  ;;  %v1447_v26 = vpop.permute.xlu1 %1446  ;;  %4258 = vmatmul.mubr.bf16.gmra.mrb[164].mxu1 %v3016_v14  ;;  %v3071_v52 = vld [vmem:[#allocation3 + $0x6f0] sm:$0xff]  ;;  %v3077_v14 = vld [vmem:[#allocation3 + $0x720] sm:$0xff] }
 0x431   :  { %1560 = vst.msk [vmem:[#allocation3 + $0x550] sm:$0xff] %vm1525_vm3, %v1447_v26  ;;  %3673 = vmatmul.mubr.bf16.gmra.mrb[248].mxu0 %v2914_v62  ;;  %4265 = vmatprep.mubr.bf16.mxu1 %v3022_v12  ;;  %v2970_v12 = vld [vmem:[#allocation3 + $0x3c8] sm:$0xff]  ;;  %v2969_v26 = vld [vmem:[#allocation3 + $0x3c0] sm:$0xff]  ;;  %v2975_v62 = vld [vmem:[#allocation3 + $0x3f0] sm:$0xff] }
 0x432   :  { %3680 = vmatprep.mubr.bf16.mxu0 %v2920_v51  ;;  %v3076_v51 = vld [vmem:[#allocation3 + $0x718] sm:$0xff] }
 0x433   :  { %v1830_v17 = vpop.permute.xlu0 %1829 }
 0x434   :  { %1947 = vst.msk [vmem:[#allocation3 + $0x490] sm:$0xff] %vm1525_vm3, %v1830_v17  ;;  %v1449_v53 = vpop.permute.xlu1 %1448  ;;  %v3082_v17 = vld [vmem:[#allocation3 + $0x748] sm:$0xff] }
 0x435   :  { %1561 = vst.msk [vmem:[#allocation3 + $0x578] sm:$0xff] %vm1525_vm3, %v1449_v53  ;;  %v2974_v53 = vld [vmem:[#allocation3 + $0x3e8] sm:$0xff] }
 0x437   :  { %v1832_v13 = vpop.permute.xlu0 %1831 }
 0x438   :  { %1948 = vst.msk [vmem:[#allocation3 + $0x4b8] sm:$0xff] %vm1525_vm3, %v1832_v13  ;;  %v1451_v21 = vpop.permute.xlu1 %1450  ;;  %4266 = vmatmul.mubr.bf16.gmra.mrb[168].mxu1 %v3021_v61  ;;  %v3081_v13 = vld [vmem:[#allocation3 + $0x740] sm:$0xff]  ;;  %v3087_v61 = vld [vmem:[#allocation3 + $0x770] sm:$0xff] }
 0x439   :  { %1562 = vst.msk [vmem:[#allocation3 + $0x5a0] sm:$0xff] %vm1525_vm3, %v1451_v21  ;;  %3681 = vmatmul.mubr.bf16.gmra.mrb[252].mxu0 %v2919_v41  ;;  %4273 = vmatprep.mubr.bf16.mxu1 %v3027_v10  ;;  %v2980_v10 = vld [vmem:[#allocation3 + $0x418] sm:$0xff]  ;;  %v2979_v21 = vld [vmem:[#allocation3 + $0x410] sm:$0xff]  ;;  %v2985_v41 = vld [vmem:[#allocation3 + $0x440] sm:$0xff] }
 0x43a   :  { %3688 = vmatprep.mubr.bf16.mxu0 %v2925_v42 }
 0x43b   :  { %v1834_v20 = vpop.permute.xlu0 %1833 }
 0x43c   :  { %1949 = vst.msk [vmem:[#allocation3 + $0x4e0] sm:$0xff] %vm1525_vm3, %v1834_v20  ;;  %v1453_v33 = vpop.permute.xlu1 %1452 }
 0x43d   :  { %1563 = vst.msk [vmem:[#allocation3 + $0x5c8] sm:$0xff] %vm1525_vm3, %v1453_v33  ;;  %v3086_v33 = vld [vmem:[#allocation3 + $0x768] sm:$0xff] }
 0x43f   :  { %v1836_v30 = vpop.permute.xlu0 %1835 }
 0x440   :  { %1950 = vst.msk [vmem:[#allocation3 + $0x508] sm:$0xff] %vm1525_vm3, %v1836_v30  ;;  %v1455_v15 = vpop.permute.xlu1 %1454  ;;  %4274 = vmatmul.mubr.bf16.gmra.mrb[172].mxu1 %v3026_v44  ;;  %v3092_v30 = vld [vmem:[#allocation3 + $0x798] sm:$0xff] }
 0x441   :  { %1564 = vst.msk [vmem:[#allocation3 + $0x5f0] sm:$0xff] %vm1525_vm3, %v1455_v15  ;;  %3689 = vmatmul.mubr.bf16.gmra.mrb[0].mxu0 %v2924_v45  ;;  %4281 = vmatprep.mubr.bf16.mxu1 %v3032_v8  ;;  %v2984_v15 = vld [vmem:[#allocation3 + $0x438] sm:$0xff]  ;;  %v2990_v45 = vld [vmem:[#allocation3 + $0x468] sm:$0xff] }
 0x442   :  { %3696 = vmatprep.mubr.bf16.mxu0 %v2930_v55  ;;  %v7796_v55 = vld [vmem:[%s10562_s5 + $0x40] sm:$0xff]  }
 0x443   :  { %v1838_v39 = vpop.permute.xlu0 %1837  ;;  %6704 = vmatprep.subr.bf16.mxu0 %v7796_v55 }
 0x444   :  { %1951 = vst.msk [vmem:[#allocation3 + $0x530] sm:$0xff] %vm1525_vm3, %v1838_v39  ;;  %v1457_v34 = vpop.permute.xlu1 %1456  ;;  %v7797_v39 = vld [vmem:[%s10562_s5] sm:$0xff]  }
 0x445   :  { %1565 = vst.msk [vmem:[#allocation3 + $0x618] sm:$0xff] %vm1525_vm3, %v1457_v34  ;;  %6705 = vmatpush3.bf16.msra.mxu0 %v7797_v39  ;;  %v2888_v39 = vld [vmem:[#allocation3 + $0x138] sm:$0xff] }
 0x447   :  { %v1840_v58 = vpop.permute.xlu0 %1839 }
 0x448   :  { %1952 = vst.msk [vmem:[#allocation3 + $0x558] sm:$0xff] %vm1525_vm3, %v1840_v58  ;;  %v1459_v16 = vpop.permute.xlu1 %1458  ;;  %4282 = vmatmul.mubr.bf16.gmra.mrb[176].mxu1 %v3031_v37  ;;  %v3091_v58 = vld [vmem:[#allocation3 + $0x790] sm:$0xff] }
 0x449   :  { %1566 = vst.msk [vmem:[#allocation3 + $0x640] sm:$0xff] %vm1525_vm3, %v1459_v16  ;;  %3697 = vmatmul.mubr.bf16.gmra.mrb[4].mxu0 %v2929_v6  ;;  %4289 = vmatprep.mubr.bf16.mxu1 %v3037_v4  ;;  %v2989_v16 = vld [vmem:[#allocation3 + $0x460] sm:$0xff] }
 0x44a   :  { %3704 = vmatprep.mubr.bf16.mxu0 %v2935_v31  ;;  %v2995_v31 = vld [vmem:[#allocation3 + $0x490] sm:$0xff] }
 0x44b   :  { %v1842_v48 = vpop.permute.xlu0 %1841 }
 0x44c   :  { %1953 = vst.msk [vmem:[#allocation3 + $0x580] sm:$0xff] %vm1525_vm3, %v1842_v48 }
 0x44f   :  { %v1844_v18 = vpop.permute.xlu0 %1843 }
 0x450   :  { %1954 = vst.msk [vmem:[#allocation3 + $0x5a8] sm:$0xff] %vm1525_vm3, %v1844_v18  ;;  %4290 = vmatmul.mubr.bf16.gmra.mrb[180].mxu1 %v3036_v54  ;;  %v2853_v18 = vld [vmem:[#allocation3 + $0x20] sm:$0xff] }
 0x451   :  { %3705 = vmatmul.mubr.bf16.gmra.mrb[8].mxu0 %v2934_v46  ;;  %4297 = vmatprep.mubr.bf16.mxu1 %v3042_v43  ;;  %v2994_v46 = vld [vmem:[#allocation3 + $0x488] sm:$0xff] }
 0x452   :  { %3712 = vmatprep.mubr.bf16.mxu0 %v2940_v59 }
 0x453   :  { %v1846_v1 = vpop.permute.xlu0 %1845 }
 0x454   :  { %1955 = vst.msk [vmem:[#allocation3 + $0x5d0] sm:$0xff] %vm1525_vm3, %v1846_v1  ;;  %v3000_v1 = vld [vmem:[#allocation3 + $0x4b8] sm:$0xff] }
 0x457   :  { %v1848_v50 = vpop.permute.xlu0 %1847 }
 0x458   :  { %1956 = vst.msk [vmem:[#allocation3 + $0x5f8] sm:$0xff] %vm1525_vm3, %v1848_v50  ;;  %4298 = vmatmul.mubr.bf16.gmra.mrb[184].mxu1 %v3041_v38  ;;  %v2858_v38 = vld [vmem:[#allocation3 + $0x48] sm:$0xff] }
 0x459   :  { %3713 = vmatmul.mubr.bf16.gmra.mrb[12].mxu0 %v2939_v36  ;;  %4305 = vmatprep.mubr.bf16.mxu1 %v3047_v19 }
 0x45a   :  { %3720 = vmatprep.mubr.bf16.mxu0 %v2945_v11  ;;  %v2999_v11 = vld [vmem:[#allocation3 + $0x4b0] sm:$0xff] }
 0x45b   :  { %v1850_v2 = vpop.permute.xlu0 %1849 }
 0x45c   :  { %1957 = vst.msk [vmem:[#allocation3 + $0x620] sm:$0xff] %vm1525_vm3, %v1850_v2 }
 0x45f   :  { %v1852_v25 = vpop.permute.xlu0 %1851 }
 0x460   :  { %1958 = vst.msk [vmem:[#allocation3 + $0x648] sm:$0xff] %vm1525_vm3, %v1852_v25  ;;  %4306 = vmatmul.mubr.bf16.gmra.mrb[188].mxu1 %v3046_v7 }
 0x461   :  { %3721 = vmatmul.mubr.bf16.gmra.mrb[16].mxu0 %v2944_v29  ;;  %4313 = vmatprep.mubr.bf16.mxu1 %v3052_v28  ;;  %v3005_v28 = vld [vmem:[#allocation3 + $0x4e0] sm:$0xff]  ;;  %v2863_v29 = vld [vmem:[#allocation3 + $0x70] sm:$0xff] }
 0x462   :  { %3728 = vmatprep.mubr.bf16.mxu0 %v2950_v63 }
 0x468   :  { %4314 = vmatmul.mubr.bf16.gmra.mrb[192].mxu1 %v3051_v3  ;;  %v3004_v3 = vld [vmem:[#allocation3 + $0x4d8] sm:$0xff] }
 0x469   :  { %3729 = vmatmul.mubr.bf16.gmra.mrb[20].mxu0 %v2949_v60  ;;  %4321 = vmatprep.mubr.bf16.mxu1 %v3057_v0  ;;  %v3010_v60 = vld [vmem:[#allocation3 + $0x508] sm:$0xff] }
 0x46a   :  { %3736 = vmatprep.mubr.bf16.mxu0 %v2955_v5 }
 0x470   :  { %4322 = vmatmul.mubr.bf16.gmra.mrb[0].mxu1 %v3056_v24 }
 0x471   :  { %3737 = vmatmul.mubr.bf16.gmra.mrb[24].mxu0 %v2954_v49  ;;  %4329 = vmatprep.mubr.bf16.mxu1 %v3062_v47  ;;  %v2868_v47 = vld [vmem:[#allocation3 + $0x98] sm:$0xff] }
 0x472   :  { %3744 = vmatprep.mubr.bf16.mxu0 %v2960_v40  ;;  %v3009_v40 = vld [vmem:[#allocation3 + $0x500] sm:$0xff] }
 0x478   :  { %4330 = vmatmul.mubr.bf16.gmra.mrb[4].mxu1 %v3061_v27 }
 0x479   :  { %3745 = vmatmul.mubr.bf16.gmra.mrb[28].mxu0 %v2959_v23  ;;  %4337 = vmatprep.mubr.bf16.mxu1 %v3067_v35  ;;  %v3015_v35 = vld [vmem:[#allocation3 + $0x530] sm:$0xff]  ;;  %v7798_v23 = vld [vmem:[%s10562_s5 + $0x48] sm:$0xff]  }
 0x47a   :  { %3752 = vmatprep.mubr.bf16.mxu0 %v2965_v56  ;;  %v7799_v56 = vld [vmem:[%s10562_s5 + $0x8] sm:$0xff]   ;;  %6706 = vmatprep.subr.bf16.mxu0 %v7798_v23 }
 0x47b   :  { %6707 = vmatpush3.bf16.msra.mxu0 %v7799_v56 }
 0x480   :  { %4338 = vmatmul.mubr.bf16.gmra.mrb[8].mxu1 %v3066_v22 }
 0x481   :  { %3753 = vmatmul.mubr.bf16.gmra.mrb[32].mxu0 %v2964_v32  ;;  %4345 = vmatprep.mubr.bf16.mxu1 %v3072_v57  ;;  %v2873_v32 = vld [vmem:[#allocation3 + $0xc0] sm:$0xff] }
 0x482   :  { %3760 = vmatprep.mubr.bf16.mxu0 %v2970_v12 }
 0x488   :  { %4346 = vmatmul.mubr.bf16.gmra.mrb[12].mxu1 %v3071_v52  ;;  %v3014_v52 = vld [vmem:[#allocation3 + $0x528] sm:$0xff] }
 0x489   :  { %3761 = vmatmul.mubr.bf16.gmra.mrb[36].mxu0 %v2969_v26  ;;  %4353 = vmatprep.mubr.bf16.mxu1 %v3077_v14  ;;  %v3020_v26 = vld [vmem:[#allocation3 + $0x558] sm:$0xff] }
 0x48a   :  { %3768 = vmatprep.mubr.bf16.mxu0 %v2975_v62 }
 0x490   :  { %4354 = vmatmul.mubr.bf16.gmra.mrb[16].mxu1 %v3076_v51 }
 0x491   :  { %3769 = vmatmul.mubr.bf16.gmra.mrb[40].mxu0 %v2974_v53  ;;  %4361 = vmatprep.mubr.bf16.mxu1 %v3082_v17  ;;  %v2878_v17 = vld [vmem:[#allocation3 + $0xe8] sm:$0xff] }
 0x492   :  { %3776 = vmatprep.mubr.bf16.mxu0 %v2980_v10  ;;  %v3019_v10 = vld [vmem:[#allocation3 + $0x550] sm:$0xff] }
 0x498   :  { %4362 = vmatmul.mubr.bf16.gmra.mrb[20].mxu1 %v3081_v13 }
 0x499   :  { %3777 = vmatmul.mubr.bf16.gmra.mrb[44].mxu0 %v2979_v21  ;;  %4369 = vmatprep.mubr.bf16.mxu1 %v3087_v61  ;;  %v3025_v61 = vld [vmem:[#allocation3 + $0x580] sm:$0xff] }
 0x49a   :  { %3784 = vmatprep.mubr.bf16.mxu0 %v2985_v41 }
 0x49c   :  { %v9797_v42 = vpop.f32.mrb[196].mxu0 }
 0x49d   :  { %v3572_v20 = vpop.f32.mrb[197].mxu0 }
 0x49e   :  { %v9799_v8 = vpop.f32.mrb[198].mxu0  ;;  %v2883_v20 = vld [vmem:[#allocation3 + $0x110] sm:$0xff] }
 0x49f   :  { %v3575_v44 = vpop.f32.mrb[199].mxu0 }
 0x4a0   :  { %4370 = vmatmul.mubr.bf16.gmra.mrb[24].mxu1 %v3086_v33 }
 0x4a1   :  { %3785 = vmatmul.mubr.bf16.gmra.mrb[48].mxu0 %v2984_v15  ;;  %4377 = vmatprep.mubr.bf16.mxu1 %v3092_v30  ;;  %v3024_v30 = vld [vmem:[#allocation3 + $0x578] sm:$0xff]  ;;  %v3030_v15 = vld [vmem:[#allocation3 + $0x5a8] sm:$0xff] }
 0x4a2   :  { %3792 = vmatprep.mubr.bf16.mxu0 %v2990_v45 }
 0x4a4   :  { %v9807_v34 = vpop.f32.mrb[200].mxu0 }
 0x4a5   :  { %v3580_v4 = vpop.f32.mrb[201].mxu0 }
 0x4a6   :  { %v9809_v37 = vpop.f32.mrb[202].mxu0 }
 0x4a7   :  { %v3583_v6 = vpop.f32.mrb[203].mxu0 }
 0x4a8   :  { %4378 = vmatmul.mubr.bf16.gmra.mrb[28].mxu1 %v3091_v58  ;;  %v3029_v58 = vld [vmem:[#allocation3 + $0x5a0] sm:$0xff]  ;;  %v3035_v6 = vld [vmem:[#allocation3 + $0x5d0] sm:$0xff] }
 0x4a9   :  { %3793 = vmatmul.mubr.bf16.gmra.mrb[52].mxu0 %v2989_v16  ;;  %7050 = vmatprep.mubr.msk.bf16.mxu1 %vm7902_vm0, %v10668_v9 }
 0x4aa   :  { %3800 = vmatprep.mubr.bf16.mxu0 %v2995_v31 }
 0x4ac   :  { %v9813_v48 = vpop.f32.mrb[204].mxu0 }
 0x4ad   :  { %v3588_v43 = vpop.f32.mrb[205].mxu0 }
 0x4ae   :  { %v9815_v54 = vpop.f32.mrb[206].mxu0 }
 0x4af   :  { %v3591_v59 = vpop.f32.mrb[207].mxu0 }
 0x4b0   :  { %7051 = vmatmul.mubr.msk.bf16.vlgmr.msra.gmra.mrb[32].mxu1 %vm37_vm2, %v2853_v18  ;;  %v2893_v18 = vld [vmem:[#allocation3 + $0x160] sm:$0xff]  ;;  %v3034_v59 = vld [vmem:[#allocation3 + $0x5c8] sm:$0xff] }
 0x4b1   :  { %3801 = vmatmul.mubr.bf16.gmra.mrb[56].mxu0 %v2994_v46  ;;  %7054 = vmatprep.mubr.msk.bf16.mxu1 %vm7902_vm0, %v10668_v9 }
 0x4b2   :  { %3808 = vmatprep.mubr.bf16.mxu0 %v3000_v1 }
 0x4b4   :  { %v9820_v19 = vpop.f32.mrb[208].mxu0 }
 0x4b5   :  { %v3596_v50 = vpop.f32.mrb[209].mxu0 }
 0x4b6   :  { %v9822_v36 = vpop.f32.mrb[210].mxu0  ;;  %v3040_v50 = vld [vmem:[#allocation3 + $0x5f8] sm:$0xff] }
 0x4b7   :  { %v3599_v2 = vpop.f32.mrb[211].mxu0 }
 0x4b8   :  { %7055 = vmatmul.mubr.msk.bf16.gmra.mrb[36].mxu1 %vm37_vm2, %v2858_v38  ;;  %v7800_v38 = vld [vmem:[%s10562_s5 + $0x50] sm:$0xff]  }
 0x4b9   :  { %3809 = vmatmul.mubr.bf16.gmra.mrb[60].mxu0 %v2999_v11  ;;  %7058 = vmatprep.mubr.msk.bf16.mxu1 %vm7902_vm0, %v10668_v9  ;;  %v7801_v11 = vld [vmem:[%s10562_s5 + $0x10] sm:$0xff]  }
 0x4ba   :  { %3816 = vmatprep.mubr.bf16.mxu0 %v3005_v28  ;;  %6708 = vmatprep.subr.bf16.mxu0 %v7800_v38 }
 0x4bb   :  { %6709 = vmatpush3.bf16.msra.mxu0 %v7801_v11 }
 0x4bc   :  { %v9827_v25 = vpop.f32.mrb[212].mxu0 }
 0x4bd   :  { %v3604_v7 = vpop.f32.mrb[213].mxu0 }
 0x4be   :  { %v9829_v63 = vpop.f32.mrb[214].mxu0 }
 0x4bf   :  { %v3607_v0 = vpop.f32.mrb[215].mxu0 }
 0x4c0   :  { %7059 = vmatmul.mubr.msk.bf16.gmra.mrb[40].mxu1 %vm37_vm2, %v2863_v29  ;;  %v3039_v0 = vld [vmem:[#allocation3 + $0x5f0] sm:$0xff] }
 0x4c1   :  { %3817 = vmatmul.mubr.bf16.gmra.mrb[64].mxu0 %v3004_v3  ;;  %7062 = vmatprep.mubr.msk.bf16.mxu1 %vm7902_vm0, %v10668_v9  ;;  %v2898_v3 = vld [vmem:[#allocation3 + $0x188] sm:$0xff] }
 0x4c2   :  { %3824 = vmatprep.mubr.bf16.mxu0 %v3010_v60  ;;  %v3045_v60 = vld [vmem:[#allocation3 + $0x620] sm:$0xff] }
 0x4c4   :  { %v3610_v5 = vpop.f32.mrb[216].mxu0 }
 0x4c5   :  { %v3612_v24 = vpop.f32.mrb[217].mxu0 }
 0x4c6   :  { %v3613_v49 = vpop.f32.mrb[218].mxu0 }
 0x4c7   :  { %v3615_v27 = vpop.f32.mrb[219].mxu0 }
 0x4c8   :  { %7063 = vmatmul.mubr.msk.bf16.gmra.mrb[44].mxu1 %vm37_vm2, %v2868_v47  ;;  %v3044_v27 = vld [vmem:[#allocation3 + $0x618] sm:$0xff] }
 0x4c9   :  { %3825 = vmatmul.mubr.bf16.gmra.mrb[68].mxu0 %v3009_v40  ;;  %7066 = vmatprep.mubr.msk.bf16.mxu1 %vm7902_vm0, %v10668_v9  ;;  %v2903_v40 = vld [vmem:[#allocation3 + $0x1b0] sm:$0xff] }
 0x4ca   :  { %3832 = vmatprep.mubr.bf16.mxu0 %v3015_v35  ;;  %v3050_v35 = vld [vmem:[#allocation3 + $0x648] sm:$0xff] }
 0x4cc   :  { %v3618_v22 = vpop.f32.mrb[220].mxu0 }
 0x4cd   :  { %v3620_v57 = vpop.f32.mrb[221].mxu0 }
 0x4ce   :  { %v3621_v12 = vpop.f32.mrb[222].mxu0 }
 0x4cf   :  { %v3623_v14 = vpop.f32.mrb[223].mxu0  ;;  %v3049_v12 = vld [vmem:[#allocation3 + $0x640] sm:$0xff] }
 0x4d0   :  { %7067 = vmatmul.mubr.msk.bf16.gmra.mrb[48].mxu1 %vm37_vm2, %v2873_v32  ;;  %v2908_v32 = vld [vmem:[#allocation3 + $0x1d8] sm:$0xff] }
 0x4d1   :  { %3833 = vmatmul.mubr.bf16.gmra.mrb[72].mxu0 %v3014_v52  ;;  %7070 = vmatprep.mubr.msk.bf16.mxu1 %vm7902_vm0, %v10668_v9 }
 0x4d2   :  { %3840 = vmatprep.mubr.bf16.mxu0 %v3020_v26 }
 0x4d4   :  { %v9846_v62 = vpop.f32.mrb[224].mxu0 }
 0x4d5   :  { %v3628_v51 = vpop.f32.mrb[225].mxu0 }
 0x4d6   :  { %v9848_v53 = vpop.f32.mrb[226].mxu0 }
 0x4d7   :  { %v3631_v13 = vpop.f32.mrb[227].mxu0 }
 0x4d8   :  { %7071 = vmatmul.mubr.msk.bf16.gmra.mrb[52].mxu1 %vm37_vm2, %v2878_v17  ;;  %v2913_v17 = vld [vmem:[#allocation3 + $0x200] sm:$0xff] }
 0x4d9   :  { %3841 = vmatmul.mubr.bf16.gmra.mrb[76].mxu0 %v3019_v10  ;;  %7074 = vmatprep.mubr.msk.bf16.mxu1 %vm7902_vm0, %v10668_v9 }
 0x4da   :  { %3848 = vmatprep.mubr.bf16.mxu0 %v3025_v61 }
 0x4dc   :  { %v9853_v21 = vpop.f32.mrb[228].mxu0 }
 0x4dd   :  { %v3636_v41 = vpop.f32.mrb[229].mxu0 }
 0x4de   :  { %v9855_v33 = vpop.f32.mrb[230].mxu0 }
 0x4df   :  { %v3639_v44 = vpop.f32.mrb[231].mxu0 }
 0x4e0   :  { %7075 = vmatmul.mubr.msk.bf16.gmra.mrb[56].mxu1 %vm37_vm2, %v2883_v20  ;;  %v2918_v20 = vld [vmem:[#allocation3 + $0x228] sm:$0xff]  ;;  %v7802_v44 = vld [vmem:[%s10562_s5 + $0x58] sm:$0xff]  }
 0x4e1   :  { %3849 = vmatmul.mubr.bf16.gmra.mrb[80].mxu0 %v3024_v30  ;;  %7078 = vmatprep.mubr.msk.bf16.mxu1 %vm7902_vm0, %v10668_v9 }
 0x4e2   :  { %3856 = vmatprep.mubr.bf16.mxu0 %v3030_v15  ;;  %6710 = vmatprep.subr.bf16.mxu0 %v7802_v44 }
 0x4e4   :  { %v9860_v45 = vpop.f32.mrb[232].mxu0 }
 0x4e5   :  { %v3644_v55 = vpop.f32.mrb[233].mxu0 }
 0x4e6   :  { %v9862_v4 = vpop.f32.mrb[234].mxu0 }
 0x4e7   :  { %v3647_v16 = vpop.f32.mrb[235].mxu0 }
 0x4e8   :  { %7079 = vmatmul.mubr.msk.bf16.gmra.mrb[60].mxu1 %vm37_vm2, %v2888_v39  ;;  %v7803_v39 = vld [vmem:[%s10562_s5 + $0x18] sm:$0xff]  }
 0x4e9   :  { %3857 = vmatmul.mubr.bf16.gmra.mrb[84].mxu0 %v3029_v58  ;;  %7082 = vmatprep.mubr.msk.bf16.mxu1 %vm7902_vm0, %v10668_v9  ;;  %v2923_v16 = vld [vmem:[#allocation3 + $0x250] sm:$0xff] }
 0x4ea   :  { %3864 = vmatprep.mubr.bf16.mxu0 %v3035_v6  ;;  %6711 = vmatpush3.bf16.msra.mxu0 %v7803_v39  ;;  %v2953_v39 = vld [vmem:[#allocation3 + $0x340] sm:$0xff] }
 0x4ec   :  { %v9867_v31 = vpop.f32.mrb[236].mxu0 }
 0x4ed   :  { %v3652_v43 = vpop.f32.mrb[237].mxu0 }
 0x4ee   :  { %v9869_v46 = vpop.f32.mrb[238].mxu0 }
 0x4ef   :  { %v3655_v1 = vpop.f32.mrb[239].mxu0 }
 0x4f0   :  { %7083 = vmatmul.mubr.msk.bf16.gmra.mrb[64].mxu1 %vm37_vm2, %v2893_v18  ;;  %v2928_v1 = vld [vmem:[#allocation3 + $0x278] sm:$0xff] }
 0x4f1   :  { %3865 = vmatmul.mubr.bf16.gmra.mrb[88].mxu0 %v3034_v59  ;;  %7086 = vmatprep.mubr.msk.bf16.mxu1 %vm7902_vm0, %v10668_v9 }
 0x4f2   :  { %3872 = vmatprep.mubr.bf16.mxu0 %v3040_v50 }
 0x4f4   :  { %v9880_v2 = vpop.f32.mrb[240].mxu0 }
 0x4f5   :  { %v3660_v28 = vpop.f32.mrb[241].mxu0 }
 0x4f6   :  { %v9882_v7 = vpop.f32.mrb[242].mxu0 }
 0x4f7   :  { %v3663_v29 = vpop.f32.mrb[243].mxu0 }
 0x4f8   :  { %7087 = vmatmul.mubr.msk.bf16.gmra.mrb[68].mxu1 %vm37_vm2, %v2898_v3  ;;  %v2933_v29 = vld [vmem:[#allocation3 + $0x2a0] sm:$0xff] }
 0x4f9   :  { %3873 = vmatmul.mubr.bf16.gmra.mrb[92].mxu0 %v3039_v0  ;;  %7090 = vmatprep.mubr.msk.bf16.mxu1 %vm7902_vm0, %v10668_v9 }
 0x4fa   :  { %3880 = vmatprep.mubr.bf16.mxu0 %v3045_v60 }
 0x4fc   :  { %v3666_v5 = vpop.f32.mrb[244].mxu0 }
 0x4fd   :  { %v3668_v24 = vpop.f32.mrb[245].mxu0 }
 0x4fe   :  { %v3669_v47 = vpop.f32.mrb[246].mxu0  ;;  %v2938_v24 = vld [vmem:[#allocation3 + $0x2c8] sm:$0xff] }
 0x4ff   :  { %v3671_v49 = vpop.f32.mrb[247].mxu0  ;;  %v2784_v47 = vld [vmem:[#allocation2 + $0x188] sm:$0xff] }
 0x500   :  { %7091 = vmatmul.mubr.msk.bf16.gmra.mrb[72].mxu1 %vm37_vm2, %v2903_v40  ;;  %2833 = vst.msk [vmem:[#allocation3 + $0x548] sm:$0xff] %vm37_vm2, %v2784_v47 }
 0x501   :  { %3881 = vmatmul.mubr.bf16.gmra.mrb[96].mxu0 %v3044_v27  ;;  %7094 = vmatprep.mubr.msk.bf16.mxu1 %vm7902_vm0, %v10668_v9 }
 0x502   :  { %3888 = vmatprep.mubr.bf16.mxu0 %v3050_v35 }
 0x504   :  { %v3674_v23 = vpop.f32.mrb[248].mxu0 }
 0x505   :  { %v3676_v56 = vpop.f32.mrb[249].mxu0  ;;  %v2943_v23 = vld [vmem:[#allocation3 + $0x2f0] sm:$0xff] }
 0x506   :  { %v3677_v22 = vpop.f32.mrb[250].mxu0  ;;  %v2785_v56 = vld [vmem:[#allocation2 + $0x190] sm:$0xff] }
 0x507   :  { %v3679_v57 = vpop.f32.mrb[251].mxu0  ;;  %2834 = vst.msk [vmem:[#allocation3 + $0x570] sm:$0xff] %vm37_vm2, %v2785_v56 }
 0x508   :  { %7095 = vmatmul.mubr.msk.bf16.gmra.mrb[76].mxu1 %vm37_vm2, %v2908_v32 }
 0x509   :  { %3889 = vmatmul.mubr.bf16.gmra.mrb[100].mxu0 %v3049_v12  ;;  %7098 = vmatprep.mubr.msk.bf16.mxu1 %vm7902_vm0, %v10668_v9  ;;  %v7804_v12 = vld [vmem:[%s10562_s5 + $0x60] sm:$0xff]  }
 0x50a   :  { %6712 = vmatprep.subr.bf16.mxu0 %v7804_v12 }
 0x50c   :  { %v9893_v52 = vpop.f32.mrb[252].mxu0 }
 0x50d   :  { %v3684_v14 = vpop.f32.mrb[253].mxu0 }
 0x50e   :  { %v9895_v26 = vpop.f32.mrb[254].mxu0  ;;  %v7805_v14 = vld [vmem:[%s10562_s5 + $0x20] sm:$0xff]  }
 0x50f   :  { %v3687_v51 = vpop.f32.mrb[255].mxu0  ;;  %6713 = vmatpush3.bf16.msra.mxu0 %v7805_v14  ;;  %v7806_v14 = vld [vmem:[%s10562_s5 + $0x68] sm:$0xff]  }
 0x510   :  { %7099 = vmatmul.mubr.msk.bf16.gmra.mrb[80].mxu1 %vm37_vm2, %v2913_v17  ;;  %v2948_v17 = vld [vmem:[#allocation3 + $0x318] sm:$0xff]  ;;  %6714 = vmatprep.subr.bf16.mxu0 %v7806_v14 }
 0x511   :  { %7102 = vmatprep.mubr.msk.bf16.mxu1 %vm7902_vm0, %v10668_v9 }
 0x514   :  { %v9900_v10 = vpop.f32.mrb[0].mxu0 }
 0x515   :  { %v3692_v13 = vpop.f32.mrb[1].mxu0 }
 0x516   :  { %v9902_v61 = vpop.f32.mrb[2].mxu0  ;;  %v2786_v13 = vld [vmem:[#allocation2 + $0x198] sm:$0xff] }
 0x517   :  { %v3695_v41 = vpop.f32.mrb[3].mxu0  ;;  %2835 = vst.msk [vmem:[#allocation3 + $0x598] sm:$0xff] %vm37_vm2, %v2786_v13  ;;  %v2791_v13 = vld [vmem:[#allocation2 + $0x1c0] sm:$0xff] }
 0x518   :  { %7103 = vmatmul.mubr.msk.bf16.gmra.mrb[84].mxu1 %vm37_vm2, %v2918_v20  ;;  %2840 = vst.msk [vmem:[#allocation3 + $0x660] sm:$0xff] %vm37_vm2, %v2791_v13 }
 0x519   :  { %7106 = vmatprep.mubr.msk.bf16.mxu1 %vm7902_vm0, %v10668_v9 }
 0x51c   :  { %v9907_v30 = vpop.f32.mrb[4].mxu0 }
 0x51d   :  { %v3700_v15 = vpop.f32.mrb[5].mxu0 }
 0x51e   :  { %v9912_v55 = vpop.f32.mrb[6].mxu0 }
 0x51f   :  { %v3703_v58 = vpop.f32.mrb[7].mxu0 }
 0x520   :  { %7107 = vmatmul.mubr.msk.bf16.gmra.mrb[88].mxu1 %vm37_vm2, %v2923_v16  ;;  %v2787_v58 = vld [vmem:[#allocation2 + $0x1a0] sm:$0xff] }
 0x521   :  { %7110 = vmatprep.mubr.msk.bf16.mxu1 %vm7902_vm0, %v10668_v9  ;;  %2836 = vst.msk [vmem:[#allocation3 + $0x5c0] sm:$0xff] %vm37_vm2, %v2787_v58 }
 0x524   :  { %v9920_v6 = vpop.f32.mrb[8].mxu0 }
 0x525   :  { %v3708_v43 = vpop.f32.mrb[9].mxu0 }
 0x526   :  { %v9922_v18 = vpop.f32.mrb[10].mxu0 }
 0x527   :  { %v3711_v59 = vpop.f32.mrb[11].mxu0 }
 0x528   :  { %7111 = vmatmul.mubr.msk.bf16.gmra.mrb[92].mxu1 %vm37_vm2, %v2928_v1 }
 0x529   :  { %7114 = vmatprep.mubr.msk.bf16.mxu1 %vm7902_vm0, %v10668_v9 }
 0x52c   :  { %v9927_v50 = vpop.f32.mrb[12].mxu0 }
 0x52d   :  { %v3716_v38 = vpop.f32.mrb[13].mxu0 }
 0x52e   :  { %v9929_v11 = vpop.f32.mrb[14].mxu0  ;;  %v2958_v38 = vld [vmem:[#allocation3 + $0x368] sm:$0xff] }
 0x52f   :  { %v3719_v28 = vpop.f32.mrb[15].mxu0 }
 0x530   :  { %7115 = vmatmul.mubr.msk.bf16.gmra.mrb[96].mxu1 %vm37_vm2, %v2933_v29  ;;  %v2788_v28 = vld [vmem:[#allocation2 + $0x1a8] sm:$0xff] }
 0x531   :  { %7118 = vmatprep.mubr.msk.bf16.mxu1 %vm7902_vm0, %v10668_v9  ;;  %2837 = vst.msk [vmem:[#allocation3 + $0x5e8] sm:$0xff] %vm37_vm2, %v2788_v28 }
 0x534   :  { %v3722_v3 = vpop.f32.mrb[16].mxu0 }
 0x535   :  { %v3724_v0 = vpop.f32.mrb[17].mxu0 }
 0x536   :  { %v3725_v60 = vpop.f32.mrb[18].mxu0 }
 0x537   :  { %v3727_v5 = vpop.f32.mrb[19].mxu0 }
 0x538   :  { %7119 = vmatmul.mubr.msk.bf16.gmra.mrb[100].mxu1 %vm37_vm2, %v2938_v24  ;;  %v2963_v5 = vld [vmem:[#allocation3 + $0x390] sm:$0xff]  ;;  %v2789_v24 = vld [vmem:[#allocation2 + $0x1b0] sm:$0xff] }
 0x539   :  { %7122 = vmatprep.mubr.msk.bf16.mxu1 %vm7902_vm0, %v10668_v9  ;;  %2838 = vst.msk [vmem:[#allocation3 + $0x610] sm:$0xff] %vm37_vm2, %v2789_v24 }
 0x53c   :  { %v3730_v49 = vpop.f32.mrb[20].mxu0 }
 0x53d   :  { %v3732_v40 = vpop.f32.mrb[21].mxu0 }
 0x53e   :  { %v3733_v27 = vpop.f32.mrb[22].mxu0 }
 0x53f   :  { %v3735_v35 = vpop.f32.mrb[23].mxu0 }
 0x540   :  { %7123 = vmatmul.mubr.msk.bf16.gmra.mrb[104].mxu1 %vm37_vm2, %v2943_v23  ;;  %v2968_v35 = vld [vmem:[#allocation3 + $0x3b8] sm:$0xff]  ;;  %v2790_v23 = vld [vmem:[#allocation2 + $0x1b8] sm:$0xff] }
 0x541   :  { %7126 = vmatprep.mubr.msk.bf16.mxu1 %vm7902_vm0, %v10668_v9  ;;  %2839 = vst.msk [vmem:[#allocation3 + $0x638] sm:$0xff] %vm37_vm2, %v2790_v23 }
 0x544   :  { %v9942_v22 = vpop.f32.mrb[24].mxu0 }
 0x545   :  { %v3740_v57 = vpop.f32.mrb[25].mxu0 }
 0x546   :  { %v9944_v32 = vpop.f32.mrb[26].mxu0 }
 0x547   :  { %v3743_v51 = vpop.f32.mrb[27].mxu0 }
 0x548   :  { %7127 = vmatmul.mubr.msk.bf16.gmra.mrb[108].mxu1 %vm37_vm2, %v2948_v17  ;;  %v2973_v17 = vld [vmem:[#allocation3 + $0x3e0] sm:$0xff] }
 0x549   :  { %7130 = vmatprep.mubr.msk.bf16.mxu1 %vm7902_vm0, %v10668_v9 }
 0x54c   :  { %v9956_v41 = vpop.f32.mrb[28].mxu0 }
 0x54d   :  { %v3748_v20 = vpop.f32.mrb[29].mxu0 }
 0x54e   :  { %v9958_v44 = vpop.f32.mrb[30].mxu0 }
 0x54f   :  { %v3751_v15 = vpop.f32.mrb[31].mxu0 }
 0x550   :  { %7131 = vmatmul.mubr.msk.bf16.gmra.mrb[112].mxu1 %vm37_vm2, %v2953_v39  ;;  %v7807_v15 = vld [vmem:[%s10562_s5 + $0x28] sm:$0xff]  }
 0x551   :  { %7134 = vmatprep.mubr.msk.bf16.mxu1 %vm7902_vm0, %v10668_v9  ;;  %6715 = vmatpush3.bf16.msra.mxu0 %v7807_v15 }
 0x554   :  { %v9964_v16 = vpop.f32.mrb[32].mxu0 }
 0x555   :  { %v3756_v43 = vpop.f32.mrb[33].mxu0 }
 0x556   :  { %v9966_v59 = vpop.f32.mrb[34].mxu0 }
 0x557   :  { %v3759_v1 = vpop.f32.mrb[35].mxu0 }
 0x558   :  { %7135 = vmatmul.mubr.msk.bf16.gmra.mrb[116].mxu1 %vm37_vm2, %v2958_v38  ;;  %v2978_v1 = vld [vmem:[#allocation3 + $0x408] sm:$0xff]  ;;  %v2792_v38 = vld [vmem:[#allocation2 + $0x1c8] sm:$0xff] }
 0x559   :  { %7138 = vmatprep.mubr.msk.bf16.mxu1 %vm7902_vm0, %v10668_v9  ;;  %2841 = vst.msk [vmem:[#allocation3 + $0x688] sm:$0xff] %vm37_vm2, %v2792_v38  ;;  %v2794_v38 = vld [vmem:[#allocation2 + $0x1d8] sm:$0xff] }
 0x55a   :  { %2843 = vst.msk [vmem:[#allocation3 + $0x6d8] sm:$0xff] %vm37_vm2, %v2794_v38 }
 0x55c   :  { %v9972_v29 = vpop.f32.mrb[36].mxu0 }
 0x55d   :  { %v3764_v3 = vpop.f32.mrb[37].mxu0 }
 0x55e   :  { %v9974_v0 = vpop.f32.mrb[38].mxu0 }
 0x55f   :  { %v3767_v60 = vpop.f32.mrb[39].mxu0 }
 0x560   :  { %7139 = vmatmul.mubr.msk.bf16.gmra.mrb[120].mxu1 %vm37_vm2, %v2963_v5  ;;  %v10009_v5 = vld [vmem:[%s10563_s4] ss:$0 sm:$0xff] }
 0x561   :  { %7142 = vmatprep.mubr.msk.bf16.mxu1 %vm7902_vm0, %v10668_v9 }
 0x564   :  { %v9980_v47 = vpop.f32.mrb[40].mxu0 }
 0x565   :  { %v3772_v49 = vpop.f32.mrb[41].mxu0 }
 0x566   :  { %v9982_v40 = vpop.f32.mrb[42].mxu0  ;;  %v2983_v49 = vld [vmem:[#allocation3 + $0x430] sm:$0xff] }
 0x567   :  { %v3775_v27 = vpop.f32.mrb[43].mxu0 }
 0x568   :  { %7143 = vmatmul.mubr.msk.bf16.gmra.mrb[124].mxu1 %vm37_vm2, %v2968_v35  ;;  %v3571_v27 = vadd.f32 %v10009_v5, %v9797_v42  ;;  %v2793_v35 = vld [vmem:[#allocation2 + $0x1d0] sm:$0xff] }
 0x569   :  { %7146 = vmatprep.mubr.msk.bf16.mxu1 %vm7902_vm0, %v10668_v9  ;;  %2842 = vst.msk [vmem:[#allocation3 + $0x6b0] sm:$0xff] %vm37_vm2, %v2793_v35 }
 0x56c   :  { %v3778_v56 = vpop.f32.mrb[44].mxu0 }
 0x56d   :  { %v3780_v57 = vpop.f32.mrb[45].mxu0  ;;  %v3574_v56 = vadd.f32 %v10009_v5, %v9799_v8  ;;  %v3579_v8 = vadd.f32 %v10009_v5, %v9807_v34 }
 0x56e   :  { %v3781_v12 = vpop.f32.mrb[46].mxu0 }
 0x56f   :  { %v3783_v51 = vpop.f32.mrb[47].mxu0 }
 0x570   :  { %7147 = vmatmul.mubr.msk.bf16.gmra.mrb[128].mxu1 %vm37_vm2, %v2973_v17 }
 0x571   :  { %7150 = vmatprep.mubr.msk.bf16.mxu1 %vm7902_vm0, %v10668_v9 }
 0x574   :  { %v3786_v20 = vpop.f32.mrb[48].mxu0 }
 0x575   :  { %v3788_v39 = vpop.f32.mrb[49].mxu0 }
 0x576   :  { %v3789_v58 = vpop.f32.mrb[50].mxu0 }
 0x577   :  { %v3791_v43 = vpop.f32.mrb[51].mxu0  ;;  %v2988_v58 = vld [vmem:[#allocation3 + $0x458] sm:$0xff] }
 0x578   :  { %7151 = vmatmul.mubr.msk.bf16.gmra.mrb[132].mxu1 %vm37_vm2, %v2978_v1 }
 0x579   :  { %7154 = vmatprep.mubr.msk.bf16.mxu1 %vm7902_vm0, %v10668_v9 }
 0x57c   :  { %v10002_v28 = vpop.f32.mrb[52].mxu0 }
 0x57d   :  { %v3796_v3 = vpop.f32.mrb[53].mxu0 }
 0x57e   :  { %v10004_v60 = vpop.f32.mrb[54].mxu0 }
 0x57f   :  { %v3799_v24 = vpop.f32.mrb[55].mxu0 }
 0x580   :  { %7155 = vmatmul.mubr.msk.bf16.gmra.mrb[136].mxu1 %vm37_vm2, %v2983_v49  ;;  %v3582_v24 = vadd.f32 %v10009_v5, %v9809_v37  ;;  %v3587_v37 = vadd.f32 %v10009_v5, %v9813_v48 }
 0x581   :  { %7158 = vmatprep.mubr.msk.bf16.mxu1 %vm7902_vm0, %v10668_v9 }
 0x583   :  { %v4420_v23 = vpop.f32.mrb[32].mxu1 }
 0x584   :  { %v7299_v57 = vadd.f32 %v4420_v23, %v3571_v27  ;;  %v10019_v12 = vpop.f32.mrb[56].mxu0  ;;  %v7052_v14 = vpop.f32.mrb[33].mxu1 }
 0x585   :  { %v3804_v51 = vpop.f32.mrb[57].mxu0  ;;  %v4423_v17 = vpop.f32.mrb[34].mxu1 }
 0x586   :  { %v7301_v13 = vadd.f32 %v4423_v17, %v3574_v56  ;;  %v10021_v20 = vpop.f32.mrb[58].mxu0  ;;  %v7053_v15 = vpop.f32.mrb[35].mxu1  ;;  %v4811_v42 = vmax.f32 %v7299_v57, 0.0  ;;  %v2993_v17 = vld [vmem:[#allocation3 + $0x480] sm:$0xff] }
 0x587   :  { %v3807_v39 = vpop.f32.mrb[59].mxu0 }
 0x588   :  { %v4812_v43 = vmax.f32 %v7301_v13, 0.0  ;;  %7159 = vmatmul.mubr.msk.bf16.gmra.mrb[140].mxu1 %vm37_vm2, %v2988_v58  ;;  %v2795_v58 = vld [vmem:[#allocation2 + $0x1e0] sm:$0xff] }
 0x589   :  { %7162 = vmatprep.mubr.msk.bf16.mxu1 %vm7902_vm0, %v10668_v9  ;;  %2844 = vst.msk [vmem:[#allocation3 + $0x700] sm:$0xff] %vm37_vm2, %v2795_v58 }
 0x58a   :  { %v4909_v1 = vpack.c.bf16 %v4812_v43, %v4811_v42 }
 0x58b   :  { %v4428_v3 = vpop.f32.mrb[36].mxu1 }
 0x58c   :  { %4958 = vst.msk [vmem:[#allocation4] sm:$0xff] %vm37_vm2, %v4909_v1  ;;  %v7303_v49 = vadd.f32 %v4428_v3, %v3579_v8  ;;  %v10032_v27 = vpop.f32.mrb[60].mxu0  ;;  %v7056_v35 = vpop.f32.mrb[37].mxu1  ;;  %v3590_v8 = vadd.f32 %v10009_v5, %v9815_v54  ;;  %v3595_v54 = vadd.f32 %v10009_v5, %v9820_v19  ;;  %v7808_v19 = vld [vmem:[%s10562_s5 + $0x70] sm:$0xff]  }
 0x58d   :  { %v3812_v23 = vpop.f32.mrb[61].mxu0  ;;  %v4431_v56 = vpop.f32.mrb[38].mxu1  ;;  %6716 = vmatprep.subr.bf16.mxu0 %v7808_v19 }
 0x58e   :  { %v7305_v57 = vadd.f32 %v4431_v56, %v3582_v24  ;;  %v10034_v14 = vpop.f32.mrb[62].mxu0  ;;  %v7057_v34 = vpop.f32.mrb[39].mxu1  ;;  %v4813_v13 = vmax.f32 %v7303_v49, 0.0 }
 0x58f   :  { %v3815_v51 = vpop.f32.mrb[63].mxu0 }
 0x590   :  { %v4814_v15 = vmax.f32 %v7305_v57, 0.0  ;;  %7163 = vmatmul.mubr.msk.bf16.gmra.mrb[144].mxu1 %vm37_vm2, %v2993_v17  ;;  %v2998_v57 = vld [vmem:[#allocation3 + $0x4a8] sm:$0xff] }
 0x591   :  { %7166 = vmatprep.mubr.msk.bf16.mxu1 %vm7902_vm0, %v10668_v9 }
 0x592   :  { %v4910_v39 = vpack.c.bf16 %v4814_v15, %v4813_v13  ;;  %v2796_v13 = vld [vmem:[#allocation2 + $0x1e8] sm:$0xff] }
 0x593   :  { %v4436_v42 = vpop.f32.mrb[40].mxu1  ;;  %v5007_v43 = vld [vmem:[#allocation4] sm:$0xff]  ;;  %2845 = vst.msk [vmem:[#allocation3 + $0x728] sm:$0xff] %vm37_vm2, %v2796_v13 }
 0x594   :  { %4959 = vst.msk [vmem:[#allocation4 + $0x8] sm:$0xff] %vm37_vm2, %v4910_v39  ;;  %v7307_v1 = vadd.f32 %v4436_v42, %v3587_v37  ;;  %v10045_v38 = vpop.f32.mrb[64].mxu0  ;;  %v7060_v3 = vpop.f32.mrb[41].mxu1  ;;  %5008 = vst.msk [vmem:[#allocation5] sm:$0xff] %vm37_vm2, %v5007_v43  ;;  %v3598_v39 = vadd.f32 %v10009_v5, %v9822_v36 }
 0x595   :  { %v3820_v24 = vpop.f32.mrb[65].mxu0  ;;  %v4439_v49 = vpop.f32.mrb[42].mxu1 }
 0x596   :  { %v7309_v48 = vadd.f32 %v4439_v49, %v3590_v8  ;;  %v10048_v35 = vpop.f32.mrb[66].mxu0  ;;  %v7061_v23 = vpop.f32.mrb[43].mxu1  ;;  %v4815_v34 = vmax.f32 %v7307_v1, 0.0  ;;  %v7809_v8 = vld [vmem:[%s10562_s5 + $0x30] sm:$0xff]  }
 0x597   :  { %v3823_v56 = vpop.f32.mrb[67].mxu0  ;;  %v3003_v23 = vld [vmem:[#allocation3 + $0x4d0] sm:$0xff]  ;;  %6717 = vmatpush3.bf16.msra.mxu0 %v7809_v8 }
 0x598   :  { %v4816_v51 = vmax.f32 %v7309_v48, 0.0  ;;  %7167 = vmatmul.mubr.msk.bf16.gmra.mrb[148].mxu1 %vm37_vm2, %v2998_v57 }
 0x599   :  { %7170 = vmatprep.mubr.msk.bf16.mxu1 %vm7902_vm0, %v10668_v9 }
 0x59a   :  { %v4911_v17 = vpack.c.bf16 %v4816_v51, %v4815_v34  ;;  %v3603_v34 = vadd.f32 %v10009_v5, %v9827_v25 }
 0x59b   :  { %v4444_v15 = vpop.f32.mrb[44].mxu1  ;;  %v5009_v37 = vld [vmem:[#allocation4 + $0x8] sm:$0xff] }
 0x59c   :  { %4960 = vst.msk [vmem:[#allocation4 + $0x10] sm:$0xff] %vm37_vm2, %v4911_v17  ;;  %v7311_v58 = vadd.f32 %v4444_v15, %v3595_v54  ;;  %v10059_v42 = vpop.f32.mrb[68].mxu0  ;;  %v7064_v43 = vpop.f32.mrb[45].mxu1  ;;  %5011 = vrot.lane.b32.xlu1 %v5009_v37, %s7904_s23  ;;  %v2797_v54 = vld [vmem:[#allocation2 + $0x1f0] sm:$0xff]  ;;  %v3606_v15 = vadd.f32 %v10009_v5, %v9829_v63 }
 0x59d   :  { %v3828_v1 = vpop.f32.mrb[69].mxu0  ;;  %v4447_v3 = vpop.f32.mrb[46].mxu1  ;;  %2846 = vst.msk [vmem:[#allocation3 + $0x750] sm:$0xff] %vm37_vm2, %v2797_v54 }
 0x59e   :  { %v7313_v24 = vadd.f32 %v4447_v3, %v3598_v39  ;;  %v10068_v36 = vpop.f32.mrb[70].mxu0  ;;  %v7065_v49 = vpop.f32.mrb[47].mxu1  ;;  %v4817_v56 = vmax.f32 %v7311_v58, 0.0  ;;  %v7810_v3 = vld [vmem:[%s10562_s5 + $0x78] sm:$0xff]  }
 0x59f   :  { %v3831_v48 = vpop.f32.mrb[71].mxu0  ;;  %v3008_v49 = vld [vmem:[#allocation3 + $0x4f8] sm:$0xff]  ;;  %6718 = vmatprep.subr.bf16.mxu0 %v7810_v3 }
 0x5a0   :  { %v4818_v57 = vmax.f32 %v7313_v24, 0.0  ;;  %7171 = vmatmul.mubr.msk.bf16.gmra.mrb[152].mxu1 %vm37_vm2, %v3003_v23 }
 0x5a1   :  { %7174 = vmatprep.mubr.msk.bf16.mxu1 %vm7902_vm0, %v10668_v9 }
 0x5a2   :  { %v4912_v51 = vpack.c.bf16 %v4818_v57, %v4817_v56  ;;  %v2798_v56 = vld [vmem:[#allocation2 + $0x1f8] sm:$0xff] }
 0x5a3   :  { %v4452_v17 = vpop.f32.mrb[48].mxu1  ;;  %v5015_v13 = vld [vmem:[#allocation4 + $0x10] sm:$0xff]  ;;  %2847 = vst.msk [vmem:[#allocation3 + $0x778] sm:$0xff] %vm37_vm2, %v2798_v56 }
 0x5a4   :  { %4961 = vst.msk [vmem:[#allocation4 + $0x18] sm:$0xff] %vm37_vm2, %v4912_v51  ;;  %v7315_v37 = vadd.f32 %v4452_v17, %v3603_v34  ;;  %v3834_v39 = vpop.f32.mrb[72].mxu0  ;;  %v7068_v58 = vpop.f32.mrb[49].mxu1  ;;  %5016 = vst.msk [vmem:[#allocation5 + $0x8] sm:$0xff] %vm37_vm2, %v5015_v13  ;;  %v7811_v17 = vld [vmem:[%s10562_s5 + $0x38] sm:$0xff]  }
 0x5a5   :  { %v3836_v43 = vpop.f32.mrb[73].mxu0  ;;  %v4455_v19 = vpop.f32.mrb[50].mxu1  ;;  %6719 = vmatpush3.bf16.msra.mxu0 %v7811_v17 }
 0x5a6   :  { %v7317_v8 = vadd.f32 %v4455_v19, %v3606_v15  ;;  %v3837_v25 = vpop.f32.mrb[74].mxu0  ;;  %v7069_v1 = vpop.f32.mrb[51].mxu1  ;;  %v4819_v48 = vmax.f32 %v7315_v37, 0.0  ;;  %v3013_v43 = vld [vmem:[#allocation3 + $0x520] sm:$0xff]  ;;  %v2799_v19 = vld [vmem:[#allocation2 + $0x200] sm:$0xff] }
 0x5a7   :  { %v3839_v24 = vpop.f32.mrb[75].mxu0  ;;  %2848 = vst.msk [vmem:[#allocation3 + $0x7a0] sm:$0xff] %vm37_vm2, %v2799_v19 }
 0x5a8   :  { %v4820_v63 = vmax.f32 %v7317_v8, 0.0  ;;  %7175 = vmatmul.mubr.msk.bf16.gmra.mrb[156].mxu1 %vm37_vm2, %v3008_v49 }
 0x5a9   :  { %7178 = vmatprep.mubr.msk.bf16.mxu1 %vm7902_vm0, %v10668_v9 }
 0x5aa   :  { %v4913_v23 = vpack.c.bf16 %v4820_v63, %v4819_v48  ;;  %v3018_v48 = vld [vmem:[#allocation3 + $0x548] sm:$0xff] }
 0x5ab   :  { %v4460_v57 = vpop.f32.mrb[52].mxu1  ;;  %v5017_v34 = vld [vmem:[#allocation4 + $0x18] sm:$0xff] }
 0x5ac   :  { %4962 = vst.msk [vmem:[#allocation4 + $0x20] sm:$0xff] %vm37_vm2, %v4913_v23  ;;  %v3842_v51 = vpop.f32.mrb[76].mxu0  ;;  %v7072_v54 = vpop.f32.mrb[53].mxu1  ;;  %5019 = vrot.lane.b32.xlu0 %v5017_v34, %s7904_s23  ;;  %v3627_v57 = vadd.f32 %v10009_v5, %v9846_v62 }
 0x5ad   :  { %v3844_v13 = vpop.f32.mrb[77].mxu0  ;;  %v4463_v15 = vpop.f32.mrb[54].mxu1  ;;  %v3630_v51 = vadd.f32 %v10009_v5, %v9848_v53  ;;  %v3635_v53 = vadd.f32 %v10009_v5, %v9853_v21  ;;  %v3643_v21 = vadd.f32 %v10009_v5, %v9860_v45 }
 0x5ae   :  { %v3845_v37 = vpop.f32.mrb[78].mxu0  ;;  %v7073_v39 = vpop.f32.mrb[55].mxu1  ;;  %v7812_v15 = vld [vmem:[%s10562_s5 + $0xc0] sm:$0xff]  }
 0x5af   :  { %v3847_v58 = vpop.f32.mrb[79].mxu0  ;;  %6726 = vmatprep.subr.bf16.mxu0 %v7812_v15 }
 0x5b0   :  { %7179 = vmatmul.mubr.msk.bf16.gmra.mrb[160].mxu1 %vm37_vm2, %v3013_v43  ;;  %v3023_v58 = vld [vmem:[#allocation3 + $0x570] sm:$0xff] }
 0x5b1   :  { %7182 = vmatprep.mubr.msk.bf16.mxu1 %vm7902_vm0, %v10668_v9 }
 0x5b3   :  { %v4468_v8 = vpop.f32.mrb[56].mxu1  ;;  %v5023_v25 = vld [vmem:[#allocation4 + $0x20] sm:$0xff] }
 0x5b4   :  { %v3850_v1 = vpop.f32.mrb[80].mxu0  ;;  %v7076_v3 = vpop.f32.mrb[57].mxu1  ;;  %5024 = vst.msk [vmem:[#allocation5 + $0x10] sm:$0xff] %vm37_vm2, %v5023_v25 }
 0x5b5   :  { %v3852_v24 = vpop.f32.mrb[81].mxu0  ;;  %v4471_v49 = vpop.f32.mrb[58].mxu1 }
 0x5b6   :  { %v3853_v63 = vpop.f32.mrb[82].mxu0  ;;  %v7077_v23 = vpop.f32.mrb[59].mxu1  ;;  %v3638_v49 = vadd.f32 %v10009_v5, %v9855_v33 }
 0x5b7   :  { %v3855_v56 = vpop.f32.mrb[83].mxu0 }
 0x5b8   :  { %7183 = vmatmul.mubr.msk.bf16.gmra.mrb[164].mxu1 %vm37_vm2, %v3018_v48 }
 0x5b9   :  { %7186 = vmatprep.mubr.msk.bf16.mxu1 %vm7902_vm0, %v10668_v9 }
 0x5bb   :  { %v4476_v34 = vpop.f32.mrb[60].mxu1 }
 0x5bc   :  { %v7327_v54 = vadd.f32 %v4476_v34, %v3627_v57  ;;  %v3858_v17 = vpop.f32.mrb[84].mxu0  ;;  %v7080_v13 = vpop.f32.mrb[61].mxu1  ;;  %v3028_v34 = vld [vmem:[#allocation3 + $0x598] sm:$0xff] }
 0x5bd   :  { %v3860_v37 = vpop.f32.mrb[85].mxu0  ;;  %v4479_v39 = vpop.f32.mrb[62].mxu1 }
 0x5be   :  { %v7329_v43 = vadd.f32 %v4479_v39, %v3630_v51  ;;  %v3861_v19 = vpop.f32.mrb[86].mxu0  ;;  %v7081_v8 = vpop.f32.mrb[63].mxu1  ;;  %v4825_v62 = vmax.f32 %v7327_v54, 0.0 }
 0x5bf   :  { %v3863_v25 = vpop.f32.mrb[87].mxu0 }
 0x5c0   :  { %v4826_v1 = vmax.f32 %v7329_v43, 0.0  ;;  %7187 = vmatmul.mubr.msk.bf16.gmra.mrb[168].mxu1 %vm37_vm2, %v3023_v58  ;;  %v3646_v43 = vadd.f32 %v10009_v5, %v9862_v4  ;;  %v3651_v4 = vadd.f32 %v10009_v5, %v9867_v31 }
 0x5c1   :  { %7190 = vmatprep.mubr.msk.bf16.mxu1 %vm7902_vm0, %v10668_v9 }
 0x5c2   :  { %v4916_v3 = vpack.c.bf16 %v4826_v1, %v4825_v62 }
 0x5c3   :  { %v4484_v24 = vpop.f32.mrb[64].mxu1 }
 0x5c4   :  { %4965 = vst.msk [vmem:[#allocation4 + $0x38] sm:$0xff] %vm37_vm2, %v4916_v3  ;;  %v7331_v48 = vadd.f32 %v4484_v24, %v3635_v53  ;;  %v3866_v63 = vpop.f32.mrb[88].mxu0  ;;  %v7084_v23 = vpop.f32.mrb[65].mxu1  ;;  %v3033_v53 = vld [vmem:[#allocation3 + $0x5c0] sm:$0xff] }
 0x5c5   :  { %v3868_v56 = vpop.f32.mrb[89].mxu0  ;;  %v4487_v57 = vpop.f32.mrb[66].mxu1 }
 0x5c6   :  { %v7333_v51 = vadd.f32 %v4487_v57, %v3638_v49  ;;  %v3869_v54 = vpop.f32.mrb[90].mxu0  ;;  %v7085_v17 = vpop.f32.mrb[67].mxu1  ;;  %v4827_v15 = vmax.f32 %v7331_v48, 0.0 }
 0x5c7   :  { %v3871_v13 = vpop.f32.mrb[91].mxu0 }
 0x5c8   :  { %v4828_v37 = vmax.f32 %v7333_v51, 0.0  ;;  %7191 = vmatmul.mubr.msk.bf16.gmra.mrb[172].mxu1 %vm37_vm2, %v3028_v34  ;;  %v3654_v34 = vadd.f32 %v10009_v5, %v9869_v46  ;;  %v3659_v46 = vadd.f32 %v10009_v5, %v9880_v2 }
 0x5c9   :  { %7194 = vmatprep.mubr.msk.bf16.mxu1 %vm7902_vm0, %v10668_v9 }
 0x5ca   :  { %v4917_v33 = vpack.c.bf16 %v4828_v37, %v4827_v15  ;;  %v3038_v37 = vld [vmem:[#allocation3 + $0x5e8] sm:$0xff] }
 0x5cb   :  { %v4492_v39 = vpop.f32.mrb[68].mxu1  ;;  %v5025_v58 = vld [vmem:[#allocation4 + $0x38] sm:$0xff] }
 0x5cc   :  { %4966 = vst.msk [vmem:[#allocation4 + $0x40] sm:$0xff] %vm37_vm2, %v4917_v33  ;;  %v7335_v19 = vadd.f32 %v4492_v39, %v3643_v21  ;;  %v3874_v8 = vpop.f32.mrb[92].mxu0  ;;  %v7088_v25 = vpop.f32.mrb[69].mxu1  ;;  %5027 = vrot.lane.b32.xlu1 %v5025_v58, %s7904_s23 }
 0x5cd   :  { %v3876_v62 = vpop.f32.mrb[93].mxu0  ;;  %v4495_v1 = vpop.f32.mrb[70].mxu1 }
 0x5ce   :  { %v7337_v3 = vadd.f32 %v4495_v1, %v3646_v43  ;;  %v3877_v24 = vpop.f32.mrb[94].mxu0  ;;  %v7089_v49 = vpop.f32.mrb[71].mxu1  ;;  %v4829_v48 = vmax.f32 %v7335_v19, 0.0  ;;  %v3662_v62 = vadd.f32 %v10009_v5, %v9882_v7 }
 0x5cf   :  { %v3879_v45 = vpop.f32.mrb[95].mxu0 }
 0x5d0   :  { %v4830_v63 = vmax.f32 %v7337_v3, 0.0  ;;  %7195 = vmatmul.mubr.msk.bf16.gmra.mrb[176].mxu1 %vm37_vm2, %v3033_v53  ;;  %v3043_v45 = vld [vmem:[#allocation3 + $0x610] sm:$0xff] }
 0x5d1   :  { %7198 = vmatprep.mubr.msk.bf16.mxu1 %vm7902_vm0, %v10668_v9 }
 0x5d2   :  { %v4918_v23 = vpack.c.bf16 %v4830_v63, %v4829_v48 }
 0x5d3   :  { %v4500_v56 = vpop.f32.mrb[72].mxu1  ;;  %v5031_v57 = vld [vmem:[#allocation4 + $0x40] sm:$0xff] }
 0x5d4   :  { %4967 = vst.msk [vmem:[#allocation4 + $0x48] sm:$0xff] %vm37_vm2, %v4918_v23  ;;  %v7339_v51 = vadd.f32 %v4500_v56, %v3651_v4  ;;  %v3882_v54 = vpop.f32.mrb[96].mxu0  ;;  %v7092_v17 = vpop.f32.mrb[73].mxu1  ;;  %5032 = vst.msk [vmem:[#allocation5 + $0x18] sm:$0xff] %vm37_vm2, %v5031_v57 }
 0x5d5   :  { %v3884_v13 = vpop.f32.mrb[97].mxu0  ;;  %v4503_v15 = vpop.f32.mrb[74].mxu1  ;;  %v3048_v17 = vld [vmem:[#allocation3 + $0x638] sm:$0xff] }
 0x5d6   :  { %v7341_v21 = vadd.f32 %v4503_v15, %v3654_v34  ;;  %v3885_v33 = vpop.f32.mrb[98].mxu0  ;;  %v7093_v39 = vpop.f32.mrb[75].mxu1  ;;  %v4831_v58 = vmax.f32 %v7339_v51, 0.0 }
 0x5d7   :  { %v3887_v31 = vpop.f32.mrb[99].mxu0  ;;  %v3053_v39 = vld [vmem:[#allocation3 + $0x660] sm:$0xff] }
 0x5d8   :  { %v4832_v43 = vmax.f32 %v7341_v21, 0.0  ;;  %7199 = vmatmul.mubr.msk.bf16.gmra.mrb[180].mxu1 %vm37_vm2, %v3038_v37 }
 0x5d9   :  { %7202 = vmatprep.mubr.msk.bf16.mxu1 %vm7902_vm0, %v10668_v9 }
 0x5da   :  { %v4919_v19 = vpack.c.bf16 %v4832_v43, %v4831_v58  ;;  %v3683_v58 = vadd.f32 %v10009_v5, %v9893_v52  ;;  %v3691_v52 = vadd.f32 %v10009_v5, %v9900_v10  ;;  %v3699_v10 = vadd.f32 %v10009_v5, %v9907_v30 }
 0x5db   :  { %v4508_v8 = vpop.f32.mrb[76].mxu1  ;;  %v5033_v25 = vld [vmem:[#allocation4 + $0x48] sm:$0xff]  ;;  %v3707_v30 = vadd.f32 %v10009_v5, %v9920_v6 }
 0x5dc   :  { %4968 = vst.msk [vmem:[#allocation4 + $0x50] sm:$0xff] %vm37_vm2, %v4919_v19  ;;  %v7343_v1 = vadd.f32 %v4508_v8, %v3659_v46  ;;  %v3890_v53 = vpop.f32.mrb[100].mxu0  ;;  %v7096_v3 = vpop.f32.mrb[77].mxu1  ;;  %5035 = vrot.lane.b32.xlu0 %v5033_v25, %s7904_s23  ;;  %v3686_v46 = vadd.f32 %v10009_v5, %v9895_v26  ;;  %v3694_v26 = vadd.f32 %v10009_v5, %v9902_v61 }
 0x5dd   :  { %v3892_v24 = vpop.f32.mrb[101].mxu0  ;;  %v4511_v49 = vpop.f32.mrb[78].mxu1 }
 0x5de   :  { %v7345_v48 = vadd.f32 %v4511_v49, %v3662_v62  ;;  %v3893_v63 = vpop.f32.mrb[102].mxu0  ;;  %v7097_v4 = vpop.f32.mrb[79].mxu1  ;;  %v4833_v23 = vmax.f32 %v7343_v1, 0.0  ;;  %v3058_v62 = vld [vmem:[#allocation3 + $0x688] sm:$0xff] }
 0x5df   :  { %v3895_v2 = vpop.f32.mrb[103].mxu0 }
 0x5e0   :  { %v4834_v56 = vmax.f32 %v7345_v48, 0.0  ;;  %7203 = vmatmul.mubr.msk.bf16.gmra.mrb[184].mxu1 %vm37_vm2, %v3043_v45  ;;  %v3063_v2 = vld [vmem:[#allocation3 + $0x6b0] sm:$0xff] }
 0x5e1   :  { %7206 = vmatprep.mubr.msk.bf16.mxu1 %vm7902_vm0, %v10668_v9 }
 0x5e2   :  { %v4920_v7 = vpack.c.bf16 %v4834_v56, %v4833_v23 }
 0x5e3   :  { %v4516_v57 = vpop.f32.mrb[80].mxu1  ;;  %v5039_v34 = vld [vmem:[#allocation4 + $0x50] sm:$0xff] }
 0x5e4   :  { %4969 = vst.msk [vmem:[#allocation4 + $0x58] sm:$0xff] %vm37_vm2, %v4920_v7  ;;  %v7100_v51 = vpop.f32.mrb[81].mxu1  ;;  %5040 = vst.msk [vmem:[#allocation5 + $0x20] sm:$0xff] %vm37_vm2, %v5039_v34 }
 0x5e5   :  { %v4519_v54 = vpop.f32.mrb[82].mxu1 }
 0x5e6   :  { %v7101_v13 = vpop.f32.mrb[83].mxu1  ;;  %v3702_v54 = vadd.f32 %v10009_v5, %v9912_v55 }
 0x5e8   :  { %7207 = vmatmul.mubr.msk.bf16.gmra.mrb[188].mxu1 %vm37_vm2, %v3048_v17 }
 0x5e9   :  { %7210 = vmatprep.mubr.msk.bf16.mxu1 %vm7902_vm0, %v10668_v9 }
 0x5eb   :  { %v4524_v15 = vpop.f32.mrb[84].mxu1  ;;  %v5041_v37 = vld [vmem:[#allocation4 + $0x58] sm:$0xff] }
 0x5ec   :  { %v7104_v21 = vpop.f32.mrb[85].mxu1  ;;  %5043 = vrot.lane.b32.xlu1 %v5041_v37, %s7904_s23  ;;  %v3068_v37 = vld [vmem:[#allocation3 + $0x6d8] sm:$0xff] }
 0x5ed   :  { %v4527_v33 = vpop.f32.mrb[86].mxu1 }
 0x5ee   :  { %v7105_v31 = vpop.f32.mrb[87].mxu1 }
 0x5f0   :  { %7211 = vmatmul.mubr.msk.bf16.gmra.mrb[192].mxu1 %vm37_vm2, %v3053_v39 }
 0x5f1   :  { %7214 = vmatprep.mubr.msk.bf16.mxu1 %vm7902_vm0, %v10668_v9 }
 0x5f3   :  { %v4532_v43 = vpop.f32.mrb[88].mxu1 }
 0x5f4   :  { %v7355_v19 = vadd.f32 %v4532_v43, %v3683_v58  ;;  %v7108_v8 = vpop.f32.mrb[89].mxu1 }
 0x5f5   :  { %v4535_v25 = vpop.f32.mrb[90].mxu1 }
 0x5f6   :  { %v7357_v1 = vadd.f32 %v4535_v25, %v3686_v46  ;;  %v7109_v53 = vpop.f32.mrb[91].mxu1  ;;  %v4839_v3 = vmax.f32 %v7355_v19, 0.0  ;;  %v3710_v46 = vadd.f32 %v10009_v5, %v9922_v18  ;;  %v3715_v18 = vadd.f32 %v10009_v5, %v9927_v50 }
 0x5f8   :  { %v4840_v24 = vmax.f32 %v7357_v1, 0.0  ;;  %7215 = vmatmul.mubr.msk.bf16.gmra.mrb[0].mxu1 %vm37_vm2, %v3058_v62  ;;  %v3073_v62 = vld [vmem:[#allocation3 + $0x700] sm:$0xff] }
 0x5f9   :  { %7218 = vmatprep.mubr.msk.bf16.mxu1 %vm7902_vm0, %v10668_v9 }
 0x5fa   :  { %v4923_v49 = vpack.c.bf16 %v4840_v24, %v4839_v3 }
 0x5fb   :  { %v4540_v45 = vpop.f32.mrb[92].mxu1 }
 0x5fc   :  { %4972 = vst.msk [vmem:[#allocation4 + $0x70] sm:$0xff] %vm37_vm2, %v4923_v49  ;;  %v7359_v48 = vadd.f32 %v4540_v45, %v3691_v52  ;;  %v7112_v63 = vpop.f32.mrb[93].mxu1 }
 0x5fd   :  { %v4543_v4 = vpop.f32.mrb[94].mxu1 }
 0x5fe   :  { %v7361_v23 = vadd.f32 %v4543_v4, %v3694_v26  ;;  %v7113_v56 = vpop.f32.mrb[95].mxu1  ;;  %v4841_v7 = vmax.f32 %v7359_v48, 0.0  ;;  %v3718_v26 = vadd.f32 %v10009_v5, %v9929_v11 }
 0x600   :  { %v4842_v57 = vmax.f32 %v7361_v23, 0.0  ;;  %7219 = vmatmul.mubr.msk.bf16.gmra.mrb[4].mxu1 %vm37_vm2, %v3063_v2  ;;  %v3078_v2 = vld [vmem:[#allocation3 + $0x728] sm:$0xff] }
 0x601   :  { %7222 = vmatprep.mubr.msk.bf16.mxu1 %vm7902_vm0, %v10668_v9 }
 0x602   :  { %v4924_v34 = vpack.c.bf16 %v4842_v57, %v4841_v7 }
 0x603   :  { %v4548_v61 = vpop.f32.mrb[96].mxu1  ;;  %v5047_v51 = vld [vmem:[#allocation4 + $0x70] sm:$0xff] }
 0x604   :  { %4973 = vst.msk [vmem:[#allocation4 + $0x78] sm:$0xff] %vm37_vm2, %v4924_v34  ;;  %v7363_v17 = vadd.f32 %v4548_v61, %v3699_v10  ;;  %v7116_v13 = vpop.f32.mrb[97].mxu1  ;;  %5048 = vst.msk [vmem:[#allocation5 + $0x28] sm:$0xff] %vm37_vm2, %v5047_v51  ;;  %v3083_v51 = vld [vmem:[#allocation3 + $0x750] sm:$0xff] }
 0x605   :  { %v4551_v15 = vpop.f32.mrb[98].mxu1 }
 0x606   :  { %v7365_v21 = vadd.f32 %v4551_v15, %v3702_v54  ;;  %v7117_v33 = vpop.f32.mrb[99].mxu1  ;;  %v4843_v39 = vmax.f32 %v7363_v17, 0.0 }
 0x607   :  { %v3088_v33 = vld [vmem:[#allocation3 + $0x778] sm:$0xff] }
 0x608   :  { %v4844_v31 = vmax.f32 %v7365_v21, 0.0  ;;  %7223 = vmatmul.mubr.msk.bf16.gmra.mrb[8].mxu1 %vm37_vm2, %v3068_v37 }
 0x609   :  { %7226 = vmatprep.mubr.msk.bf16.mxu1 %vm7902_vm0, %v10668_v9 }
 0x60a   :  { %v4925_v55 = vpack.c.bf16 %v4844_v31, %v4843_v39  ;;  %v7813_v39 = vld [vmem:[%s10562_s5 + $0x80] sm:$0xff]  }
 0x60b   :  { %v4556_v58 = vpop.f32.mrb[100].mxu1  ;;  %v5049_v43 = vld [vmem:[#allocation4 + $0x78] sm:$0xff] }
 0x60c   :  { %4974 = vst.msk [vmem:[#allocation4 + $0x80] sm:$0xff] %vm37_vm2, %v4925_v55  ;;  %v7367_v19 = vadd.f32 %v4556_v58, %v3707_v30  ;;  %v7120_v8 = vpop.f32.mrb[101].mxu1  ;;  %5051 = vrot.lane.b32.xlu0 %v5049_v43, %s7904_s23  ;;  %v7814_v55 = vld [vmem:[%s10562_s5 + $0xc8] sm:$0xff]  }
 0x60d   :  { %v4559_v25 = vpop.f32.mrb[102].mxu1  ;;  %v7815_v43 = vld [vmem:[%s10562_s5 + $0x88] sm:$0xff]  }
 0x60e   :  { %v7369_v1 = vadd.f32 %v4559_v25, %v3710_v46  ;;  %v7121_v53 = vpop.f32.mrb[103].mxu1  ;;  %v5012_v3 = vpop.permute.xlu1 %5011  ;;  %v4845_v6 = vmax.f32 %v7367_v19, 0.0  ;;  %v3739_v46 = vadd.f32 %v10009_v5, %v9942_v22  ;;  %v7816_v19 = vld [vmem:[%s10562_s5 + $0xd0] sm:$0xff]   ;;  %v3742_v25 = vadd.f32 %v10009_v5, %v9944_v32  ;;  %v7819_v32 = vld [vmem:[%s10562_s5 + $0x98] sm:$0xff]  }
 0x60f   :  { %5014 = vst.msk [vmem:[#allocation5] sm:$0xff] %vm1525_vm3, %v5012_v3  ;;  %v3093_v3 = vld [vmem:[#allocation3 + $0x7a0] sm:$0xff] }
 0x610   :  { %v4846_v24 = vmax.f32 %v7369_v1, 0.0  ;;  %7227 = vmatmul.mubr.msk.bf16.gmra.mrb[12].mxu1 %vm37_vm2, %v3073_v62 }
 0x611   :  { %7230 = vmatprep.mubr.msk.bf16.mxu1 %vm7902_vm0, %v10668_v9 }
 0x612   :  { %v4926_v52 = vpack.c.bf16 %v4846_v24, %v4845_v6  ;;  %v7817_v6 = vld [vmem:[%s10562_s5 + $0x90] sm:$0xff]  }
 0x613   :  { %v4564_v49 = vpop.f32.mrb[104].mxu1  ;;  %v5055_v45 = vld [vmem:[#allocation4 + $0x80] sm:$0xff] }
 0x614   :  { %4975 = vst.msk [vmem:[#allocation4 + $0x88] sm:$0xff] %vm37_vm2, %v4926_v52  ;;  %v7371_v48 = vadd.f32 %v4564_v49, %v3715_v18  ;;  %v7124_v63 = vpop.f32.mrb[105].mxu1  ;;  %5056 = vst.msk [vmem:[#allocation5 + $0x30] sm:$0xff] %vm37_vm2, %v5055_v45  ;;  %v7818_v18 = vld [vmem:[%s10562_s5 + $0xd8] sm:$0xff]   ;;  %v3747_v45 = vadd.f32 %v10009_v5, %v9956_v41  ;;  %v7821_v41 = vld [vmem:[%s10562_s5 + $0xa0] sm:$0xff]  }
 0x615   :  { %v4567_v4 = vpop.f32.mrb[106].mxu1 }
 0x616   :  { %v7373_v23 = vadd.f32 %v4567_v4, %v3718_v26  ;;  %v7125_v56 = vpop.f32.mrb[107].mxu1  ;;  %v4847_v7 = vmax.f32 %v7371_v48, 0.0  ;;  %v5105_v58 = vld [vmem:[#allocation5] sm:$0xff]  ;;  %v7820_v48 = vld [vmem:[%s10562_s5 + $0xe0] sm:$0xff]   ;;  %v3750_v4 = vadd.f32 %v10009_v5, %v9958_v44  ;;  %v7823_v44 = vld [vmem:[%s10562_s5 + $0xa8] sm:$0xff]  }
 0x618   :  { %v4848_v57 = vmax.f32 %v7373_v23, 0.0  ;;  %7231 = vmatmul.mubr.msk.bf16.gmra.mrb[16].mxu1 %vm37_vm2, %v3078_v2 }
 0x619   :  { %7234 = vmatprep.mubr.msk.bf16.mxu1 %vm7902_vm0, %v10668_v9 }
 0x61a   :  { %v4927_v50 = vpack.c.bf16 %v4848_v57, %v4847_v7 }
 0x61b   :  { %v4572_v10 = vpop.f32.mrb[108].mxu1  ;;  %v5057_v11 = vld [vmem:[#allocation4 + $0x88] sm:$0xff] }
 0x61c   :  { %4976 = vst.msk [vmem:[#allocation4 + $0x90] sm:$0xff] %vm37_vm2, %v4927_v50  ;;  %v7128_v34 = vpop.f32.mrb[109].mxu1  ;;  %5059 = vrot.lane.b32.xlu1 %v5057_v11, %s7904_s23  ;;  %v7822_v50 = vld [vmem:[%s10562_s5 + $0xe8] sm:$0xff]  }
 0x61d   :  { %v4575_v61 = vpop.f32.mrb[110].mxu1  ;;  %v3755_v34 = vadd.f32 %v10009_v5, %v9964_v16  ;;  %v7825_v16 = vld [vmem:[%s10562_s5 + $0xb0] sm:$0xff]  }
 0x61e   :  { %v7129_v54 = vpop.f32.mrb[111].mxu1  ;;  %v5020_v17 = vpop.permute.xlu0 %5019 }
 0x61f   :  { %5022 = vst.msk [vmem:[#allocation5 + $0x8] sm:$0xff] %vm1525_vm3, %v5020_v17 }
 0x620   :  { %7235 = vmatmul.mubr.msk.bf16.gmra.mrb[20].mxu1 %vm37_vm2, %v3083_v51  ;;  %v7824_v51 = vld [vmem:[%s10562_s5 + $0xf0] sm:$0xff]  }
 0x621   :  { %7238 = vmatprep.mubr.msk.bf16.mxu1 %vm7902_vm0, %v10668_v9 }
 0x623   :  { %v4580_v13 = vpop.f32.mrb[112].mxu1  ;;  %v5063_v15 = vld [vmem:[#allocation4 + $0x90] sm:$0xff] }
 0x624   :  { %v7132_v37 = vpop.f32.mrb[113].mxu1  ;;  %5064 = vst.msk [vmem:[#allocation5 + $0x38] sm:$0xff] %vm37_vm2, %v5063_v15  ;;  %v3758_v13 = vadd.f32 %v10009_v5, %v9966_v59  ;;  %v7826_v59 = vld [vmem:[%s10562_s5 + $0xf8] sm:$0xff]  }
 0x625   :  { %v4583_v21 = vpop.f32.mrb[114].mxu1 }
 0x626   :  { %v7133_v31 = vpop.f32.mrb[115].mxu1  ;;  %v5106_v30 = vld [vmem:[#allocation5 + $0x8] sm:$0xff] }
 0x627   :  { %5960 = vmatprep.mubr.bf16.mxu0 %v5106_v30 }
 0x628   :  { %7239 = vmatmul.mubr.msk.bf16.gmra.mrb[24].mxu1 %vm37_vm2, %v3088_v33  ;;  %5961 = vmatmul.mubr.bf16.vlgmr.msra.gmra.mrb[104].mxu0 %v5105_v58  ;;  %v7827_v58 = vld [vmem:[%s10562_s5 + $0xb8] sm:$0xff]  }
 0x629   :  { %7242 = vmatprep.mubr.msk.bf16.mxu1 %vm7902_vm0, %v10668_v9  ;;  %6727 = vmatpush3.bf16.msra.mxu0 %v7813_v39 }
 0x62a   :  { %6728 = vmatprep.subr.bf16.mxu0 %v7814_v55 }
 0x62b   :  { %v4588_v8 = vpop.f32.mrb[116].mxu1 }
 0x62c   :  { %v7383_v62 = vadd.f32 %v4588_v8, %v3739_v46  ;;  %v7136_v1 = vpop.f32.mrb[117].mxu1 }
 0x62d   :  { %v4591_v53 = vpop.f32.mrb[118].mxu1  ;;  %6729 = vmatpush3.bf16.msra.mxu0 %v7815_v43  ;;  %v3763_v43 = vadd.f32 %v10009_v5, %v9972_v29 }
 0x62e   :  { %v7385_v24 = vadd.f32 %v4591_v53, %v3742_v25  ;;  %v7137_v22 = vpop.f32.mrb[119].mxu1  ;;  %6730 = vmatprep.subr.bf16.mxu0 %v7816_v19  ;;  %v4853_v52 = vmax.f32 %v7383_v62, 0.0  ;;  %v7828_v19 = vld [vmem:[%s10562_s5 + $0x140] sm:$0xff]   ;;  %v3766_v62 = vadd.f32 %v10009_v5, %v9974_v0 }
 0x630   :  { %v4854_v49 = vmax.f32 %v7385_v24, 0.0  ;;  %7243 = vmatmul.mubr.msk.bf16.gmra.mrb[28].mxu1 %vm37_vm2, %v3093_v3 }
 0x631   :  { %6731 = vmatpush3.bf16.msra.mxu0 %v7817_v6 }
 0x632   :  { %v4930_v26 = vpack.c.bf16 %v4854_v49, %v4853_v52  ;;  %6732 = vmatprep.subr.bf16.mxu0 %v7818_v18  ;;  %v10281_v18 = vld [vmem:[%s10563_s4] ss:$0 sm:$0xff] }
 0x633   :  { %v4596_v63 = vpop.f32.mrb[120].mxu1  ;;  %v3771_v0 = vadd.f32 %v10281_v18, %v9980_v47 }
 0x634   :  { %4979 = vst.msk [vmem:[#allocation4 + $0xa8] sm:$0xff] %vm37_vm2, %v4930_v26  ;;  %v7387_v2 = vadd.f32 %v4596_v63, %v3747_v45  ;;  %v7140_v23 = vpop.f32.mrb[121].mxu1 }
 0x635   :  { %v4599_v56 = vpop.f32.mrb[122].mxu1  ;;  %6733 = vmatpush3.bf16.msra.mxu0 %v7819_v32  ;;  %v3774_v32 = vadd.f32 %v10281_v18, %v9982_v40 }
 0x636   :  { %v7389_v7 = vadd.f32 %v4599_v56, %v3750_v4  ;;  %v7141_v57 = vpop.f32.mrb[123].mxu1  ;;  %6734 = vmatprep.subr.bf16.mxu0 %v7820_v48  ;;  %v4855_v10 = vmax.f32 %v7387_v2, 0.0 }
 0x638   :  { %v4856_v11 = vmax.f32 %v7389_v7, 0.0 }
 0x639   :  { %6735 = vmatpush3.bf16.msra.mxu0 %v7821_v41 }
 0x63a   :  { %v4931_v61 = vpack.c.bf16 %v4856_v11, %v4855_v10  ;;  %6736 = vmatprep.subr.bf16.mxu0 %v7822_v50  ;;  %v7829_v50 = vld [vmem:[%s10562_s5 + $0x100] sm:$0xff]  }
 0x63b   :  { %v4604_v54 = vpop.f32.mrb[124].mxu1  ;;  %v5065_v17 = vld [vmem:[#allocation4 + $0xa8] sm:$0xff] }
 0x63c   :  { %4980 = vst.msk [vmem:[#allocation4 + $0xb0] sm:$0xff] %vm37_vm2, %v4931_v61  ;;  %v7391_v15 = vadd.f32 %v4604_v54, %v3755_v34  ;;  %v7144_v37 = vpop.f32.mrb[125].mxu1  ;;  %5067 = vrot.lane.b32.xlu0 %v5065_v17, %s7904_s23  ;;  %v7831_v61 = vld [vmem:[%s10562_s5 + $0x108] sm:$0xff]  }
 0x63d   :  { %v4607_v21 = vpop.f32.mrb[126].mxu1  ;;  %6737 = vmatpush3.bf16.msra.mxu0 %v7823_v44  ;;  %v7830_v44 = vld [vmem:[%s10562_s5 + $0x148] sm:$0xff]   ;;  %v7833_v37 = vld [vmem:[%s10562_s5 + $0x110] sm:$0xff]  }
 0x63e   :  { %v7393_v33 = vadd.f32 %v4607_v21, %v3758_v13  ;;  %v7145_v39 = vpop.f32.mrb[127].mxu1  ;;  %v5028_v31 = vpop.permute.xlu1 %5027  ;;  %6738 = vmatprep.subr.bf16.mxu0 %v7824_v51  ;;  %v4857_v30 = vmax.f32 %v7391_v15, 0.0  ;;  %v7832_v51 = vld [vmem:[%s10562_s5 + $0x150] sm:$0xff]  }
 0x63f   :  { %5030 = vst.msk [vmem:[#allocation5 + $0x10] sm:$0xff] %vm1525_vm3, %v5028_v31  ;;  %v7835_v39 = vld [vmem:[%s10562_s5 + $0x118] sm:$0xff]   ;;  %v3795_v31 = vadd.f32 %v10281_v18, %v10002_v28  ;;  %v7838_v28 = vld [vmem:[%s10562_s5 + $0x168] sm:$0xff]  }
 0x640   :  { %v4858_v55 = vmax.f32 %v7393_v33, 0.0  ;;  %v7834_v33 = vld [vmem:[%s10562_s5 + $0x158] sm:$0xff]  }
 0x641   :  { %6739 = vmatpush3.bf16.msra.mxu0 %v7825_v16 }
 0x642   :  { %v4932_v46 = vpack.c.bf16 %v4858_v55, %v4857_v30  ;;  %6740 = vmatprep.subr.bf16.mxu0 %v7826_v59  ;;  %v7836_v59 = vld [vmem:[%s10562_s5 + $0x160] sm:$0xff]   ;;  %v3798_v55 = vadd.f32 %v10281_v18, %v10004_v60  ;;  %v7839_v60 = vld [vmem:[%s10562_s5 + $0x128] sm:$0xff]  }
 0x643   :  { %v4612_v8 = vpop.f32.mrb[128].mxu1  ;;  %v5071_v25 = vld [vmem:[#allocation4 + $0xb0] sm:$0xff] }
 0x644   :  { %4981 = vst.msk [vmem:[#allocation4 + $0xb8] sm:$0xff] %vm37_vm2, %v4932_v46  ;;  %v7395_v1 = vadd.f32 %v4612_v8, %v3763_v43  ;;  %v7148_v53 = vpop.f32.mrb[129].mxu1  ;;  %5072 = vst.msk [vmem:[#allocation5 + $0x40] sm:$0xff] %vm37_vm2, %v5071_v25 }
 0x645   :  { %v4615_v3 = vpop.f32.mrb[130].mxu1  ;;  %6741 = vmatpush3.bf16.msra.mxu0 %v7827_v58  ;;  %v3803_v53 = vadd.f32 %v10281_v18, %v10019_v12  ;;  %v7841_v12 = vld [vmem:[%s10562_s5 + $0x130] sm:$0xff]  }
 0x646   :  { %v7397_v29 = vadd.f32 %v4615_v3, %v3766_v62  ;;  %v7149_v6 = vpop.f32.mrb[131].mxu1  ;;  %6748 = vmatprep.subr.bf16.mxu0 %v7828_v19  ;;  %v4859_v24 = vmax.f32 %v7395_v1, 0.0  ;;  %v5107_v34 = vld [vmem:[#allocation5 + $0x10] sm:$0xff]  ;;  %v7837_v19 = vld [vmem:[%s10562_s5 + $0x120] sm:$0xff]  }
 0x648   :  { %v4860_v22 = vmax.f32 %v7397_v29, 0.0  ;;  %v7840_v29 = vld [vmem:[%s10562_s5 + $0x170] sm:$0xff]  }
 0x64a   :  { %v4933_v5 = vpack.c.bf16 %v4860_v22, %v4859_v24  ;;  %v3806_v24 = vadd.f32 %v10281_v18, %v10021_v20  ;;  %v7843_v20 = vld [vmem:[%s10562_s5 + $0x138] sm:$0xff]  }
 0x64b   :  { %v4620_v52 = vpop.f32.mrb[132].mxu1  ;;  %v5073_v49 = vld [vmem:[#allocation4 + $0xb8] sm:$0xff] }
 0x64c   :  { %4982 = vst.msk [vmem:[#allocation4 + $0xc0] sm:$0xff] %vm37_vm2, %v4933_v5  ;;  %v7399_v45 = vadd.f32 %v4620_v52, %v3771_v0  ;;  %v7152_v26 = vpop.f32.mrb[133].mxu1  ;;  %5075 = vrot.lane.b32.xlu1 %v5073_v49, %s7904_s23 }
 0x64d   :  { %v4623_v48 = vpop.f32.mrb[134].mxu1 }
 0x64e   :  { %v7401_v63 = vadd.f32 %v4623_v48, %v3774_v32  ;;  %v7153_v4 = vpop.f32.mrb[135].mxu1  ;;  %v5036_v2 = vpop.permute.xlu0 %5035  ;;  %v4861_v23 = vmax.f32 %v7399_v45, 0.0  ;;  %v7842_v32 = vld [vmem:[%s10562_s5 + $0x178] sm:$0xff]   ;;  %v3811_v48 = vadd.f32 %v10281_v18, %v10032_v27 }
 0x64f   :  { %5038 = vst.msk [vmem:[#allocation5 + $0x18] sm:$0xff] %vm1525_vm3, %v5036_v2  ;;  %v7844_v4 = vld [vmem:[%s10562_s5 + $0x1c0] sm:$0xff]  }
 0x650   :  { %v4862_v47 = vmax.f32 %v7401_v63, 0.0 }
 0x652   :  { %v4934_v56 = vpack.c.bf16 %v4862_v47, %v4861_v23  ;;  %v3814_v47 = vadd.f32 %v10281_v18, %v10034_v14  ;;  %v3822_v14 = vadd.f32 %v10281_v18, %v10048_v35 }
 0x653   :  { %v4628_v41 = vpop.f32.mrb[136].mxu1  ;;  %v5079_v7 = vld [vmem:[#allocation4 + $0xc0] sm:$0xff] }
 0x654   :  { %4983 = vst.msk [vmem:[#allocation4 + $0xc8] sm:$0xff] %vm37_vm2, %v4934_v56  ;;  %v7156_v40 = vpop.f32.mrb[137].mxu1  ;;  %5080 = vst.msk [vmem:[#allocation5 + $0x48] sm:$0xff] %vm37_vm2, %v5079_v7 }
 0x655   :  { %v4631_v57 = vpop.f32.mrb[138].mxu1 }
 0x656   :  { %v7157_v10 = vpop.f32.mrb[139].mxu1  ;;  %v5108_v11 = vld [vmem:[#allocation5 + $0x18] sm:$0xff] }
 0x657   :  { %6001 = vmatprep.mubr.bf16.mxu0 %v5108_v11  ;;  %v3819_v10 = vadd.f32 %v10281_v18, %v10045_v38 }
 0x658   :  { %6002 = vmatmul.mubr.bf16.vlgmr.msra.gmra.mrb[108].mxu0 %v5107_v34 }
 0x659   :  { %6749 = vmatpush3.bf16.msra.mxu0 %v7829_v50 }
 0x65a   :  { %6750 = vmatprep.subr.bf16.mxu0 %v7830_v44 }
 0x65b   :  { %v4636_v54 = vpop.f32.mrb[140].mxu1  ;;  %v5081_v17 = vld [vmem:[#allocation4 + $0xc8] sm:$0xff] }
 0x65c   :  { %v7160_v13 = vpop.f32.mrb[141].mxu1  ;;  %5083 = vrot.lane.b32.xlu0 %v5081_v17, %s7904_s23 }
 0x65d   :  { %v4639_v15 = vpop.f32.mrb[142].mxu1  ;;  %6751 = vmatpush3.bf16.msra.mxu0 %v7831_v61 }
 0x65e   :  { %v7161_v21 = vpop.f32.mrb[143].mxu1  ;;  %v5044_v16 = vpop.permute.xlu1 %5043  ;;  %6752 = vmatprep.subr.bf16.mxu0 %v7832_v51 }
 0x65f   :  { %5046 = vst.msk [vmem:[#allocation5 + $0x20] sm:$0xff] %vm1525_vm3, %v5044_v16  ;;  %v3827_v21 = vadd.f32 %v10281_v18, %v10059_v42 }
 0x661   :  { %6753 = vmatpush3.bf16.msra.mxu0 %v7833_v37 }
 0x662   :  { %6754 = vmatprep.subr.bf16.mxu0 %v7834_v33 }
 0x663   :  { %v4644_v30 = vpop.f32.mrb[144].mxu1 }
 0x664   :  { %v7411_v58 = vadd.f32 %v4644_v30, %v3795_v31  ;;  %v7164_v43 = vpop.f32.mrb[145].mxu1 }
 0x665   :  { %v4647_v46 = vpop.f32.mrb[146].mxu1  ;;  %6755 = vmatpush3.bf16.msra.mxu0 %v7835_v39  ;;  %v3830_v39 = vadd.f32 %v10281_v18, %v10068_v36 }
 0x666   :  { %v7413_v8 = vadd.f32 %v4647_v46, %v3798_v55  ;;  %v7165_v25 = vpop.f32.mrb[147].mxu1  ;;  %6756 = vmatprep.subr.bf16.mxu0 %v7836_v59  ;;  %v4867_v62 = vmax.f32 %v7411_v58, 0.0  ;;  %v7845_v55 = vld [vmem:[%s10562_s5 + $0x180] sm:$0xff]   ;;  %v7846_v46 = vld [vmem:[%s10562_s5 + $0x1c8] sm:$0xff]   ;;  %v5109_v36 = vld [vmem:[#allocation5 + $0x20] sm:$0xff] }
 0x668   :  { %v4868_v1 = vmax.f32 %v7413_v8, 0.0  ;;  %v7847_v8 = vld [vmem:[%s10562_s5 + $0x188] sm:$0xff]  }
 0x669   :  { %6757 = vmatpush3.bf16.msra.mxu0 %v7837_v19 }
 0x66a   :  { %v4937_v3 = vpack.c.bf16 %v4868_v1, %v4867_v62  ;;  %6758 = vmatprep.subr.bf16.mxu0 %v7838_v28  ;;  %v7848_v28 = vld [vmem:[%s10562_s5 + $0x1d0] sm:$0xff]  }
 0x66b   :  { %v4652_v6 = vpop.f32.mrb[148].mxu1 }
 0x66c   :  { %4986 = vst.msk [vmem:[#allocation4 + $0xe0] sm:$0xff] %vm37_vm2, %v4937_v3  ;;  %v7415_v22 = vadd.f32 %v4652_v6, %v3803_v53  ;;  %v7168_v0 = vpop.f32.mrb[149].mxu1  ;;  %v7849_v3 = vld [vmem:[%s10562_s5 + $0x190] sm:$0xff]  }
 0x66d   :  { %v4655_v5 = vpop.f32.mrb[150].mxu1  ;;  %6759 = vmatpush3.bf16.msra.mxu0 %v7839_v60  ;;  %v7852_v0 = vld [vmem:[%s10562_s5 + $0x1e0] sm:$0xff]  }
 0x66e   :  { %v7417_v52 = vadd.f32 %v4655_v5, %v3806_v24  ;;  %v7169_v49 = vpop.f32.mrb[151].mxu1  ;;  %6760 = vmatprep.subr.bf16.mxu0 %v7840_v29  ;;  %v4869_v45 = vmax.f32 %v7415_v22, 0.0  ;;  %v7850_v24 = vld [vmem:[%s10562_s5 + $0x1d8] sm:$0xff]  }
 0x66f   :  { %v7851_v22 = vld [vmem:[%s10562_s5 + $0x198] sm:$0xff]  }
 0x670   :  { %v4870_v26 = vmax.f32 %v7417_v52, 0.0 }
 0x671   :  { %6761 = vmatpush3.bf16.msra.mxu0 %v7841_v12 }
 0x672   :  { %v4938_v63 = vpack.c.bf16 %v4870_v26, %v4869_v45  ;;  %6762 = vmatprep.subr.bf16.mxu0 %v7842_v32  ;;  %v7853_v32 = vld [vmem:[%s10562_s5 + $0x1a0] sm:$0xff]   ;;  %v7854_v26 = vld [vmem:[%s10562_s5 + $0x1e8] sm:$0xff]  }
 0x673   :  { %v4660_v2 = vpop.f32.mrb[152].mxu1  ;;  %v5087_v23 = vld [vmem:[#allocation4 + $0xe0] sm:$0xff] }
 0x674   :  { %4987 = vst.msk [vmem:[#allocation4 + $0xe8] sm:$0xff] %vm37_vm2, %v4938_v63  ;;  %v7419_v56 = vadd.f32 %v4660_v2, %v3811_v48  ;;  %v7172_v41 = vpop.f32.mrb[153].mxu1  ;;  %5088 = vst.msk [vmem:[#allocation5 + $0x50] sm:$0xff] %vm37_vm2, %v5087_v23  ;;  %v7856_v48 = vld [vmem:[%s10562_s5 + $0x1f0] sm:$0xff]  }
 0x675   :  { %v4663_v7 = vpop.f32.mrb[154].mxu1  ;;  %6763 = vmatpush3.bf16.msra.mxu0 %v7843_v20  ;;  %v7855_v20 = vld [vmem:[%s10562_s5 + $0x1a8] sm:$0xff]   ;;  %v7857_v23 = vld [vmem:[%s10562_s5 + $0x1b0] sm:$0xff]   ;;  %v7859_v41 = vld [vmem:[%s10562_s5 + $0x1b8] sm:$0xff]  }
 0x676   :  { %v7421_v27 = vadd.f32 %v4663_v7, %v3814_v47  ;;  %v7173_v40 = vpop.f32.mrb[155].mxu1  ;;  %6770 = vmatprep.subr.bf16.mxu0 %v7844_v4  ;;  %v4871_v57 = vmax.f32 %v7419_v56, 0.0  ;;  %v7858_v56 = vld [vmem:[%s10562_s5 + $0x1f8] sm:$0xff]   ;;  %v7860_v7 = vld [vmem:[%s10562_s5 + $0x240] sm:$0xff]  }
 0x678   :  { %v4872_v50 = vmax.f32 %v7421_v27, 0.0 }
 0x67a   :  { %v4939_v11 = vpack.c.bf16 %v4872_v50, %v4871_v57 }
 0x67b   :  { %v4668_v44 = vpop.f32.mrb[156].mxu1  ;;  %v5089_v34 = vld [vmem:[#allocation4 + $0xe8] sm:$0xff] }
 0x67c   :  { %4988 = vst.msk [vmem:[#allocation4 + $0xf0] sm:$0xff] %vm37_vm2, %v4939_v11  ;;  %v7423_v61 = vadd.f32 %v4668_v44, %v3819_v10  ;;  %v7176_v51 = vpop.f32.mrb[157].mxu1  ;;  %5091 = vrot.lane.b32.xlu1 %v5089_v34, %s7904_s23 }
 0x67d   :  { %v4671_v54 = vpop.f32.mrb[158].mxu1 }
 0x67e   :  { %v7425_v17 = vadd.f32 %v4671_v54, %v3822_v14  ;;  %v7177_v13 = vpop.f32.mrb[159].mxu1  ;;  %v5052_v15 = vpop.permute.xlu0 %5051  ;;  %v4873_v37 = vmax.f32 %v7423_v61, 0.0 }
 0x67f   :  { %5054 = vst.msk [vmem:[#allocation5 + $0x28] sm:$0xff] %vm1525_vm3, %v5052_v15 }
 0x680   :  { %v4874_v38 = vmax.f32 %v7425_v17, 0.0  ;;  %v7861_v17 = vld [vmem:[%s10562_s5 + $0x200] sm:$0xff]  }
 0x682   :  { %v4940_v16 = vpack.c.bf16 %v4874_v38, %v4873_v37  ;;  %v7862_v37 = vld [vmem:[%s10562_s5 + $0x248] sm:$0xff]  }
 0x683   :  { %v4676_v33 = vpop.f32.mrb[160].mxu1  ;;  %v5095_v35 = vld [vmem:[#allocation4 + $0xf0] sm:$0xff] }
 0x684   :  { %4989 = vst.msk [vmem:[#allocation4 + $0xf8] sm:$0xff] %vm37_vm2, %v4940_v16  ;;  %v7427_v31 = vadd.f32 %v4676_v33, %v3827_v21  ;;  %v7180_v59 = vpop.f32.mrb[161].mxu1  ;;  %5096 = vst.msk [vmem:[#allocation5 + $0x58] sm:$0xff] %vm37_vm2, %v5095_v35  ;;  %v7863_v21 = vld [vmem:[%s10562_s5 + $0x208] sm:$0xff]   ;;  %v7864_v16 = vld [vmem:[%s10562_s5 + $0x250] sm:$0xff]  }
 0x685   :  { %v4679_v30 = vpop.f32.mrb[162].mxu1 }
 0x686   :  { %v7429_v58 = vadd.f32 %v4679_v30, %v3830_v39  ;;  %v7181_v43 = vpop.f32.mrb[163].mxu1  ;;  %v5110_v42 = vld [vmem:[#allocation5 + $0x28] sm:$0xff]  ;;  %v4875_v18 = vmax.f32 %v7427_v31, 0.0  ;;  %v7865_v31 = vld [vmem:[%s10562_s5 + $0x210] sm:$0xff]  }
 0x687   :  { %6042 = vmatprep.mubr.bf16.mxu0 %v5110_v42  ;;  %v7868_v43 = vld [vmem:[%s10562_s5 + $0x260] sm:$0xff]  }
 0x688   :  { %v4876_v19 = vmax.f32 %v7429_v58, 0.0  ;;  %6043 = vmatmul.mubr.bf16.vlgmr.msra.gmra.mrb[112].mxu0 %v5109_v36  ;;  %v7867_v58 = vld [vmem:[%s10562_s5 + $0x218] sm:$0xff]  }
 0x689   :  { %6771 = vmatpush3.bf16.msra.mxu0 %v7845_v55  ;;  %v7866_v55 = vld [vmem:[%s10562_s5 + $0x258] sm:$0xff]  }
 0x68a   :  { %v4941_v25 = vpack.c.bf16 %v4876_v19, %v4875_v18  ;;  %6772 = vmatprep.subr.bf16.mxu0 %v7846_v46  ;;  %v7869_v18 = vld [vmem:[%s10562_s5 + $0x220] sm:$0xff]  }
 0x68b   :  { %v4684_v62 = vpop.f32.mrb[164].mxu1  ;;  %v5097_v1 = vld [vmem:[#allocation4 + $0xf8] sm:$0xff] }
 0x68c   :  { %4990 = vst.msk [vmem:[#allocation4 + $0x100] sm:$0xff] %vm37_vm2, %v4941_v25  ;;  %v7184_v60 = vpop.f32.mrb[165].mxu1  ;;  %5099 = vrot.lane.b32.xlu0 %v5097_v1, %s7904_s23  ;;  %v7871_v25 = vld [vmem:[%s10562_s5 + $0x228] sm:$0xff]  }
 0x68d   :  { %v4687_v53 = vpop.f32.mrb[166].mxu1  ;;  %6773 = vmatpush3.bf16.msra.mxu0 %v7847_v8  ;;  %v7870_v8 = vld [vmem:[%s10562_s5 + $0x268] sm:$0xff]  }
 0x68e   :  { %v7185_v29 = vpop.f32.mrb[167].mxu1  ;;  %v5060_v6 = vpop.permute.xlu1 %5059  ;;  %6774 = vmatprep.subr.bf16.mxu0 %v7848_v28  ;;  %v7872_v28 = vld [vmem:[%s10562_s5 + $0x270] sm:$0xff]  }
 0x68f   :  { %5062 = vst.msk [vmem:[#allocation5 + $0x30] sm:$0xff] %vm1525_vm3, %v5060_v6  ;;  %v7873_v53 = vld [vmem:[%s10562_s5 + $0x230] sm:$0xff]   ;;  %v7874_v6 = vld [vmem:[%s10562_s5 + $0x278] sm:$0xff]  }
 0x691   :  { %6775 = vmatpush3.bf16.msra.mxu0 %v7849_v3 }
 0x692   :  { %6776 = vmatprep.subr.bf16.mxu0 %v7850_v24  ;;  %v7875_v24 = vld [vmem:[%s10562_s5 + $0x238] sm:$0xff]  }
 0x693   :  { %v5103_v5 = vld [vmem:[#allocation4 + $0x100] sm:$0xff]  ;;  %v4692_v12 = vpop.f32.mrb[168].mxu1 }
 0x694   :  { %5104 = vst.msk [vmem:[#allocation5 + $0x60] sm:$0xff] %vm37_vm2, %v5103_v5  ;;  %v7188_v52 = vpop.f32.mrb[169].mxu1 }
 0x695   :  { %v4695_v49 = vpop.f32.mrb[170].mxu1  ;;  %6777 = vmatpush3.bf16.msra.mxu0 %v7851_v22  ;;  %v7876_v22 = vld [vmem:[%s10562_s5 + $0x2c0] sm:$0xff]  }
 0x696   :  { %v7189_v45 = vpop.f32.mrb[171].mxu1  ;;  %6778 = vmatprep.subr.bf16.mxu0 %v7852_v0  ;;  %v5111_v38 = vld [vmem:[#allocation5 + $0x30] sm:$0xff]  ;;  %v7877_v52 = vld [vmem:[%s10562_s5 + $0x280] sm:$0xff]  }
 0x697   :  { %v7878_v45 = vld [vmem:[%s10562_s5 + $0x2c8] sm:$0xff]  }
 0x699   :  { %6779 = vmatpush3.bf16.msra.mxu0 %v7853_v32 }
 0x69a   :  { %6780 = vmatprep.subr.bf16.mxu0 %v7854_v26 }
 0x69b   :  { %v4700_v63 = vpop.f32.mrb[172].mxu1 }
 0x69c   :  { %v7192_v4 = vpop.f32.mrb[173].mxu1 }
 0x69d   :  { %v4703_v2 = vpop.f32.mrb[174].mxu1  ;;  %6781 = vmatpush3.bf16.msra.mxu0 %v7855_v20  ;;  %v7879_v20 = vld [vmem:[%s10562_s5 + $0x288] sm:$0xff]  }
 0x69e   :  { %v7193_v47 = vpop.f32.mrb[175].mxu1  ;;  %6782 = vmatprep.subr.bf16.mxu0 %v7856_v48  ;;  %v7880_v48 = vld [vmem:[%s10562_s5 + $0x2d0] sm:$0xff]  }
 0x6a1   :  { %6783 = vmatpush3.bf16.msra.mxu0 %v7857_v23  ;;  %v7881_v23 = vld [vmem:[%s10562_s5 + $0x290] sm:$0xff]  }
 0x6a2   :  { %6784 = vmatprep.subr.bf16.mxu0 %v7858_v56  ;;  %v7882_v56 = vld [vmem:[%s10562_s5 + $0x2d8] sm:$0xff]  }
 0x6a3   :  { %v4708_v27 = vpop.f32.mrb[176].mxu1 }
 0x6a4   :  { %v7196_v40 = vpop.f32.mrb[177].mxu1 }
 0x6a5   :  { %v4711_v57 = vpop.f32.mrb[178].mxu1  ;;  %6785 = vmatpush3.bf16.msra.mxu0 %v7859_v41  ;;  %v7883_v41 = vld [vmem:[%s10562_s5 + $0x298] sm:$0xff]  }
 0x6a6   :  { %v7197_v50 = vpop.f32.mrb[179].mxu1  ;;  %6792 = vmatprep.subr.bf16.mxu0 %v7860_v7  ;;  %v7884_v7 = vld [vmem:[%s10562_s5 + $0x2e0] sm:$0xff]  }
 0x6a7   :  { %v7885_v50 = vld [vmem:[%s10562_s5 + $0x2a0] sm:$0xff]  }
 0x6ab   :  { %v4716_v10 = vpop.f32.mrb[180].mxu1 }
 0x6ac   :  { %v7200_v11 = vpop.f32.mrb[181].mxu1 }
 0x6ad   :  { %v4719_v44 = vpop.f32.mrb[182].mxu1  ;;  %v7886_v11 = vld [vmem:[%s10562_s5 + $0x2e8] sm:$0xff]  }
 0x6ae   :  { %v7201_v34 = vpop.f32.mrb[183].mxu1  ;;  %v5068_v14 = vpop.permute.xlu0 %5067  ;;  %v7887_v44 = vld [vmem:[%s10562_s5 + $0x2a8] sm:$0xff]  }
 0x6af   :  { %5070 = vst.msk [vmem:[#allocation5 + $0x38] sm:$0xff] %vm1525_vm3, %v5068_v14  ;;  %v7888_v34 = vld [vmem:[%s10562_s5 + $0x2f0] sm:$0xff]  }
 0x6b3   :  { %v4724_v61 = vpop.f32.mrb[184].mxu1 }
 0x6b4   :  { %v7204_v51 = vpop.f32.mrb[185].mxu1 }
 0x6b5   :  { %v4727_v54 = vpop.f32.mrb[186].mxu1 }
 0x6b6   :  { %v7205_v13 = vpop.f32.mrb[187].mxu1  ;;  %v5112_v15 = vld [vmem:[#allocation5 + $0x38] sm:$0xff] }
 0x6b7   :  { %6083 = vmatprep.mubr.bf16.mxu0 %v5112_v15  ;;  %v7889_v54 = vld [vmem:[%s10562_s5 + $0x2b0] sm:$0xff]   ;;  %v7890_v15 = vld [vmem:[%s10562_s5 + $0x2f8] sm:$0xff]  }
 0x6b8   :  { %6084 = vmatmul.mubr.bf16.vlgmr.msra.gmra.mrb[116].mxu0 %v5111_v38 }
 0x6b9   :  { %6793 = vmatpush3.bf16.msra.mxu0 %v7861_v17 }
 0x6ba   :  { %6794 = vmatprep.subr.bf16.mxu0 %v7862_v37  ;;  %v7891_v37 = vld [vmem:[%s10562_s5 + $0x2b8] sm:$0xff]  }
 0x6bb   :  { %v4732_v33 = vpop.f32.mrb[188].mxu1 }
 0x6bc   :  { %v7208_v35 = vpop.f32.mrb[189].mxu1 }
 0x6bd   :  { %v4735_v39 = vpop.f32.mrb[190].mxu1  ;;  %6795 = vmatpush3.bf16.msra.mxu0 %v7863_v21 }
 0x6be   :  { %v7209_v59 = vpop.f32.mrb[191].mxu1  ;;  %v5076_v30 = vpop.permute.xlu1 %5075  ;;  %6796 = vmatprep.subr.bf16.mxu0 %v7864_v16 }
 0x6bf   :  { %5078 = vst.msk [vmem:[#allocation5 + $0x40] sm:$0xff] %vm1525_vm3, %v5076_v30 }
 0x6c1   :  { %6797 = vmatpush3.bf16.msra.mxu0 %v7865_v31 }
 0x6c2   :  { %6798 = vmatprep.subr.bf16.mxu0 %v7866_v55 }
 0x6c3   :  { %v4740_v42 = vpop.f32.mrb[192].mxu1 }
 0x6c4   :  { %v7212_v46 = vpop.f32.mrb[193].mxu1 }
 0x6c5   :  { %v4743_v36 = vpop.f32.mrb[194].mxu1  ;;  %6799 = vmatpush3.bf16.msra.mxu0 %v7867_v58 }
 0x6c6   :  { %v7213_v19 = vpop.f32.mrb[195].mxu1  ;;  %6800 = vmatprep.subr.bf16.mxu0 %v7868_v43  ;;  %v5113_v26 = vld [vmem:[#allocation5 + $0x40] sm:$0xff] }
 0x6c9   :  { %6801 = vmatpush3.bf16.msra.mxu0 %v7869_v18 }
 0x6ca   :  { %6802 = vmatprep.subr.bf16.mxu0 %v7870_v8 }
 0x6cb   :  { %v4748_v62 = vpop.f32.mrb[0].mxu1 }
 0x6cc   :  { %v7216_v1 = vpop.f32.mrb[1].mxu1 }
 0x6cd   :  { %v4751_v60 = vpop.f32.mrb[2].mxu1  ;;  %6803 = vmatpush3.bf16.msra.mxu0 %v7871_v25  ;;  %v7892_v25 = vld [vmem:[%s10562_s5 + $0x300] sm:$0xff]  }
 0x6ce   :  { %v7217_v3 = vpop.f32.mrb[3].mxu1  ;;  %v5084_v29 = vpop.permute.xlu0 %5083  ;;  %6804 = vmatprep.subr.bf16.mxu0 %v7872_v28  ;;  %v7893_v60 = vld [vmem:[%s10562_s5 + $0x308] sm:$0xff]  }
 0x6cf   :  { %5086 = vst.msk [vmem:[#allocation5 + $0x48] sm:$0xff] %vm1525_vm3, %v5084_v29  ;;  %v7895_v3 = vld [vmem:[%s10562_s5 + $0x318] sm:$0xff]  }
 0x6d0   :  { %v5117_v29 = vld [vmem:[#allocation5 + $0x60] sm:$0xff] }
 0x6d1   :  { %6805 = vmatpush3.bf16.msra.mxu0 %v7873_v53  ;;  %v7894_v53 = vld [vmem:[%s10562_s5 + $0x310] sm:$0xff]  }
 0x6d2   :  { %6806 = vmatprep.subr.bf16.mxu0 %v7874_v6  ;;  %v6486_v6 = vld [vmem:[%s10564_s6] ss:$0 sm:$0xff] }
 0x6d3   :  { %v4756_v0 = vpop.f32.mrb[4].mxu1 }
 0x6d4   :  { %v7220_v5 = vpop.f32.mrb[5].mxu1 }
 0x6d5   :  { %v4759_v12 = vpop.f32.mrb[6].mxu1  ;;  %6807 = vmatpush3.bf16.msra.mxu0 %v7875_v24 }
 0x6d6   :  { %v7221_v49 = vpop.f32.mrb[7].mxu1  ;;  %v5114_v32 = vld [vmem:[#allocation5 + $0x48] sm:$0xff]  ;;  %6814 = vmatprep.subr.bf16.mxu0 %v7876_v22 }
 0x6d7   :  { %6124 = vmatprep.mubr.bf16.mxu0 %v5114_v32 }
 0x6d8   :  { %6125 = vmatmul.mubr.bf16.vlgmr.msra.gmra.mrb[120].mxu0 %v5113_v26 }
 0x6d9   :  { %6815 = vmatpush3.bf16.msra.mxu0 %v7877_v52 }
 0x6da   :  { %6816 = vmatprep.subr.bf16.mxu0 %v7878_v45 }
 0x6db   :  { %v4764_v63 = vpop.f32.mrb[8].mxu1 }
 0x6dc   :  { %v7224_v4 = vpop.f32.mrb[9].mxu1 }
 0x6dd   :  { %v4767_v2 = vpop.f32.mrb[10].mxu1  ;;  %6817 = vmatpush3.bf16.msra.mxu0 %v7879_v20 }
 0x6de   :  { %v7225_v47 = vpop.f32.mrb[11].mxu1  ;;  %6818 = vmatprep.subr.bf16.mxu0 %v7880_v48 }
 0x6e1   :  { %6819 = vmatpush3.bf16.msra.mxu0 %v7881_v23 }
 0x6e2   :  { %6820 = vmatprep.subr.bf16.mxu0 %v7882_v56 }
 0x6e3   :  { %v4772_v27 = vpop.f32.mrb[12].mxu1 }
 0x6e4   :  { %v7228_v40 = vpop.f32.mrb[13].mxu1 }
 0x6e5   :  { %v4775_v57 = vpop.f32.mrb[14].mxu1  ;;  %6821 = vmatpush3.bf16.msra.mxu0 %v7883_v41  ;;  %v7896_v41 = vld [vmem:[%s10565_s7] sm:$0xff]  }
 0x6e6   :  { %v7229_v10 = vpop.f32.mrb[15].mxu1  ;;  %6822 = vmatprep.subr.bf16.mxu0 %v7884_v7  ;;  %v7897_v7 = vld [vmem:[%s10565_s7 + $0x8] sm:$0xff]  }
 0x6e9   :  { %6823 = vmatpush3.bf16.msra.mxu0 %v7885_v50 }
 0x6ea   :  { %6824 = vmatprep.subr.bf16.mxu0 %v7886_v11 }
 0x6eb   :  { %v4780_v14 = vpop.f32.mrb[16].mxu1 }
 0x6ec   :  { %v7232_v61 = vpop.f32.mrb[17].mxu1 }
 0x6ed   :  { %v4783_v51 = vpop.f32.mrb[18].mxu1  ;;  %6825 = vmatpush3.bf16.msra.mxu0 %v7887_v44 }
 0x6ee   :  { %v7233_v17 = vpop.f32.mrb[19].mxu1  ;;  %v5092_v13 = vpop.permute.xlu1 %5091  ;;  %6826 = vmatprep.subr.bf16.mxu0 %v7888_v34 }
 0x6ef   :  { %5094 = vst.msk [vmem:[#allocation5 + $0x50] sm:$0xff] %vm1525_vm3, %v5092_v13 }
 0x6f1   :  { %6827 = vmatpush3.bf16.msra.mxu0 %v7889_v54 }
 0x6f2   :  { %6828 = vmatprep.subr.bf16.mxu0 %v7890_v15 }
 0x6f3   :  { %v4788_v38 = vpop.f32.mrb[20].mxu1 }
 0x6f4   :  { %v7236_v21 = vpop.f32.mrb[21].mxu1 }
 0x6f5   :  { %v4791_v16 = vpop.f32.mrb[22].mxu1  ;;  %6829 = vmatpush3.bf16.msra.mxu0 %v7891_v37 }
 0x6f6   :  { %v7237_v33 = vpop.f32.mrb[23].mxu1  ;;  %7246 = vmatprep.subr.bf16.mxu0 %v10668_v9  ;;  %v5115_v1 = vld [vmem:[#allocation5 + $0x50] sm:$0xff] }
 0x6fb   :  { %v4796_v35 = vpop.f32.mrb[24].mxu1  ;;  %v6720_v39 = vpop.f32.mrb[104].mxu0 }
 0x6fc   :  { %v7240_v31 = vpop.f32.mrb[25].mxu1  ;;  %v6721_v59 = vpop.f32.mrb[105].mxu0 }
 0x6fd   :  { %v6722_v30 = vadd.f32 %v6721_v59, %v6720_v39  ;;  %v4799_v55 = vpop.f32.mrb[26].mxu1  ;;  %v6723_v58 = vpop.f32.mrb[106].mxu0 }
 0x6fe   :  { %v7241_v43 = vpop.f32.mrb[27].mxu1  ;;  %v5100_v42 = vpop.permute.xlu0 %5099 }
 0x6ff   :  { %5102 = vst.msk [vmem:[#allocation5 + $0x58] sm:$0xff] %vm1525_vm3, %v5100_v42  ;;  %v6724_v46 = vpop.f32.mrb[107].mxu0  ;;  %v5963_v0 = vadd.f32 %v6722_v30, %v6486_v6 }
 0x700   :  { %v6725_v36 = vadd.f32 %v6724_v46, %v6723_v58 }
 0x702   :  { %v5966_v49 = vadd.f32 %v6725_v36, %v6486_v6 }
 0x703   :  { %v4804_v18 = vpop.f32.mrb[28].mxu1 }
 0x704   :  { %v7244_v19 = vpop.f32.mrb[29].mxu1 }
 0x705   :  { %v4807_v8 = vpop.f32.mrb[30].mxu1  ;;  %v6588_v19 = vld [vmem:[%s10566_s8] ss:$0 sm:$0xff] }
 0x706   :  { %v7245_v28 = vpop.f32.mrb[31].mxu1  ;;  %v5116_v62 = vld [vmem:[#allocation5 + $0x58] sm:$0xff] }
 0x707   :  { %6165 = vmatprep.mubr.bf16.mxu0 %v5116_v62 }
 0x708   :  { %6166 = vmatmul.mubr.bf16.vlgmr.msra.gmra.mrb[124].mxu0 %v5115_v1 }
 0x709   :  { %7247 = vmatpush3.bf16.msra.mxu0 %v7892_v25  ;;  %7254 = vmatprep.mubr.msk.bf16.mxu0 %vm7902_vm0, %v10668_v9 }
 0x70a   :  { %7248 = vmatprep.subr.bf16.mxu0 %v10668_v9 }
 0x70d   :  { %7249 = vmatpush3.bf16.msra.mxu0 %v7893_v60 }
 0x70e   :  { %7250 = vmatprep.subr.bf16.mxu0 %v10668_v9 }
 0x711   :  { %7251 = vmatpush3.bf16.msra.mxu0 %v7894_v53 }
 0x712   :  { %7252 = vmatprep.subr.bf16.mxu0 %v10668_v9 }
 0x715   :  { %7253 = vmatpush3.bf16.msra.mxu0 %v7895_v3 }
 0x716   :  { %7258 = vmatprep.subr.bf16.mxu0 %v10668_v9 }
 0x718   :  { %7255 = vmatmul.mubr.msk.bf16.vlgmr.msra.gmra.mrb[128].mxu0 %vm37_vm2, %v5117_v29 }
 0x719   :  { %7262 = vmatprep.mubr.msk.bf16.mxu0 %vm7902_vm0, %v10668_v9  ;;  %7259 = vmatpush3.bf16.msra.mxu0 %v7896_v41 }
 0x71a   :  { %7260 = vmatprep.subr.bf16.mxu0 %v10668_v9 }
 0x71d   :  { %7261 = vmatpush3.bf16.msra.mxu0 %v7897_v7 }
 0x72b   :  { %v6742_v24 = vpop.f32.mrb[108].mxu0 }
 0x72c   :  { %v6743_v22 = vpop.f32.mrb[109].mxu0 }
 0x72d   :  { %v6744_v5 = vadd.f32 %v6743_v22, %v6742_v24  ;;  %v6745_v12 = vpop.f32.mrb[110].mxu0 }
 0x72e   :  { %v6746_v52 = vpop.f32.mrb[111].mxu0 }
 0x72f   :  { %v6004_v32 = vadd.f32 %v6744_v5, %v5963_v0  ;;  %v6747_v45 = vadd.f32 %v6746_v52, %v6745_v12 }
 0x731   :  { %v6007_v26 = vadd.f32 %v6747_v45, %v5966_v49 }
 0x75b   :  { %v6764_v20 = vpop.f32.mrb[112].mxu0 }
 0x75c   :  { %v6765_v48 = vpop.f32.mrb[113].mxu0 }
 0x75d   :  { %v6766_v63 = vadd.f32 %v6765_v48, %v6764_v20  ;;  %v6767_v4 = vpop.f32.mrb[114].mxu0 }
 0x75e   :  { %v6768_v2 = vpop.f32.mrb[115].mxu0 }
 0x75f   :  { %v6045_v23 = vadd.f32 %v6766_v63, %v6004_v32  ;;  %v6769_v47 = vadd.f32 %v6768_v2, %v6767_v4 }
 0x761   :  { %v6048_v56 = vadd.f32 %v6769_v47, %v6007_v26 }
 0x78b   :  { %v6786_v27 = vpop.f32.mrb[116].mxu0 }
 0x78c   :  { %v6787_v40 = vpop.f32.mrb[117].mxu0 }
 0x78d   :  { %v6788_v57 = vadd.f32 %v6787_v40, %v6786_v27  ;;  %v6789_v50 = vpop.f32.mrb[118].mxu0 }
 0x78e   :  { %v6790_v10 = vpop.f32.mrb[119].mxu0 }
 0x78f   :  { %v6086_v11 = vadd.f32 %v6788_v57, %v6045_v23  ;;  %v6791_v44 = vadd.f32 %v6790_v10, %v6789_v50 }
 0x791   :  { %v6089_v34 = vadd.f32 %v6791_v44, %v6048_v56 }
 0x7ab   :  { %v6808_v14 = vpop.f32.mrb[120].mxu0 }
 0x7ac   :  { %v6809_v61 = vpop.f32.mrb[121].mxu0 }
 0x7ad   :  { %v6810_v51 = vadd.f32 %v6809_v61, %v6808_v14  ;;  %v6811_v54 = vpop.f32.mrb[122].mxu0 }
 0x7ae   :  { %v6812_v17 = vpop.f32.mrb[123].mxu0 }
 0x7af   :  { %v6127_v13 = vadd.f32 %v6810_v51, %v6086_v11  ;;  %v6813_v9 = vadd.f32 %v6812_v17, %v6811_v54 }
 0x7b1   :  { %v6130_v15 = vadd.f32 %v6813_v9, %v6089_v34 }
 0x7db   :  { %v6830_v37 = vpop.f32.mrb[124].mxu0 }
 0x7dc   :  { %v6831_v38 = vpop.f32.mrb[125].mxu0 }
 0x7dd   :  { %v6832_v21 = vadd.f32 %v6831_v38, %v6830_v37  ;;  %v6833_v16 = vpop.f32.mrb[126].mxu0 }
 0x7de   :  { %v6834_v33 = vpop.f32.mrb[127].mxu0 }
 0x7df   :  { %v6835_v35 = vadd.f32 %v6834_v33, %v6833_v16  ;;  %v6168_v39 = vadd.f32 %v6832_v21, %v6127_v13 }
 0x7e1   :  { %v6171_v31 = vadd.f32 %v6835_v35, %v6130_v15 }
 0x7eb   :  { %v6208_v59 = vpop.f32.mrb[128].mxu0 }
 0x7ec   :  { %v6209_v30 = vadd.f32 %v6208_v59, %v6168_v39  ;;  %v7256_v55 = vpop.f32.mrb[129].mxu0 }
 0x7ed   :  { %v6211_v58 = vpop.f32.mrb[130].mxu0 }
 0x7ee   :  { %v6212_v43 = vadd.f32 %v6211_v58, %v6171_v31  ;;  %v7257_v42 = vpop.f32.mrb[131].mxu0  ;;  %v6215_v46 = vmax.f32 %v6209_v30, 0.0 }
 0x7f0   :  { %v6216_v36 = vmax.f32 %v6212_v43, 0.0 }
 0x7f2   :  { %v6217_v18 = vpack.c.bf16 %v6216_v36, %v6215_v46 }
 0x7f4   :  { %7263 = vmatmul.mubr.msk.bf16.vlgmr.msra.gmra.mrb[132].mxu0 %vm6241_vm4, %v6217_v18 }
 0x8c7   :  { %v6279_v8 = vpop.f32.mrb[132].mxu0 }
 0x8c8   :  { %v7264_v25 = vpop.f32.mrb[133].mxu0  ;;  %v6280_v62 = vadd.f32 %v6588_v19, %v6279_v8 }
 0x8c9   :  { %v6282_v28 = vpop.f32.mrb[134].mxu0 }
 0x8ca   :  { %v6283_v1 = vadd.f32 %v6588_v19, %v6282_v28  ;;  %v7265_v60 = vpop.f32.mrb[135].mxu0 }
 0x8cc   :  { %v6599_v53 = vpack.c.bf16 %v6283_v1, %v6280_v62 }
 0x8ce   :  { %6600 = vst [vmem:[%s10567_s9] sm:$0xff] %v6599_v53  }

</bundles_post_ra>
